<compile_context>
chip_gen: v7x
topology: tpu7x:2x2x1
jax: 0.10.0
libtpu: 0.0.40
codegen_flags: <defaults>
</compile_context>

<pallas_src>
import functools

import jax
import jax.numpy as jnp
from jax.experimental import pallas as pl
from jax.experimental.pallas import tpu as pltpu


# ----------------------------------------------------------------------------
# Fused whole-network kernel
# ----------------------------------------------------------------------------
def _silu(v):
    # SiLU = v * sigmoid(v); exp and the reciprocal both land on the EUP slot.
    return v * pl.reciprocal(1.0 + jnp.exp(-v), approx=True)


def _critic_kernel(
    x1_ref,      # (16*Bp, 2048) bf16  conv1 im2col; rows (oh2,ow2,b),
                 #                     cols (pair j2, s, (kh1,kw1,ci) pad 108->128)
    act_ref,     # (Bp, A)       bf16  action (batch-padded)
    w1_ref,      # (256, 128)    bf16  block-diagonal conv1 weight (two 108x64 blocks)
    w2_hbm,      # (1024, 128)   bf16  HBM: conv2 weight, rows (kh2,kw2,ci)
    w3_hbm,      # (2048, 256)   bf16  HBM: conv3 weight, rows (kh3,kw3,ci)
    b3_ref,      # (1, 256)      f32
    wfcf_ref,    # (256, 128)    bf16  fc weight, feature part
    wfca_ref,    # (A, 128)      bf16  fc weight, action part
    bfc_ref,     # (1, 128)      f32
    wout_ref,    # (1, 128)      f32
    bout_ref,    # (1, 1)        f32
    o_ref,       # (Bp, 1)       f32   output Q-values
    z_buf,       # scratch (16*Bp, 1024) bf16   conv2 im2col buffer
    x3_buf,      # scratch (Bp, 2048)    bf16   conv3 im2col buffer
    w2_vm,       # scratch (1024, 128)   bf16
    w3_vm,       # scratch (2048, 256)   bf16
    dma_sem,     # scratch DMA semaphores (2,)
    *, n_real, n_pad, eps,
):
    # Kick off the big weight DMAs; they overlap conv1/BN1 (and conv2) compute.
    cp_w2 = pltpu.make_async_copy(w2_hbm, w2_vm, dma_sem.at[0])
    cp_w3 = pltpu.make_async_copy(w3_hbm, w3_vm, dma_sem.at[1])
    cp_w2.start()
    cp_w3.start()

    rows = 16 * n_pad  # rows of z_buf: (oh2, ow2, b) with b batch-padded

    # ---- conv1: 8 block-diagonal pair matmuls, streamed into z_buf ----------
    # Output lanes 0:64 = conv1 channels for chunk (kh2,kw2)=2*j2, lanes 64:128
    # for chunk 2*j2+1, so stores are full 128-lane aligned and z_buf columns
    # are exactly conv2's (kh2,kw2,ci) im2col layout.  conv1/conv2 biases are
    # dropped (they cancel exactly against the BatchNorm mean subtraction).
    s1 = jnp.zeros((1, 128), jnp.float32)
    q1 = jnp.zeros((1, 128), jnp.float32)
    for j2 in range(8):
        z = jnp.dot(x1_ref[:, j2 * 256:(j2 + 1) * 256], w1_ref[...],
                    preferred_element_type=jnp.float32)           # (rows, 128)
        s1 = s1 + jnp.sum(z, axis=0, keepdims=True)
        q1 = q1 + jnp.sum(z * z, axis=0, keepdims=True)
        z_buf[:, j2 * 128:(j2 + 1) * 128] = z.astype(jnp.bfloat16)

    # Fold the two 64-lane halves (same 64 conv1 channels, even/odd chunks).
    n1 = jnp.float32(256 * n_real)
    m64 = (s1[:, :64] + s1[:, 64:]) / n1
    e64 = (q1[:, :64] + q1[:, 64:]) / n1
    v64 = jnp.maximum(e64 - m64 * m64, 0.0)
    i64 = jax.lax.rsqrt(v64 + eps)
    m128 = jnp.concatenate([m64, m64], axis=1)                    # packed layout
    i128 = jnp.concatenate([i64, i64], axis=1)

    if n_real != n_pad:
        rid = jax.lax.broadcasted_iota(jnp.int32, (rows, 1), 0)
        live = ((rid % n_pad) < n_real).astype(jnp.float32)       # (rows, 1)
    else:
        live = None

    # ---- BN1 (train, gamma=1/beta=0) + SiLU, in place over z_buf ------------
    for j2 in range(8):
        zb = z_buf[:, j2 * 128:(j2 + 1) * 128].astype(jnp.float32)
        zb = _silu((zb - m128) * i128)
        if live is not None:
            zb = zb * live          # zero padded-batch rows so BN2 stays clean
        z_buf[:, j2 * 128:(j2 + 1) * 128] = zb.astype(jnp.bfloat16)

    # ---- conv2 (im2col matmul) + BN2 + SiLU ---------------------------------
    cp_w2.wait()
    z2 = jnp.dot(z_buf[...], w2_vm[...],
                 preferred_element_type=jnp.float32)              # (rows, 128)
    n2 = jnp.float32(16 * n_real)
    m2 = jnp.sum(z2, axis=0, keepdims=True) / n2
    v2 = jnp.maximum(jnp.sum(z2 * z2, axis=0, keepdims=True) / n2 - m2 * m2, 0.0)
    y2 = _silu((z2 - m2) * jax.lax.rsqrt(v2 + eps))               # f32 (rows, 128)

    # Repack rows (p=oh2*4+ow2, b) into per-batch lanes for the full-window
    # conv3.  n_pad is a multiple of 8 so every slice is sublane-tile aligned.
    for p in range(16):
        x3_buf[:, p * 128:(p + 1) * 128] = (
            y2[p * n_pad:(p + 1) * n_pad, :].astype(jnp.bfloat16))

    # ---- conv3 (+ bias) + SiLU ----------------------------------------------
    cp_w3.wait()
    y3 = jnp.dot(x3_buf[...], w3_vm[...],
                 preferred_element_type=jnp.float32)              # (Bp, 256)
    y3 = _silu(y3 + b3_ref[...])

    # ---- fc over [features | action] (split weights: no concat) + SiLU ------
    h = (jnp.dot(y3.astype(jnp.bfloat16), wfcf_ref[...],
                 preferred_element_type=jnp.float32)
         + jnp.dot(act_ref[...], wfca_ref[...],
                   preferred_element_type=jnp.float32)
         + bfc_ref[...])
    h = _silu(h)                                                  # (Bp, 128)

    # ---- out: (Bp,128) x (128,1) done as a lane reduction -------------------
    q = jnp.sum(h * wout_ref[...], axis=1, keepdims=True) + bout_ref[...]
    o_ref[...] = q.astype(o_ref.dtype)


def critic_pallas(x1p, action, params, n_real, n_pad):
    kernel = functools.partial(_critic_kernel, n_real=n_real, n_pad=n_pad, eps=1e-5)
    a_dim = action.shape[1]
    vmem = pl.BlockSpec(memory_space=pltpu.MemorySpace.VMEM)
    hbm = pl.BlockSpec(memory_space=pl.ANY)

    operands = (x1p, action,
                params["w1bd"], params["w2"], params["w3"], params["b3"],
                params["wfc_feat"], params["wfc_act"], params["bfc"],
                params["wout"], params["bout"])

    flops = 2 * n_pad * (16 * 256 * 128 * 8     # conv1 (block-diag pairs)
                         + 16 * 1024 * 128      # conv2
                         + 2048 * 256           # conv3
                         + (256 + a_dim) * 128  # fc
                         + 128)                 # out
    transcendentals = n_pad * (16 * 1024 + 16 * 128 + 256 + 128)
    bytes_accessed = sum(int(o.size) * o.dtype.itemsize for o in operands) + n_pad * 4

    return pl.pallas_call(
        kernel,
        out_shape=jax.ShapeDtypeStruct((n_pad, 1), jnp.float32),
        in_specs=[vmem, vmem, vmem, hbm, hbm, vmem, vmem, vmem, vmem, vmem, vmem],
        out_specs=vmem,
        scratch_shapes=[
            pltpu.VMEM((16 * n_pad, 1024), jnp.bfloat16),  # z_buf (conv2 im2col)
            pltpu.VMEM((n_pad, 2048), jnp.bfloat16),       # x3_buf (conv3 im2col)
            pltpu.VMEM((1024, 128), jnp.bfloat16),         # w2 landing buffer
            pltpu.VMEM((2048, 256), jnp.bfloat16),         # w3 landing buffer
            pltpu.SemaphoreType.DMA((2,)),
        ],
        compiler_params=pltpu.CompilerParams(vmem_limit_bytes=32 * 1024 * 1024),
        cost_estimate=pl.CostEstimate(flops=flops,
                                      transcendentals=transcendentals,
                                      bytes_accessed=bytes_accessed),
    )(*operands)


# ----------------------------------------------------------------------------
# Wrapper-side glue (pure XLA): NCHW -> bf16 conv1 patch matrix with the
# row/column ordering the kernel expects; batch padded to a multiple of 8.
# ----------------------------------------------------------------------------
def build_conv1_patches(state_nchw, n_pad):
    B, C, H, W = state_nchw.shape
    assert (C, H, W) == (3, 96, 96), (C, H, W)
    if n_pad != B:
        state_nchw = jnp.pad(state_nchw, ((0, n_pad - B), (0, 0), (0, 0), (0, 0)))
    x = jnp.transpose(state_nchw, (0, 2, 3, 1))        # (Bp,96,96,3) NHWC
    # 96 = oh2(4) * kh2(4) * kh1(6): conv1 output index h1 = 4*oh2 + kh2.
    x = x.reshape(n_pad, 4, 4, 6, 4, 4, 6, 3)          # (b,oh2,kh2,kh1,ow2,kw2,kw1,ci)
    x = jnp.transpose(x, (1, 4, 0, 2, 5, 3, 6, 7))     # (oh2,ow2,b,kh2,kw2,kh1,kw1,ci)
    x = x.reshape(16 * n_pad, 16, 108)                 # rows=(oh2,ow2,b); chunk j=(kh2,kw2)
    x = jnp.pad(x, ((0, 0), (0, 0), (0, 20)))          # K: 108 -> 128
    return x.reshape(16 * n_pad, 2048).astype(jnp.bfloat16)


def torch_conv_w_to_mat(w_oihw):
    """(Cout, Cin, kh, kw) torch conv weight -> (kh*kw*Cin, Cout) matmul weight."""
    cout, cin, kh, kw = w_oihw.shape
    return jnp.transpose(w_oihw, (2, 3, 1, 0)).reshape(kh * kw * cin, cout)


# ----------------------------------------------------------------------------
# Parameter construction (deterministic, mirrors the torch init scheme)
# ----------------------------------------------------------------------------
def _uniform(key, shape, lim):
    return jax.random.uniform(key, shape, jnp.float32, -lim, lim)


def init_params(key, action_dim):
    ks = jax.random.split(key, 10)
    # hidden_init uses weight.size(0) = out_channels / out_features
    w1 = _uniform(ks[0], (64, 3, 6, 6), 1.0 / jnp.sqrt(64.0))
    w2 = _uniform(ks[2], (128, 64, 4, 4), 1.0 / jnp.sqrt(128.0))
    w3 = _uniform(ks[4], (256, 128, 4, 4), 1.0 / jnp.sqrt(256.0))
    b3 = _uniform(ks[5], (256,), 1.0 / jnp.sqrt(128.0 * 4 * 4))
    wfc = _uniform(ks[6], (128, 256 + action_dim), 1.0 / jnp.sqrt(128.0))
    bfc = _uniform(ks[7], (128,), 1.0 / jnp.sqrt(256.0 + action_dim))
    wout = _uniform(ks[8], (1, 128), 0.003)
    bout = _uniform(ks[9], (1,), 1.0 / jnp.sqrt(128.0))

    p = {}
    # conv1: block-diagonal (256,128) bf16 so each (kh2,kw2)-chunk PAIR lands
    # directly in the packed 1024-wide conv2 layout; bias dropped (cancelled by BN1).
    w1m = torch_conv_w_to_mat(w1)                                  # (108, 64)
    w1bd = jnp.zeros((256, 128), jnp.float32)
    w1bd = w1bd.at[:108, :64].set(w1m)
    w1bd = w1bd.at[128:236, 64:].set(w1m)
    p["w1bd"] = w1bd.astype(jnp.bfloat16)
    # conv2: un-padded (1024,128); bias dropped (cancelled by BN2).
    p["w2"] = torch_conv_w_to_mat(w2).astype(jnp.bfloat16)         # (1024, 128)
    # conv3
    p["w3"] = torch_conv_w_to_mat(w3).astype(jnp.bfloat16)         # (2048, 256)
    p["b3"] = b3.reshape(1, 256)
    # fc split into feature / action parts (no runtime concat)
    wfc_t = wfc.T                                                  # (256+A, 128)
    p["wfc_feat"] = wfc_t[:256, :].astype(jnp.bfloat16)
    p["wfc_act"] = wfc_t[256:, :].astype(jnp.bfloat16)
    p["bfc"] = bfc.reshape(1, 128)
    # out (kept f32: tiny)
    p["wout"] = wout                                               # (1, 128)
    p["bout"] = bout.reshape(1, 1)
    return p


# ----------------------------------------------------------------------------
# Forward pass (matches Critic.forward semantics; BatchNorm in train mode)
# ----------------------------------------------------------------------------
@jax.jit
def critic_forward(state_nchw, action, params):
    B = state_nchw.shape[0]
    n_pad = ((B + 7) // 8) * 8                       # sublane-tile aligned batch
    x1p = build_conv1_patches(state_nchw, n_pad)     # (16*Bp, 2048) bf16
    act = action
    if n_pad != B:
        act = jnp.pad(act, ((0, n_pad - B), (0, 0)))
    act = act.astype(jnp.bfloat16)
    q = critic_pallas(x1p, act, params, B, n_pad)    # (Bp, 1)
    return q[:B]


if __name__ == "__main__":
    key = jax.random.PRNGKey(0)
    k_state, k_action, k_params = jax.random.split(key, 3)

    B, action_dim = 2, 4
    # fc is (256 + action_dim) -> 128, which forces the conv stack to collapse
    # to 256 features, implying a 96x96 input image.
    state = jax.random.normal(k_state, (B, 3, 96, 96), jnp.float32)
    action = jax.random.normal(k_action, (B, action_dim), jnp.float32)

    params = init_params(k_params, action_dim)

    q = critic_forward(state, action, params)
    jax.block_until_ready(q)
    assert q.shape == (B, 1), q.shape
    print("KERNEL_OK")
</pallas_src>

<mosaic_0001>
module attributes {stable_mosaic.version = 11 : i64} {
  func.func @_critic_kernel(%arg0: memref<128x2048xbf16, #tpu.memory_space<vmem>>, %arg1: memref<8x4xbf16, #tpu.memory_space<vmem>>, %arg2: memref<256x128xbf16, #tpu.memory_space<vmem>>, %arg3: memref<1024x128xbf16, #tpu.memory_space<any>>, %arg4: memref<2048x256xbf16, #tpu.memory_space<any>>, %arg5: memref<1x256xf32, #tpu.memory_space<vmem>>, %arg6: memref<256x128xbf16, #tpu.memory_space<vmem>>, %arg7: memref<4x128xbf16, #tpu.memory_space<vmem>>, %arg8: memref<1x128xf32, #tpu.memory_space<vmem>>, %arg9: memref<1x128xf32, #tpu.memory_space<vmem>>, %arg10: memref<1x1xf32, #tpu.memory_space<vmem>>, %arg11: memref<8x1xf32, #tpu.memory_space<vmem>>, %arg12: memref<128x1024xbf16, #tpu.memory_space<vmem>>, %arg13: memref<8x2048xbf16, #tpu.memory_space<vmem>>, %arg14: memref<1024x128xbf16, #tpu.memory_space<vmem>>, %arg15: memref<2048x256xbf16, #tpu.memory_space<vmem>>, %arg16: memref<2x!tpu.dma_semaphore, #tpu.memory_space<semaphore_mem>>) attributes {dimension_semantics = [], scalar_prefetch = 0 : i64, scratch_operands = 5 : i64, tpu.core_type = #tpu.core_type<tc>} {
    %c0_i32 = arith.constant 0 : i32
    %0 = tpu.memref_slice %arg16[%c0_i32] : memref<2x!tpu.dma_semaphore, #tpu.memory_space<semaphore_mem>> -> memref<1x!tpu.dma_semaphore, #tpu.memory_space<semaphore_mem>>
    %1 = tpu.memref_squeeze %0 : memref<1x!tpu.dma_semaphore, #tpu.memory_space<semaphore_mem>> -> memref<!tpu.dma_semaphore, #tpu.memory_space<semaphore_mem>>
    tpu.enqueue_dma source(%arg3 : memref<1024x128xbf16, #tpu.memory_space<any>>) target(%arg14 : memref<1024x128xbf16, #tpu.memory_space<vmem>>) target_semaphore(%1 : memref<!tpu.dma_semaphore, #tpu.memory_space<semaphore_mem>>)
    %c1_i32 = arith.constant 1 : i32
    %2 = tpu.memref_slice %arg16[%c1_i32] : memref<2x!tpu.dma_semaphore, #tpu.memory_space<semaphore_mem>> -> memref<1x!tpu.dma_semaphore, #tpu.memory_space<semaphore_mem>>
    %3 = tpu.memref_squeeze %2 : memref<1x!tpu.dma_semaphore, #tpu.memory_space<semaphore_mem>> -> memref<!tpu.dma_semaphore, #tpu.memory_space<semaphore_mem>>
    tpu.enqueue_dma source(%arg4 : memref<2048x256xbf16, #tpu.memory_space<any>>) target(%arg15 : memref<2048x256xbf16, #tpu.memory_space<vmem>>) target_semaphore(%3 : memref<!tpu.dma_semaphore, #tpu.memory_space<semaphore_mem>>)
    %cst = arith.constant 0.000000e+00 : f32
    %4 = vector.broadcast %cst : f32 to vector<1x128xf32>
    %cst_0 = arith.constant 0.000000e+00 : f32
    %5 = vector.broadcast %cst_0 : f32 to vector<1x128xf32>
    %c0 = arith.constant 0 : index
    %c0_1 = arith.constant 0 : index
    %6 = vector.load %arg0[%c0, %c0_1] : memref<128x2048xbf16, #tpu.memory_space<vmem>>, vector<128x256xbf16>
    %c0_2 = arith.constant 0 : index
    %c0_3 = arith.constant 0 : index
    %7 = vector.load %arg2[%c0_2, %c0_3] : memref<256x128xbf16, #tpu.memory_space<vmem>>, vector<256x128xbf16>
    %cst_4 = arith.constant dense<0.000000e+00> : vector<128x128xf32>
    %8 = tpu.matmul %6, %7, %cst_4 {dimension_numbers = #tpu.dot_dimension_numbers<[1], [0], [0], [1], [0, 0, 1, 1], [], []>} : vector<128x256xbf16>, vector<256x128xbf16>, vector<128x128xf32> -> vector<128x128xf32>
    %cst_5 = arith.constant dense<0.000000e+00> : vector<128xf32>
    %9 = vector.multi_reduction <add>, %8, %cst_5 [0] : vector<128x128xf32> to vector<128xf32>
    %10 = vector.shape_cast %9 : vector<128xf32> to vector<1x128xf32>
    %11 = arith.addf %4, %10 : vector<1x128xf32>
    %12 = arith.mulf %8, %8 : vector<128x128xf32>
    %cst_6 = arith.constant dense<0.000000e+00> : vector<128xf32>
    %13 = vector.multi_reduction <add>, %12, %cst_6 [0] : vector<128x128xf32> to vector<128xf32>
    %14 = vector.shape_cast %13 : vector<128xf32> to vector<1x128xf32>
    %15 = arith.addf %5, %14 : vector<1x128xf32>
    %16 = arith.truncf %8 : vector<128x128xf32> to vector<128x128xbf16>
    %c0_7 = arith.constant 0 : index
    %c0_8 = arith.constant 0 : index
    %17 = vector.load %arg12[%c0_7, %c0_8] : memref<128x1024xbf16, #tpu.memory_space<vmem>>, vector<128x128xbf16>
    tpu.vector_store %arg12[%c0_7, %c0_8], %16 {strides = array<i32>} : memref<128x1024xbf16, #tpu.memory_space<vmem>>, vector<128x128xbf16>,
    %c0_9 = arith.constant 0 : index
    %c256 = arith.constant 256 : index
    %18 = vector.load %arg0[%c0_9, %c256] : memref<128x2048xbf16, #tpu.memory_space<vmem>>, vector<128x256xbf16>
    %c0_10 = arith.constant 0 : index
    %c0_11 = arith.constant 0 : index
    %19 = vector.load %arg2[%c0_10, %c0_11] : memref<256x128xbf16, #tpu.memory_space<vmem>>, vector<256x128xbf16>
    %cst_12 = arith.constant dense<0.000000e+00> : vector<128x128xf32>
    %20 = tpu.matmul %18, %19, %cst_12 {dimension_numbers = #tpu.dot_dimension_numbers<[1], [0], [0], [1], [0, 0, 1, 1], [], []>} : vector<128x256xbf16>, vector<256x128xbf16>, vector<128x128xf32> -> vector<128x128xf32>
    %cst_13 = arith.constant dense<0.000000e+00> : vector<128xf32>
    %21 = vector.multi_reduction <add>, %20, %cst_13 [0] : vector<128x128xf32> to vector<128xf32>
    %22 = vector.shape_cast %21 : vector<128xf32> to vector<1x128xf32>
    %23 = arith.addf %11, %22 : vector<1x128xf32>
    %24 = arith.mulf %20, %20 : vector<128x128xf32>
    %cst_14 = arith.constant dense<0.000000e+00> : vector<128xf32>
    %25 = vector.multi_reduction <add>, %24, %cst_14 [0] : vector<128x128xf32> to vector<128xf32>
    %26 = vector.shape_cast %25 : vector<128xf32> to vector<1x128xf32>
    %27 = arith.addf %15, %26 : vector<1x128xf32>
    %28 = arith.truncf %20 : vector<128x128xf32> to vector<128x128xbf16>
    %c0_15 = arith.constant 0 : index
    %c128 = arith.constant 128 : index
    %29 = vector.load %arg12[%c0_15, %c128] : memref<128x1024xbf16, #tpu.memory_space<vmem>>, vector<128x128xbf16>
    tpu.vector_store %arg12[%c0_15, %c128], %28 {strides = array<i32>} : memref<128x1024xbf16, #tpu.memory_space<vmem>>, vector<128x128xbf16>,
    %c0_16 = arith.constant 0 : index
    %c512 = arith.constant 512 : index
    %30 = vector.load %arg0[%c0_16, %c512] : memref<128x2048xbf16, #tpu.memory_space<vmem>>, vector<128x256xbf16>
    %c0_17 = arith.constant 0 : index
    %c0_18 = arith.constant 0 : index
    %31 = vector.load %arg2[%c0_17, %c0_18] : memref<256x128xbf16, #tpu.memory_space<vmem>>, vector<256x128xbf16>
    %cst_19 = arith.constant dense<0.000000e+00> : vector<128x128xf32>
    %32 = tpu.matmul %30, %31, %cst_19 {dimension_numbers = #tpu.dot_dimension_numbers<[1], [0], [0], [1], [0, 0, 1, 1], [], []>} : vector<128x256xbf16>, vector<256x128xbf16>, vector<128x128xf32> -> vector<128x128xf32>
    %cst_20 = arith.constant dense<0.000000e+00> : vector<128xf32>
    %33 = vector.multi_reduction <add>, %32, %cst_20 [0] : vector<128x128xf32> to vector<128xf32>
    %34 = vector.shape_cast %33 : vector<128xf32> to vector<1x128xf32>
    %35 = arith.addf %23, %34 : vector<1x128xf32>
    %36 = arith.mulf %32, %32 : vector<128x128xf32>
    %cst_21 = arith.constant dense<0.000000e+00> : vector<128xf32>
    %37 = vector.multi_reduction <add>, %36, %cst_21 [0] : vector<128x128xf32> to vector<128xf32>
    %38 = vector.shape_cast %37 : vector<128xf32> to vector<1x128xf32>
    %39 = arith.addf %27, %38 : vector<1x128xf32>
    %40 = arith.truncf %32 : vector<128x128xf32> to vector<128x128xbf16>
    %c0_22 = arith.constant 0 : index
    %c256_23 = arith.constant 256 : index
    %41 = vector.load %arg12[%c0_22, %c256_23] : memref<128x1024xbf16, #tpu.memory_space<vmem>>, vector<128x128xbf16>
    tpu.vector_store %arg12[%c0_22, %c256_23], %40 {strides = array<i32>} : memref<128x1024xbf16, #tpu.memory_space<vmem>>, vector<128x128xbf16>,
    %c0_24 = arith.constant 0 : index
    %c768 = arith.constant 768 : index
    %42 = vector.load %arg0[%c0_24, %c768] : memref<128x2048xbf16, #tpu.memory_space<vmem>>, vector<128x256xbf16>
    %c0_25 = arith.constant 0 : index
    %c0_26 = arith.constant 0 : index
    %43 = vector.load %arg2[%c0_25, %c0_26] : memref<256x128xbf16, #tpu.memory_space<vmem>>, vector<256x128xbf16>
    %cst_27 = arith.constant dense<0.000000e+00> : vector<128x128xf32>
    %44 = tpu.matmul %42, %43, %cst_27 {dimension_numbers = #tpu.dot_dimension_numbers<[1], [0], [0], [1], [0, 0, 1, 1], [], []>} : vector<128x256xbf16>, vector<256x128xbf16>, vector<128x128xf32> -> vector<128x128xf32>
    %cst_28 = arith.constant dense<0.000000e+00> : vector<128xf32>
    %45 = vector.multi_reduction <add>, %44, %cst_28 [0] : vector<128x128xf32> to vector<128xf32>
    %46 = vector.shape_cast %45 : vector<128xf32> to vector<1x128xf32>
    %47 = arith.addf %35, %46 : vector<1x128xf32>
    %48 = arith.mulf %44, %44 : vector<128x128xf32>
    %cst_29 = arith.constant dense<0.000000e+00> : vector<128xf32>
    %49 = vector.multi_reduction <add>, %48, %cst_29 [0] : vector<128x128xf32> to vector<128xf32>
    %50 = vector.shape_cast %49 : vector<128xf32> to vector<1x128xf32>
    %51 = arith.addf %39, %50 : vector<1x128xf32>
    %52 = arith.truncf %44 : vector<128x128xf32> to vector<128x128xbf16>
    %c0_30 = arith.constant 0 : index
    %c384 = arith.constant 384 : index
    %53 = vector.load %arg12[%c0_30, %c384] : memref<128x1024xbf16, #tpu.memory_space<vmem>>, vector<128x128xbf16>
    tpu.vector_store %arg12[%c0_30, %c384], %52 {strides = array<i32>} : memref<128x1024xbf16, #tpu.memory_space<vmem>>, vector<128x128xbf16>,
    %c0_31 = arith.constant 0 : index
    %c1024 = arith.constant 1024 : index
    %54 = vector.load %arg0[%c0_31, %c1024] : memref<128x2048xbf16, #tpu.memory_space<vmem>>, vector<128x256xbf16>
    %c0_32 = arith.constant 0 : index
    %c0_33 = arith.constant 0 : index
    %55 = vector.load %arg2[%c0_32, %c0_33] : memref<256x128xbf16, #tpu.memory_space<vmem>>, vector<256x128xbf16>
    %cst_34 = arith.constant dense<0.000000e+00> : vector<128x128xf32>
    %56 = tpu.matmul %54, %55, %cst_34 {dimension_numbers = #tpu.dot_dimension_numbers<[1], [0], [0], [1], [0, 0, 1, 1], [], []>} : vector<128x256xbf16>, vector<256x128xbf16>, vector<128x128xf32> -> vector<128x128xf32>
    %cst_35 = arith.constant dense<0.000000e+00> : vector<128xf32>
    %57 = vector.multi_reduction <add>, %56, %cst_35 [0] : vector<128x128xf32> to vector<128xf32>
    %58 = vector.shape_cast %57 : vector<128xf32> to vector<1x128xf32>
    %59 = arith.addf %47, %58 : vector<1x128xf32>
    %60 = arith.mulf %56, %56 : vector<128x128xf32>
    %cst_36 = arith.constant dense<0.000000e+00> : vector<128xf32>
    %61 = vector.multi_reduction <add>, %60, %cst_36 [0] : vector<128x128xf32> to vector<128xf32>
    %62 = vector.shape_cast %61 : vector<128xf32> to vector<1x128xf32>
    %63 = arith.addf %51, %62 : vector<1x128xf32>
    %64 = arith.truncf %56 : vector<128x128xf32> to vector<128x128xbf16>
    %c0_37 = arith.constant 0 : index
    %c512_38 = arith.constant 512 : index
    %65 = vector.load %arg12[%c0_37, %c512_38] : memref<128x1024xbf16, #tpu.memory_space<vmem>>, vector<128x128xbf16>
    tpu.vector_store %arg12[%c0_37, %c512_38], %64 {strides = array<i32>} : memref<128x1024xbf16, #tpu.memory_space<vmem>>, vector<128x128xbf16>,
    %c0_39 = arith.constant 0 : index
    %c1280 = arith.constant 1280 : index
    %66 = vector.load %arg0[%c0_39, %c1280] : memref<128x2048xbf16, #tpu.memory_space<vmem>>, vector<128x256xbf16>
    %c0_40 = arith.constant 0 : index
    %c0_41 = arith.constant 0 : index
    %67 = vector.load %arg2[%c0_40, %c0_41] : memref<256x128xbf16, #tpu.memory_space<vmem>>, vector<256x128xbf16>
    %cst_42 = arith.constant dense<0.000000e+00> : vector<128x128xf32>
    %68 = tpu.matmul %66, %67, %cst_42 {dimension_numbers = #tpu.dot_dimension_numbers<[1], [0], [0], [1], [0, 0, 1, 1], [], []>} : vector<128x256xbf16>, vector<256x128xbf16>, vector<128x128xf32> -> vector<128x128xf32>
    %cst_43 = arith.constant dense<0.000000e+00> : vector<128xf32>
    %69 = vector.multi_reduction <add>, %68, %cst_43 [0] : vector<128x128xf32> to vector<128xf32>
    %70 = vector.shape_cast %69 : vector<128xf32> to vector<1x128xf32>
    %71 = arith.addf %59, %70 : vector<1x128xf32>
    %72 = arith.mulf %68, %68 : vector<128x128xf32>
    %cst_44 = arith.constant dense<0.000000e+00> : vector<128xf32>
    %73 = vector.multi_reduction <add>, %72, %cst_44 [0] : vector<128x128xf32> to vector<128xf32>
    %74 = vector.shape_cast %73 : vector<128xf32> to vector<1x128xf32>
    %75 = arith.addf %63, %74 : vector<1x128xf32>
    %76 = arith.truncf %68 : vector<128x128xf32> to vector<128x128xbf16>
    %c0_45 = arith.constant 0 : index
    %c640 = arith.constant 640 : index
    %77 = vector.load %arg12[%c0_45, %c640] : memref<128x1024xbf16, #tpu.memory_space<vmem>>, vector<128x128xbf16>
    tpu.vector_store %arg12[%c0_45, %c640], %76 {strides = array<i32>} : memref<128x1024xbf16, #tpu.memory_space<vmem>>, vector<128x128xbf16>,
    %c0_46 = arith.constant 0 : index
    %c1536 = arith.constant 1536 : index
    %78 = vector.load %arg0[%c0_46, %c1536] : memref<128x2048xbf16, #tpu.memory_space<vmem>>, vector<128x256xbf16>
    %c0_47 = arith.constant 0 : index
    %c0_48 = arith.constant 0 : index
    %79 = vector.load %arg2[%c0_47, %c0_48] : memref<256x128xbf16, #tpu.memory_space<vmem>>, vector<256x128xbf16>
    %cst_49 = arith.constant dense<0.000000e+00> : vector<128x128xf32>
    %80 = tpu.matmul %78, %79, %cst_49 {dimension_numbers = #tpu.dot_dimension_numbers<[1], [0], [0], [1], [0, 0, 1, 1], [], []>} : vector<128x256xbf16>, vector<256x128xbf16>, vector<128x128xf32> -> vector<128x128xf32>
    %cst_50 = arith.constant dense<0.000000e+00> : vector<128xf32>
    %81 = vector.multi_reduction <add>, %80, %cst_50 [0] : vector<128x128xf32> to vector<128xf32>
    %82 = vector.shape_cast %81 : vector<128xf32> to vector<1x128xf32>
    %83 = arith.addf %71, %82 : vector<1x128xf32>
    %84 = arith.mulf %80, %80 : vector<128x128xf32>
    %cst_51 = arith.constant dense<0.000000e+00> : vector<128xf32>
    %85 = vector.multi_reduction <add>, %84, %cst_51 [0] : vector<128x128xf32> to vector<128xf32>
    %86 = vector.shape_cast %85 : vector<128xf32> to vector<1x128xf32>
    %87 = arith.addf %75, %86 : vector<1x128xf32>
    %88 = arith.truncf %80 : vector<128x128xf32> to vector<128x128xbf16>
    %c0_52 = arith.constant 0 : index
    %c768_53 = arith.constant 768 : index
    %89 = vector.load %arg12[%c0_52, %c768_53] : memref<128x1024xbf16, #tpu.memory_space<vmem>>, vector<128x128xbf16>
    tpu.vector_store %arg12[%c0_52, %c768_53], %88 {strides = array<i32>} : memref<128x1024xbf16, #tpu.memory_space<vmem>>, vector<128x128xbf16>,
    %c0_54 = arith.constant 0 : index
    %c1792 = arith.constant 1792 : index
    %90 = vector.load %arg0[%c0_54, %c1792] : memref<128x2048xbf16, #tpu.memory_space<vmem>>, vector<128x256xbf16>
    %c0_55 = arith.constant 0 : index
    %c0_56 = arith.constant 0 : index
    %91 = vector.load %arg2[%c0_55, %c0_56] : memref<256x128xbf16, #tpu.memory_space<vmem>>, vector<256x128xbf16>
    %cst_57 = arith.constant dense<0.000000e+00> : vector<128x128xf32>
    %92 = tpu.matmul %90, %91, %cst_57 {dimension_numbers = #tpu.dot_dimension_numbers<[1], [0], [0], [1], [0, 0, 1, 1], [], []>} : vector<128x256xbf16>, vector<256x128xbf16>, vector<128x128xf32> -> vector<128x128xf32>
    %cst_58 = arith.constant dense<0.000000e+00> : vector<128xf32>
    %93 = vector.multi_reduction <add>, %92, %cst_58 [0] : vector<128x128xf32> to vector<128xf32>
    %94 = vector.shape_cast %93 : vector<128xf32> to vector<1x128xf32>
    %95 = arith.addf %83, %94 : vector<1x128xf32>
    %96 = arith.mulf %92, %92 : vector<128x128xf32>
    %cst_59 = arith.constant dense<0.000000e+00> : vector<128xf32>
    %97 = vector.multi_reduction <add>, %96, %cst_59 [0] : vector<128x128xf32> to vector<128xf32>
    %98 = vector.shape_cast %97 : vector<128xf32> to vector<1x128xf32>
    %99 = arith.addf %87, %98 : vector<1x128xf32>
    %100 = arith.truncf %92 : vector<128x128xf32> to vector<128x128xbf16>
    %c0_60 = arith.constant 0 : index
    %c896 = arith.constant 896 : index
    %101 = vector.load %arg12[%c0_60, %c896] : memref<128x1024xbf16, #tpu.memory_space<vmem>>, vector<128x128xbf16>
    tpu.vector_store %arg12[%c0_60, %c896], %100 {strides = array<i32>} : memref<128x1024xbf16, #tpu.memory_space<vmem>>, vector<128x128xbf16>,
    %102 = vector.extract_strided_slice %95 {offsets = [0, 0], sizes = [1, 64], strides = [1, 1]} : vector<1x128xf32> to vector<1x64xf32>
    %103 = vector.extract_strided_slice %95 {offsets = [0, 64], sizes = [1, 64], strides = [1, 1]} : vector<1x128xf32> to vector<1x64xf32>
    %104 = arith.addf %102, %103 : vector<1x64xf32>
    %cst_61 = arith.constant 5.120000e+02 : f32
    %105 = vector.broadcast %cst_61 : f32 to vector<1x64xf32>
    %106 = arith.divf %104, %105 : vector<1x64xf32>
    %107 = vector.extract_strided_slice %99 {offsets = [0, 0], sizes = [1, 64], strides = [1, 1]} : vector<1x128xf32> to vector<1x64xf32>
    %108 = vector.extract_strided_slice %99 {offsets = [0, 64], sizes = [1, 64], strides = [1, 1]} : vector<1x128xf32> to vector<1x64xf32>
    %109 = arith.addf %107, %108 : vector<1x64xf32>
    %cst_62 = arith.constant 5.120000e+02 : f32
    %110 = vector.broadcast %cst_62 : f32 to vector<1x64xf32>
    %111 = arith.divf %109, %110 : vector<1x64xf32>
    %112 = arith.mulf %106, %106 : vector<1x64xf32>
    %113 = arith.subf %111, %112 : vector<1x64xf32>
    %cst_63 = arith.constant 0.000000e+00 : f32
    %114 = vector.broadcast %cst_63 : f32 to vector<1x64xf32>
    %115 = arith.maximumf %113, %114 : vector<1x64xf32>
    %cst_64 = arith.constant 9.99999974E-6 : f32
    %116 = vector.broadcast %cst_64 : f32 to vector<1x64xf32>
    %117 = arith.addf %115, %116 : vector<1x64xf32>
    %118 = math.rsqrt %117 : vector<1x64xf32>
    %119 = tpu.concatenate %106, %106 in 1 : vector<1x64xf32>, vector<1x64xf32> -> vector<1x128xf32>
    %120 = tpu.concatenate %118, %118 in 1 : vector<1x64xf32>, vector<1x64xf32> -> vector<1x128xf32>
    %121 = tpu.iota {dimensions = array<i32: 0>} : vector<128x1xi32>
    %c8_i32 = arith.constant 8 : i32
    %c0_i32_65 = arith.constant 0 : i32
    %122 = arith.cmpi eq, %c8_i32, %c0_i32_65 : i32
    %c1_i32_66 = arith.constant 1 : i32
    %123 = arith.select %122, %c1_i32_66, %c8_i32 : i32
    %124 = vector.broadcast %123 : i32 to vector<128x1xi32>
    %125 = arith.remsi %121, %124 : vector<128x1xi32>
    %c0_i32_67 = arith.constant 0 : i32
    %126 = vector.broadcast %c0_i32_67 : i32 to vector<128x1xi32>
    %127 = arith.cmpi ne, %125, %126 : vector<128x1xi32>
    %c0_i32_68 = arith.constant 0 : i32
    %128 = vector.broadcast %c0_i32_68 : i32 to vector<128x1xi32>
    %129 = arith.cmpi slt, %125, %128 : vector<128x1xi32>
    %c0_i32_69 = arith.constant 0 : i32
    %130 = arith.cmpi slt, %123, %c0_i32_69 : i32
    %131 = vector.broadcast %130 : i1 to vector<128x1xi1>
    %132 = vector.broadcast %131 : vector<128x1xi1> to vector<128x1xi1>
    %133 = arith.xori %129, %132 : vector<128x1xi1>
    %134 = arith.andi %133, %127 : vector<128x1xi1>
    %135 = vector.broadcast %123 : i32 to vector<128x1xi32>
    %136 = arith.addi %125, %135 : vector<128x1xi32>
    %137 = arith.select %134, %136, %125 : vector<128x1xi1>, vector<128x1xi32>
    %c2_i32 = arith.constant 2 : i32
    %138 = vector.broadcast %c2_i32 : i32 to vector<128x1xi32>
    %139 = arith.cmpi slt, %137, %138 : vector<128x1xi32>
    %140 = arith.extui %139 : vector<128x1xi1> to vector<128x1xi32>
    %141 = arith.sitofp %140 : vector<128x1xi32> to vector<128x1xf32>
    %c0_70 = arith.constant 0 : index
    %c0_71 = arith.constant 0 : index
    %142 = vector.load %arg12[%c0_70, %c0_71] : memref<128x1024xbf16, #tpu.memory_space<vmem>>, vector<128x128xbf16>
    %143 = arith.extf %142 : vector<128x128xbf16> to vector<128x128xf32>
    %144 = vector.broadcast %119 : vector<1x128xf32> to vector<128x128xf32>
    %145 = arith.subf %143, %144 : vector<128x128xf32>
    %146 = vector.broadcast %120 : vector<1x128xf32> to vector<128x128xf32>
    %147 = arith.mulf %145, %146 : vector<128x128xf32>
    %cst_72 = arith.constant 0.000000e+00 : f32
    %148 = vector.broadcast %cst_72 : f32 to vector<128x128xf32>
    %149 = arith.subf %148, %147 : vector<128x128xf32>
    %150 = math.exp %149 : vector<128x128xf32>
    %cst_73 = arith.constant 1.000000e+00 : f32
    %151 = vector.broadcast %cst_73 : f32 to vector<128x128xf32>
    %152 = arith.addf %151, %150 : vector<128x128xf32>
    %153 = tpu.reciprocal %152 {approx = true} : vector<128x128xf32> -> vector<128x128xf32>
    %154 = arith.mulf %147, %153 : vector<128x128xf32>
    %155 = vector.broadcast %141 : vector<128x1xf32> to vector<128x128xf32>
    %156 = arith.mulf %154, %155 : vector<128x128xf32>
    %157 = arith.truncf %156 : vector<128x128xf32> to vector<128x128xbf16>
    %c0_74 = arith.constant 0 : index
    %c0_75 = arith.constant 0 : index
    %158 = vector.load %arg12[%c0_74, %c0_75] : memref<128x1024xbf16, #tpu.memory_space<vmem>>, vector<128x128xbf16>
    tpu.vector_store %arg12[%c0_74, %c0_75], %157 {strides = array<i32>} : memref<128x1024xbf16, #tpu.memory_space<vmem>>, vector<128x128xbf16>,
    %c0_76 = arith.constant 0 : index
    %c128_77 = arith.constant 128 : index
    %159 = vector.load %arg12[%c0_76, %c128_77] : memref<128x1024xbf16, #tpu.memory_space<vmem>>, vector<128x128xbf16>
    %160 = arith.extf %159 : vector<128x128xbf16> to vector<128x128xf32>
    %161 = vector.broadcast %119 : vector<1x128xf32> to vector<128x128xf32>
    %162 = arith.subf %160, %161 : vector<128x128xf32>
    %163 = vector.broadcast %120 : vector<1x128xf32> to vector<128x128xf32>
    %164 = arith.mulf %162, %163 : vector<128x128xf32>
    %cst_78 = arith.constant 0.000000e+00 : f32
    %165 = vector.broadcast %cst_78 : f32 to vector<128x128xf32>
    %166 = arith.subf %165, %164 : vector<128x128xf32>
    %167 = math.exp %166 : vector<128x128xf32>
    %cst_79 = arith.constant 1.000000e+00 : f32
    %168 = vector.broadcast %cst_79 : f32 to vector<128x128xf32>
    %169 = arith.addf %168, %167 : vector<128x128xf32>
    %170 = tpu.reciprocal %169 {approx = true} : vector<128x128xf32> -> vector<128x128xf32>
    %171 = arith.mulf %164, %170 : vector<128x128xf32>
    %172 = vector.broadcast %141 : vector<128x1xf32> to vector<128x128xf32>
    %173 = arith.mulf %171, %172 : vector<128x128xf32>
    %174 = arith.truncf %173 : vector<128x128xf32> to vector<128x128xbf16>
    %c0_80 = arith.constant 0 : index
    %c128_81 = arith.constant 128 : index
    %175 = vector.load %arg12[%c0_80, %c128_81] : memref<128x1024xbf16, #tpu.memory_space<vmem>>, vector<128x128xbf16>
    tpu.vector_store %arg12[%c0_80, %c128_81], %174 {strides = array<i32>} : memref<128x1024xbf16, #tpu.memory_space<vmem>>, vector<128x128xbf16>,
    %c0_82 = arith.constant 0 : index
    %c256_83 = arith.constant 256 : index
    %176 = vector.load %arg12[%c0_82, %c256_83] : memref<128x1024xbf16, #tpu.memory_space<vmem>>, vector<128x128xbf16>
    %177 = arith.extf %176 : vector<128x128xbf16> to vector<128x128xf32>
    %178 = vector.broadcast %119 : vector<1x128xf32> to vector<128x128xf32>
    %179 = arith.subf %177, %178 : vector<128x128xf32>
    %180 = vector.broadcast %120 : vector<1x128xf32> to vector<128x128xf32>
    %181 = arith.mulf %179, %180 : vector<128x128xf32>
    %cst_84 = arith.constant 0.000000e+00 : f32
    %182 = vector.broadcast %cst_84 : f32 to vector<128x128xf32>
    %183 = arith.subf %182, %181 : vector<128x128xf32>
    %184 = math.exp %183 : vector<128x128xf32>
    %cst_85 = arith.constant 1.000000e+00 : f32
    %185 = vector.broadcast %cst_85 : f32 to vector<128x128xf32>
    %186 = arith.addf %185, %184 : vector<128x128xf32>
    %187 = tpu.reciprocal %186 {approx = true} : vector<128x128xf32> -> vector<128x128xf32>
    %188 = arith.mulf %181, %187 : vector<128x128xf32>
    %189 = vector.broadcast %141 : vector<128x1xf32> to vector<128x128xf32>
    %190 = arith.mulf %188, %189 : vector<128x128xf32>
    %191 = arith.truncf %190 : vector<128x128xf32> to vector<128x128xbf16>
    %c0_86 = arith.constant 0 : index
    %c256_87 = arith.constant 256 : index
    %192 = vector.load %arg12[%c0_86, %c256_87] : memref<128x1024xbf16, #tpu.memory_space<vmem>>, vector<128x128xbf16>
    tpu.vector_store %arg12[%c0_86, %c256_87], %191 {strides = array<i32>} : memref<128x1024xbf16, #tpu.memory_space<vmem>>, vector<128x128xbf16>,
    %c0_88 = arith.constant 0 : index
    %c384_89 = arith.constant 384 : index
    %193 = vector.load %arg12[%c0_88, %c384_89] : memref<128x1024xbf16, #tpu.memory_space<vmem>>, vector<128x128xbf16>
    %194 = arith.extf %193 : vector<128x128xbf16> to vector<128x128xf32>
    %195 = vector.broadcast %119 : vector<1x128xf32> to vector<128x128xf32>
    %196 = arith.subf %194, %195 : vector<128x128xf32>
    %197 = vector.broadcast %120 : vector<1x128xf32> to vector<128x128xf32>
    %198 = arith.mulf %196, %197 : vector<128x128xf32>
    %cst_90 = arith.constant 0.000000e+00 : f32
    %199 = vector.broadcast %cst_90 : f32 to vector<128x128xf32>
    %200 = arith.subf %199, %198 : vector<128x128xf32>
    %201 = math.exp %200 : vector<128x128xf32>
    %cst_91 = arith.constant 1.000000e+00 : f32
    %202 = vector.broadcast %cst_91 : f32 to vector<128x128xf32>
    %203 = arith.addf %202, %201 : vector<128x128xf32>
    %204 = tpu.reciprocal %203 {approx = true} : vector<128x128xf32> -> vector<128x128xf32>
    %205 = arith.mulf %198, %204 : vector<128x128xf32>
    %206 = vector.broadcast %141 : vector<128x1xf32> to vector<128x128xf32>
    %207 = arith.mulf %205, %206 : vector<128x128xf32>
    %208 = arith.truncf %207 : vector<128x128xf32> to vector<128x128xbf16>
    %c0_92 = arith.constant 0 : index
    %c384_93 = arith.constant 384 : index
    %209 = vector.load %arg12[%c0_92, %c384_93] : memref<128x1024xbf16, #tpu.memory_space<vmem>>, vector<128x128xbf16>
    tpu.vector_store %arg12[%c0_92, %c384_93], %208 {strides = array<i32>} : memref<128x1024xbf16, #tpu.memory_space<vmem>>, vector<128x128xbf16>,
    %c0_94 = arith.constant 0 : index
    %c512_95 = arith.constant 512 : index
    %210 = vector.load %arg12[%c0_94, %c512_95] : memref<128x1024xbf16, #tpu.memory_space<vmem>>, vector<128x128xbf16>
    %211 = arith.extf %210 : vector<128x128xbf16> to vector<128x128xf32>
    %212 = vector.broadcast %119 : vector<1x128xf32> to vector<128x128xf32>
    %213 = arith.subf %211, %212 : vector<128x128xf32>
    %214 = vector.broadcast %120 : vector<1x128xf32> to vector<128x128xf32>
    %215 = arith.mulf %213, %214 : vector<128x128xf32>
    %cst_96 = arith.constant 0.000000e+00 : f32
    %216 = vector.broadcast %cst_96 : f32 to vector<128x128xf32>
    %217 = arith.subf %216, %215 : vector<128x128xf32>
    %218 = math.exp %217 : vector<128x128xf32>
    %cst_97 = arith.constant 1.000000e+00 : f32
    %219 = vector.broadcast %cst_97 : f32 to vector<128x128xf32>
    %220 = arith.addf %219, %218 : vector<128x128xf32>
    %221 = tpu.reciprocal %220 {approx = true} : vector<128x128xf32> -> vector<128x128xf32>
    %222 = arith.mulf %215, %221 : vector<128x128xf32>
    %223 = vector.broadcast %141 : vector<128x1xf32> to vector<128x128xf32>
    %224 = arith.mulf %222, %223 : vector<128x128xf32>
    %225 = arith.truncf %224 : vector<128x128xf32> to vector<128x128xbf16>
    %c0_98 = arith.constant 0 : index
    %c512_99 = arith.constant 512 : index
    %226 = vector.load %arg12[%c0_98, %c512_99] : memref<128x1024xbf16, #tpu.memory_space<vmem>>, vector<128x128xbf16>
    tpu.vector_store %arg12[%c0_98, %c512_99], %225 {strides = array<i32>} : memref<128x1024xbf16, #tpu.memory_space<vmem>>, vector<128x128xbf16>,
    %c0_100 = arith.constant 0 : index
    %c640_101 = arith.constant 640 : index
    %227 = vector.load %arg12[%c0_100, %c640_101] : memref<128x1024xbf16, #tpu.memory_space<vmem>>, vector<128x128xbf16>
    %228 = arith.extf %227 : vector<128x128xbf16> to vector<128x128xf32>
    %229 = vector.broadcast %119 : vector<1x128xf32> to vector<128x128xf32>
    %230 = arith.subf %228, %229 : vector<128x128xf32>
    %231 = vector.broadcast %120 : vector<1x128xf32> to vector<128x128xf32>
    %232 = arith.mulf %230, %231 : vector<128x128xf32>
    %cst_102 = arith.constant 0.000000e+00 : f32
    %233 = vector.broadcast %cst_102 : f32 to vector<128x128xf32>
    %234 = arith.subf %233, %232 : vector<128x128xf32>
    %235 = math.exp %234 : vector<128x128xf32>
    %cst_103 = arith.constant 1.000000e+00 : f32
    %236 = vector.broadcast %cst_103 : f32 to vector<128x128xf32>
    %237 = arith.addf %236, %235 : vector<128x128xf32>
    %238 = tpu.reciprocal %237 {approx = true} : vector<128x128xf32> -> vector<128x128xf32>
    %239 = arith.mulf %232, %238 : vector<128x128xf32>
    %240 = vector.broadcast %141 : vector<128x1xf32> to vector<128x128xf32>
    %241 = arith.mulf %239, %240 : vector<128x128xf32>
    %242 = arith.truncf %241 : vector<128x128xf32> to vector<128x128xbf16>
    %c0_104 = arith.constant 0 : index
    %c640_105 = arith.constant 640 : index
    %243 = vector.load %arg12[%c0_104, %c640_105] : memref<128x1024xbf16, #tpu.memory_space<vmem>>, vector<128x128xbf16>
    tpu.vector_store %arg12[%c0_104, %c640_105], %242 {strides = array<i32>} : memref<128x1024xbf16, #tpu.memory_space<vmem>>, vector<128x128xbf16>,
    %c0_106 = arith.constant 0 : index
    %c768_107 = arith.constant 768 : index
    %244 = vector.load %arg12[%c0_106, %c768_107] : memref<128x1024xbf16, #tpu.memory_space<vmem>>, vector<128x128xbf16>
    %245 = arith.extf %244 : vector<128x128xbf16> to vector<128x128xf32>
    %246 = vector.broadcast %119 : vector<1x128xf32> to vector<128x128xf32>
    %247 = arith.subf %245, %246 : vector<128x128xf32>
    %248 = vector.broadcast %120 : vector<1x128xf32> to vector<128x128xf32>
    %249 = arith.mulf %247, %248 : vector<128x128xf32>
    %cst_108 = arith.constant 0.000000e+00 : f32
    %250 = vector.broadcast %cst_108 : f32 to vector<128x128xf32>
    %251 = arith.subf %250, %249 : vector<128x128xf32>
    %252 = math.exp %251 : vector<128x128xf32>
    %cst_109 = arith.constant 1.000000e+00 : f32
    %253 = vector.broadcast %cst_109 : f32 to vector<128x128xf32>
    %254 = arith.addf %253, %252 : vector<128x128xf32>
    %255 = tpu.reciprocal %254 {approx = true} : vector<128x128xf32> -> vector<128x128xf32>
    %256 = arith.mulf %249, %255 : vector<128x128xf32>
    %257 = vector.broadcast %141 : vector<128x1xf32> to vector<128x128xf32>
    %258 = arith.mulf %256, %257 : vector<128x128xf32>
    %259 = arith.truncf %258 : vector<128x128xf32> to vector<128x128xbf16>
    %c0_110 = arith.constant 0 : index
    %c768_111 = arith.constant 768 : index
    %260 = vector.load %arg12[%c0_110, %c768_111] : memref<128x1024xbf16, #tpu.memory_space<vmem>>, vector<128x128xbf16>
    tpu.vector_store %arg12[%c0_110, %c768_111], %259 {strides = array<i32>} : memref<128x1024xbf16, #tpu.memory_space<vmem>>, vector<128x128xbf16>,
    %c0_112 = arith.constant 0 : index
    %c896_113 = arith.constant 896 : index
    %261 = vector.load %arg12[%c0_112, %c896_113] : memref<128x1024xbf16, #tpu.memory_space<vmem>>, vector<128x128xbf16>
    %262 = arith.extf %261 : vector<128x128xbf16> to vector<128x128xf32>
    %263 = vector.broadcast %119 : vector<1x128xf32> to vector<128x128xf32>
    %264 = arith.subf %262, %263 : vector<128x128xf32>
    %265 = vector.broadcast %120 : vector<1x128xf32> to vector<128x128xf32>
    %266 = arith.mulf %264, %265 : vector<128x128xf32>
    %cst_114 = arith.constant 0.000000e+00 : f32
    %267 = vector.broadcast %cst_114 : f32 to vector<128x128xf32>
    %268 = arith.subf %267, %266 : vector<128x128xf32>
    %269 = math.exp %268 : vector<128x128xf32>
    %cst_115 = arith.constant 1.000000e+00 : f32
    %270 = vector.broadcast %cst_115 : f32 to vector<128x128xf32>
    %271 = arith.addf %270, %269 : vector<128x128xf32>
    %272 = tpu.reciprocal %271 {approx = true} : vector<128x128xf32> -> vector<128x128xf32>
    %273 = arith.mulf %266, %272 : vector<128x128xf32>
    %274 = vector.broadcast %141 : vector<128x1xf32> to vector<128x128xf32>
    %275 = arith.mulf %273, %274 : vector<128x128xf32>
    %276 = arith.truncf %275 : vector<128x128xf32> to vector<128x128xbf16>
    %c0_116 = arith.constant 0 : index
    %c896_117 = arith.constant 896 : index
    %277 = vector.load %arg12[%c0_116, %c896_117] : memref<128x1024xbf16, #tpu.memory_space<vmem>>, vector<128x128xbf16>
    tpu.vector_store %arg12[%c0_116, %c896_117], %276 {strides = array<i32>} : memref<128x1024xbf16, #tpu.memory_space<vmem>>, vector<128x128xbf16>,
    %c0_i32_118 = arith.constant 0 : i32
    %278 = tpu.memref_slice %arg16[%c0_i32_118] : memref<2x!tpu.dma_semaphore, #tpu.memory_space<semaphore_mem>> -> memref<1x!tpu.dma_semaphore, #tpu.memory_space<semaphore_mem>>
    %279 = tpu.memref_squeeze %278 : memref<1x!tpu.dma_semaphore, #tpu.memory_space<semaphore_mem>> -> memref<!tpu.dma_semaphore, #tpu.memory_space<semaphore_mem>>
    tpu.wait_dma2 semaphore(%279 : memref<!tpu.dma_semaphore, #tpu.memory_space<semaphore_mem>>) src(%arg3 : memref<1024x128xbf16, #tpu.memory_space<any>>) dst(%arg14 : memref<1024x128xbf16, #tpu.memory_space<vmem>>)
    %c0_119 = arith.constant 0 : index
    %c0_120 = arith.constant 0 : index
    %280 = vector.load %arg12[%c0_119, %c0_120] : memref<128x1024xbf16, #tpu.memory_space<vmem>>, vector<128x1024xbf16>
    %c0_121 = arith.constant 0 : index
    %c0_122 = arith.constant 0 : index
    %281 = vector.load %arg14[%c0_121, %c0_122] : memref<1024x128xbf16, #tpu.memory_space<vmem>>, vector<1024x128xbf16>
    %cst_123 = arith.constant dense<0.000000e+00> : vector<128x128xf32>
    %282 = tpu.matmul %280, %281, %cst_123 {dimension_numbers = #tpu.dot_dimension_numbers<[1], [0], [0], [1], [0, 0, 1, 1], [], []>} : vector<128x1024xbf16>, vector<1024x128xbf16>, vector<128x128xf32> -> vector<128x128xf32>
    %cst_124 = arith.constant dense<0.000000e+00> : vector<128xf32>
    %283 = vector.multi_reduction <add>, %282, %cst_124 [0] : vector<128x128xf32> to vector<128xf32>
    %284 = vector.shape_cast %283 : vector<128xf32> to vector<1x128xf32>
    %cst_125 = arith.constant 3.200000e+01 : f32
    %285 = vector.broadcast %cst_125 : f32 to vector<1x128xf32>
    %286 = arith.divf %284, %285 : vector<1x128xf32>
    %287 = arith.mulf %282, %282 : vector<128x128xf32>
    %cst_126 = arith.constant dense<0.000000e+00> : vector<128xf32>
    %288 = vector.multi_reduction <add>, %287, %cst_126 [0] : vector<128x128xf32> to vector<128xf32>
    %289 = vector.shape_cast %288 : vector<128xf32> to vector<1x128xf32>
    %cst_127 = arith.constant 3.200000e+01 : f32
    %290 = vector.broadcast %cst_127 : f32 to vector<1x128xf32>
    %291 = arith.divf %289, %290 : vector<1x128xf32>
    %292 = arith.mulf %286, %286 : vector<1x128xf32>
    %293 = arith.subf %291, %292 : vector<1x128xf32>
    %cst_128 = arith.constant 0.000000e+00 : f32
    %294 = vector.broadcast %cst_128 : f32 to vector<1x128xf32>
    %295 = arith.maximumf %293, %294 : vector<1x128xf32>
    %296 = vector.broadcast %286 : vector<1x128xf32> to vector<128x128xf32>
    %297 = arith.subf %282, %296 : vector<128x128xf32>
    %cst_129 = arith.constant 9.99999974E-6 : f32
    %298 = vector.broadcast %cst_129 : f32 to vector<1x128xf32>
    %299 = arith.addf %295, %298 : vector<1x128xf32>
    %300 = math.rsqrt %299 : vector<1x128xf32>
    %301 = vector.broadcast %300 : vector<1x128xf32> to vector<128x128xf32>
    %302 = arith.mulf %297, %301 : vector<128x128xf32>
    %cst_130 = arith.constant 0.000000e+00 : f32
    %303 = vector.broadcast %cst_130 : f32 to vector<128x128xf32>
    %304 = arith.subf %303, %302 : vector<128x128xf32>
    %305 = math.exp %304 : vector<128x128xf32>
    %cst_131 = arith.constant 1.000000e+00 : f32
    %306 = vector.broadcast %cst_131 : f32 to vector<128x128xf32>
    %307 = arith.addf %306, %305 : vector<128x128xf32>
    %308 = tpu.reciprocal %307 {approx = true} : vector<128x128xf32> -> vector<128x128xf32>
    %309 = arith.mulf %302, %308 : vector<128x128xf32>
    %310 = vector.extract_strided_slice %309 {offsets = [0, 0], sizes = [8, 128], strides = [1, 1]} : vector<128x128xf32> to vector<8x128xf32>
    %311 = arith.truncf %310 : vector<8x128xf32> to vector<8x128xbf16>
    %c0_132 = arith.constant 0 : index
    %c0_133 = arith.constant 0 : index
    %312 = vector.load %arg13[%c0_132, %c0_133] : memref<8x2048xbf16, #tpu.memory_space<vmem>>, vector<8x128xbf16>
    tpu.vector_store %arg13[%c0_132, %c0_133], %311 {strides = array<i32>} : memref<8x2048xbf16, #tpu.memory_space<vmem>>, vector<8x128xbf16>,
    %313 = vector.extract_strided_slice %309 {offsets = [8, 0], sizes = [8, 128], strides = [1, 1]} : vector<128x128xf32> to vector<8x128xf32>
    %314 = arith.truncf %313 : vector<8x128xf32> to vector<8x128xbf16>
    %c0_134 = arith.constant 0 : index
    %c128_135 = arith.constant 128 : index
    %315 = vector.load %arg13[%c0_134, %c128_135] : memref<8x2048xbf16, #tpu.memory_space<vmem>>, vector<8x128xbf16>
    tpu.vector_store %arg13[%c0_134, %c128_135], %314 {strides = array<i32>} : memref<8x2048xbf16, #tpu.memory_space<vmem>>, vector<8x128xbf16>,
    %316 = vector.extract_strided_slice %309 {offsets = [16, 0], sizes = [8, 128], strides = [1, 1]} : vector<128x128xf32> to vector<8x128xf32>
    %317 = arith.truncf %316 : vector<8x128xf32> to vector<8x128xbf16>
    %c0_136 = arith.constant 0 : index
    %c256_137 = arith.constant 256 : index
    %318 = vector.load %arg13[%c0_136, %c256_137] : memref<8x2048xbf16, #tpu.memory_space<vmem>>, vector<8x128xbf16>
    tpu.vector_store %arg13[%c0_136, %c256_137], %317 {strides = array<i32>} : memref<8x2048xbf16, #tpu.memory_space<vmem>>, vector<8x128xbf16>,
    %319 = vector.extract_strided_slice %309 {offsets = [24, 0], sizes = [8, 128], strides = [1, 1]} : vector<128x128xf32> to vector<8x128xf32>
    %320 = arith.truncf %319 : vector<8x128xf32> to vector<8x128xbf16>
    %c0_138 = arith.constant 0 : index
    %c384_139 = arith.constant 384 : index
    %321 = vector.load %arg13[%c0_138, %c384_139] : memref<8x2048xbf16, #tpu.memory_space<vmem>>, vector<8x128xbf16>
    tpu.vector_store %arg13[%c0_138, %c384_139], %320 {strides = array<i32>} : memref<8x2048xbf16, #tpu.memory_space<vmem>>, vector<8x128xbf16>,
    %322 = vector.extract_strided_slice %309 {offsets = [32, 0], sizes = [8, 128], strides = [1, 1]} : vector<128x128xf32> to vector<8x128xf32>
    %323 = arith.truncf %322 : vector<8x128xf32> to vector<8x128xbf16>
    %c0_140 = arith.constant 0 : index
    %c512_141 = arith.constant 512 : index
    %324 = vector.load %arg13[%c0_140, %c512_141] : memref<8x2048xbf16, #tpu.memory_space<vmem>>, vector<8x128xbf16>
    tpu.vector_store %arg13[%c0_140, %c512_141], %323 {strides = array<i32>} : memref<8x2048xbf16, #tpu.memory_space<vmem>>, vector<8x128xbf16>,
    %325 = vector.extract_strided_slice %309 {offsets = [40, 0], sizes = [8, 128], strides = [1, 1]} : vector<128x128xf32> to vector<8x128xf32>
    %326 = arith.truncf %325 : vector<8x128xf32> to vector<8x128xbf16>
    %c0_142 = arith.constant 0 : index
    %c640_143 = arith.constant 640 : index
    %327 = vector.load %arg13[%c0_142, %c640_143] : memref<8x2048xbf16, #tpu.memory_space<vmem>>, vector<8x128xbf16>
    tpu.vector_store %arg13[%c0_142, %c640_143], %326 {strides = array<i32>} : memref<8x2048xbf16, #tpu.memory_space<vmem>>, vector<8x128xbf16>,
    %328 = vector.extract_strided_slice %309 {offsets = [48, 0], sizes = [8, 128], strides = [1, 1]} : vector<128x128xf32> to vector<8x128xf32>
    %329 = arith.truncf %328 : vector<8x128xf32> to vector<8x128xbf16>
    %c0_144 = arith.constant 0 : index
    %c768_145 = arith.constant 768 : index
    %330 = vector.load %arg13[%c0_144, %c768_145] : memref<8x2048xbf16, #tpu.memory_space<vmem>>, vector<8x128xbf16>
    tpu.vector_store %arg13[%c0_144, %c768_145], %329 {strides = array<i32>} : memref<8x2048xbf16, #tpu.memory_space<vmem>>, vector<8x128xbf16>,
    %331 = vector.extract_strided_slice %309 {offsets = [56, 0], sizes = [8, 128], strides = [1, 1]} : vector<128x128xf32> to vector<8x128xf32>
    %332 = arith.truncf %331 : vector<8x128xf32> to vector<8x128xbf16>
    %c0_146 = arith.constant 0 : index
    %c896_147 = arith.constant 896 : index
    %333 = vector.load %arg13[%c0_146, %c896_147] : memref<8x2048xbf16, #tpu.memory_space<vmem>>, vector<8x128xbf16>
    tpu.vector_store %arg13[%c0_146, %c896_147], %332 {strides = array<i32>} : memref<8x2048xbf16, #tpu.memory_space<vmem>>, vector<8x128xbf16>,
    %334 = vector.extract_strided_slice %309 {offsets = [64, 0], sizes = [8, 128], strides = [1, 1]} : vector<128x128xf32> to vector<8x128xf32>
    %335 = arith.truncf %334 : vector<8x128xf32> to vector<8x128xbf16>
    %c0_148 = arith.constant 0 : index
    %c1024_149 = arith.constant 1024 : index
    %336 = vector.load %arg13[%c0_148, %c1024_149] : memref<8x2048xbf16, #tpu.memory_space<vmem>>, vector<8x128xbf16>
    tpu.vector_store %arg13[%c0_148, %c1024_149], %335 {strides = array<i32>} : memref<8x2048xbf16, #tpu.memory_space<vmem>>, vector<8x128xbf16>,
    %337 = vector.extract_strided_slice %309 {offsets = [72, 0], sizes = [8, 128], strides = [1, 1]} : vector<128x128xf32> to vector<8x128xf32>
    %338 = arith.truncf %337 : vector<8x128xf32> to vector<8x128xbf16>
    %c0_150 = arith.constant 0 : index
    %c1152 = arith.constant 1152 : index
    %339 = vector.load %arg13[%c0_150, %c1152] : memref<8x2048xbf16, #tpu.memory_space<vmem>>, vector<8x128xbf16>
    tpu.vector_store %arg13[%c0_150, %c1152], %338 {strides = array<i32>} : memref<8x2048xbf16, #tpu.memory_space<vmem>>, vector<8x128xbf16>,
    %340 = vector.extract_strided_slice %309 {offsets = [80, 0], sizes = [8, 128], strides = [1, 1]} : vector<128x128xf32> to vector<8x128xf32>
    %341 = arith.truncf %340 : vector<8x128xf32> to vector<8x128xbf16>
    %c0_151 = arith.constant 0 : index
    %c1280_152 = arith.constant 1280 : index
    %342 = vector.load %arg13[%c0_151, %c1280_152] : memref<8x2048xbf16, #tpu.memory_space<vmem>>, vector<8x128xbf16>
    tpu.vector_store %arg13[%c0_151, %c1280_152], %341 {strides = array<i32>} : memref<8x2048xbf16, #tpu.memory_space<vmem>>, vector<8x128xbf16>,
    %343 = vector.extract_strided_slice %309 {offsets = [88, 0], sizes = [8, 128], strides = [1, 1]} : vector<128x128xf32> to vector<8x128xf32>
    %344 = arith.truncf %343 : vector<8x128xf32> to vector<8x128xbf16>
    %c0_153 = arith.constant 0 : index
    %c1408 = arith.constant 1408 : index
    %345 = vector.load %arg13[%c0_153, %c1408] : memref<8x2048xbf16, #tpu.memory_space<vmem>>, vector<8x128xbf16>
    tpu.vector_store %arg13[%c0_153, %c1408], %344 {strides = array<i32>} : memref<8x2048xbf16, #tpu.memory_space<vmem>>, vector<8x128xbf16>,
    %346 = vector.extract_strided_slice %309 {offsets = [96, 0], sizes = [8, 128], strides = [1, 1]} : vector<128x128xf32> to vector<8x128xf32>
    %347 = arith.truncf %346 : vector<8x128xf32> to vector<8x128xbf16>
    %c0_154 = arith.constant 0 : index
    %c1536_155 = arith.constant 1536 : index
    %348 = vector.load %arg13[%c0_154, %c1536_155] : memref<8x2048xbf16, #tpu.memory_space<vmem>>, vector<8x128xbf16>
    tpu.vector_store %arg13[%c0_154, %c1536_155], %347 {strides = array<i32>} : memref<8x2048xbf16, #tpu.memory_space<vmem>>, vector<8x128xbf16>,
    %349 = vector.extract_strided_slice %309 {offsets = [104, 0], sizes = [8, 128], strides = [1, 1]} : vector<128x128xf32> to vector<8x128xf32>
    %350 = arith.truncf %349 : vector<8x128xf32> to vector<8x128xbf16>
    %c0_156 = arith.constant 0 : index
    %c1664 = arith.constant 1664 : index
    %351 = vector.load %arg13[%c0_156, %c1664] : memref<8x2048xbf16, #tpu.memory_space<vmem>>, vector<8x128xbf16>
    tpu.vector_store %arg13[%c0_156, %c1664], %350 {strides = array<i32>} : memref<8x2048xbf16, #tpu.memory_space<vmem>>, vector<8x128xbf16>,
    %352 = vector.extract_strided_slice %309 {offsets = [112, 0], sizes = [8, 128], strides = [1, 1]} : vector<128x128xf32> to vector<8x128xf32>
    %353 = arith.truncf %352 : vector<8x128xf32> to vector<8x128xbf16>
    %c0_157 = arith.constant 0 : index
    %c1792_158 = arith.constant 1792 : index
    %354 = vector.load %arg13[%c0_157, %c1792_158] : memref<8x2048xbf16, #tpu.memory_space<vmem>>, vector<8x128xbf16>
    tpu.vector_store %arg13[%c0_157, %c1792_158], %353 {strides = array<i32>} : memref<8x2048xbf16, #tpu.memory_space<vmem>>, vector<8x128xbf16>,
    %355 = vector.extract_strided_slice %309 {offsets = [120, 0], sizes = [8, 128], strides = [1, 1]} : vector<128x128xf32> to vector<8x128xf32>
    %356 = arith.truncf %355 : vector<8x128xf32> to vector<8x128xbf16>
    %c0_159 = arith.constant 0 : index
    %c1920 = arith.constant 1920 : index
    %357 = vector.load %arg13[%c0_159, %c1920] : memref<8x2048xbf16, #tpu.memory_space<vmem>>, vector<8x128xbf16>
    tpu.vector_store %arg13[%c0_159, %c1920], %356 {strides = array<i32>} : memref<8x2048xbf16, #tpu.memory_space<vmem>>, vector<8x128xbf16>,
    %c1_i32_160 = arith.constant 1 : i32
    %358 = tpu.memref_slice %arg16[%c1_i32_160] : memref<2x!tpu.dma_semaphore, #tpu.memory_space<semaphore_mem>> -> memref<1x!tpu.dma_semaphore, #tpu.memory_space<semaphore_mem>>
    %359 = tpu.memref_squeeze %358 : memref<1x!tpu.dma_semaphore, #tpu.memory_space<semaphore_mem>> -> memref<!tpu.dma_semaphore, #tpu.memory_space<semaphore_mem>>
    tpu.wait_dma2 semaphore(%359 : memref<!tpu.dma_semaphore, #tpu.memory_space<semaphore_mem>>) src(%arg4 : memref<2048x256xbf16, #tpu.memory_space<any>>) dst(%arg15 : memref<2048x256xbf16, #tpu.memory_space<vmem>>)
    %c0_161 = arith.constant 0 : index
    %c0_162 = arith.constant 0 : index
    %360 = vector.load %arg13[%c0_161, %c0_162] : memref<8x2048xbf16, #tpu.memory_space<vmem>>, vector<8x2048xbf16>
    %c0_163 = arith.constant 0 : index
    %c0_164 = arith.constant 0 : index
    %361 = vector.load %arg15[%c0_163, %c0_164] : memref<2048x256xbf16, #tpu.memory_space<vmem>>, vector<2048x256xbf16>
    %cst_165 = arith.constant dense<0.000000e+00> : vector<8x256xf32>
    %362 = tpu.matmul %360, %361, %cst_165 {dimension_numbers = #tpu.dot_dimension_numbers<[1], [0], [0], [1], [0, 0, 1, 1], [], []>} : vector<8x2048xbf16>, vector<2048x256xbf16>, vector<8x256xf32> -> vector<8x256xf32>
    %c0_166 = arith.constant 0 : index
    %c0_167 = arith.constant 0 : index
    %363 = vector.load %arg5[%c0_166, %c0_167] : memref<1x256xf32, #tpu.memory_space<vmem>>, vector<1x256xf32>
    %364 = vector.broadcast %363 : vector<1x256xf32> to vector<8x256xf32>
    %365 = arith.addf %362, %364 : vector<8x256xf32>
    %cst_168 = arith.constant 0.000000e+00 : f32
    %366 = vector.broadcast %cst_168 : f32 to vector<8x256xf32>
    %367 = arith.subf %366, %365 : vector<8x256xf32>
    %368 = math.exp %367 : vector<8x256xf32>
    %cst_169 = arith.constant 1.000000e+00 : f32
    %369 = vector.broadcast %cst_169 : f32 to vector<8x256xf32>
    %370 = arith.addf %369, %368 : vector<8x256xf32>
    %371 = tpu.reciprocal %370 {approx = true} : vector<8x256xf32> -> vector<8x256xf32>
    %372 = arith.mulf %365, %371 : vector<8x256xf32>
    %373 = arith.truncf %372 : vector<8x256xf32> to vector<8x256xbf16>
    %c0_170 = arith.constant 0 : index
    %c0_171 = arith.constant 0 : index
    %374 = vector.load %arg6[%c0_170, %c0_171] : memref<256x128xbf16, #tpu.memory_space<vmem>>, vector<256x128xbf16>
    %cst_172 = arith.constant dense<0.000000e+00> : vector<8x128xf32>
    %375 = tpu.matmul %373, %374, %cst_172 {dimension_numbers = #tpu.dot_dimension_numbers<[1], [0], [0], [1], [0, 0, 1, 1], [], []>} : vector<8x256xbf16>, vector<256x128xbf16>, vector<8x128xf32> -> vector<8x128xf32>
    %c0_173 = arith.constant 0 : index
    %c0_174 = arith.constant 0 : index
    %376 = vector.load %arg1[%c0_173, %c0_174] : memref<8x4xbf16, #tpu.memory_space<vmem>>, vector<8x4xbf16>
    %c0_175 = arith.constant 0 : index
    %c0_176 = arith.constant 0 : index
    %377 = vector.load %arg7[%c0_175, %c0_176] : memref<4x128xbf16, #tpu.memory_space<vmem>>, vector<4x128xbf16>
    %cst_177 = arith.constant dense<0.000000e+00> : vector<8x128xf32>
    %378 = tpu.matmul %376, %377, %cst_177 {dimension_numbers = #tpu.dot_dimension_numbers<[1], [0], [0], [1], [0, 0, 1, 1], [], []>} : vector<8x4xbf16>, vector<4x128xbf16>, vector<8x128xf32> -> vector<8x128xf32>
    %379 = arith.addf %375, %378 : vector<8x128xf32>
    %c0_178 = arith.constant 0 : index
    %c0_179 = arith.constant 0 : index
    %380 = vector.load %arg8[%c0_178, %c0_179] : memref<1x128xf32, #tpu.memory_space<vmem>>, vector<1x128xf32>
    %381 = vector.broadcast %380 : vector<1x128xf32> to vector<8x128xf32>
    %382 = arith.addf %379, %381 : vector<8x128xf32>
    %cst_180 = arith.constant 0.000000e+00 : f32
    %383 = vector.broadcast %cst_180 : f32 to vector<8x128xf32>
    %384 = arith.subf %383, %382 : vector<8x128xf32>
    %385 = math.exp %384 : vector<8x128xf32>
    %cst_181 = arith.constant 1.000000e+00 : f32
    %386 = vector.broadcast %cst_181 : f32 to vector<8x128xf32>
    %387 = arith.addf %386, %385 : vector<8x128xf32>
    %388 = tpu.reciprocal %387 {approx = true} : vector<8x128xf32> -> vector<8x128xf32>
    %389 = arith.mulf %382, %388 : vector<8x128xf32>
    %c0_182 = arith.constant 0 : index
    %c0_183 = arith.constant 0 : index
    %390 = vector.load %arg9[%c0_182, %c0_183] : memref<1x128xf32, #tpu.memory_space<vmem>>, vector<1x128xf32>
    %391 = vector.broadcast %390 : vector<1x128xf32> to vector<8x128xf32>
    %392 = arith.mulf %389, %391 : vector<8x128xf32>
    %cst_184 = arith.constant dense<0.000000e+00> : vector<8xf32>
    %393 = vector.multi_reduction <add>, %392, %cst_184 [1] : vector<8x128xf32> to vector<8xf32>
    %394 = vector.shape_cast %393 : vector<8xf32> to vector<8x1xf32>
    %c0_185 = arith.constant 0 : index
    %c0_186 = arith.constant 0 : index
    %395 = vector.load %arg10[%c0_185, %c0_186] : memref<1x1xf32, #tpu.memory_space<vmem>>, vector<1x1xf32>
    %396 = vector.broadcast %395 : vector<1x1xf32> to vector<8x1xf32>
    %397 = arith.addf %394, %396 : vector<8x1xf32>
    %c0_187 = arith.constant 0 : index
    %c0_188 = arith.constant 0 : index
    %398 = vector.load %arg11[%c0_187, %c0_188] : memref<8x1xf32, #tpu.memory_space<vmem>>, vector<8x1xf32>
    tpu.vector_store %arg11[%c0_187, %c0_188], %397 {strides = array<i32>} : memref<8x1xf32, #tpu.memory_space<vmem>>, vector<8x1xf32>,
    return
  }
}

</mosaic_0001>

<bundles_post_ra>
// kernel: critic_forward.1
= control target key start
LH: loop header
LB: loop body
LE: loop exit
PB: predicated region body
PF: predicated region fallthrough
CT: control target
= control target key end

     0   :  { %s18592_s0 = inlined_call_operand.vmem [shape: bf16[128,2048], index: 0, kind: input, shape index: {}]   ;;  %s18593_s1 = inlined_call_operand.vmem [shape: bf16[8,4], index: 1, kind: input, shape index: {}]   ;;  %s18594_s2 = inlined_call_operand.vmem [shape: bf16[256,128], index: 2, kind: input, shape index: {}]   ;;  %s18595_s3 = inlined_call_operand.vmem [shape: bf16[1024,128], index: 3, kind: input, shape index: {}]   ;;  %s18596_s4 = inlined_call_operand.vmem [shape: bf16[2048,256], index: 4, kind: input, shape index: {}]   ;;  %s18597_s5 = inlined_call_operand.vmem [shape: f32[1,256], index: 5, kind: input, shape index: {}]   ;;  %s18598_s6 = inlined_call_operand.vmem [shape: bf16[256,128], index: 6, kind: input, shape index: {}]   ;;  %s18599_s7 = inlined_call_operand.vmem [shape: bf16[4,128], index: 7, kind: input, shape index: {}]   ;;  %s18600_s8 = inlined_call_operand.vmem [shape: f32[1,128], index: 8, kind: input, shape index: {}]   ;;  %s18601_s9 = inlined_call_operand.vmem [shape: f32[1,128], index: 9, kind: input, shape index: {}]   ;;  %s18602_s10 = inlined_call_operand.<no memory space> [shape: f32[1,1], index: 10, kind: input, shape index: {}]   ;;  %s18603_s11 = inlined_call_operand.vmem [shape: f32[8,1], index: 11, kind: output, shape index: {}]  }
   0x1   :  { %v16_v0 = vstv %s18602_s10  ;;  %v13103_v1 = vld [vmem:[%s18595_s3] sm:$0xff]  ;;  %v13108_v2 = vld [vmem:[%s18595_s3 + $0x8] sm:$0xff]  ;;  %v13113_v3 = vld [vmem:[%s18595_s3 + $0x10] sm:$0xff] }
   0x2   :  { %18859 = vst [vmem:[#allocation12_spill] sm:$0xff] %v13103_v1  ;;  %18860 = vst [vmem:[#allocation13_spill] sm:$0xff] %v13108_v2  ;;  %v13118_v4 = vld [vmem:[%s18595_s3 + $0x18] sm:$0xff]  ;;  %v13123_v5 = vld [vmem:[%s18595_s3 + $0x20] sm:$0xff] }
   0x3   :  { %18861 = vst [vmem:[#allocation14_spill] sm:$0xff] %v13113_v3  ;;  %17 = vst [vmem:[#allocation7] sm:$0x1] %v16_v0  ;;  %v13128_v6 = vld [vmem:[%s18595_s3 + $0x28] sm:$0xff]  ;;  %v13133_v7 = vld [vmem:[%s18595_s3 + $0x30] sm:$0xff] }
   0x4   :  { %18862 = vst [vmem:[#allocation15_spill] sm:$0xff] %v13118_v4  ;;  %18863 = vst [vmem:[#allocation16_spill] sm:$0xff] %v13123_v5  ;;  %v13138_v8 = vld [vmem:[%s18595_s3 + $0x38] sm:$0xff]  ;;  %v13143_v9 = vld [vmem:[%s18595_s3 + $0x40] sm:$0xff] }
   0x5   :  { %18864 = vst [vmem:[#allocation17_spill] sm:$0xff] %v13128_v6  ;;  %18865 = vst [vmem:[#allocation18_spill] sm:$0xff] %v13133_v7  ;;  %v13148_v10 = vld [vmem:[%s18595_s3 + $0x48] sm:$0xff]  ;;  %v13153_v11 = vld [vmem:[%s18595_s3 + $0x50] sm:$0xff] }
   0x6   :  { %18866 = vst [vmem:[#allocation19_spill] sm:$0xff] %v13138_v8  ;;  %18867 = vst [vmem:[#allocation20_spill] sm:$0xff] %v13143_v9  ;;  %v13158_v12 = vld [vmem:[%s18595_s3 + $0x58] sm:$0xff]  ;;  %v13163_v13 = vld [vmem:[%s18595_s3 + $0x60] sm:$0xff] }
   0x7   :  { %18868 = vst [vmem:[#allocation21_spill] sm:$0xff] %v13148_v10  ;;  %18869 = vst [vmem:[#allocation22_spill] sm:$0xff] %v13153_v11  ;;  %v13168_v14 = vld [vmem:[%s18595_s3 + $0x68] sm:$0xff]  ;;  %v13173_v15 = vld [vmem:[%s18595_s3 + $0x70] sm:$0xff] }
   0x8   :  { %18870 = vst [vmem:[#allocation23_spill] sm:$0xff] %v13158_v12  ;;  %18871 = vst [vmem:[#allocation24_spill] sm:$0xff] %v13163_v13  ;;  %v13178_v16 = vld [vmem:[%s18595_s3 + $0x78] sm:$0xff]  ;;  %v13183_v17 = vld [vmem:[%s18595_s3 + $0x80] sm:$0xff] }
   0x9   :  { %18872 = vst [vmem:[#allocation25_spill] sm:$0xff] %v13168_v14  ;;  %18873 = vst [vmem:[#allocation26_spill] sm:$0xff] %v13173_v15  ;;  %v13188_v18 = vld [vmem:[%s18595_s3 + $0x88] sm:$0xff]  ;;  %v13193_v19 = vld [vmem:[%s18595_s3 + $0x90] sm:$0xff] }
   0xa   :  { %18874 = vst [vmem:[#allocation27_spill] sm:$0xff] %v13178_v16  ;;  %18875 = vst [vmem:[#allocation28_spill] sm:$0xff] %v13183_v17  ;;  %v13198_v20 = vld [vmem:[%s18595_s3 + $0x98] sm:$0xff]  ;;  %v13203_v21 = vld [vmem:[%s18595_s3 + $0xa0] sm:$0xff] }
   0xb   :  { %18876 = vst [vmem:[#allocation29_spill] sm:$0xff] %v13188_v18  ;;  %18877 = vst [vmem:[#allocation30_spill] sm:$0xff] %v13193_v19  ;;  %v13208_v22 = vld [vmem:[%s18595_s3 + $0xa8] sm:$0xff]  ;;  %v13213_v23 = vld [vmem:[%s18595_s3 + $0xb0] sm:$0xff] }
   0xc   :  { %18878 = vst [vmem:[#allocation31_spill] sm:$0xff] %v13198_v20  ;;  %18879 = vst [vmem:[#allocation32_spill] sm:$0xff] %v13203_v21  ;;  %v13218_v24 = vld [vmem:[%s18595_s3 + $0xb8] sm:$0xff]  ;;  %v13223_v25 = vld [vmem:[%s18595_s3 + $0xc0] sm:$0xff] }
   0xd   :  { %18880 = vst [vmem:[#allocation33_spill] sm:$0xff] %v13208_v22  ;;  %18881 = vst [vmem:[#allocation34_spill] sm:$0xff] %v13213_v23  ;;  %v13228_v26 = vld [vmem:[%s18595_s3 + $0xc8] sm:$0xff]  ;;  %v13233_v27 = vld [vmem:[%s18595_s3 + $0xd0] sm:$0xff] }
   0xe   :  { %18882 = vst [vmem:[#allocation35_spill] sm:$0xff] %v13218_v24  ;;  %18883 = vst [vmem:[#allocation36_spill] sm:$0xff] %v13223_v25  ;;  %v13238_v28 = vld [vmem:[%s18595_s3 + $0xd8] sm:$0xff]  ;;  %v13243_v29 = vld [vmem:[%s18595_s3 + $0xe0] sm:$0xff] }
   0xf   :  { %18884 = vst [vmem:[#allocation37_spill] sm:$0xff] %v13228_v26  ;;  %18885 = vst [vmem:[#allocation38_spill] sm:$0xff] %v13233_v27  ;;  %v13248_v30 = vld [vmem:[%s18595_s3 + $0xe8] sm:$0xff]  ;;  %v13253_v31 = vld [vmem:[%s18595_s3 + $0xf0] sm:$0xff] }
  0x10   :  { %18886 = vst [vmem:[#allocation39_spill] sm:$0xff] %v13238_v28  ;;  %18887 = vst [vmem:[#allocation40_spill] sm:$0xff] %v13243_v29  ;;  %v13258_v32 = vld [vmem:[%s18595_s3 + $0xf8] sm:$0xff]  ;;  %v13263_v33 = vld [vmem:[%s18595_s3 + $0x100] sm:$0xff] }
  0x11   :  { %18888 = vst [vmem:[#allocation41_spill] sm:$0xff] %v13248_v30  ;;  %18889 = vst [vmem:[#allocation42_spill] sm:$0xff] %v13253_v31  ;;  %v13268_v34 = vld [vmem:[%s18595_s3 + $0x108] sm:$0xff]  ;;  %v13273_v35 = vld [vmem:[%s18595_s3 + $0x110] sm:$0xff] }
  0x12   :  { %18890 = vst [vmem:[#allocation43_spill] sm:$0xff] %v13258_v32  ;;  %18891 = vst [vmem:[#allocation44_spill] sm:$0xff] %v13263_v33  ;;  %v13278_v36 = vld [vmem:[%s18595_s3 + $0x118] sm:$0xff]  ;;  %v13283_v37 = vld [vmem:[%s18595_s3 + $0x120] sm:$0xff] }
  0x13   :  { %18892 = vst [vmem:[#allocation45_spill] sm:$0xff] %v13268_v34  ;;  %18893 = vst [vmem:[#allocation46_spill] sm:$0xff] %v13273_v35  ;;  %v13288_v38 = vld [vmem:[%s18595_s3 + $0x128] sm:$0xff]  ;;  %v13293_v39 = vld [vmem:[%s18595_s3 + $0x130] sm:$0xff] }
  0x14   :  { %18894 = vst [vmem:[#allocation47_spill] sm:$0xff] %v13278_v36  ;;  %18895 = vst [vmem:[#allocation48_spill] sm:$0xff] %v13283_v37  ;;  %v13298_v40 = vld [vmem:[%s18595_s3 + $0x138] sm:$0xff]  ;;  %v13303_v41 = vld [vmem:[%s18595_s3 + $0x140] sm:$0xff] }
  0x15   :  { %18896 = vst [vmem:[#allocation49_spill] sm:$0xff] %v13288_v38  ;;  %18897 = vst [vmem:[#allocation50_spill] sm:$0xff] %v13293_v39  ;;  %v13308_v42 = vld [vmem:[%s18595_s3 + $0x148] sm:$0xff]  ;;  %v13313_v43 = vld [vmem:[%s18595_s3 + $0x150] sm:$0xff] }
  0x16   :  { %18898 = vst [vmem:[#allocation51_spill] sm:$0xff] %v13298_v40  ;;  %18899 = vst [vmem:[#allocation52_spill] sm:$0xff] %v13303_v41  ;;  %v13318_v44 = vld [vmem:[%s18595_s3 + $0x158] sm:$0xff]  ;;  %v13323_v45 = vld [vmem:[%s18595_s3 + $0x160] sm:$0xff] }
  0x17   :  { %18900 = vst [vmem:[#allocation53_spill] sm:$0xff] %v13308_v42  ;;  %18901 = vst [vmem:[#allocation54_spill] sm:$0xff] %v13313_v43  ;;  %v13328_v46 = vld [vmem:[%s18595_s3 + $0x168] sm:$0xff]  ;;  %v13333_v47 = vld [vmem:[%s18595_s3 + $0x170] sm:$0xff] }
  0x18   :  { %18902 = vst [vmem:[#allocation55_spill] sm:$0xff] %v13318_v44  ;;  %18903 = vst [vmem:[#allocation56_spill] sm:$0xff] %v13323_v45  ;;  %v13338_v48 = vld [vmem:[%s18595_s3 + $0x178] sm:$0xff]  ;;  %v13343_v49 = vld [vmem:[%s18595_s3 + $0x180] sm:$0xff] }
  0x19   :  { %18904 = vst [vmem:[#allocation57_spill] sm:$0xff] %v13328_v46  ;;  %18905 = vst [vmem:[#allocation58_spill] sm:$0xff] %v13333_v47  ;;  %v13348_v50 = vld [vmem:[%s18595_s3 + $0x188] sm:$0xff]  ;;  %v13353_v51 = vld [vmem:[%s18595_s3 + $0x190] sm:$0xff] }
  0x1a   :  { %18906 = vst [vmem:[#allocation59_spill] sm:$0xff] %v13338_v48  ;;  %18907 = vst [vmem:[#allocation60_spill] sm:$0xff] %v13343_v49  ;;  %v13358_v52 = vld [vmem:[%s18595_s3 + $0x198] sm:$0xff]  ;;  %v13363_v53 = vld [vmem:[%s18595_s3 + $0x1a0] sm:$0xff] }
  0x1b   :  { %18908 = vst [vmem:[#allocation61_spill] sm:$0xff] %v13348_v50  ;;  %18909 = vst [vmem:[#allocation62_spill] sm:$0xff] %v13353_v51  ;;  %v13368_v54 = vld [vmem:[%s18595_s3 + $0x1a8] sm:$0xff]  ;;  %v13373_v55 = vld [vmem:[%s18595_s3 + $0x1b0] sm:$0xff] }
  0x1c   :  { %18910 = vst [vmem:[#allocation63_spill] sm:$0xff] %v13358_v52  ;;  %18911 = vst [vmem:[#allocation64_spill] sm:$0xff] %v13363_v53  ;;  %v13378_v56 = vld [vmem:[%s18595_s3 + $0x1b8] sm:$0xff]  ;;  %v13383_v57 = vld [vmem:[%s18595_s3 + $0x1c0] sm:$0xff] }
  0x1d   :  { %18912 = vst [vmem:[#allocation65_spill] sm:$0xff] %v13368_v54  ;;  %18913 = vst [vmem:[#allocation66_spill] sm:$0xff] %v13373_v55  ;;  %v13388_v58 = vld [vmem:[%s18595_s3 + $0x1c8] sm:$0xff]  ;;  %v13393_v59 = vld [vmem:[%s18595_s3 + $0x1d0] sm:$0xff] }
  0x1e   :  { %18914 = vst [vmem:[#allocation67_spill] sm:$0xff] %v13378_v56  ;;  %18915 = vst [vmem:[#allocation68_spill] sm:$0xff] %v13383_v57  ;;  %v13398_v60 = vld [vmem:[%s18595_s3 + $0x1d8] sm:$0xff]  ;;  %v13403_v61 = vld [vmem:[%s18595_s3 + $0x1e0] sm:$0xff] }
  0x1f   :  { %18916 = vst [vmem:[#allocation69_spill] sm:$0xff] %v13388_v58  ;;  %18917 = vst [vmem:[#allocation70_spill] sm:$0xff] %v13393_v59  ;;  %v13408_v62 = vld [vmem:[%s18595_s3 + $0x1e8] sm:$0xff]  ;;  %v13413_v63 = vld [vmem:[%s18595_s3 + $0x1f0] sm:$0xff] }
  0x20   :  { %18918 = vst [vmem:[#allocation71_spill] sm:$0xff] %v13398_v60  ;;  %18919 = vst [vmem:[#allocation72_spill] sm:$0xff] %v13403_v61  ;;  %v13418_v0 = vld [vmem:[%s18595_s3 + $0x1f8] sm:$0xff] }
  0x21   :  { %18920 = vst [vmem:[#allocation73_spill] sm:$0xff] %v13408_v62  ;;  %18921 = vst [vmem:[#allocation74_spill] sm:$0xff] %v13413_v63 }
  0x22   :  { %18922 = vst [vmem:[#allocation75_spill] sm:$0xff] %v13418_v0 }
  0x23   :  { %204 = vsyncadd [#allocation6], 8192  ;;  %v223_v56 = vld [vmem:[%s18596_s4] sm:$0xf]  ;;  %v225_v40 = vld [vmem:[%s18596_s4 + $0x8] sm:$0xf] }
  0x24   :  { %224 = vst [vmem:[#allocation5] sm:$0xf] %v223_v56  ;;  %226 = vst [vmem:[#allocation5 + $0x4] sm:$0xf] %v225_v40  ;;  %v227_v48 = vld [vmem:[%s18596_s4 + $0x4] sm:$0xf] }
  0x25   :  { %v229_v55 = vld [vmem:[%s18596_s4 + $0xc] sm:$0xff]   ;;  %v233_v0 = vld [vmem:[%s18596_s4 + $0x18] sm:$0xf]  ;;  %228 = vst [vmem:[#allocation5 + $0x8] sm:$0xf] %v227_v48  ;;  %v237_v40 = vld [vmem:[%s18596_s4 + $0x1c] sm:$0xff]  }
  0x26   :  { %230 = vst [vmem:[#allocation5 + $0xc] sm:$0xff] %v229_v55   ;;  %234 = vst [vmem:[#allocation5 + $0x14] sm:$0xf] %v233_v0  ;;  %v235_v56 = vld [vmem:[%s18596_s4 + $0x14] sm:$0xf]  ;;  %v245_v55 = vld [vmem:[%s18596_s4 + $0x2c] sm:$0xff]  }
  0x27   :  { %v241_v39 = vld [vmem:[%s18596_s4 + $0x28] sm:$0xf]  ;;  %236 = vst [vmem:[#allocation5 + $0x18] sm:$0xf] %v235_v56  ;;  %238 = vst [vmem:[#allocation5 + $0x1c] sm:$0xff] %v237_v40  }
  0x28   :  { %242 = vst [vmem:[#allocation5 + $0x24] sm:$0xf] %v241_v39  ;;  %v243_v48 = vld [vmem:[%s18596_s4 + $0x24] sm:$0xf]  ;;  %v249_v0 = vld [vmem:[%s18596_s4 + $0x38] sm:$0xf] }
  0x29   :  { %244 = vst [vmem:[#allocation5 + $0x28] sm:$0xf] %v243_v48  ;;  %246 = vst [vmem:[#allocation5 + $0x2c] sm:$0xff] %v245_v55   ;;  %v251_v56 = vld [vmem:[%s18596_s4 + $0x34] sm:$0xf]  ;;  %v253_v39 = vld [vmem:[%s18596_s4 + $0x3c] sm:$0xff]  }
  0x2a   :  { %250 = vst [vmem:[#allocation5 + $0x34] sm:$0xf] %v249_v0  ;;  %v257_v40 = vld [vmem:[%s18596_s4 + $0x48] sm:$0xf]  ;;  %252 = vst [vmem:[#allocation5 + $0x38] sm:$0xf] %v251_v56 }
  0x2b   :  { %254 = vst [vmem:[#allocation5 + $0x3c] sm:$0xff] %v253_v39   ;;  %258 = vst [vmem:[#allocation5 + $0x44] sm:$0xf] %v257_v40  ;;  %v259_v48 = vld [vmem:[%s18596_s4 + $0x44] sm:$0xf]  ;;  %v261_v55 = vld [vmem:[%s18596_s4 + $0x4c] sm:$0xff]  }
  0x2c   :  { %v265_v0 = vld [vmem:[%s18596_s4 + $0x58] sm:$0xf]  ;;  %260 = vst [vmem:[#allocation5 + $0x48] sm:$0xf] %v259_v48  ;;  %262 = vst [vmem:[#allocation5 + $0x4c] sm:$0xff] %v261_v55   ;;  %v269_v39 = vld [vmem:[%s18596_s4 + $0x5c] sm:$0xff]  }
  0x2d   :  { %266 = vst [vmem:[#allocation5 + $0x54] sm:$0xf] %v265_v0  ;;  %v267_v56 = vld [vmem:[%s18596_s4 + $0x54] sm:$0xf]  ;;  %v273_v40 = vld [vmem:[%s18596_s4 + $0x68] sm:$0xf] }
  0x2e   :  { %268 = vst [vmem:[#allocation5 + $0x58] sm:$0xf] %v267_v56  ;;  %270 = vst [vmem:[#allocation5 + $0x5c] sm:$0xff] %v269_v39   ;;  %v275_v48 = vld [vmem:[%s18596_s4 + $0x64] sm:$0xf]  ;;  %v277_v55 = vld [vmem:[%s18596_s4 + $0x6c] sm:$0xff]  }
  0x2f   :  { %274 = vst [vmem:[#allocation5 + $0x64] sm:$0xf] %v273_v40  ;;  %v281_v0 = vld [vmem:[%s18596_s4 + $0x78] sm:$0xf]  ;;  %276 = vst [vmem:[#allocation5 + $0x68] sm:$0xf] %v275_v48 }
  0x30   :  { %278 = vst [vmem:[#allocation5 + $0x6c] sm:$0xff] %v277_v55   ;;  %282 = vst [vmem:[#allocation5 + $0x74] sm:$0xf] %v281_v0  ;;  %v283_v56 = vld [vmem:[%s18596_s4 + $0x74] sm:$0xf]  ;;  %v285_v39 = vld [vmem:[%s18596_s4 + $0x7c] sm:$0xff]  }
  0x31   :  { %v289_v40 = vld [vmem:[%s18596_s4 + $0x88] sm:$0xf]  ;;  %284 = vst [vmem:[#allocation5 + $0x78] sm:$0xf] %v283_v56  ;;  %286 = vst [vmem:[#allocation5 + $0x7c] sm:$0xff] %v285_v39   ;;  %v293_v55 = vld [vmem:[%s18596_s4 + $0x8c] sm:$0xff]  }
  0x32   :  { %290 = vst [vmem:[#allocation5 + $0x84] sm:$0xf] %v289_v40  ;;  %v291_v48 = vld [vmem:[%s18596_s4 + $0x84] sm:$0xf]  ;;  %v297_v0 = vld [vmem:[%s18596_s4 + $0x98] sm:$0xf] }
  0x33   :  { %292 = vst [vmem:[#allocation5 + $0x88] sm:$0xf] %v291_v48  ;;  %294 = vst [vmem:[#allocation5 + $0x8c] sm:$0xff] %v293_v55   ;;  %v299_v56 = vld [vmem:[%s18596_s4 + $0x94] sm:$0xf]  ;;  %v301_v39 = vld [vmem:[%s18596_s4 + $0x9c] sm:$0xff]  }
  0x34   :  { %298 = vst [vmem:[#allocation5 + $0x94] sm:$0xf] %v297_v0  ;;  %v305_v40 = vld [vmem:[%s18596_s4 + $0xa8] sm:$0xf]  ;;  %300 = vst [vmem:[#allocation5 + $0x98] sm:$0xf] %v299_v56 }
  0x35   :  { %302 = vst [vmem:[#allocation5 + $0x9c] sm:$0xff] %v301_v39   ;;  %306 = vst [vmem:[#allocation5 + $0xa4] sm:$0xf] %v305_v40  ;;  %v307_v48 = vld [vmem:[%s18596_s4 + $0xa4] sm:$0xf]  ;;  %v309_v55 = vld [vmem:[%s18596_s4 + $0xac] sm:$0xff]  }
  0x36   :  { %v313_v0 = vld [vmem:[%s18596_s4 + $0xb8] sm:$0xf]  ;;  %308 = vst [vmem:[#allocation5 + $0xa8] sm:$0xf] %v307_v48  ;;  %310 = vst [vmem:[#allocation5 + $0xac] sm:$0xff] %v309_v55   ;;  %v317_v39 = vld [vmem:[%s18596_s4 + $0xbc] sm:$0xff]  }
  0x37   :  { %314 = vst [vmem:[#allocation5 + $0xb4] sm:$0xf] %v313_v0  ;;  %v315_v56 = vld [vmem:[%s18596_s4 + $0xb4] sm:$0xf]  ;;  %v321_v40 = vld [vmem:[%s18596_s4 + $0xc8] sm:$0xf] }
  0x38   :  { %316 = vst [vmem:[#allocation5 + $0xb8] sm:$0xf] %v315_v56  ;;  %318 = vst [vmem:[#allocation5 + $0xbc] sm:$0xff] %v317_v39   ;;  %v323_v48 = vld [vmem:[%s18596_s4 + $0xc4] sm:$0xf]  ;;  %v325_v55 = vld [vmem:[%s18596_s4 + $0xcc] sm:$0xff]  }
  0x39   :  { %322 = vst [vmem:[#allocation5 + $0xc4] sm:$0xf] %v321_v40  ;;  %v329_v0 = vld [vmem:[%s18596_s4 + $0xd8] sm:$0xf]  ;;  %324 = vst [vmem:[#allocation5 + $0xc8] sm:$0xf] %v323_v48 }
  0x3a   :  { %326 = vst [vmem:[#allocation5 + $0xcc] sm:$0xff] %v325_v55   ;;  %330 = vst [vmem:[#allocation5 + $0xd4] sm:$0xf] %v329_v0  ;;  %v331_v56 = vld [vmem:[%s18596_s4 + $0xd4] sm:$0xf]  ;;  %v333_v39 = vld [vmem:[%s18596_s4 + $0xdc] sm:$0xff]  }
  0x3b   :  { %v337_v40 = vld [vmem:[%s18596_s4 + $0xe8] sm:$0xf]  ;;  %332 = vst [vmem:[#allocation5 + $0xd8] sm:$0xf] %v331_v56  ;;  %334 = vst [vmem:[#allocation5 + $0xdc] sm:$0xff] %v333_v39   ;;  %v341_v55 = vld [vmem:[%s18596_s4 + $0xec] sm:$0xff]  }
  0x3c   :  { %338 = vst [vmem:[#allocation5 + $0xe4] sm:$0xf] %v337_v40  ;;  %v339_v48 = vld [vmem:[%s18596_s4 + $0xe4] sm:$0xf]  ;;  %v345_v0 = vld [vmem:[%s18596_s4 + $0xf8] sm:$0xf] }
  0x3d   :  { %340 = vst [vmem:[#allocation5 + $0xe8] sm:$0xf] %v339_v48  ;;  %342 = vst [vmem:[#allocation5 + $0xec] sm:$0xff] %v341_v55   ;;  %v347_v56 = vld [vmem:[%s18596_s4 + $0xf4] sm:$0xf]  ;;  %v349_v39 = vld [vmem:[%s18596_s4 + $0xfc] sm:$0xff]  }
  0x3e   :  { %346 = vst [vmem:[#allocation5 + $0xf4] sm:$0xf] %v345_v0  ;;  %v353_v40 = vld [vmem:[%s18596_s4 + $0x108] sm:$0xf]  ;;  %348 = vst [vmem:[#allocation5 + $0xf8] sm:$0xf] %v347_v56 }
  0x3f   :  { %350 = vst [vmem:[#allocation5 + $0xfc] sm:$0xff] %v349_v39   ;;  %354 = vst [vmem:[#allocation5 + $0x104] sm:$0xf] %v353_v40  ;;  %v355_v48 = vld [vmem:[%s18596_s4 + $0x104] sm:$0xf]  ;;  %v357_v55 = vld [vmem:[%s18596_s4 + $0x10c] sm:$0xff]  }
  0x40   :  { %v361_v0 = vld [vmem:[%s18596_s4 + $0x118] sm:$0xf]  ;;  %356 = vst [vmem:[#allocation5 + $0x108] sm:$0xf] %v355_v48  ;;  %358 = vst [vmem:[#allocation5 + $0x10c] sm:$0xff] %v357_v55   ;;  %v365_v39 = vld [vmem:[%s18596_s4 + $0x11c] sm:$0xff]  }
  0x41   :  { %362 = vst [vmem:[#allocation5 + $0x114] sm:$0xf] %v361_v0  ;;  %v363_v56 = vld [vmem:[%s18596_s4 + $0x114] sm:$0xf]  ;;  %v369_v40 = vld [vmem:[%s18596_s4 + $0x128] sm:$0xf] }
  0x42   :  { %364 = vst [vmem:[#allocation5 + $0x118] sm:$0xf] %v363_v56  ;;  %366 = vst [vmem:[#allocation5 + $0x11c] sm:$0xff] %v365_v39   ;;  %v371_v48 = vld [vmem:[%s18596_s4 + $0x124] sm:$0xf]  ;;  %v373_v55 = vld [vmem:[%s18596_s4 + $0x12c] sm:$0xff]  }
  0x43   :  { %370 = vst [vmem:[#allocation5 + $0x124] sm:$0xf] %v369_v40  ;;  %v377_v0 = vld [vmem:[%s18596_s4 + $0x138] sm:$0xf]  ;;  %372 = vst [vmem:[#allocation5 + $0x128] sm:$0xf] %v371_v48 }
  0x44   :  { %374 = vst [vmem:[#allocation5 + $0x12c] sm:$0xff] %v373_v55   ;;  %378 = vst [vmem:[#allocation5 + $0x134] sm:$0xf] %v377_v0  ;;  %v379_v56 = vld [vmem:[%s18596_s4 + $0x134] sm:$0xf]  ;;  %v381_v39 = vld [vmem:[%s18596_s4 + $0x13c] sm:$0xff]  }
  0x45   :  { %v385_v40 = vld [vmem:[%s18596_s4 + $0x148] sm:$0xf]  ;;  %380 = vst [vmem:[#allocation5 + $0x138] sm:$0xf] %v379_v56  ;;  %382 = vst [vmem:[#allocation5 + $0x13c] sm:$0xff] %v381_v39   ;;  %v389_v55 = vld [vmem:[%s18596_s4 + $0x14c] sm:$0xff]  }
  0x46   :  { %386 = vst [vmem:[#allocation5 + $0x144] sm:$0xf] %v385_v40  ;;  %v387_v48 = vld [vmem:[%s18596_s4 + $0x144] sm:$0xf]  ;;  %v393_v0 = vld [vmem:[%s18596_s4 + $0x158] sm:$0xf] }
  0x47   :  { %388 = vst [vmem:[#allocation5 + $0x148] sm:$0xf] %v387_v48  ;;  %390 = vst [vmem:[#allocation5 + $0x14c] sm:$0xff] %v389_v55   ;;  %v395_v56 = vld [vmem:[%s18596_s4 + $0x154] sm:$0xf]  ;;  %v397_v39 = vld [vmem:[%s18596_s4 + $0x15c] sm:$0xff]  }
  0x48   :  { %394 = vst [vmem:[#allocation5 + $0x154] sm:$0xf] %v393_v0  ;;  %v401_v40 = vld [vmem:[%s18596_s4 + $0x168] sm:$0xf]  ;;  %396 = vst [vmem:[#allocation5 + $0x158] sm:$0xf] %v395_v56 }
  0x49   :  { %398 = vst [vmem:[#allocation5 + $0x15c] sm:$0xff] %v397_v39   ;;  %402 = vst [vmem:[#allocation5 + $0x164] sm:$0xf] %v401_v40  ;;  %v403_v48 = vld [vmem:[%s18596_s4 + $0x164] sm:$0xf]  ;;  %v405_v55 = vld [vmem:[%s18596_s4 + $0x16c] sm:$0xff]  }
  0x4a   :  { %v409_v0 = vld [vmem:[%s18596_s4 + $0x178] sm:$0xf]  ;;  %404 = vst [vmem:[#allocation5 + $0x168] sm:$0xf] %v403_v48  ;;  %406 = vst [vmem:[#allocation5 + $0x16c] sm:$0xff] %v405_v55   ;;  %v413_v39 = vld [vmem:[%s18596_s4 + $0x17c] sm:$0xff]  }
  0x4b   :  { %410 = vst [vmem:[#allocation5 + $0x174] sm:$0xf] %v409_v0  ;;  %v411_v56 = vld [vmem:[%s18596_s4 + $0x174] sm:$0xf]  ;;  %v417_v40 = vld [vmem:[%s18596_s4 + $0x188] sm:$0xf] }
  0x4c   :  { %412 = vst [vmem:[#allocation5 + $0x178] sm:$0xf] %v411_v56  ;;  %414 = vst [vmem:[#allocation5 + $0x17c] sm:$0xff] %v413_v39   ;;  %v419_v48 = vld [vmem:[%s18596_s4 + $0x184] sm:$0xf]  ;;  %v421_v55 = vld [vmem:[%s18596_s4 + $0x18c] sm:$0xff]  }
  0x4d   :  { %418 = vst [vmem:[#allocation5 + $0x184] sm:$0xf] %v417_v40  ;;  %v425_v0 = vld [vmem:[%s18596_s4 + $0x198] sm:$0xf]  ;;  %420 = vst [vmem:[#allocation5 + $0x188] sm:$0xf] %v419_v48 }
  0x4e   :  { %422 = vst [vmem:[#allocation5 + $0x18c] sm:$0xff] %v421_v55   ;;  %426 = vst [vmem:[#allocation5 + $0x194] sm:$0xf] %v425_v0  ;;  %v427_v56 = vld [vmem:[%s18596_s4 + $0x194] sm:$0xf]  ;;  %v429_v39 = vld [vmem:[%s18596_s4 + $0x19c] sm:$0xff]  }
  0x4f   :  { %v433_v40 = vld [vmem:[%s18596_s4 + $0x1a8] sm:$0xf]  ;;  %428 = vst [vmem:[#allocation5 + $0x198] sm:$0xf] %v427_v56  ;;  %430 = vst [vmem:[#allocation5 + $0x19c] sm:$0xff] %v429_v39   ;;  %v437_v55 = vld [vmem:[%s18596_s4 + $0x1ac] sm:$0xff]  }
  0x50   :  { %434 = vst [vmem:[#allocation5 + $0x1a4] sm:$0xf] %v433_v40  ;;  %v435_v48 = vld [vmem:[%s18596_s4 + $0x1a4] sm:$0xf]  ;;  %v441_v0 = vld [vmem:[%s18596_s4 + $0x1b8] sm:$0xf] }
  0x51   :  { %436 = vst [vmem:[#allocation5 + $0x1a8] sm:$0xf] %v435_v48  ;;  %438 = vst [vmem:[#allocation5 + $0x1ac] sm:$0xff] %v437_v55   ;;  %v443_v56 = vld [vmem:[%s18596_s4 + $0x1b4] sm:$0xf]  ;;  %v445_v39 = vld [vmem:[%s18596_s4 + $0x1bc] sm:$0xff]  }
  0x52   :  { %442 = vst [vmem:[#allocation5 + $0x1b4] sm:$0xf] %v441_v0  ;;  %v449_v40 = vld [vmem:[%s18596_s4 + $0x1c8] sm:$0xf]  ;;  %444 = vst [vmem:[#allocation5 + $0x1b8] sm:$0xf] %v443_v56 }
  0x53   :  { %446 = vst [vmem:[#allocation5 + $0x1bc] sm:$0xff] %v445_v39   ;;  %450 = vst [vmem:[#allocation5 + $0x1c4] sm:$0xf] %v449_v40  ;;  %v451_v48 = vld [vmem:[%s18596_s4 + $0x1c4] sm:$0xf]  ;;  %v453_v55 = vld [vmem:[%s18596_s4 + $0x1cc] sm:$0xff]  }
  0x54   :  { %v457_v0 = vld [vmem:[%s18596_s4 + $0x1d8] sm:$0xf]  ;;  %452 = vst [vmem:[#allocation5 + $0x1c8] sm:$0xf] %v451_v48  ;;  %454 = vst [vmem:[#allocation5 + $0x1cc] sm:$0xff] %v453_v55   ;;  %v461_v39 = vld [vmem:[%s18596_s4 + $0x1dc] sm:$0xff]  }
  0x55   :  { %458 = vst [vmem:[#allocation5 + $0x1d4] sm:$0xf] %v457_v0  ;;  %v459_v56 = vld [vmem:[%s18596_s4 + $0x1d4] sm:$0xf]  ;;  %v465_v40 = vld [vmem:[%s18596_s4 + $0x1e8] sm:$0xf] }
  0x56   :  { %460 = vst [vmem:[#allocation5 + $0x1d8] sm:$0xf] %v459_v56  ;;  %462 = vst [vmem:[#allocation5 + $0x1dc] sm:$0xff] %v461_v39   ;;  %v467_v48 = vld [vmem:[%s18596_s4 + $0x1e4] sm:$0xf]  ;;  %v469_v55 = vld [vmem:[%s18596_s4 + $0x1ec] sm:$0xff]  }
  0x57   :  { %466 = vst [vmem:[#allocation5 + $0x1e4] sm:$0xf] %v465_v40  ;;  %v473_v0 = vld [vmem:[%s18596_s4 + $0x1f8] sm:$0xf]  ;;  %468 = vst [vmem:[#allocation5 + $0x1e8] sm:$0xf] %v467_v48 }
  0x58   :  { %470 = vst [vmem:[#allocation5 + $0x1ec] sm:$0xff] %v469_v55   ;;  %474 = vst [vmem:[#allocation5 + $0x1f4] sm:$0xf] %v473_v0  ;;  %v475_v56 = vld [vmem:[%s18596_s4 + $0x1f4] sm:$0xf]  ;;  %v477_v39 = vld [vmem:[%s18596_s4 + $0x1fc] sm:$0xff]  }
  0x59   :  { %v481_v40 = vld [vmem:[%s18596_s4 + $0x208] sm:$0xf]  ;;  %476 = vst [vmem:[#allocation5 + $0x1f8] sm:$0xf] %v475_v56  ;;  %478 = vst [vmem:[#allocation5 + $0x1fc] sm:$0xff] %v477_v39   ;;  %v485_v55 = vld [vmem:[%s18596_s4 + $0x20c] sm:$0xff]  }
  0x5a   :  { %482 = vst [vmem:[#allocation5 + $0x204] sm:$0xf] %v481_v40  ;;  %v483_v48 = vld [vmem:[%s18596_s4 + $0x204] sm:$0xf]  ;;  %v489_v0 = vld [vmem:[%s18596_s4 + $0x218] sm:$0xf] }
  0x5b   :  { %484 = vst [vmem:[#allocation5 + $0x208] sm:$0xf] %v483_v48  ;;  %486 = vst [vmem:[#allocation5 + $0x20c] sm:$0xff] %v485_v55   ;;  %v491_v56 = vld [vmem:[%s18596_s4 + $0x214] sm:$0xf]  ;;  %v493_v39 = vld [vmem:[%s18596_s4 + $0x21c] sm:$0xff]  }
  0x5c   :  { %490 = vst [vmem:[#allocation5 + $0x214] sm:$0xf] %v489_v0  ;;  %v497_v40 = vld [vmem:[%s18596_s4 + $0x228] sm:$0xf]  ;;  %492 = vst [vmem:[#allocation5 + $0x218] sm:$0xf] %v491_v56 }
  0x5d   :  { %494 = vst [vmem:[#allocation5 + $0x21c] sm:$0xff] %v493_v39   ;;  %498 = vst [vmem:[#allocation5 + $0x224] sm:$0xf] %v497_v40  ;;  %v499_v48 = vld [vmem:[%s18596_s4 + $0x224] sm:$0xf]  ;;  %v501_v55 = vld [vmem:[%s18596_s4 + $0x22c] sm:$0xff]  }
  0x5e   :  { %v505_v0 = vld [vmem:[%s18596_s4 + $0x238] sm:$0xf]  ;;  %500 = vst [vmem:[#allocation5 + $0x228] sm:$0xf] %v499_v48  ;;  %502 = vst [vmem:[#allocation5 + $0x22c] sm:$0xff] %v501_v55   ;;  %v509_v39 = vld [vmem:[%s18596_s4 + $0x23c] sm:$0xff]  }
  0x5f   :  { %506 = vst [vmem:[#allocation5 + $0x234] sm:$0xf] %v505_v0  ;;  %v507_v56 = vld [vmem:[%s18596_s4 + $0x234] sm:$0xf]  ;;  %v513_v40 = vld [vmem:[%s18596_s4 + $0x248] sm:$0xf] }
  0x60   :  { %508 = vst [vmem:[#allocation5 + $0x238] sm:$0xf] %v507_v56  ;;  %510 = vst [vmem:[#allocation5 + $0x23c] sm:$0xff] %v509_v39   ;;  %v515_v48 = vld [vmem:[%s18596_s4 + $0x244] sm:$0xf]  ;;  %v517_v55 = vld [vmem:[%s18596_s4 + $0x24c] sm:$0xff]  }
  0x61   :  { %514 = vst [vmem:[#allocation5 + $0x244] sm:$0xf] %v513_v40  ;;  %v521_v0 = vld [vmem:[%s18596_s4 + $0x258] sm:$0xf]  ;;  %516 = vst [vmem:[#allocation5 + $0x248] sm:$0xf] %v515_v48 }
  0x62   :  { %518 = vst [vmem:[#allocation5 + $0x24c] sm:$0xff] %v517_v55   ;;  %522 = vst [vmem:[#allocation5 + $0x254] sm:$0xf] %v521_v0  ;;  %v523_v56 = vld [vmem:[%s18596_s4 + $0x254] sm:$0xf]  ;;  %v525_v39 = vld [vmem:[%s18596_s4 + $0x25c] sm:$0xff]  }
  0x63   :  { %v529_v40 = vld [vmem:[%s18596_s4 + $0x268] sm:$0xf]  ;;  %524 = vst [vmem:[#allocation5 + $0x258] sm:$0xf] %v523_v56  ;;  %526 = vst [vmem:[#allocation5 + $0x25c] sm:$0xff] %v525_v39   ;;  %v533_v55 = vld [vmem:[%s18596_s4 + $0x26c] sm:$0xff]  }
  0x64   :  { %530 = vst [vmem:[#allocation5 + $0x264] sm:$0xf] %v529_v40  ;;  %v531_v48 = vld [vmem:[%s18596_s4 + $0x264] sm:$0xf]  ;;  %v537_v0 = vld [vmem:[%s18596_s4 + $0x278] sm:$0xf] }
  0x65   :  { %532 = vst [vmem:[#allocation5 + $0x268] sm:$0xf] %v531_v48  ;;  %534 = vst [vmem:[#allocation5 + $0x26c] sm:$0xff] %v533_v55   ;;  %v539_v56 = vld [vmem:[%s18596_s4 + $0x274] sm:$0xf]  ;;  %v541_v39 = vld [vmem:[%s18596_s4 + $0x27c] sm:$0xff]  }
  0x66   :  { %538 = vst [vmem:[#allocation5 + $0x274] sm:$0xf] %v537_v0  ;;  %v545_v40 = vld [vmem:[%s18596_s4 + $0x288] sm:$0xf]  ;;  %540 = vst [vmem:[#allocation5 + $0x278] sm:$0xf] %v539_v56 }
  0x67   :  { %542 = vst [vmem:[#allocation5 + $0x27c] sm:$0xff] %v541_v39   ;;  %546 = vst [vmem:[#allocation5 + $0x284] sm:$0xf] %v545_v40  ;;  %v547_v48 = vld [vmem:[%s18596_s4 + $0x284] sm:$0xf]  ;;  %v549_v55 = vld [vmem:[%s18596_s4 + $0x28c] sm:$0xff]  }
  0x68   :  { %v553_v0 = vld [vmem:[%s18596_s4 + $0x298] sm:$0xf]  ;;  %548 = vst [vmem:[#allocation5 + $0x288] sm:$0xf] %v547_v48  ;;  %550 = vst [vmem:[#allocation5 + $0x28c] sm:$0xff] %v549_v55   ;;  %v557_v39 = vld [vmem:[%s18596_s4 + $0x29c] sm:$0xff]  }
  0x69   :  { %554 = vst [vmem:[#allocation5 + $0x294] sm:$0xf] %v553_v0  ;;  %v555_v56 = vld [vmem:[%s18596_s4 + $0x294] sm:$0xf]  ;;  %v561_v40 = vld [vmem:[%s18596_s4 + $0x2a8] sm:$0xf] }
  0x6a   :  { %556 = vst [vmem:[#allocation5 + $0x298] sm:$0xf] %v555_v56  ;;  %558 = vst [vmem:[#allocation5 + $0x29c] sm:$0xff] %v557_v39   ;;  %v563_v48 = vld [vmem:[%s18596_s4 + $0x2a4] sm:$0xf]  ;;  %v565_v55 = vld [vmem:[%s18596_s4 + $0x2ac] sm:$0xff]  }
  0x6b   :  { %562 = vst [vmem:[#allocation5 + $0x2a4] sm:$0xf] %v561_v40  ;;  %v569_v0 = vld [vmem:[%s18596_s4 + $0x2b8] sm:$0xf]  ;;  %564 = vst [vmem:[#allocation5 + $0x2a8] sm:$0xf] %v563_v48 }
  0x6c   :  { %566 = vst [vmem:[#allocation5 + $0x2ac] sm:$0xff] %v565_v55   ;;  %570 = vst [vmem:[#allocation5 + $0x2b4] sm:$0xf] %v569_v0  ;;  %v571_v56 = vld [vmem:[%s18596_s4 + $0x2b4] sm:$0xf]  ;;  %v573_v39 = vld [vmem:[%s18596_s4 + $0x2bc] sm:$0xff]  }
  0x6d   :  { %v577_v40 = vld [vmem:[%s18596_s4 + $0x2c8] sm:$0xf]  ;;  %572 = vst [vmem:[#allocation5 + $0x2b8] sm:$0xf] %v571_v56  ;;  %574 = vst [vmem:[#allocation5 + $0x2bc] sm:$0xff] %v573_v39   ;;  %v581_v55 = vld [vmem:[%s18596_s4 + $0x2cc] sm:$0xff]  }
  0x6e   :  { %578 = vst [vmem:[#allocation5 + $0x2c4] sm:$0xf] %v577_v40  ;;  %v579_v48 = vld [vmem:[%s18596_s4 + $0x2c4] sm:$0xf]  ;;  %v585_v0 = vld [vmem:[%s18596_s4 + $0x2d8] sm:$0xf] }
  0x6f   :  { %580 = vst [vmem:[#allocation5 + $0x2c8] sm:$0xf] %v579_v48  ;;  %582 = vst [vmem:[#allocation5 + $0x2cc] sm:$0xff] %v581_v55   ;;  %v587_v56 = vld [vmem:[%s18596_s4 + $0x2d4] sm:$0xf]  ;;  %v589_v39 = vld [vmem:[%s18596_s4 + $0x2dc] sm:$0xff]  }
  0x70   :  { %586 = vst [vmem:[#allocation5 + $0x2d4] sm:$0xf] %v585_v0  ;;  %v593_v40 = vld [vmem:[%s18596_s4 + $0x2e8] sm:$0xf]  ;;  %588 = vst [vmem:[#allocation5 + $0x2d8] sm:$0xf] %v587_v56 }
  0x71   :  { %590 = vst [vmem:[#allocation5 + $0x2dc] sm:$0xff] %v589_v39   ;;  %594 = vst [vmem:[#allocation5 + $0x2e4] sm:$0xf] %v593_v40  ;;  %v595_v48 = vld [vmem:[%s18596_s4 + $0x2e4] sm:$0xf]  ;;  %v597_v55 = vld [vmem:[%s18596_s4 + $0x2ec] sm:$0xff]  }
  0x72   :  { %v601_v0 = vld [vmem:[%s18596_s4 + $0x2f8] sm:$0xf]  ;;  %596 = vst [vmem:[#allocation5 + $0x2e8] sm:$0xf] %v595_v48  ;;  %598 = vst [vmem:[#allocation5 + $0x2ec] sm:$0xff] %v597_v55   ;;  %v605_v39 = vld [vmem:[%s18596_s4 + $0x2fc] sm:$0xff]  }
  0x73   :  { %602 = vst [vmem:[#allocation5 + $0x2f4] sm:$0xf] %v601_v0  ;;  %v603_v56 = vld [vmem:[%s18596_s4 + $0x2f4] sm:$0xf]  ;;  %v609_v40 = vld [vmem:[%s18596_s4 + $0x308] sm:$0xf] }
  0x74   :  { %604 = vst [vmem:[#allocation5 + $0x2f8] sm:$0xf] %v603_v56  ;;  %606 = vst [vmem:[#allocation5 + $0x2fc] sm:$0xff] %v605_v39   ;;  %v611_v48 = vld [vmem:[%s18596_s4 + $0x304] sm:$0xf]  ;;  %v613_v55 = vld [vmem:[%s18596_s4 + $0x30c] sm:$0xff]  }
  0x75   :  { %610 = vst [vmem:[#allocation5 + $0x304] sm:$0xf] %v609_v40  ;;  %v617_v0 = vld [vmem:[%s18596_s4 + $0x318] sm:$0xf]  ;;  %612 = vst [vmem:[#allocation5 + $0x308] sm:$0xf] %v611_v48 }
  0x76   :  { %614 = vst [vmem:[#allocation5 + $0x30c] sm:$0xff] %v613_v55   ;;  %618 = vst [vmem:[#allocation5 + $0x314] sm:$0xf] %v617_v0  ;;  %v619_v56 = vld [vmem:[%s18596_s4 + $0x314] sm:$0xf]  ;;  %v621_v39 = vld [vmem:[%s18596_s4 + $0x31c] sm:$0xff]  }
  0x77   :  { %v625_v40 = vld [vmem:[%s18596_s4 + $0x328] sm:$0xf]  ;;  %620 = vst [vmem:[#allocation5 + $0x318] sm:$0xf] %v619_v56  ;;  %622 = vst [vmem:[#allocation5 + $0x31c] sm:$0xff] %v621_v39   ;;  %v629_v55 = vld [vmem:[%s18596_s4 + $0x32c] sm:$0xff]  }
  0x78   :  { %626 = vst [vmem:[#allocation5 + $0x324] sm:$0xf] %v625_v40  ;;  %v627_v48 = vld [vmem:[%s18596_s4 + $0x324] sm:$0xf]  ;;  %v633_v0 = vld [vmem:[%s18596_s4 + $0x338] sm:$0xf] }
  0x79   :  { %628 = vst [vmem:[#allocation5 + $0x328] sm:$0xf] %v627_v48  ;;  %630 = vst [vmem:[#allocation5 + $0x32c] sm:$0xff] %v629_v55   ;;  %v635_v56 = vld [vmem:[%s18596_s4 + $0x334] sm:$0xf]  ;;  %v637_v39 = vld [vmem:[%s18596_s4 + $0x33c] sm:$0xff]  }
  0x7a   :  { %634 = vst [vmem:[#allocation5 + $0x334] sm:$0xf] %v633_v0  ;;  %v641_v40 = vld [vmem:[%s18596_s4 + $0x348] sm:$0xf]  ;;  %636 = vst [vmem:[#allocation5 + $0x338] sm:$0xf] %v635_v56 }
  0x7b   :  { %638 = vst [vmem:[#allocation5 + $0x33c] sm:$0xff] %v637_v39   ;;  %642 = vst [vmem:[#allocation5 + $0x344] sm:$0xf] %v641_v40  ;;  %v643_v48 = vld [vmem:[%s18596_s4 + $0x344] sm:$0xf]  ;;  %v645_v55 = vld [vmem:[%s18596_s4 + $0x34c] sm:$0xff]  }
  0x7c   :  { %v649_v0 = vld [vmem:[%s18596_s4 + $0x358] sm:$0xf]  ;;  %644 = vst [vmem:[#allocation5 + $0x348] sm:$0xf] %v643_v48  ;;  %646 = vst [vmem:[#allocation5 + $0x34c] sm:$0xff] %v645_v55   ;;  %v653_v39 = vld [vmem:[%s18596_s4 + $0x35c] sm:$0xff]  }
  0x7d   :  { %650 = vst [vmem:[#allocation5 + $0x354] sm:$0xf] %v649_v0  ;;  %v651_v56 = vld [vmem:[%s18596_s4 + $0x354] sm:$0xf]  ;;  %v657_v40 = vld [vmem:[%s18596_s4 + $0x368] sm:$0xf] }
  0x7e   :  { %652 = vst [vmem:[#allocation5 + $0x358] sm:$0xf] %v651_v56  ;;  %654 = vst [vmem:[#allocation5 + $0x35c] sm:$0xff] %v653_v39   ;;  %v659_v48 = vld [vmem:[%s18596_s4 + $0x364] sm:$0xf]  ;;  %v661_v55 = vld [vmem:[%s18596_s4 + $0x36c] sm:$0xff]  }
  0x7f   :  { %658 = vst [vmem:[#allocation5 + $0x364] sm:$0xf] %v657_v40  ;;  %v665_v0 = vld [vmem:[%s18596_s4 + $0x378] sm:$0xf]  ;;  %660 = vst [vmem:[#allocation5 + $0x368] sm:$0xf] %v659_v48 }
  0x80   :  { %662 = vst [vmem:[#allocation5 + $0x36c] sm:$0xff] %v661_v55   ;;  %666 = vst [vmem:[#allocation5 + $0x374] sm:$0xf] %v665_v0  ;;  %v667_v56 = vld [vmem:[%s18596_s4 + $0x374] sm:$0xf]  ;;  %v669_v39 = vld [vmem:[%s18596_s4 + $0x37c] sm:$0xff]  }
  0x81   :  { %v673_v40 = vld [vmem:[%s18596_s4 + $0x388] sm:$0xf]  ;;  %668 = vst [vmem:[#allocation5 + $0x378] sm:$0xf] %v667_v56  ;;  %670 = vst [vmem:[#allocation5 + $0x37c] sm:$0xff] %v669_v39   ;;  %v677_v55 = vld [vmem:[%s18596_s4 + $0x38c] sm:$0xff]  }
  0x82   :  { %674 = vst [vmem:[#allocation5 + $0x384] sm:$0xf] %v673_v40  ;;  %v675_v48 = vld [vmem:[%s18596_s4 + $0x384] sm:$0xf]  ;;  %v681_v0 = vld [vmem:[%s18596_s4 + $0x398] sm:$0xf] }
  0x83   :  { %676 = vst [vmem:[#allocation5 + $0x388] sm:$0xf] %v675_v48  ;;  %678 = vst [vmem:[#allocation5 + $0x38c] sm:$0xff] %v677_v55   ;;  %v683_v56 = vld [vmem:[%s18596_s4 + $0x394] sm:$0xf]  ;;  %v685_v39 = vld [vmem:[%s18596_s4 + $0x39c] sm:$0xff]  }
  0x84   :  { %682 = vst [vmem:[#allocation5 + $0x394] sm:$0xf] %v681_v0  ;;  %v689_v40 = vld [vmem:[%s18596_s4 + $0x3a8] sm:$0xf]  ;;  %684 = vst [vmem:[#allocation5 + $0x398] sm:$0xf] %v683_v56 }
  0x85   :  { %686 = vst [vmem:[#allocation5 + $0x39c] sm:$0xff] %v685_v39   ;;  %690 = vst [vmem:[#allocation5 + $0x3a4] sm:$0xf] %v689_v40  ;;  %v691_v48 = vld [vmem:[%s18596_s4 + $0x3a4] sm:$0xf]  ;;  %v693_v55 = vld [vmem:[%s18596_s4 + $0x3ac] sm:$0xff]  }
  0x86   :  { %v697_v0 = vld [vmem:[%s18596_s4 + $0x3b8] sm:$0xf]  ;;  %692 = vst [vmem:[#allocation5 + $0x3a8] sm:$0xf] %v691_v48  ;;  %694 = vst [vmem:[#allocation5 + $0x3ac] sm:$0xff] %v693_v55   ;;  %v701_v39 = vld [vmem:[%s18596_s4 + $0x3bc] sm:$0xff]  }
  0x87   :  { %698 = vst [vmem:[#allocation5 + $0x3b4] sm:$0xf] %v697_v0  ;;  %v699_v56 = vld [vmem:[%s18596_s4 + $0x3b4] sm:$0xf]  ;;  %v705_v40 = vld [vmem:[%s18596_s4 + $0x3c8] sm:$0xf] }
  0x88   :  { %700 = vst [vmem:[#allocation5 + $0x3b8] sm:$0xf] %v699_v56  ;;  %702 = vst [vmem:[#allocation5 + $0x3bc] sm:$0xff] %v701_v39   ;;  %v707_v48 = vld [vmem:[%s18596_s4 + $0x3c4] sm:$0xf]  ;;  %v709_v55 = vld [vmem:[%s18596_s4 + $0x3cc] sm:$0xff]  }
  0x89   :  { %706 = vst [vmem:[#allocation5 + $0x3c4] sm:$0xf] %v705_v40  ;;  %v713_v0 = vld [vmem:[%s18596_s4 + $0x3d8] sm:$0xf]  ;;  %708 = vst [vmem:[#allocation5 + $0x3c8] sm:$0xf] %v707_v48 }
  0x8a   :  { %710 = vst [vmem:[#allocation5 + $0x3cc] sm:$0xff] %v709_v55   ;;  %714 = vst [vmem:[#allocation5 + $0x3d4] sm:$0xf] %v713_v0  ;;  %v715_v56 = vld [vmem:[%s18596_s4 + $0x3d4] sm:$0xf]  ;;  %v717_v39 = vld [vmem:[%s18596_s4 + $0x3dc] sm:$0xff]  }
  0x8b   :  { %v721_v40 = vld [vmem:[%s18596_s4 + $0x3e8] sm:$0xf]  ;;  %716 = vst [vmem:[#allocation5 + $0x3d8] sm:$0xf] %v715_v56  ;;  %718 = vst [vmem:[#allocation5 + $0x3dc] sm:$0xff] %v717_v39   ;;  %v725_v55 = vld [vmem:[%s18596_s4 + $0x3ec] sm:$0xff]  }
  0x8c   :  { %722 = vst [vmem:[#allocation5 + $0x3e4] sm:$0xf] %v721_v40  ;;  %v723_v48 = vld [vmem:[%s18596_s4 + $0x3e4] sm:$0xf]  ;;  %v729_v0 = vld [vmem:[%s18596_s4 + $0x3f8] sm:$0xf] }
  0x8d   :  { %724 = vst [vmem:[#allocation5 + $0x3e8] sm:$0xf] %v723_v48  ;;  %726 = vst [vmem:[#allocation5 + $0x3ec] sm:$0xff] %v725_v55   ;;  %v731_v56 = vld [vmem:[%s18596_s4 + $0x3f4] sm:$0xf]  ;;  %v733_v39 = vld [vmem:[%s18596_s4 + $0x3fc] sm:$0xff]  }
  0x8e   :  { %730 = vst [vmem:[#allocation5 + $0x3f4] sm:$0xf] %v729_v0  ;;  %v737_v40 = vld [vmem:[%s18596_s4 + $0x408] sm:$0xf]  ;;  %732 = vst [vmem:[#allocation5 + $0x3f8] sm:$0xf] %v731_v56 }
  0x8f   :  { %734 = vst [vmem:[#allocation5 + $0x3fc] sm:$0xff] %v733_v39   ;;  %738 = vst [vmem:[#allocation5 + $0x404] sm:$0xf] %v737_v40  ;;  %v739_v48 = vld [vmem:[%s18596_s4 + $0x404] sm:$0xf]  ;;  %v741_v55 = vld [vmem:[%s18596_s4 + $0x40c] sm:$0xff]  }
  0x90   :  { %v745_v0 = vld [vmem:[%s18596_s4 + $0x418] sm:$0xf]  ;;  %740 = vst [vmem:[#allocation5 + $0x408] sm:$0xf] %v739_v48  ;;  %742 = vst [vmem:[#allocation5 + $0x40c] sm:$0xff] %v741_v55   ;;  %v749_v39 = vld [vmem:[%s18596_s4 + $0x41c] sm:$0xff]  }
  0x91   :  { %746 = vst [vmem:[#allocation5 + $0x414] sm:$0xf] %v745_v0  ;;  %v747_v56 = vld [vmem:[%s18596_s4 + $0x414] sm:$0xf]  ;;  %v753_v40 = vld [vmem:[%s18596_s4 + $0x428] sm:$0xf] }
  0x92   :  { %748 = vst [vmem:[#allocation5 + $0x418] sm:$0xf] %v747_v56  ;;  %750 = vst [vmem:[#allocation5 + $0x41c] sm:$0xff] %v749_v39   ;;  %v755_v48 = vld [vmem:[%s18596_s4 + $0x424] sm:$0xf]  ;;  %v757_v55 = vld [vmem:[%s18596_s4 + $0x42c] sm:$0xff]  }
  0x93   :  { %754 = vst [vmem:[#allocation5 + $0x424] sm:$0xf] %v753_v40  ;;  %v761_v0 = vld [vmem:[%s18596_s4 + $0x438] sm:$0xf]  ;;  %756 = vst [vmem:[#allocation5 + $0x428] sm:$0xf] %v755_v48 }
  0x94   :  { %758 = vst [vmem:[#allocation5 + $0x42c] sm:$0xff] %v757_v55   ;;  %762 = vst [vmem:[#allocation5 + $0x434] sm:$0xf] %v761_v0  ;;  %v763_v56 = vld [vmem:[%s18596_s4 + $0x434] sm:$0xf]  ;;  %v765_v39 = vld [vmem:[%s18596_s4 + $0x43c] sm:$0xff]  }
  0x95   :  { %v769_v40 = vld [vmem:[%s18596_s4 + $0x448] sm:$0xf]  ;;  %764 = vst [vmem:[#allocation5 + $0x438] sm:$0xf] %v763_v56  ;;  %766 = vst [vmem:[#allocation5 + $0x43c] sm:$0xff] %v765_v39   ;;  %v773_v55 = vld [vmem:[%s18596_s4 + $0x44c] sm:$0xff]  }
  0x96   :  { %770 = vst [vmem:[#allocation5 + $0x444] sm:$0xf] %v769_v40  ;;  %v771_v48 = vld [vmem:[%s18596_s4 + $0x444] sm:$0xf]  ;;  %v777_v0 = vld [vmem:[%s18596_s4 + $0x458] sm:$0xf] }
  0x97   :  { %772 = vst [vmem:[#allocation5 + $0x448] sm:$0xf] %v771_v48  ;;  %774 = vst [vmem:[#allocation5 + $0x44c] sm:$0xff] %v773_v55   ;;  %v779_v56 = vld [vmem:[%s18596_s4 + $0x454] sm:$0xf]  ;;  %v781_v39 = vld [vmem:[%s18596_s4 + $0x45c] sm:$0xff]  }
  0x98   :  { %778 = vst [vmem:[#allocation5 + $0x454] sm:$0xf] %v777_v0  ;;  %v785_v40 = vld [vmem:[%s18596_s4 + $0x468] sm:$0xf]  ;;  %780 = vst [vmem:[#allocation5 + $0x458] sm:$0xf] %v779_v56 }
  0x99   :  { %782 = vst [vmem:[#allocation5 + $0x45c] sm:$0xff] %v781_v39   ;;  %786 = vst [vmem:[#allocation5 + $0x464] sm:$0xf] %v785_v40  ;;  %v787_v48 = vld [vmem:[%s18596_s4 + $0x464] sm:$0xf]  ;;  %v789_v55 = vld [vmem:[%s18596_s4 + $0x46c] sm:$0xff]  }
  0x9a   :  { %v793_v0 = vld [vmem:[%s18596_s4 + $0x478] sm:$0xf]  ;;  %788 = vst [vmem:[#allocation5 + $0x468] sm:$0xf] %v787_v48  ;;  %790 = vst [vmem:[#allocation5 + $0x46c] sm:$0xff] %v789_v55   ;;  %v797_v39 = vld [vmem:[%s18596_s4 + $0x47c] sm:$0xff]  }
  0x9b   :  { %794 = vst [vmem:[#allocation5 + $0x474] sm:$0xf] %v793_v0  ;;  %v795_v56 = vld [vmem:[%s18596_s4 + $0x474] sm:$0xf]  ;;  %v801_v40 = vld [vmem:[%s18596_s4 + $0x488] sm:$0xf] }
  0x9c   :  { %796 = vst [vmem:[#allocation5 + $0x478] sm:$0xf] %v795_v56  ;;  %798 = vst [vmem:[#allocation5 + $0x47c] sm:$0xff] %v797_v39   ;;  %v803_v48 = vld [vmem:[%s18596_s4 + $0x484] sm:$0xf]  ;;  %v805_v55 = vld [vmem:[%s18596_s4 + $0x48c] sm:$0xff]  }
  0x9d   :  { %802 = vst [vmem:[#allocation5 + $0x484] sm:$0xf] %v801_v40  ;;  %v809_v0 = vld [vmem:[%s18596_s4 + $0x498] sm:$0xf]  ;;  %804 = vst [vmem:[#allocation5 + $0x488] sm:$0xf] %v803_v48 }
  0x9e   :  { %806 = vst [vmem:[#allocation5 + $0x48c] sm:$0xff] %v805_v55   ;;  %810 = vst [vmem:[#allocation5 + $0x494] sm:$0xf] %v809_v0  ;;  %v811_v56 = vld [vmem:[%s18596_s4 + $0x494] sm:$0xf]  ;;  %v813_v39 = vld [vmem:[%s18596_s4 + $0x49c] sm:$0xff]  }
  0x9f   :  { %v817_v40 = vld [vmem:[%s18596_s4 + $0x4a8] sm:$0xf]  ;;  %812 = vst [vmem:[#allocation5 + $0x498] sm:$0xf] %v811_v56  ;;  %814 = vst [vmem:[#allocation5 + $0x49c] sm:$0xff] %v813_v39   ;;  %v821_v55 = vld [vmem:[%s18596_s4 + $0x4ac] sm:$0xff]  }
  0xa0   :  { %818 = vst [vmem:[#allocation5 + $0x4a4] sm:$0xf] %v817_v40  ;;  %v819_v48 = vld [vmem:[%s18596_s4 + $0x4a4] sm:$0xf]  ;;  %v825_v0 = vld [vmem:[%s18596_s4 + $0x4b8] sm:$0xf] }
  0xa1   :  { %820 = vst [vmem:[#allocation5 + $0x4a8] sm:$0xf] %v819_v48  ;;  %822 = vst [vmem:[#allocation5 + $0x4ac] sm:$0xff] %v821_v55   ;;  %v827_v56 = vld [vmem:[%s18596_s4 + $0x4b4] sm:$0xf]  ;;  %v829_v39 = vld [vmem:[%s18596_s4 + $0x4bc] sm:$0xff]  }
  0xa2   :  { %826 = vst [vmem:[#allocation5 + $0x4b4] sm:$0xf] %v825_v0  ;;  %v833_v40 = vld [vmem:[%s18596_s4 + $0x4c8] sm:$0xf]  ;;  %828 = vst [vmem:[#allocation5 + $0x4b8] sm:$0xf] %v827_v56 }
  0xa3   :  { %830 = vst [vmem:[#allocation5 + $0x4bc] sm:$0xff] %v829_v39   ;;  %834 = vst [vmem:[#allocation5 + $0x4c4] sm:$0xf] %v833_v40  ;;  %v835_v48 = vld [vmem:[%s18596_s4 + $0x4c4] sm:$0xf]  ;;  %v837_v55 = vld [vmem:[%s18596_s4 + $0x4cc] sm:$0xff]  }
  0xa4   :  { %v841_v0 = vld [vmem:[%s18596_s4 + $0x4d8] sm:$0xf]  ;;  %836 = vst [vmem:[#allocation5 + $0x4c8] sm:$0xf] %v835_v48  ;;  %838 = vst [vmem:[#allocation5 + $0x4cc] sm:$0xff] %v837_v55   ;;  %v845_v39 = vld [vmem:[%s18596_s4 + $0x4dc] sm:$0xff]  }
  0xa5   :  { %842 = vst [vmem:[#allocation5 + $0x4d4] sm:$0xf] %v841_v0  ;;  %v843_v56 = vld [vmem:[%s18596_s4 + $0x4d4] sm:$0xf]  ;;  %v849_v40 = vld [vmem:[%s18596_s4 + $0x4e8] sm:$0xf] }
  0xa6   :  { %844 = vst [vmem:[#allocation5 + $0x4d8] sm:$0xf] %v843_v56  ;;  %846 = vst [vmem:[#allocation5 + $0x4dc] sm:$0xff] %v845_v39   ;;  %v851_v48 = vld [vmem:[%s18596_s4 + $0x4e4] sm:$0xf]  ;;  %v853_v55 = vld [vmem:[%s18596_s4 + $0x4ec] sm:$0xff]  }
  0xa7   :  { %850 = vst [vmem:[#allocation5 + $0x4e4] sm:$0xf] %v849_v40  ;;  %v857_v0 = vld [vmem:[%s18596_s4 + $0x4f8] sm:$0xf]  ;;  %852 = vst [vmem:[#allocation5 + $0x4e8] sm:$0xf] %v851_v48 }
  0xa8   :  { %854 = vst [vmem:[#allocation5 + $0x4ec] sm:$0xff] %v853_v55   ;;  %858 = vst [vmem:[#allocation5 + $0x4f4] sm:$0xf] %v857_v0  ;;  %v859_v56 = vld [vmem:[%s18596_s4 + $0x4f4] sm:$0xf]  ;;  %v861_v39 = vld [vmem:[%s18596_s4 + $0x4fc] sm:$0xff]  }
  0xa9   :  { %v865_v40 = vld [vmem:[%s18596_s4 + $0x508] sm:$0xf]  ;;  %860 = vst [vmem:[#allocation5 + $0x4f8] sm:$0xf] %v859_v56  ;;  %862 = vst [vmem:[#allocation5 + $0x4fc] sm:$0xff] %v861_v39   ;;  %v869_v55 = vld [vmem:[%s18596_s4 + $0x50c] sm:$0xff]  }
  0xaa   :  { %866 = vst [vmem:[#allocation5 + $0x504] sm:$0xf] %v865_v40  ;;  %v867_v48 = vld [vmem:[%s18596_s4 + $0x504] sm:$0xf]  ;;  %v873_v0 = vld [vmem:[%s18596_s4 + $0x518] sm:$0xf] }
  0xab   :  { %868 = vst [vmem:[#allocation5 + $0x508] sm:$0xf] %v867_v48  ;;  %870 = vst [vmem:[#allocation5 + $0x50c] sm:$0xff] %v869_v55   ;;  %v875_v56 = vld [vmem:[%s18596_s4 + $0x514] sm:$0xf]  ;;  %v877_v39 = vld [vmem:[%s18596_s4 + $0x51c] sm:$0xff]  }
  0xac   :  { %874 = vst [vmem:[#allocation5 + $0x514] sm:$0xf] %v873_v0  ;;  %v881_v40 = vld [vmem:[%s18596_s4 + $0x528] sm:$0xf]  ;;  %876 = vst [vmem:[#allocation5 + $0x518] sm:$0xf] %v875_v56 }
  0xad   :  { %878 = vst [vmem:[#allocation5 + $0x51c] sm:$0xff] %v877_v39   ;;  %882 = vst [vmem:[#allocation5 + $0x524] sm:$0xf] %v881_v40  ;;  %v883_v48 = vld [vmem:[%s18596_s4 + $0x524] sm:$0xf]  ;;  %v885_v55 = vld [vmem:[%s18596_s4 + $0x52c] sm:$0xff]  }
  0xae   :  { %v889_v0 = vld [vmem:[%s18596_s4 + $0x538] sm:$0xf]  ;;  %884 = vst [vmem:[#allocation5 + $0x528] sm:$0xf] %v883_v48  ;;  %886 = vst [vmem:[#allocation5 + $0x52c] sm:$0xff] %v885_v55   ;;  %v893_v39 = vld [vmem:[%s18596_s4 + $0x53c] sm:$0xff]  }
  0xaf   :  { %890 = vst [vmem:[#allocation5 + $0x534] sm:$0xf] %v889_v0  ;;  %v891_v56 = vld [vmem:[%s18596_s4 + $0x534] sm:$0xf]  ;;  %v897_v40 = vld [vmem:[%s18596_s4 + $0x548] sm:$0xf] }
  0xb0   :  { %892 = vst [vmem:[#allocation5 + $0x538] sm:$0xf] %v891_v56  ;;  %894 = vst [vmem:[#allocation5 + $0x53c] sm:$0xff] %v893_v39   ;;  %v899_v48 = vld [vmem:[%s18596_s4 + $0x544] sm:$0xf]  ;;  %v901_v55 = vld [vmem:[%s18596_s4 + $0x54c] sm:$0xff]  }
  0xb1   :  { %898 = vst [vmem:[#allocation5 + $0x544] sm:$0xf] %v897_v40  ;;  %v905_v0 = vld [vmem:[%s18596_s4 + $0x558] sm:$0xf]  ;;  %900 = vst [vmem:[#allocation5 + $0x548] sm:$0xf] %v899_v48 }
  0xb2   :  { %902 = vst [vmem:[#allocation5 + $0x54c] sm:$0xff] %v901_v55   ;;  %906 = vst [vmem:[#allocation5 + $0x554] sm:$0xf] %v905_v0  ;;  %v907_v56 = vld [vmem:[%s18596_s4 + $0x554] sm:$0xf]  ;;  %v909_v39 = vld [vmem:[%s18596_s4 + $0x55c] sm:$0xff]  }
  0xb3   :  { %v913_v40 = vld [vmem:[%s18596_s4 + $0x568] sm:$0xf]  ;;  %908 = vst [vmem:[#allocation5 + $0x558] sm:$0xf] %v907_v56  ;;  %910 = vst [vmem:[#allocation5 + $0x55c] sm:$0xff] %v909_v39   ;;  %v917_v55 = vld [vmem:[%s18596_s4 + $0x56c] sm:$0xff]  }
  0xb4   :  { %914 = vst [vmem:[#allocation5 + $0x564] sm:$0xf] %v913_v40  ;;  %v915_v48 = vld [vmem:[%s18596_s4 + $0x564] sm:$0xf]  ;;  %v921_v0 = vld [vmem:[%s18596_s4 + $0x578] sm:$0xf] }
  0xb5   :  { %916 = vst [vmem:[#allocation5 + $0x568] sm:$0xf] %v915_v48  ;;  %918 = vst [vmem:[#allocation5 + $0x56c] sm:$0xff] %v917_v55   ;;  %v923_v56 = vld [vmem:[%s18596_s4 + $0x574] sm:$0xf]  ;;  %v925_v39 = vld [vmem:[%s18596_s4 + $0x57c] sm:$0xff]  }
  0xb6   :  { %922 = vst [vmem:[#allocation5 + $0x574] sm:$0xf] %v921_v0  ;;  %v929_v40 = vld [vmem:[%s18596_s4 + $0x588] sm:$0xf]  ;;  %924 = vst [vmem:[#allocation5 + $0x578] sm:$0xf] %v923_v56 }
  0xb7   :  { %926 = vst [vmem:[#allocation5 + $0x57c] sm:$0xff] %v925_v39   ;;  %930 = vst [vmem:[#allocation5 + $0x584] sm:$0xf] %v929_v40  ;;  %v931_v48 = vld [vmem:[%s18596_s4 + $0x584] sm:$0xf]  ;;  %v933_v55 = vld [vmem:[%s18596_s4 + $0x58c] sm:$0xff]  }
  0xb8   :  { %v937_v0 = vld [vmem:[%s18596_s4 + $0x598] sm:$0xf]  ;;  %932 = vst [vmem:[#allocation5 + $0x588] sm:$0xf] %v931_v48  ;;  %934 = vst [vmem:[#allocation5 + $0x58c] sm:$0xff] %v933_v55   ;;  %v941_v39 = vld [vmem:[%s18596_s4 + $0x59c] sm:$0xff]  }
  0xb9   :  { %938 = vst [vmem:[#allocation5 + $0x594] sm:$0xf] %v937_v0  ;;  %v939_v56 = vld [vmem:[%s18596_s4 + $0x594] sm:$0xf]  ;;  %v945_v40 = vld [vmem:[%s18596_s4 + $0x5a8] sm:$0xf] }
  0xba   :  { %940 = vst [vmem:[#allocation5 + $0x598] sm:$0xf] %v939_v56  ;;  %942 = vst [vmem:[#allocation5 + $0x59c] sm:$0xff] %v941_v39   ;;  %v947_v48 = vld [vmem:[%s18596_s4 + $0x5a4] sm:$0xf]  ;;  %v949_v55 = vld [vmem:[%s18596_s4 + $0x5ac] sm:$0xff]  }
  0xbb   :  { %946 = vst [vmem:[#allocation5 + $0x5a4] sm:$0xf] %v945_v40  ;;  %v953_v0 = vld [vmem:[%s18596_s4 + $0x5b8] sm:$0xf]  ;;  %948 = vst [vmem:[#allocation5 + $0x5a8] sm:$0xf] %v947_v48 }
  0xbc   :  { %950 = vst [vmem:[#allocation5 + $0x5ac] sm:$0xff] %v949_v55   ;;  %954 = vst [vmem:[#allocation5 + $0x5b4] sm:$0xf] %v953_v0  ;;  %v955_v56 = vld [vmem:[%s18596_s4 + $0x5b4] sm:$0xf]  ;;  %v957_v39 = vld [vmem:[%s18596_s4 + $0x5bc] sm:$0xff]  }
  0xbd   :  { %v961_v40 = vld [vmem:[%s18596_s4 + $0x5c8] sm:$0xf]  ;;  %956 = vst [vmem:[#allocation5 + $0x5b8] sm:$0xf] %v955_v56  ;;  %958 = vst [vmem:[#allocation5 + $0x5bc] sm:$0xff] %v957_v39   ;;  %v965_v55 = vld [vmem:[%s18596_s4 + $0x5cc] sm:$0xff]  }
  0xbe   :  { %962 = vst [vmem:[#allocation5 + $0x5c4] sm:$0xf] %v961_v40  ;;  %v963_v48 = vld [vmem:[%s18596_s4 + $0x5c4] sm:$0xf]  ;;  %v969_v0 = vld [vmem:[%s18596_s4 + $0x5d8] sm:$0xf] }
  0xbf   :  { %964 = vst [vmem:[#allocation5 + $0x5c8] sm:$0xf] %v963_v48  ;;  %966 = vst [vmem:[#allocation5 + $0x5cc] sm:$0xff] %v965_v55   ;;  %v971_v56 = vld [vmem:[%s18596_s4 + $0x5d4] sm:$0xf]  ;;  %v973_v39 = vld [vmem:[%s18596_s4 + $0x5dc] sm:$0xff]  }
  0xc0   :  { %970 = vst [vmem:[#allocation5 + $0x5d4] sm:$0xf] %v969_v0  ;;  %v977_v40 = vld [vmem:[%s18596_s4 + $0x5e8] sm:$0xf]  ;;  %972 = vst [vmem:[#allocation5 + $0x5d8] sm:$0xf] %v971_v56 }
  0xc1   :  { %974 = vst [vmem:[#allocation5 + $0x5dc] sm:$0xff] %v973_v39   ;;  %978 = vst [vmem:[#allocation5 + $0x5e4] sm:$0xf] %v977_v40  ;;  %v979_v48 = vld [vmem:[%s18596_s4 + $0x5e4] sm:$0xf]  ;;  %v981_v55 = vld [vmem:[%s18596_s4 + $0x5ec] sm:$0xff]  }
  0xc2   :  { %v985_v0 = vld [vmem:[%s18596_s4 + $0x5f8] sm:$0xf]  ;;  %980 = vst [vmem:[#allocation5 + $0x5e8] sm:$0xf] %v979_v48  ;;  %982 = vst [vmem:[#allocation5 + $0x5ec] sm:$0xff] %v981_v55   ;;  %v989_v39 = vld [vmem:[%s18596_s4 + $0x5fc] sm:$0xff]  }
  0xc3   :  { %986 = vst [vmem:[#allocation5 + $0x5f4] sm:$0xf] %v985_v0  ;;  %v987_v56 = vld [vmem:[%s18596_s4 + $0x5f4] sm:$0xf]  ;;  %v993_v40 = vld [vmem:[%s18596_s4 + $0x608] sm:$0xf] }
  0xc4   :  { %988 = vst [vmem:[#allocation5 + $0x5f8] sm:$0xf] %v987_v56  ;;  %990 = vst [vmem:[#allocation5 + $0x5fc] sm:$0xff] %v989_v39   ;;  %v995_v48 = vld [vmem:[%s18596_s4 + $0x604] sm:$0xf]  ;;  %v997_v55 = vld [vmem:[%s18596_s4 + $0x60c] sm:$0xff]  }
  0xc5   :  { %994 = vst [vmem:[#allocation5 + $0x604] sm:$0xf] %v993_v40  ;;  %v1001_v0 = vld [vmem:[%s18596_s4 + $0x618] sm:$0xf]  ;;  %996 = vst [vmem:[#allocation5 + $0x608] sm:$0xf] %v995_v48 }
  0xc6   :  { %998 = vst [vmem:[#allocation5 + $0x60c] sm:$0xff] %v997_v55   ;;  %1002 = vst [vmem:[#allocation5 + $0x614] sm:$0xf] %v1001_v0  ;;  %v1003_v56 = vld [vmem:[%s18596_s4 + $0x614] sm:$0xf]  ;;  %v1005_v39 = vld [vmem:[%s18596_s4 + $0x61c] sm:$0xff]  }
  0xc7   :  { %v1009_v40 = vld [vmem:[%s18596_s4 + $0x628] sm:$0xf]  ;;  %1004 = vst [vmem:[#allocation5 + $0x618] sm:$0xf] %v1003_v56  ;;  %1006 = vst [vmem:[#allocation5 + $0x61c] sm:$0xff] %v1005_v39   ;;  %v1013_v55 = vld [vmem:[%s18596_s4 + $0x62c] sm:$0xff]  }
  0xc8   :  { %1010 = vst [vmem:[#allocation5 + $0x624] sm:$0xf] %v1009_v40  ;;  %v1011_v48 = vld [vmem:[%s18596_s4 + $0x624] sm:$0xf]  ;;  %v1017_v0 = vld [vmem:[%s18596_s4 + $0x638] sm:$0xf] }
  0xc9   :  { %1012 = vst [vmem:[#allocation5 + $0x628] sm:$0xf] %v1011_v48  ;;  %1014 = vst [vmem:[#allocation5 + $0x62c] sm:$0xff] %v1013_v55   ;;  %v1019_v56 = vld [vmem:[%s18596_s4 + $0x634] sm:$0xf]  ;;  %v1021_v39 = vld [vmem:[%s18596_s4 + $0x63c] sm:$0xff]  }
  0xca   :  { %1018 = vst [vmem:[#allocation5 + $0x634] sm:$0xf] %v1017_v0  ;;  %v1025_v40 = vld [vmem:[%s18596_s4 + $0x648] sm:$0xf]  ;;  %1020 = vst [vmem:[#allocation5 + $0x638] sm:$0xf] %v1019_v56 }
  0xcb   :  { %1022 = vst [vmem:[#allocation5 + $0x63c] sm:$0xff] %v1021_v39   ;;  %1026 = vst [vmem:[#allocation5 + $0x644] sm:$0xf] %v1025_v40  ;;  %v1027_v48 = vld [vmem:[%s18596_s4 + $0x644] sm:$0xf]  ;;  %v1029_v55 = vld [vmem:[%s18596_s4 + $0x64c] sm:$0xff]  }
  0xcc   :  { %v1033_v0 = vld [vmem:[%s18596_s4 + $0x658] sm:$0xf]  ;;  %1028 = vst [vmem:[#allocation5 + $0x648] sm:$0xf] %v1027_v48  ;;  %1030 = vst [vmem:[#allocation5 + $0x64c] sm:$0xff] %v1029_v55   ;;  %v1037_v39 = vld [vmem:[%s18596_s4 + $0x65c] sm:$0xff]  }
  0xcd   :  { %1034 = vst [vmem:[#allocation5 + $0x654] sm:$0xf] %v1033_v0  ;;  %v1035_v56 = vld [vmem:[%s18596_s4 + $0x654] sm:$0xf]  ;;  %v1041_v40 = vld [vmem:[%s18596_s4 + $0x668] sm:$0xf] }
  0xce   :  { %1036 = vst [vmem:[#allocation5 + $0x658] sm:$0xf] %v1035_v56  ;;  %1038 = vst [vmem:[#allocation5 + $0x65c] sm:$0xff] %v1037_v39   ;;  %v1043_v48 = vld [vmem:[%s18596_s4 + $0x664] sm:$0xf]  ;;  %v1045_v55 = vld [vmem:[%s18596_s4 + $0x66c] sm:$0xff]  }
  0xcf   :  { %1042 = vst [vmem:[#allocation5 + $0x664] sm:$0xf] %v1041_v40  ;;  %v1049_v0 = vld [vmem:[%s18596_s4 + $0x678] sm:$0xf]  ;;  %1044 = vst [vmem:[#allocation5 + $0x668] sm:$0xf] %v1043_v48 }
  0xd0   :  { %1046 = vst [vmem:[#allocation5 + $0x66c] sm:$0xff] %v1045_v55   ;;  %1050 = vst [vmem:[#allocation5 + $0x674] sm:$0xf] %v1049_v0  ;;  %v1051_v56 = vld [vmem:[%s18596_s4 + $0x674] sm:$0xf]  ;;  %v1053_v39 = vld [vmem:[%s18596_s4 + $0x67c] sm:$0xff]  }
  0xd1   :  { %v1057_v40 = vld [vmem:[%s18596_s4 + $0x688] sm:$0xf]  ;;  %1052 = vst [vmem:[#allocation5 + $0x678] sm:$0xf] %v1051_v56  ;;  %1054 = vst [vmem:[#allocation5 + $0x67c] sm:$0xff] %v1053_v39   ;;  %v1061_v55 = vld [vmem:[%s18596_s4 + $0x68c] sm:$0xff]  }
  0xd2   :  { %1058 = vst [vmem:[#allocation5 + $0x684] sm:$0xf] %v1057_v40  ;;  %v1059_v48 = vld [vmem:[%s18596_s4 + $0x684] sm:$0xf]  ;;  %v1065_v0 = vld [vmem:[%s18596_s4 + $0x698] sm:$0xf] }
  0xd3   :  { %1060 = vst [vmem:[#allocation5 + $0x688] sm:$0xf] %v1059_v48  ;;  %1062 = vst [vmem:[#allocation5 + $0x68c] sm:$0xff] %v1061_v55   ;;  %v1067_v56 = vld [vmem:[%s18596_s4 + $0x694] sm:$0xf]  ;;  %v1069_v39 = vld [vmem:[%s18596_s4 + $0x69c] sm:$0xff]  }
  0xd4   :  { %1066 = vst [vmem:[#allocation5 + $0x694] sm:$0xf] %v1065_v0  ;;  %v1073_v40 = vld [vmem:[%s18596_s4 + $0x6a8] sm:$0xf]  ;;  %1068 = vst [vmem:[#allocation5 + $0x698] sm:$0xf] %v1067_v56 }
  0xd5   :  { %1070 = vst [vmem:[#allocation5 + $0x69c] sm:$0xff] %v1069_v39   ;;  %1074 = vst [vmem:[#allocation5 + $0x6a4] sm:$0xf] %v1073_v40  ;;  %v1075_v48 = vld [vmem:[%s18596_s4 + $0x6a4] sm:$0xf]  ;;  %v1077_v55 = vld [vmem:[%s18596_s4 + $0x6ac] sm:$0xff]  }
  0xd6   :  { %v1081_v0 = vld [vmem:[%s18596_s4 + $0x6b8] sm:$0xf]  ;;  %1076 = vst [vmem:[#allocation5 + $0x6a8] sm:$0xf] %v1075_v48  ;;  %1078 = vst [vmem:[#allocation5 + $0x6ac] sm:$0xff] %v1077_v55   ;;  %v1085_v39 = vld [vmem:[%s18596_s4 + $0x6bc] sm:$0xff]  }
  0xd7   :  { %1082 = vst [vmem:[#allocation5 + $0x6b4] sm:$0xf] %v1081_v0  ;;  %v1083_v56 = vld [vmem:[%s18596_s4 + $0x6b4] sm:$0xf]  ;;  %v1089_v40 = vld [vmem:[%s18596_s4 + $0x6c8] sm:$0xf] }
  0xd8   :  { %1084 = vst [vmem:[#allocation5 + $0x6b8] sm:$0xf] %v1083_v56  ;;  %1086 = vst [vmem:[#allocation5 + $0x6bc] sm:$0xff] %v1085_v39   ;;  %v1091_v48 = vld [vmem:[%s18596_s4 + $0x6c4] sm:$0xf]  ;;  %v1093_v55 = vld [vmem:[%s18596_s4 + $0x6cc] sm:$0xff]  }
  0xd9   :  { %1090 = vst [vmem:[#allocation5 + $0x6c4] sm:$0xf] %v1089_v40  ;;  %v1097_v0 = vld [vmem:[%s18596_s4 + $0x6d8] sm:$0xf]  ;;  %1092 = vst [vmem:[#allocation5 + $0x6c8] sm:$0xf] %v1091_v48 }
  0xda   :  { %1094 = vst [vmem:[#allocation5 + $0x6cc] sm:$0xff] %v1093_v55   ;;  %1098 = vst [vmem:[#allocation5 + $0x6d4] sm:$0xf] %v1097_v0  ;;  %v1099_v56 = vld [vmem:[%s18596_s4 + $0x6d4] sm:$0xf]  ;;  %v1101_v39 = vld [vmem:[%s18596_s4 + $0x6dc] sm:$0xff]  }
  0xdb   :  { %v1105_v40 = vld [vmem:[%s18596_s4 + $0x6e8] sm:$0xf]  ;;  %1100 = vst [vmem:[#allocation5 + $0x6d8] sm:$0xf] %v1099_v56  ;;  %1102 = vst [vmem:[#allocation5 + $0x6dc] sm:$0xff] %v1101_v39   ;;  %v1109_v55 = vld [vmem:[%s18596_s4 + $0x6ec] sm:$0xff]  }
  0xdc   :  { %1106 = vst [vmem:[#allocation5 + $0x6e4] sm:$0xf] %v1105_v40  ;;  %v1107_v48 = vld [vmem:[%s18596_s4 + $0x6e4] sm:$0xf]  ;;  %v1113_v0 = vld [vmem:[%s18596_s4 + $0x6f8] sm:$0xf] }
  0xdd   :  { %1108 = vst [vmem:[#allocation5 + $0x6e8] sm:$0xf] %v1107_v48  ;;  %1110 = vst [vmem:[#allocation5 + $0x6ec] sm:$0xff] %v1109_v55   ;;  %v1115_v56 = vld [vmem:[%s18596_s4 + $0x6f4] sm:$0xf]  ;;  %v1117_v39 = vld [vmem:[%s18596_s4 + $0x6fc] sm:$0xff]  }
  0xde   :  { %1114 = vst [vmem:[#allocation5 + $0x6f4] sm:$0xf] %v1113_v0  ;;  %v1121_v40 = vld [vmem:[%s18596_s4 + $0x708] sm:$0xf]  ;;  %1116 = vst [vmem:[#allocation5 + $0x6f8] sm:$0xf] %v1115_v56 }
  0xdf   :  { %1118 = vst [vmem:[#allocation5 + $0x6fc] sm:$0xff] %v1117_v39   ;;  %1122 = vst [vmem:[#allocation5 + $0x704] sm:$0xf] %v1121_v40  ;;  %v1123_v48 = vld [vmem:[%s18596_s4 + $0x704] sm:$0xf]  ;;  %v1125_v55 = vld [vmem:[%s18596_s4 + $0x70c] sm:$0xff]  }
  0xe0   :  { %v1129_v0 = vld [vmem:[%s18596_s4 + $0x718] sm:$0xf]  ;;  %1124 = vst [vmem:[#allocation5 + $0x708] sm:$0xf] %v1123_v48  ;;  %1126 = vst [vmem:[#allocation5 + $0x70c] sm:$0xff] %v1125_v55   ;;  %v1133_v39 = vld [vmem:[%s18596_s4 + $0x71c] sm:$0xff]  }
  0xe1   :  { %1130 = vst [vmem:[#allocation5 + $0x714] sm:$0xf] %v1129_v0  ;;  %v1131_v56 = vld [vmem:[%s18596_s4 + $0x714] sm:$0xf]  ;;  %v1137_v40 = vld [vmem:[%s18596_s4 + $0x728] sm:$0xf] }
  0xe2   :  { %1132 = vst [vmem:[#allocation5 + $0x718] sm:$0xf] %v1131_v56  ;;  %1134 = vst [vmem:[#allocation5 + $0x71c] sm:$0xff] %v1133_v39   ;;  %v1139_v48 = vld [vmem:[%s18596_s4 + $0x724] sm:$0xf]  ;;  %v1141_v55 = vld [vmem:[%s18596_s4 + $0x72c] sm:$0xff]  }
  0xe3   :  { %1138 = vst [vmem:[#allocation5 + $0x724] sm:$0xf] %v1137_v40  ;;  %v1145_v0 = vld [vmem:[%s18596_s4 + $0x738] sm:$0xf]  ;;  %1140 = vst [vmem:[#allocation5 + $0x728] sm:$0xf] %v1139_v48 }
  0xe4   :  { %1142 = vst [vmem:[#allocation5 + $0x72c] sm:$0xff] %v1141_v55   ;;  %1146 = vst [vmem:[#allocation5 + $0x734] sm:$0xf] %v1145_v0  ;;  %v1147_v56 = vld [vmem:[%s18596_s4 + $0x734] sm:$0xf]  ;;  %v1149_v39 = vld [vmem:[%s18596_s4 + $0x73c] sm:$0xff]  }
  0xe5   :  { %v1153_v40 = vld [vmem:[%s18596_s4 + $0x748] sm:$0xf]  ;;  %1148 = vst [vmem:[#allocation5 + $0x738] sm:$0xf] %v1147_v56  ;;  %1150 = vst [vmem:[#allocation5 + $0x73c] sm:$0xff] %v1149_v39   ;;  %v1157_v55 = vld [vmem:[%s18596_s4 + $0x74c] sm:$0xff]  }
  0xe6   :  { %1154 = vst [vmem:[#allocation5 + $0x744] sm:$0xf] %v1153_v40  ;;  %v1155_v48 = vld [vmem:[%s18596_s4 + $0x744] sm:$0xf]  ;;  %v1161_v0 = vld [vmem:[%s18596_s4 + $0x758] sm:$0xf] }
  0xe7   :  { %1156 = vst [vmem:[#allocation5 + $0x748] sm:$0xf] %v1155_v48  ;;  %1158 = vst [vmem:[#allocation5 + $0x74c] sm:$0xff] %v1157_v55   ;;  %v1163_v56 = vld [vmem:[%s18596_s4 + $0x754] sm:$0xf]  ;;  %v1165_v39 = vld [vmem:[%s18596_s4 + $0x75c] sm:$0xff]  }
  0xe8   :  { %1162 = vst [vmem:[#allocation5 + $0x754] sm:$0xf] %v1161_v0  ;;  %v1169_v40 = vld [vmem:[%s18596_s4 + $0x768] sm:$0xf]  ;;  %1164 = vst [vmem:[#allocation5 + $0x758] sm:$0xf] %v1163_v56 }
  0xe9   :  { %1166 = vst [vmem:[#allocation5 + $0x75c] sm:$0xff] %v1165_v39   ;;  %1170 = vst [vmem:[#allocation5 + $0x764] sm:$0xf] %v1169_v40  ;;  %v1171_v48 = vld [vmem:[%s18596_s4 + $0x764] sm:$0xf]  ;;  %v1173_v55 = vld [vmem:[%s18596_s4 + $0x76c] sm:$0xff]  }
  0xea   :  { %v1177_v0 = vld [vmem:[%s18596_s4 + $0x778] sm:$0xf]  ;;  %1172 = vst [vmem:[#allocation5 + $0x768] sm:$0xf] %v1171_v48  ;;  %1174 = vst [vmem:[#allocation5 + $0x76c] sm:$0xff] %v1173_v55   ;;  %v1181_v39 = vld [vmem:[%s18596_s4 + $0x77c] sm:$0xff]  }
  0xeb   :  { %1178 = vst [vmem:[#allocation5 + $0x774] sm:$0xf] %v1177_v0  ;;  %v1179_v56 = vld [vmem:[%s18596_s4 + $0x774] sm:$0xf]  ;;  %v1185_v40 = vld [vmem:[%s18596_s4 + $0x788] sm:$0xf] }
  0xec   :  { %1180 = vst [vmem:[#allocation5 + $0x778] sm:$0xf] %v1179_v56  ;;  %1182 = vst [vmem:[#allocation5 + $0x77c] sm:$0xff] %v1181_v39   ;;  %v1187_v48 = vld [vmem:[%s18596_s4 + $0x784] sm:$0xf]  ;;  %v1189_v55 = vld [vmem:[%s18596_s4 + $0x78c] sm:$0xff]  }
  0xed   :  { %1186 = vst [vmem:[#allocation5 + $0x784] sm:$0xf] %v1185_v40  ;;  %v1193_v0 = vld [vmem:[%s18596_s4 + $0x798] sm:$0xf]  ;;  %1188 = vst [vmem:[#allocation5 + $0x788] sm:$0xf] %v1187_v48 }
  0xee   :  { %1190 = vst [vmem:[#allocation5 + $0x78c] sm:$0xff] %v1189_v55   ;;  %1194 = vst [vmem:[#allocation5 + $0x794] sm:$0xf] %v1193_v0  ;;  %v1195_v56 = vld [vmem:[%s18596_s4 + $0x794] sm:$0xf]  ;;  %v1197_v39 = vld [vmem:[%s18596_s4 + $0x79c] sm:$0xff]  }
  0xef   :  { %v1201_v40 = vld [vmem:[%s18596_s4 + $0x7a8] sm:$0xf]  ;;  %1196 = vst [vmem:[#allocation5 + $0x798] sm:$0xf] %v1195_v56  ;;  %1198 = vst [vmem:[#allocation5 + $0x79c] sm:$0xff] %v1197_v39   ;;  %v1205_v55 = vld [vmem:[%s18596_s4 + $0x7ac] sm:$0xff]  }
  0xf0   :  { %1202 = vst [vmem:[#allocation5 + $0x7a4] sm:$0xf] %v1201_v40  ;;  %v1203_v48 = vld [vmem:[%s18596_s4 + $0x7a4] sm:$0xf]  ;;  %v1209_v0 = vld [vmem:[%s18596_s4 + $0x7b8] sm:$0xf] }
  0xf1   :  { %1204 = vst [vmem:[#allocation5 + $0x7a8] sm:$0xf] %v1203_v48  ;;  %1206 = vst [vmem:[#allocation5 + $0x7ac] sm:$0xff] %v1205_v55   ;;  %v1211_v56 = vld [vmem:[%s18596_s4 + $0x7b4] sm:$0xf]  ;;  %v1213_v39 = vld [vmem:[%s18596_s4 + $0x7bc] sm:$0xff]  }
  0xf2   :  { %1210 = vst [vmem:[#allocation5 + $0x7b4] sm:$0xf] %v1209_v0  ;;  %v1217_v40 = vld [vmem:[%s18596_s4 + $0x7c8] sm:$0xf]  ;;  %1212 = vst [vmem:[#allocation5 + $0x7b8] sm:$0xf] %v1211_v56 }
  0xf3   :  { %1214 = vst [vmem:[#allocation5 + $0x7bc] sm:$0xff] %v1213_v39   ;;  %1218 = vst [vmem:[#allocation5 + $0x7c4] sm:$0xf] %v1217_v40  ;;  %v1219_v48 = vld [vmem:[%s18596_s4 + $0x7c4] sm:$0xf]  ;;  %v1221_v55 = vld [vmem:[%s18596_s4 + $0x7cc] sm:$0xff]  }
  0xf4   :  { %v1225_v0 = vld [vmem:[%s18596_s4 + $0x7d8] sm:$0xf]  ;;  %1220 = vst [vmem:[#allocation5 + $0x7c8] sm:$0xf] %v1219_v48  ;;  %1222 = vst [vmem:[#allocation5 + $0x7cc] sm:$0xff] %v1221_v55   ;;  %v1229_v39 = vld [vmem:[%s18596_s4 + $0x7dc] sm:$0xff]  }
  0xf5   :  { %1226 = vst [vmem:[#allocation5 + $0x7d4] sm:$0xf] %v1225_v0  ;;  %v1227_v56 = vld [vmem:[%s18596_s4 + $0x7d4] sm:$0xf]  ;;  %v1233_v40 = vld [vmem:[%s18596_s4 + $0x7e8] sm:$0xf] }
  0xf6   :  { %1228 = vst [vmem:[#allocation5 + $0x7d8] sm:$0xf] %v1227_v56  ;;  %1230 = vst [vmem:[#allocation5 + $0x7dc] sm:$0xff] %v1229_v39   ;;  %v1235_v48 = vld [vmem:[%s18596_s4 + $0x7e4] sm:$0xf]  ;;  %v1237_v55 = vld [vmem:[%s18596_s4 + $0x7ec] sm:$0xff]  }
  0xf7   :  { %1234 = vst [vmem:[#allocation5 + $0x7e4] sm:$0xf] %v1233_v40  ;;  %v1241_v0 = vld [vmem:[%s18596_s4 + $0x7f8] sm:$0xf]  ;;  %1236 = vst [vmem:[#allocation5 + $0x7e8] sm:$0xf] %v1235_v48 }
  0xf8   :  { %1238 = vst [vmem:[#allocation5 + $0x7ec] sm:$0xff] %v1237_v55   ;;  %1242 = vst [vmem:[#allocation5 + $0x7f4] sm:$0xf] %v1241_v0  ;;  %v1243_v56 = vld [vmem:[%s18596_s4 + $0x7f4] sm:$0xf] }
  0xf9   :  { %v1245_v39 = vld [vmem:[%s18596_s4 + $0x7fc] sm:$0xf]  ;;  %1244 = vst [vmem:[#allocation5 + $0x7f8] sm:$0xf] %v1243_v56 }
  0xfa   :  { %1246 = vst [vmem:[#allocation5 + $0x7fc] sm:$0xf] %v1245_v39 }
  0xfb   :  { %4382 = vsyncadd [#allocation6 + $0x1], 32768  ;;  %v12294_v40 = vld [vmem:[%s18594_s2 + $0x40] sm:$0xff]   ;;  %v12296_v55 = vld [vmem:[%s18594_s2 + $0x48] sm:$0xff]   ;;  %vm7581_vm0 = vcmask 523264  }
  0xfc   :  { %v12295_v48 = vld [vmem:[%s18594_s2] sm:$0xff]   ;;  %11449 = vmatprep.subr.bf16.mxu0 %v12294_v40  ;;  %12247 = vmatprep.subr.bf16.mxu1 %v12294_v40  ;;  %v12297_v0 = vld [vmem:[%s18594_s2 + $0x8] sm:$0xff]   ;;  %v12298_v56 = vld [vmem:[%s18594_s2 + $0x50] sm:$0xff]  }
  0xfd   :  { %11450 = vmatpush3.bf16.msra.mxu0 %v12295_v48  ;;  %12255 = vmatpush3.bf16.msra.mxu1 %v12295_v48  ;;  %v12299_v39 = vld [vmem:[%s18594_s2 + $0x10] sm:$0xff]   ;;  %v12300_v40 = vld [vmem:[%s18594_s2 + $0x58] sm:$0xff]   ;;  %v4391_v47 = vld [vmem:[%s18592_s0 + $0x200] sm:$0xff] }
  0xfe   :  { %11451 = vmatprep.subr.bf16.mxu0 %v12296_v55  ;;  %12248 = vmatprep.subr.bf16.mxu1 %v12296_v55  ;;  %v12301_v48 = vld [vmem:[%s18594_s2 + $0x18] sm:$0xff]   ;;  %v12302_v55 = vld [vmem:[%s18594_s2 + $0x60] sm:$0xff]   ;;  %v12305_v38 = vld [vmem:[%s18594_s2 + $0x28] sm:$0xff]  }
  0xff   :  { %v12307_v62 = vld [vmem:[%s18594_s2 + $0x30] sm:$0xff]   ;;  %v4394_v46 = vld [vmem:[%s18592_s0 + $0x2c0] sm:$0xff]  ;;  %v12313_v52 = vld [vmem:[%s18594_s2 + $0x8] sm:$0xff]  }
 0x100   :  { %v12379_v49 = vld [vmem:[%s18594_s2 + $0x10] sm:$0xff]  }
 0x101   :  { %11452 = vmatpush3.bf16.msra.mxu0 %v12297_v0  ;;  %12256 = vmatpush3.bf16.msra.mxu1 %v12297_v0  ;;  %v12303_v0 = vld [vmem:[%s18594_s2 + $0x20] sm:$0xff]  }
 0x102   :  { %11453 = vmatprep.subr.bf16.mxu0 %v12298_v56  ;;  %12249 = vmatprep.subr.bf16.mxu1 %v12298_v56  ;;  %v12304_v56 = vld [vmem:[%s18594_s2 + $0x68] sm:$0xff]  }
 0x105   :  { %11454 = vmatpush3.bf16.msra.mxu0 %v12299_v39  ;;  %12257 = vmatpush3.bf16.msra.mxu1 %v12299_v39  ;;  %v4383_v39 = vld [vmem:[%s18592_s0] sm:$0xff] }
 0x106   :  { %11455 = vmatprep.subr.bf16.mxu0 %v12300_v40  ;;  %12250 = vmatprep.subr.bf16.mxu1 %v12300_v40  ;;  %v4384_v40 = vld [vmem:[%s18592_s0 + $0x40] sm:$0xff] }
 0x107   :  { %v11077_v63 = vcombine.high %v4383_v39, %v4384_v40  ;;  %v11076_v53 = vcombine.low %v4383_v39, %v4384_v40  ;;  %v4387_v39 = vld [vmem:[%s18592_s0 + $0x100] sm:$0xff] }
 0x108   :  { %v4388_v40 = vld [vmem:[%s18592_s0 + $0x140] sm:$0xff] }
 0x109   :  { %11456 = vmatpush3.bf16.msra.mxu0 %v12301_v48  ;;  %12258 = vmatpush3.bf16.msra.mxu1 %v12301_v48  ;;  %v4392_v48 = vld [vmem:[%s18592_s0 + $0x240] sm:$0xff] }
 0x10a   :  { %11457 = vmatprep.subr.bf16.mxu0 %v12302_v55  ;;  %12251 = vmatprep.subr.bf16.mxu1 %v12302_v55  ;;  %v11085_v54 = vcombine.high %v4391_v47, %v4392_v48  ;;  %v12306_v55 = vld [vmem:[%s18594_s2 + $0x70] sm:$0xff]   ;;  %v11084_v37 = vcombine.low %v4391_v47, %v4392_v48 }
 0x10b   :  { %4639 = vmatprep.mubr.bf16.mxu0 %v11077_v63  ;;  %v12308_v63 = vld [vmem:[%s18594_s2 + $0x78] sm:$0xff]   ;;  %v12314_v47 = vld [vmem:[%s18594_s2 + $0x50] sm:$0xff]  }
 0x10c   :  { %4671 = vmatprep.mubr.bf16.mxu1 %v11085_v54  ;;  %v12310_v54 = vld [vmem:[%s18594_s2 + $0x40] sm:$0xff]  }
 0x10d   :  { %11458 = vmatpush3.bf16.msra.mxu0 %v12303_v0  ;;  %12259 = vmatpush3.bf16.msra.mxu1 %v12303_v0  ;;  %v12309_v0 = vld [vmem:[%s18594_s2 + $0x38] sm:$0xff]  }
 0x10e   :  { %11459 = vmatprep.subr.bf16.mxu0 %v12304_v56  ;;  %12252 = vmatprep.subr.bf16.mxu1 %v12304_v56  ;;  %v4386_v56 = vld [vmem:[%s18592_s0 + $0xc0] sm:$0xff] }
 0x111   :  { %11460 = vmatpush3.bf16.msra.mxu0 %v12305_v38  ;;  %12260 = vmatpush3.bf16.msra.mxu1 %v12305_v38  ;;  %v4385_v38 = vld [vmem:[%s18592_s0 + $0x80] sm:$0xff] }
 0x112   :  { %11461 = vmatprep.subr.bf16.mxu0 %v12306_v55  ;;  %12253 = vmatprep.subr.bf16.mxu1 %v12306_v55  ;;  %v4393_v55 = vld [vmem:[%s18592_s0 + $0x280] sm:$0xff]  ;;  %v11079_v61 = vcombine.high %v4385_v38, %v4386_v56  ;;  %v11078_v48 = vcombine.low %v4385_v38, %v4386_v56 }
 0x113   :  { %v11087_v45 = vcombine.high %v4393_v55, %v4394_v46  ;;  %v4390_v38 = vld [vmem:[%s18592_s0 + $0x1c0] sm:$0xff] }
 0x114   :  { %v4397_v56 = vld [vmem:[%s18592_s0 + $0x380] sm:$0xff] }
 0x115   :  { %11462 = vmatpush3.bf16.msra.mxu0 %v12307_v62  ;;  %12261 = vmatpush3.bf16.msra.mxu1 %v12307_v62  ;;  %v12311_v62 = vld [vmem:[%s18594_s2] sm:$0xff]  }
 0x116   :  { %11463 = vmatprep.subr.bf16.mxu0 %v12308_v63  ;;  %12254 = vmatprep.subr.bf16.mxu1 %v12308_v63  ;;  %v12312_v63 = vld [vmem:[%s18594_s2 + $0x48] sm:$0xff]  }
 0x119   :  { %11464 = vmatpush3.bf16.msra.mxu0 %v12309_v0  ;;  %12262 = vmatpush3.bf16.msra.mxu1 %v12309_v0  ;;  %v12315_v0 = vld [vmem:[%s18594_s2 + $0x10] sm:$0xff]  }
 0x11a   :  { %11513 = vmatprep.subr.bf16.mxu1 %v12310_v54  ;;  %v12316_v54 = vld [vmem:[%s18594_s2 + $0x58] sm:$0xff]  }
 0x11c   :  { %4640 = vmatmul.mubr.bf16.vlgmr.msra.gmra.mrb[0].mxu0 %v11076_v53  ;;  %4672 = vmatmul.mubr.bf16.vlgmr.msra.gmra.mrb[0].mxu1 %v11084_v37  ;;  %v4395_v37 = vld [vmem:[%s18592_s0 + $0x300] sm:$0xff] }
 0x11d   :  { %11514 = vmatpush3.bf16.msra.mxu1 %v12311_v62  ;;  %4647 = vmatprep.mubr.bf16.mxu0 %v11079_v61  ;;  %v4396_v53 = vld [vmem:[%s18592_s0 + $0x340] sm:$0xff]  ;;  %v11086_v61 = vcombine.low %v4393_v55, %v4394_v46 }
 0x11e   :  { %11515 = vmatprep.subr.bf16.mxu1 %v12312_v63  ;;  %4679 = vmatprep.mubr.bf16.mxu1 %v11087_v45  ;;  %v11081_v45 = vcombine.high %v4387_v39, %v4388_v40  ;;  %v11089_v62 = vcombine.high %v4395_v37, %v4396_v53  ;;  %v12317_v63 = vld [vmem:[%s18594_s2 + $0x18] sm:$0xff]   ;;  %v12318_v46 = vld [vmem:[%s18594_s2 + $0x60] sm:$0xff]  }
 0x11f   :  { %v4398_v55 = vld [vmem:[%s18592_s0 + $0x3c0] sm:$0xff] }
 0x121   :  { %11516 = vmatpush3.bf16.msra.mxu1 %v12313_v52  ;;  %v4389_v52 = vld [vmem:[%s18592_s0 + $0x180] sm:$0xff] }
 0x122   :  { %11517 = vmatprep.subr.bf16.mxu1 %v12314_v47  ;;  %v11080_v47 = vcombine.low %v4387_v39, %v4388_v40  ;;  %v12322_v39 = vld [vmem:[%s18594_s2 + $0x70] sm:$0xff]   ;;  %v4780_v40 = vld [vmem:[%s18592_s0 + $0x8] sm:$0xff] }
 0x124   :  { %4648 = vmatmul.mubr.bf16.gmra.mrb[4].mxu0 %v11078_v48  ;;  %4680 = vmatmul.mubr.bf16.gmra.mrb[4].mxu1 %v11086_v61  ;;  %v11088_v48 = vcombine.low %v4395_v37, %v4396_v53  ;;  %v12319_v61 = vld [vmem:[%s18594_s2 + $0x20] sm:$0xff]   ;;  %v4781_v37 = vld [vmem:[%s18592_s0 + $0x48] sm:$0xff]  ;;  %v11082_v53 = vcombine.low %v4389_v52, %v4390_v38 }
 0x125   :  { %11518 = vmatpush3.bf16.msra.mxu1 %v12315_v0  ;;  %4655 = vmatprep.mubr.bf16.mxu0 %v11081_v45  ;;  %v11083_v0 = vcombine.high %v4389_v52, %v4390_v38  ;;  %v12320_v45 = vld [vmem:[%s18594_s2 + $0x68] sm:$0xff]   ;;  %v12326_v52 = vld [vmem:[%s18594_s2 + $0x40] sm:$0xff]  }
 0x126   :  { %11519 = vmatprep.subr.bf16.mxu1 %v12316_v54  ;;  %4687 = vmatprep.mubr.bf16.mxu1 %v11089_v62  ;;  %v11091_v54 = vcombine.high %v4397_v56, %v4398_v55  ;;  %v12321_v62 = vld [vmem:[%s18594_s2 + $0x28] sm:$0xff]  }
 0x127   :  { %v4782_v38 = vld [vmem:[%s18592_s0 + $0x88] sm:$0xff] }
 0x129   :  { %11520 = vmatpush3.bf16.msra.mxu1 %v12317_v63  ;;  %v11090_v63 = vcombine.low %v4397_v56, %v4398_v55  ;;  %v4783_v56 = vld [vmem:[%s18592_s0 + $0xc8] sm:$0xff]  ;;  %v11108_v55 = vcombine.low %v4780_v40, %v4781_v37 }
 0x12a   :  { %11521 = vmatprep.subr.bf16.mxu1 %v12318_v46  ;;  %v12323_v46 = vld [vmem:[%s18594_s2 + $0x30] sm:$0xff]  }
 0x12c   :  { %4656 = vmatmul.mubr.bf16.gmra.mrb[8].mxu0 %v11080_v47  ;;  %4688 = vmatmul.mubr.bf16.gmra.mrb[8].mxu1 %v11088_v48  ;;  %v11109_v47 = vcombine.high %v4780_v40, %v4781_v37  ;;  %v12324_v48 = vld [vmem:[%s18594_s2 + $0x78] sm:$0xff]   ;;  %v4785_v40 = vld [vmem:[%s18592_s0 + $0x148] sm:$0xff]  ;;  %v12330_v37 = vld [vmem:[%s18594_s2 + $0x50] sm:$0xff]  }
 0x12d   :  { %11522 = vmatpush3.bf16.msra.mxu1 %v12319_v61  ;;  %4663 = vmatprep.mubr.bf16.mxu0 %v11083_v0  ;;  %v12325_v61 = vld [vmem:[%s18594_s2 + $0x38] sm:$0xff]   ;;  %v12327_v0 = vld [vmem:[%s18594_s2] sm:$0xff]  }
 0x12e   :  { %11523 = vmatprep.subr.bf16.mxu1 %v12320_v45  ;;  %4695 = vmatprep.mubr.bf16.mxu1 %v11091_v54  ;;  %v11111_v45 = vcombine.high %v4782_v38, %v4783_v56  ;;  %v12328_v54 = vld [vmem:[%s18594_s2 + $0x48] sm:$0xff]  }
 0x131   :  { %11524 = vmatpush3.bf16.msra.mxu1 %v12321_v62  ;;  %v12329_v62 = vld [vmem:[%s18594_s2 + $0x8] sm:$0xff]  }
 0x132   :  { %11525 = vmatprep.subr.bf16.mxu1 %v12322_v39  ;;  %v4784_v39 = vld [vmem:[%s18592_s0 + $0x108] sm:$0xff] }
 0x134   :  { %4664 = vmatmul.mubr.bf16.gmra.mrb[12].mxu0 %v11082_v53  ;;  %4696 = vmatmul.mubr.bf16.gmra.mrb[12].mxu1 %v11090_v63  ;;  %v11110_v53 = vcombine.low %v4782_v38, %v4783_v56  ;;  %v11113_v63 = vcombine.high %v4784_v39, %v4785_v40  ;;  %v12334_v38 = vld [vmem:[%s18594_s2 + $0x60] sm:$0xff]   ;;  %v11112_v56 = vcombine.low %v4784_v39, %v4785_v40  ;;  %v4789_v39 = vld [vmem:[%s18592_s0 + $0x248] sm:$0xff]  ;;  %v12338_v40 = vld [vmem:[%s18594_s2 + $0x70] sm:$0xff]  }
 0x135   :  { %11526 = vmatpush3.bf16.msra.mxu1 %v12323_v46  ;;  %5036 = vmatprep.mubr.bf16.mxu1 %v11109_v47  ;;  %v12331_v46 = vld [vmem:[%s18594_s2 + $0x10] sm:$0xff]   ;;  %v12332_v47 = vld [vmem:[%s18594_s2 + $0x58] sm:$0xff]  }
 0x136   :  { %11527 = vmatprep.subr.bf16.mxu1 %v12324_v48  ;;  %v4786_v48 = vld [vmem:[%s18592_s0 + $0x188] sm:$0xff] }
 0x139   :  { %11528 = vmatpush3.bf16.msra.mxu1 %v12325_v61  ;;  %v12333_v61 = vld [vmem:[%s18594_s2 + $0x18] sm:$0xff]  }
 0x13a   :  { %11577 = vmatprep.subr.bf16.mxu1 %v12326_v52  ;;  %v4787_v52 = vld [vmem:[%s18592_s0 + $0x1c8] sm:$0xff] }
 0x13c   :  { %5037 = vmatmul.mubr.bf16.vlgmr.msra.gmra.mrb[16].mxu1 %v11108_v55  ;;  %v11115_v55 = vcombine.high %v4786_v48, %v4787_v52 }
 0x13d   :  { %11578 = vmatpush3.bf16.msra.mxu1 %v12327_v0  ;;  %5044 = vmatprep.mubr.bf16.mxu1 %v11111_v45  ;;  %v12335_v0 = vld [vmem:[%s18594_s2 + $0x20] sm:$0xff]   ;;  %v12336_v45 = vld [vmem:[%s18594_s2 + $0x68] sm:$0xff]  }
 0x13e   :  { %11579 = vmatprep.subr.bf16.mxu1 %v12328_v54  ;;  %v4788_v54 = vld [vmem:[%s18592_s0 + $0x208] sm:$0xff] }
 0x141   :  { %11580 = vmatpush3.bf16.msra.mxu1 %v12329_v62  ;;  %v12337_v62 = vld [vmem:[%s18594_s2 + $0x28] sm:$0xff]  }
 0x142   :  { %11581 = vmatprep.subr.bf16.mxu1 %v12330_v37  ;;  %v11114_v37 = vcombine.low %v4786_v48, %v4787_v52  ;;  %v4791_v48 = vld [vmem:[%s18592_s0 + $0x2c8] sm:$0xff]  ;;  %v12342_v52 = vld [vmem:[%s18594_s2 + $0x40] sm:$0xff]  }
 0x144   :  { %5045 = vmatmul.mubr.bf16.gmra.mrb[20].mxu1 %v11110_v53  ;;  %v11117_v53 = vcombine.high %v4788_v54, %v4789_v39 }
 0x145   :  { %5052 = vmatprep.mubr.bf16.mxu1 %v11113_v63  ;;  %11582 = vmatpush3.bf16.msra.mxu1 %v12331_v46  ;;  %v12339_v63 = vld [vmem:[%s18594_s2 + $0x30] sm:$0xff]   ;;  %v12340_v46 = vld [vmem:[%s18594_s2 + $0x78] sm:$0xff]  }
 0x146   :  { %11583 = vmatprep.subr.bf16.mxu1 %v12332_v47  ;;  %v4790_v47 = vld [vmem:[%s18592_s0 + $0x288] sm:$0xff] }
 0x149   :  { %11584 = vmatpush3.bf16.msra.mxu1 %v12333_v61  ;;  %v12341_v61 = vld [vmem:[%s18594_s2 + $0x38] sm:$0xff]  }
 0x14a   :  { %11585 = vmatprep.subr.bf16.mxu1 %v12334_v38  ;;  %v11116_v38 = vcombine.low %v4788_v54, %v4789_v39  ;;  %v4794_v54 = vld [vmem:[%s18592_s0 + $0x388] sm:$0xff] }
 0x14b   :  { %v4795_v39 = vld [vmem:[%s18592_s0 + $0x3c8] sm:$0xff] }
 0x14c   :  { %5053 = vmatmul.mubr.bf16.gmra.mrb[24].mxu1 %v11112_v56  ;;  %v11119_v56 = vcombine.high %v4790_v47, %v4791_v48 }
 0x14d   :  { %5060 = vmatprep.mubr.bf16.mxu1 %v11115_v55  ;;  %11586 = vmatpush3.bf16.msra.mxu1 %v12335_v0  ;;  %v4792_v55 = vld [vmem:[%s18592_s0 + $0x308] sm:$0xff] }
 0x14e   :  { %11587 = vmatprep.subr.bf16.mxu1 %v12336_v45  ;;  %v4793_v0 = vld [vmem:[%s18592_s0 + $0x348] sm:$0xff]  ;;  %v11118_v45 = vcombine.low %v4790_v47, %v4791_v48  ;;  %v5179_v48 = vld [vmem:[%s18592_s0 + $0x90] sm:$0xff] }
 0x151   :  { %11588 = vmatpush3.bf16.msra.mxu1 %v12337_v62  ;;  %v11121_v62 = vcombine.high %v4792_v55, %v4793_v0 }
 0x152   :  { %11589 = vmatprep.subr.bf16.mxu1 %v12338_v40  ;;  %v11120_v40 = vcombine.low %v4792_v55, %v4793_v0  ;;  %v12345_v0 = vld [vmem:[%s18594_s2 + $0x8] sm:$0xff]  }
 0x154   :  { %5061 = vmatmul.mubr.bf16.gmra.mrb[28].mxu1 %v11114_v37  ;;  %v11123_v37 = vcombine.high %v4794_v54, %v4795_v39 }
 0x155   :  { %5068 = vmatprep.mubr.bf16.mxu1 %v11117_v53  ;;  %11590 = vmatpush3.bf16.msra.mxu1 %v12339_v63  ;;  %v5177_v53 = vld [vmem:[%s18592_s0 + $0x10] sm:$0xff] }
 0x156   :  { %11591 = vmatprep.subr.bf16.mxu1 %v12340_v46  ;;  %v5178_v63 = vld [vmem:[%s18592_s0 + $0x50] sm:$0xff]  ;;  %v11122_v46 = vcombine.low %v4794_v54, %v4795_v39 }
 0x157   :  { %v11141_v47 = vcombine.high %v5177_v53, %v5178_v63  ;;  %v12346_v54 = vld [vmem:[%s18594_s2 + $0x50] sm:$0xff]  }
 0x159   :  { %11592 = vmatpush3.bf16.msra.mxu1 %v12341_v61  ;;  %v5180_v61 = vld [vmem:[%s18592_s0 + $0xd0] sm:$0xff] }
 0x15a   :  { %11641 = vmatprep.subr.bf16.mxu1 %v12342_v52  ;;  %v11140_v52 = vcombine.low %v5177_v53, %v5178_v63  ;;  %v11143_v55 = vcombine.high %v5179_v48, %v5180_v61  ;;  %v11142_v39 = vcombine.low %v5179_v48, %v5180_v61  ;;  %v12348_v53 = vld [vmem:[%s18594_s2 + $0x58] sm:$0xff]   ;;  %v12350_v48 = vld [vmem:[%s18594_s2 + $0x60] sm:$0xff]  }
 0x15b   :  { %v12349_v63 = vld [vmem:[%s18594_s2 + $0x18] sm:$0xff]  }
 0x15c   :  { %5069 = vmatmul.mubr.bf16.gmra.mrb[32].mxu1 %v11116_v38  ;;  %v12343_v38 = vld [vmem:[%s18594_s2] sm:$0xff]  }
 0x15d   :  { %5076 = vmatprep.mubr.bf16.mxu1 %v11119_v56  ;;  %v12344_v56 = vld [vmem:[%s18594_s2 + $0x48] sm:$0xff]  }
 0x164   :  { %5077 = vmatmul.mubr.bf16.gmra.mrb[36].mxu1 %v11118_v45  ;;  %v5181_v45 = vld [vmem:[%s18592_s0 + $0x110] sm:$0xff] }
 0x165   :  { %5084 = vmatprep.mubr.bf16.mxu1 %v11121_v62  ;;  %v5182_v62 = vld [vmem:[%s18592_s0 + $0x150] sm:$0xff] }
 0x166   :  { %v11144_v61 = vcombine.low %v5181_v45, %v5182_v62 }
 0x16c   :  { %5085 = vmatmul.mubr.bf16.gmra.mrb[40].mxu1 %v11120_v40  ;;  %v11145_v40 = vcombine.high %v5181_v45, %v5182_v62  ;;  %v5186_v45 = vld [vmem:[%s18592_s0 + $0x250] sm:$0xff] }
 0x16d   :  { %5092 = vmatprep.mubr.bf16.mxu1 %v11123_v37  ;;  %v12347_v37 = vld [vmem:[%s18594_s2 + $0x10] sm:$0xff]  }
 0x16e   :  { %v12354_v62 = vld [vmem:[%s18594_s2 + $0x70] sm:$0xff]  }
 0x174   :  { %5093 = vmatmul.mubr.bf16.gmra.mrb[44].mxu1 %v11122_v46  ;;  %v5183_v46 = vld [vmem:[%s18592_s0 + $0x190] sm:$0xff] }
 0x175   :  { %5433 = vmatprep.mubr.bf16.mxu1 %v11141_v47  ;;  %v5184_v47 = vld [vmem:[%s18592_s0 + $0x1d0] sm:$0xff] }
 0x17c   :  { %5434 = vmatmul.mubr.bf16.vlgmr.msra.gmra.mrb[48].mxu1 %v11140_v52  ;;  %v11147_v52 = vcombine.high %v5183_v46, %v5184_v47 }
 0x17d   :  { %11642 = vmatpush3.bf16.msra.mxu1 %v12343_v38  ;;  %5441 = vmatprep.mubr.bf16.mxu1 %v11143_v55  ;;  %v12351_v38 = vld [vmem:[%s18594_s2 + $0x20] sm:$0xff]   ;;  %v12353_v55 = vld [vmem:[%s18594_s2 + $0x28] sm:$0xff]  }
 0x17e   :  { %11643 = vmatprep.subr.bf16.mxu1 %v12344_v56  ;;  %v12352_v56 = vld [vmem:[%s18594_s2 + $0x68] sm:$0xff]  }
 0x181   :  { %11644 = vmatpush3.bf16.msra.mxu1 %v12345_v0  ;;  %v5185_v0 = vld [vmem:[%s18592_s0 + $0x210] sm:$0xff] }
 0x182   :  { %11645 = vmatprep.subr.bf16.mxu1 %v12346_v54  ;;  %v11146_v54 = vcombine.low %v5183_v46, %v5184_v47  ;;  %v5188_v46 = vld [vmem:[%s18592_s0 + $0x2d0] sm:$0xff]  ;;  %v12358_v47 = vld [vmem:[%s18594_s2 + $0x40] sm:$0xff]  }
 0x184   :  { %5442 = vmatmul.mubr.bf16.gmra.mrb[52].mxu1 %v11142_v39  ;;  %v11149_v39 = vcombine.high %v5185_v0, %v5186_v45 }
 0x185   :  { %5449 = vmatprep.mubr.bf16.mxu1 %v11145_v40  ;;  %11646 = vmatpush3.bf16.msra.mxu1 %v12347_v37  ;;  %v12355_v40 = vld [vmem:[%s18594_s2 + $0x30] sm:$0xff]   ;;  %v12356_v37 = vld [vmem:[%s18594_s2 + $0x78] sm:$0xff]  }
 0x186   :  { %11647 = vmatprep.subr.bf16.mxu1 %v12348_v53  ;;  %v12357_v53 = vld [vmem:[%s18594_s2 + $0x38] sm:$0xff]  }
 0x189   :  { %11648 = vmatpush3.bf16.msra.mxu1 %v12349_v63  ;;  %v5187_v63 = vld [vmem:[%s18592_s0 + $0x290] sm:$0xff] }
 0x18a   :  { %11649 = vmatprep.subr.bf16.mxu1 %v12350_v48  ;;  %v11148_v48 = vcombine.low %v5185_v0, %v5186_v45  ;;  %v11150_v0 = vcombine.low %v5187_v63, %v5188_v46 }
 0x18c   :  { %5450 = vmatmul.mubr.bf16.gmra.mrb[56].mxu1 %v11144_v61  ;;  %v11151_v61 = vcombine.high %v5187_v63, %v5188_v46 }
 0x18d   :  { %5457 = vmatprep.mubr.bf16.mxu1 %v11147_v52  ;;  %11650 = vmatpush3.bf16.msra.mxu1 %v12351_v38  ;;  %v12384_v52 = vld [vmem:[%s18594_s2 + $0x40] sm:$0xff]   ;;  %v5189_v38 = vld [vmem:[%s18592_s0 + $0x310] sm:$0xff] }
 0x18e   :  { %11651 = vmatprep.subr.bf16.mxu1 %v12352_v56  ;;  %v5190_v56 = vld [vmem:[%s18592_s0 + $0x350] sm:$0xff]  ;;  %11833 = vmatprep.subr.bf16.mxu0 %v12384_v52  ;;  %v5574_v52 = vld [vmem:[%s18592_s0 + $0x18] sm:$0xff] }
 0x18f   :  { %v11153_v45 = vcombine.high %v5189_v38, %v5190_v56  ;;  %v11152_v63 = vcombine.low %v5189_v38, %v5190_v56  ;;  %v5575_v38 = vld [vmem:[%s18592_s0 + $0x58] sm:$0xff]  ;;  %v12397_v56 = vld [vmem:[%s18594_s2 + $0x20] sm:$0xff]  }
 0x191   :  { %11652 = vmatpush3.bf16.msra.mxu1 %v12353_v55  ;;  %v12385_v55 = vld [vmem:[%s18594_s2] sm:$0xff]  }
 0x192   :  { %11653 = vmatprep.subr.bf16.mxu1 %v12354_v62  ;;  %11834 = vmatpush3.bf16.msra.mxu0 %v12385_v55  ;;  %v12386_v62 = vld [vmem:[%s18594_s2 + $0x48] sm:$0xff]  }
 0x193   :  { %11835 = vmatprep.subr.bf16.mxu0 %v12386_v62  ;;  %v12399_v62 = vld [vmem:[%s18594_s2 + $0x28] sm:$0xff]  }
 0x194   :  { %5458 = vmatmul.mubr.bf16.gmra.mrb[60].mxu1 %v11146_v54  ;;  %v12387_v54 = vld [vmem:[%s18594_s2 + $0x8] sm:$0xff]  }
 0x195   :  { %5465 = vmatprep.mubr.bf16.mxu1 %v11149_v39  ;;  %11654 = vmatpush3.bf16.msra.mxu1 %v12355_v40  ;;  %v12390_v39 = vld [vmem:[%s18594_s2 + $0x50] sm:$0xff]  }
 0x196   :  { %11655 = vmatprep.subr.bf16.mxu1 %v12356_v37  ;;  %11836 = vmatpush3.bf16.msra.mxu0 %v12387_v54  ;;  %v5191_v40 = vld [vmem:[%s18592_s0 + $0x390] sm:$0xff] }
 0x197   :  { %v5192_v37 = vld [vmem:[%s18592_s0 + $0x3d0] sm:$0xff]  ;;  %11837 = vmatprep.subr.bf16.mxu0 %v12390_v39  ;;  %v5576_v39 = vld [vmem:[%s18592_s0 + $0x98] sm:$0xff] }
 0x198   :  { %v11155_v46 = vcombine.high %v5191_v40, %v5192_v37  ;;  %v11154_v55 = vcombine.low %v5191_v40, %v5192_v37  ;;  %v12402_v54 = vld [vmem:[%s18594_s2 + $0x70] sm:$0xff]   ;;  %v5577_v40 = vld [vmem:[%s18592_s0 + $0xd8] sm:$0xff] }
 0x199   :  { %11656 = vmatpush3.bf16.msra.mxu1 %v12357_v53  ;;  %v12391_v53 = vld [vmem:[%s18594_s2 + $0x10] sm:$0xff]  }
 0x19a   :  { %11705 = vmatprep.subr.bf16.mxu1 %v12358_v47  ;;  %11838 = vmatpush3.bf16.msra.mxu0 %v12391_v53  ;;  %v12392_v47 = vld [vmem:[%s18594_s2 + $0x58] sm:$0xff]   ;;  %v12403_v37 = vld [vmem:[%s18594_s2 + $0x30] sm:$0xff]   ;;  %v11172_v53 = vcombine.low %v5574_v52, %v5575_v38 }
 0x19b   :  { %11839 = vmatprep.subr.bf16.mxu0 %v12392_v47  ;;  %v12404_v47 = vld [vmem:[%s18594_s2 + $0x78] sm:$0xff]  }
 0x19c   :  { %5466 = vmatmul.mubr.bf16.gmra.mrb[64].mxu1 %v11148_v48  ;;  %v12393_v48 = vld [vmem:[%s18594_s2 + $0x18] sm:$0xff]  }
 0x19d   :  { %5473 = vmatprep.mubr.bf16.mxu1 %v11151_v61  ;;  %v12396_v61 = vld [vmem:[%s18594_s2 + $0x60] sm:$0xff]  }
 0x19e   :  { %11840 = vmatpush3.bf16.msra.mxu0 %v12393_v48  ;;  %v12360_v48 = vld [vmem:[%s18594_s2 + $0x48] sm:$0xff]  }
 0x19f   :  { %11841 = vmatprep.subr.bf16.mxu0 %v12396_v61  ;;  %v12405_v61 = vld [vmem:[%s18594_s2 + $0x38] sm:$0xff]  }
 0x1a2   :  { %11842 = vmatpush3.bf16.msra.mxu0 %v12397_v56 }
 0x1a4   :  { %5474 = vmatmul.mubr.bf16.gmra.mrb[68].mxu1 %v11150_v0  ;;  %v11173_v0 = vcombine.high %v5574_v52, %v5575_v38  ;;  %v6765_v52 = vld [vmem:[%s18592_s0 + $0x30] sm:$0xff] }
 0x1a5   :  { %5481 = vmatprep.mubr.bf16.mxu1 %v11153_v45  ;;  %v12398_v45 = vld [vmem:[%s18594_s2 + $0x68] sm:$0xff]   ;;  %v6766_v38 = vld [vmem:[%s18592_s0 + $0x70] sm:$0xff] }
 0x1a6   :  { %11843 = vmatprep.subr.bf16.mxu0 %v12398_v45  ;;  %v11269_v56 = vcombine.high %v6765_v52, %v6766_v38  ;;  %v5578_v45 = vld [vmem:[%s18592_s0 + $0x118] sm:$0xff] }
 0x1a7   :  { %11844 = vmatpush3.bf16.msra.mxu0 %v12399_v62  ;;  %v5579_v62 = vld [vmem:[%s18592_s0 + $0x158] sm:$0xff] }
 0x1a8   :  { %11845 = vmatprep.subr.bf16.mxu0 %v12402_v54  ;;  %v12362_v54 = vld [vmem:[%s18594_s2 + $0x50] sm:$0xff]   ;;  %7021 = vmatprep.mubr.bf16.mxu0 %v11269_v56  ;;  %v12366_v56 = vld [vmem:[%s18594_s2 + $0x60] sm:$0xff]  }
 0x1ab   :  { %11846 = vmatpush3.bf16.msra.mxu0 %v12403_v37  ;;  %v11174_v37 = vcombine.low %v5576_v39, %v5577_v40 }
 0x1ac   :  { %5482 = vmatmul.mubr.bf16.gmra.mrb[72].mxu1 %v11152_v63  ;;  %v12359_v63 = vld [vmem:[%s18594_s2] sm:$0xff]   ;;  %11847 = vmatprep.subr.bf16.mxu0 %v12404_v47  ;;  %v6767_v47 = vld [vmem:[%s18592_s0 + $0xb0] sm:$0xff] }
 0x1ad   :  { %5489 = vmatprep.mubr.bf16.mxu1 %v11155_v46  ;;  %v11175_v46 = vcombine.high %v5576_v39, %v5577_v40  ;;  %v12365_v40 = vld [vmem:[%s18594_s2 + $0x18] sm:$0xff]  }
 0x1af   :  { %11848 = vmatpush3.bf16.msra.mxu0 %v12405_v61 }
 0x1b4   :  { %5490 = vmatmul.mubr.bf16.gmra.mrb[76].mxu1 %v11154_v55  ;;  %v12361_v55 = vld [vmem:[%s18594_s2 + $0x8] sm:$0xff]  }
 0x1b5   :  { %5830 = vmatprep.mubr.bf16.mxu1 %v11173_v0  ;;  %v11268_v0 = vcombine.low %v6765_v52, %v6766_v38  ;;  %v5580_v52 = vld [vmem:[%s18592_s0 + $0x198] sm:$0xff] }
 0x1b6   :  { %v5581_v38 = vld [vmem:[%s18592_s0 + $0x1d8] sm:$0xff] }
 0x1b7   :  { %7022 = vmatmul.mubr.bf16.vlgmr.msra.gmra.mrb[16].mxu0 %v11268_v0  ;;  %v11179_v0 = vcombine.high %v5580_v52, %v5581_v38 }
 0x1bc   :  { %5831 = vmatmul.mubr.bf16.vlgmr.msra.gmra.mrb[80].mxu1 %v11172_v53  ;;  %v11177_v53 = vcombine.high %v5578_v45, %v5579_v62 }
 0x1bd   :  { %11706 = vmatpush3.bf16.msra.mxu1 %v12359_v63  ;;  %5838 = vmatprep.mubr.bf16.mxu1 %v11175_v46  ;;  %v12363_v63 = vld [vmem:[%s18594_s2 + $0x10] sm:$0xff]   ;;  %v12364_v46 = vld [vmem:[%s18594_s2 + $0x58] sm:$0xff]  }
 0x1be   :  { %11707 = vmatprep.subr.bf16.mxu1 %v12360_v48  ;;  %v6768_v48 = vld [vmem:[%s18592_s0 + $0xf0] sm:$0xff] }
 0x1bf   :  { %v11271_v39 = vcombine.high %v6767_v47, %v6768_v48  ;;  %v11270_v61 = vcombine.low %v6767_v47, %v6768_v48  ;;  %v5582_v47 = vld [vmem:[%s18592_s0 + $0x218] sm:$0xff] }
 0x1c0   :  { %v5583_v48 = vld [vmem:[%s18592_s0 + $0x258] sm:$0xff] }
 0x1c1   :  { %11708 = vmatpush3.bf16.msra.mxu1 %v12361_v55  ;;  %7029 = vmatprep.mubr.bf16.mxu0 %v11271_v39  ;;  %v11176_v55 = vcombine.low %v5578_v45, %v5579_v62  ;;  %v12369_v62 = vld [vmem:[%s18594_s2 + $0x28] sm:$0xff]   ;;  %v12370_v39 = vld [vmem:[%s18594_s2 + $0x70] sm:$0xff]  }
 0x1c2   :  { %11709 = vmatprep.subr.bf16.mxu1 %v12362_v54  ;;  %7030 = vmatmul.mubr.bf16.gmra.mrb[20].mxu0 %v11270_v61  ;;  %v12367_v54 = vld [vmem:[%s18594_s2 + $0x20] sm:$0xff]   ;;  %v11181_v61 = vcombine.high %v5582_v47, %v5583_v48 }
 0x1c4   :  { %5839 = vmatmul.mubr.bf16.gmra.mrb[84].mxu1 %v11174_v37  ;;  %v12368_v37 = vld [vmem:[%s18594_s2 + $0x68] sm:$0xff]  }
 0x1c5   :  { %5846 = vmatprep.mubr.bf16.mxu1 %v11177_v53  ;;  %11710 = vmatpush3.bf16.msra.mxu1 %v12363_v63  ;;  %v6769_v53 = vld [vmem:[%s18592_s0 + $0x130] sm:$0xff] }
 0x1c6   :  { %11711 = vmatprep.subr.bf16.mxu1 %v12364_v46  ;;  %v6770_v63 = vld [vmem:[%s18592_s0 + $0x170] sm:$0xff] }
 0x1c7   :  { %v11273_v45 = vcombine.high %v6769_v53, %v6770_v63  ;;  %v11272_v46 = vcombine.low %v6769_v53, %v6770_v63  ;;  %v5584_v53 = vld [vmem:[%s18592_s0 + $0x298] sm:$0xff] }
 0x1c8   :  { %v5585_v63 = vld [vmem:[%s18592_s0 + $0x2d8] sm:$0xff] }
 0x1c9   :  { %11712 = vmatpush3.bf16.msra.mxu1 %v12365_v40  ;;  %7037 = vmatprep.mubr.bf16.mxu0 %v11273_v45  ;;  %v11178_v40 = vcombine.low %v5580_v52, %v5581_v38  ;;  %v12373_v38 = vld [vmem:[%s18594_s2 + $0x38] sm:$0xff]   ;;  %v12374_v45 = vld [vmem:[%s18594_s2 + $0x40] sm:$0xff]  }
 0x1ca   :  { %11713 = vmatprep.subr.bf16.mxu1 %v12366_v56  ;;  %7038 = vmatmul.mubr.bf16.gmra.mrb[24].mxu0 %v11272_v46  ;;  %v12371_v56 = vld [vmem:[%s18594_s2 + $0x30] sm:$0xff]   ;;  %v11183_v46 = vcombine.high %v5584_v53, %v5585_v63 }
 0x1cc   :  { %5847 = vmatmul.mubr.bf16.gmra.mrb[88].mxu1 %v11176_v55  ;;  %v12372_v55 = vld [vmem:[%s18594_s2 + $0x78] sm:$0xff]  }
 0x1cd   :  { %5854 = vmatprep.mubr.bf16.mxu1 %v11179_v0  ;;  %11714 = vmatpush3.bf16.msra.mxu1 %v12367_v54  ;;  %v6771_v0 = vld [vmem:[%s18592_s0 + $0x1b0] sm:$0xff] }
 0x1ce   :  { %11715 = vmatprep.subr.bf16.mxu1 %v12368_v37  ;;  %v6772_v54 = vld [vmem:[%s18592_s0 + $0x1f0] sm:$0xff] }
 0x1cf   :  { %v11275_v52 = vcombine.high %v6771_v0, %v6772_v54  ;;  %v11274_v37 = vcombine.low %v6771_v0, %v6772_v54  ;;  %v6775_v54 = vld [vmem:[%s18592_s0 + $0x2b0] sm:$0xff] }
 0x1d1   :  { %11716 = vmatpush3.bf16.msra.mxu1 %v12369_v62  ;;  %7045 = vmatprep.mubr.bf16.mxu0 %v11275_v52  ;;  %v11180_v62 = vcombine.low %v5582_v47, %v5583_v48  ;;  %v5587_v47 = vld [vmem:[%s18592_s0 + $0x358] sm:$0xff]  ;;  %v11182_v48 = vcombine.low %v5584_v53, %v5585_v63  ;;  %v6776_v52 = vld [vmem:[%s18592_s0 + $0x2f0] sm:$0xff] }
 0x1d2   :  { %11717 = vmatprep.subr.bf16.mxu1 %v12370_v39  ;;  %7046 = vmatmul.mubr.bf16.gmra.mrb[28].mxu0 %v11274_v37  ;;  %v6773_v39 = vld [vmem:[%s18592_s0 + $0x230] sm:$0xff]  ;;  %v11278_v37 = vcombine.low %v6775_v54, %v6776_v52  ;;  %v5589_v53 = vld [vmem:[%s18592_s0 + $0x3d8] sm:$0xff] }
 0x1d4   :  { %5855 = vmatmul.mubr.bf16.gmra.mrb[92].mxu1 %v11178_v40  ;;  %v6774_v40 = vld [vmem:[%s18592_s0 + $0x270] sm:$0xff] }
 0x1d5   :  { %5862 = vmatprep.mubr.bf16.mxu1 %v11181_v61  ;;  %11718 = vmatpush3.bf16.msra.mxu1 %v12371_v56  ;;  %v11277_v61 = vcombine.high %v6773_v39, %v6774_v40  ;;  %v11276_v56 = vcombine.low %v6773_v39, %v6774_v40  ;;  %v6778_v39 = vld [vmem:[%s18592_s0 + $0x370] sm:$0xff] }
 0x1d6   :  { %11719 = vmatprep.subr.bf16.mxu1 %v12372_v55  ;;  %v5586_v55 = vld [vmem:[%s18592_s0 + $0x318] sm:$0xff] }
 0x1d7   :  { %7053 = vmatprep.mubr.bf16.mxu0 %v11277_v61  ;;  %v11185_v0 = vcombine.high %v5586_v55, %v5587_v47  ;;  %v11184_v63 = vcombine.low %v5586_v55, %v5587_v47  ;;  %v5972_v55 = vld [vmem:[%s18592_s0 + $0x60] sm:$0xff] }
 0x1d9   :  { %11720 = vmatpush3.bf16.msra.mxu1 %v12373_v38  ;;  %v11279_v38 = vcombine.high %v6775_v54, %v6776_v52 }
 0x1da   :  { %11769 = vmatprep.subr.bf16.mxu1 %v12374_v45  ;;  %7054 = vmatmul.mubr.bf16.gmra.mrb[32].mxu0 %v11276_v56  ;;  %v5588_v45 = vld [vmem:[%s18592_s0 + $0x398] sm:$0xff]  ;;  %v5971_v56 = vld [vmem:[%s18592_s0 + $0x20] sm:$0xff] }
 0x1db   :  { %7061 = vmatprep.mubr.bf16.mxu0 %v11279_v38  ;;  %v11186_v54 = vcombine.low %v5588_v45, %v5589_v53  ;;  %v11204_v59 = vcombine.low %v5971_v56, %v5972_v55 }
 0x1dc   :  { %5863 = vmatmul.mubr.bf16.gmra.mrb[96].mxu1 %v11180_v62  ;;  %v11187_v62 = vcombine.high %v5588_v45, %v5589_v53  ;;  %v6780_v45 = vld [vmem:[%s18592_s0 + $0x3f0] sm:$0xff] }
 0x1dd   :  { %5870 = vmatprep.mubr.bf16.mxu1 %v11183_v46  ;;  %v6777_v46 = vld [vmem:[%s18592_s0 + $0x330] sm:$0xff] }
 0x1de   :  { %v11281_v40 = vcombine.high %v6777_v46, %v6778_v39  ;;  %v11280_v61 = vcombine.low %v6777_v46, %v6778_v39 }
 0x1e2   :  { %7062 = vmatmul.mubr.bf16.gmra.mrb[36].mxu0 %v11278_v37 }
 0x1e3   :  { %7069 = vmatprep.mubr.bf16.mxu0 %v11281_v40  ;;  %v6779_v40 = vld [vmem:[%s18592_s0 + $0x3b0] sm:$0xff] }
 0x1e4   :  { %5871 = vmatmul.mubr.bf16.gmra.mrb[100].mxu1 %v11182_v48  ;;  %v11283_v53 = vcombine.high %v6779_v40, %v6780_v45 }
 0x1e5   :  { %5878 = vmatprep.mubr.bf16.mxu1 %v11185_v0 }
 0x1ea   :  { %7070 = vmatmul.mubr.bf16.gmra.mrb[40].mxu0 %v11280_v61 }
 0x1eb   :  { %7077 = vmatprep.mubr.bf16.mxu0 %v11283_v53 }
 0x1ec   :  { %5879 = vmatmul.mubr.bf16.gmra.mrb[104].mxu1 %v11184_v63  ;;  %v11205_v63 = vcombine.high %v5971_v56, %v5972_v55 }
 0x1ed   :  { %5886 = vmatprep.mubr.bf16.mxu1 %v11187_v62 }
 0x1ef   :  { %v11489_v47 = vpop.f32.mrb[0].mxu1  ;;  %v11465_v48 = vpop.f32.mrb[0].mxu0 }
 0x1f0   :  { %v11490_v0 = vpop.f32.mrb[1].mxu1  ;;  %v11466_v52 = vpop.f32.mrb[1].mxu0 }
 0x1f1   :  { %v15106_v38 = vadd.f32 %v11490_v0, %v11489_v47  ;;  %v11492_v37 = vpop.f32.mrb[2].mxu1  ;;  %v11467_v62 = vadd.f32 %v11466_v52, %v11465_v48  ;;  %v11468_v46 = vpop.f32.mrb[2].mxu0  ;;  %v5974_v52 = vld [vmem:[%s18592_s0 + $0xe0] sm:$0xff] }
 0x1f2   :  { %v11493_v39 = vpop.f32.mrb[3].mxu1  ;;  %v11469_v36 = vpop.f32.mrb[3].mxu0 }
 0x1f3   :  { %v15108_v60 = vadd.f32 %v11493_v39, %v11492_v37  ;;  %v4726_v44 = vmul.f32 %v11467_v62, %v11467_v62  ;;  %v11470_v51 = vadd.f32 %v11469_v36, %v11468_v46  ;;  %v5973_v36 = vld [vmem:[%s18592_s0 + $0xa0] sm:$0xff] }
 0x1f4   :  { %5887 = vmatmul.mubr.bf16.gmra.mrb[108].mxu1 %v11186_v54  ;;  %v11282_v54 = vcombine.low %v6779_v40, %v6780_v45  ;;  %v11207_v58 = vcombine.high %v5973_v36, %v5974_v52 }
 0x1f5   :  { %v15118_v61 = vpack.c.bf16 %v15108_v60, %v15106_v38  ;;  %6227 = vmatprep.mubr.bf16.mxu1 %v11205_v63  ;;  %v4704_v47 = vadd.f32 %v11470_v51, %v11467_v62  ;;  %v4727_v48 = vmul.f32 %v11470_v51, %v11470_v51  ;;  %v15120_v0 = vpack.c.bf16 %v11470_v51, %v11467_v62  ;;  %v12375_v62 = vld [vmem:[%s18594_s2] sm:$0xff]  }
 0x1f6   :  { %7078 = vmatmul.mubr.bf16.gmra.mrb[44].mxu0 %v11282_v54  ;;  %v12377_v54 = vld [vmem:[%s18594_s2 + $0x8] sm:$0xff]  }
 0x1f7   :  { %v11495_v37 = vpop.f32.mrb[4].mxu1  ;;  %v4742_v46 = vadd.f32 %v4727_v48, %v4726_v44  ;;  %v11471_v39 = vpop.f32.mrb[4].mxu0  ;;  %v12376_v44 = vld [vmem:[%s18594_s2 + $0x48] sm:$0xff]  }
 0x1f8   :  { %v11496_v35 = vpop.f32.mrb[5].mxu1  ;;  %v11472_v63 = vpop.f32.mrb[5].mxu0 }
 0x1f9   :  { %v15128_v43 = vadd.f32 %v11496_v35, %v11495_v37  ;;  %v11498_v51 = vpop.f32.mrb[6].mxu1  ;;  %v11473_v50 = vadd.f32 %v11472_v63, %v11471_v39  ;;  %v11474_v34 = vpop.f32.mrb[6].mxu0 }
 0x1fa   :  { %v11499_v42 = vpop.f32.mrb[7].mxu1  ;;  %v11475_v53 = vpop.f32.mrb[7].mxu0 }
 0x1fb   :  { %v15136_v40 = vadd.f32 %v11499_v42, %v11498_v51  ;;  %v4705_v56 = vadd.f32 %v11473_v50, %v4704_v47  ;;  %v4728_v55 = vmul.f32 %v11473_v50, %v11473_v50  ;;  %v11476_v35 = vadd.f32 %v11475_v53, %v11474_v34  ;;  %v5975_v34 = vld [vmem:[%s18592_s0 + $0x120] sm:$0xff] }
 0x1fc   :  { %6228 = vmatmul.mubr.bf16.vlgmr.msra.gmra.mrb[112].mxu1 %v11204_v59  ;;  %v5976_v42 = vld [vmem:[%s18592_s0 + $0x160] sm:$0xff] }
 0x1fd   :  { %v15140_v45 = vpack.c.bf16 %v15136_v40, %v15128_v43  ;;  %11770 = vmatpush3.bf16.msra.mxu1 %v12375_v62  ;;  %v4743_v48 = vadd.f32 %v4742_v46, %v4728_v55  ;;  %6235 = vmatprep.mubr.bf16.mxu1 %v11207_v58  ;;  %v4706_v37 = vadd.f32 %v11476_v35, %v4705_v56  ;;  %v12378_v58 = vld [vmem:[%s18594_s2 + $0x50] sm:$0xff]  }
 0x1fe   :  { %v4729_v39 = vmul.f32 %v11476_v35, %v11476_v35  ;;  %v15145_v63 = vpack.c.bf16 %v11476_v35, %v11473_v50  ;;  %11771 = vmatprep.subr.bf16.mxu1 %v12376_v44  ;;  %v11206_v50 = vcombine.low %v5973_v36, %v5974_v52  ;;  %v11209_v35 = vcombine.high %v5975_v34, %v5976_v42 }
 0x1ff   :  { %v11501_v59 = vpop.f32.mrb[8].mxu1  ;;  %v11477_v47 = vpop.f32.mrb[8].mxu0 }
 0x200   :  { %v11502_v46 = vpop.f32.mrb[9].mxu1  ;;  %v4744_v51 = vadd.f32 %v4743_v48, %v4729_v39  ;;  %v11478_v62 = vpop.f32.mrb[9].mxu0  ;;  %v12380_v48 = vld [vmem:[%s18594_s2 + $0x58] sm:$0xff]  }
 0x201   :  { %v15156_v53 = vadd.f32 %v11502_v46, %v11501_v59  ;;  %v11504_v44 = vpop.f32.mrb[10].mxu1  ;;  %v11479_v56 = vadd.f32 %v11478_v62, %v11477_v47  ;;  %v11480_v55 = vpop.f32.mrb[10].mxu0  ;;  %11772 = vmatpush3.bf16.msra.mxu1 %v12377_v54 }
 0x202   :  { %v11505_v33 = vpop.f32.mrb[11].mxu1  ;;  %v11481_v57 = vpop.f32.mrb[11].mxu0  ;;  %11773 = vmatprep.subr.bf16.mxu1 %v12378_v58  ;;  %v12381_v58 = vld [vmem:[%s18594_s2 + $0x18] sm:$0xff]  }
 0x203   :  { %v15164_v39 = vadd.f32 %v11505_v33, %v11504_v44  ;;  %v4707_v36 = vadd.f32 %v11479_v56, %v4706_v37  ;;  %v4730_v52 = vmul.f32 %v11479_v56, %v11479_v56  ;;  %v11482_v59 = vadd.f32 %v11481_v57, %v11480_v55  ;;  %v5977_v33 = vld [vmem:[%s18592_s0 + $0x1a0] sm:$0xff] }
 0x204   :  { %6236 = vmatmul.mubr.bf16.gmra.mrb[116].mxu1 %v11206_v50  ;;  %v5978_v57 = vld [vmem:[%s18592_s0 + $0x1e0] sm:$0xff] }
 0x205   :  { %v15168_v54 = vpack.c.bf16 %v15164_v39, %v15156_v53  ;;  %v4745_v47 = vadd.f32 %v4744_v51, %v4730_v52  ;;  %6243 = vmatprep.mubr.bf16.mxu1 %v11209_v35  ;;  %11774 = vmatpush3.bf16.msra.mxu1 %v12379_v49  ;;  %v4708_v46 = vadd.f32 %v11482_v59, %v4707_v36  ;;  %v12382_v49 = vld [vmem:[%s18594_s2 + $0x60] sm:$0xff]  }
 0x206   :  { %v4731_v62 = vmul.f32 %v11482_v59, %v11482_v59  ;;  %v15173_v41 = vpack.c.bf16 %v11482_v59, %v11479_v56  ;;  %11775 = vmatprep.subr.bf16.mxu1 %v12380_v48  ;;  %v11208_v56 = vcombine.low %v5975_v34, %v5976_v42  ;;  %v11211_v24 = vcombine.high %v5977_v33, %v5978_v57  ;;  %v12383_v48 = vld [vmem:[%s18594_s2 + $0x20] sm:$0xff]   ;;  %v12388_v34 = vld [vmem:[%s18594_s2 + $0x68] sm:$0xff]  }
 0x207   :  { %v11483_v37 = vpop.f32.mrb[12].mxu0  ;;  %v11507_v51 = vpop.f32.mrb[12].mxu1 }
 0x208   :  { %v4746_v50 = vadd.f32 %v4745_v47, %v4731_v62  ;;  %v11484_v44 = vpop.f32.mrb[13].mxu0  ;;  %v11508_v55 = vpop.f32.mrb[13].mxu1 }
 0x209   :  { %v11485_v35 = vadd.f32 %v11484_v44, %v11483_v37  ;;  %v15184_v36 = vadd.f32 %v11508_v55, %v11507_v51  ;;  %v11486_v52 = vpop.f32.mrb[14].mxu0  ;;  %v11510_v59 = vpop.f32.mrb[14].mxu1  ;;  %11776 = vmatpush3.bf16.msra.mxu1 %v12381_v58  ;;  %v12394_v44 = vld [vmem:[%s18594_s2 + $0x70] sm:$0xff]  }
 0x20a   :  { %v11487_v8 = vpop.f32.mrb[15].mxu0  ;;  %v11511_v32 = vpop.f32.mrb[15].mxu1  ;;  %11777 = vmatprep.subr.bf16.mxu1 %v12382_v49  ;;  %v15199_v49 = vld [vmem:[%s18592_s0 + $0x220] sm:$0xff] }
 0x20b   :  { %v4709_v16 = vadd.f32 %v11485_v35, %v4708_v46  ;;  %v4732_v23 = vmul.f32 %v11485_v35, %v11485_v35  ;;  %v11488_v47 = vadd.f32 %v11487_v8, %v11486_v52  ;;  %v15192_v42 = vadd.f32 %v11511_v32, %v11510_v59  ;;  %v15204_v8 = vld [vmem:[%s18592_s0 + $0x260] sm:$0xff] }
 0x20c   :  { %6244 = vmatmul.mubr.bf16.gmra.mrb[120].mxu1 %v11208_v56  ;;  %v11210_v56 = vcombine.low %v5977_v33, %v5978_v57  ;;  %v4735_v52 = vmul.f32 %v15108_v60, %v15108_v60  ;;  %v4736_v33 = vmul.f32 %v15128_v43, %v15128_v43 }
 0x20d   :  { %v4747_v62 = vadd.f32 %v4746_v50, %v4732_v23  ;;  %v4710_v37 = vadd.f32 %v11488_v47, %v4709_v16  ;;  %v4733_v58 = vmul.f32 %v11488_v47, %v11488_v47  ;;  %v15194_v51 = vpack.c.bf16 %v11488_v47, %v11485_v35  ;;  %6251 = vmatprep.mubr.bf16.mxu1 %v11211_v24  ;;  %v12389_v16 = vld [vmem:[%s18594_s2 + $0x28] sm:$0xff]  }
 0x20e   :  { %v15208_v32 = vpack.c.bf16 %v15192_v42, %v15184_v36  ;;  %11778 = vmatpush3.bf16.msra.mxu1 %v12383_v48  ;;  %v4734_v23 = vmul.f32 %v15106_v38, %v15106_v38  ;;  %v11213_v35 = vcombine.high %v15199_v49, %v15204_v8 }
 0x20f   :  { %v4711_v24 = vadd.f32 %v15106_v38, %v4710_v37  ;;  %v4748_v46 = vadd.f32 %v4747_v62, %v4733_v58  ;;  %v11529_v50 = vpop.f32.mrb[16].mxu1  ;;  %11779 = vmatprep.subr.bf16.mxu1 %v12388_v34  ;;  %v12395_v34 = vld [vmem:[%s18594_s2 + $0x30] sm:$0xff]  }
 0x210   :  { %v11530_v55 = vpop.f32.mrb[17].mxu1 }
 0x211   :  { %v4712_v59 = vadd.f32 %v15108_v60, %v4711_v24  ;;  %v4749_v48 = vadd.f32 %v4748_v46, %v4734_v23  ;;  %v11531_v47 = vadd.f32 %v11530_v55, %v11529_v50  ;;  %v11532_v38 = vpop.f32.mrb[18].mxu1  ;;  %v12400_v60 = vld [vmem:[%s18594_s2 + $0x78] sm:$0xff]   ;;  %v4737_v23 = vmul.f32 %v15136_v40, %v15136_v40 }
 0x212   :  { %v11533_v62 = vpop.f32.mrb[19].mxu1  ;;  %11780 = vmatpush3.bf16.msra.mxu1 %v12389_v16 }
 0x213   :  { %v4713_v57 = vadd.f32 %v15128_v43, %v4712_v59  ;;  %v4750_v37 = vadd.f32 %v4749_v48, %v4735_v52  ;;  %v11534_v58 = vadd.f32 %v11533_v62, %v11532_v38  ;;  %11781 = vmatprep.subr.bf16.mxu1 %v12394_v44  ;;  %v5123_v16 = vmul.f32 %v11531_v47, %v11531_v47  ;;  %v5981_v43 = vld [vmem:[%s18592_s0 + $0x2a0] sm:$0xff] }
 0x214   :  { %6252 = vmatmul.mubr.bf16.gmra.mrb[124].mxu1 %v11210_v56  ;;  %v5982_v44 = vld [vmem:[%s18592_s0 + $0x2e0] sm:$0xff]  ;;  %v12401_v56 = vld [vmem:[%s18594_s2 + $0x38] sm:$0xff]  }
 0x215   :  { %v4751_v24 = vadd.f32 %v4750_v37, %v4736_v33  ;;  %v4714_v46 = vadd.f32 %v15136_v40, %v4713_v57  ;;  %v5101_v50 = vadd.f32 %v11534_v58, %v11531_v47  ;;  %v5124_v55 = vmul.f32 %v11534_v58, %v11534_v58  ;;  %6259 = vmatprep.mubr.bf16.mxu1 %v11213_v35  ;;  %v12406_v62 = vld [vmem:[%s18594_s2 + $0x40] sm:$0xff]  }
 0x216   :  { %v15242_v52 = vpack.c.bf16 %v11534_v58, %v11531_v47  ;;  %11782 = vmatpush3.bf16.msra.mxu1 %v12395_v34  ;;  %v4738_v40 = vmul.f32 %v15156_v53, %v15156_v53  ;;  %v11212_v34 = vcombine.low %v15199_v49, %v15204_v8  ;;  %v11215_v33 = vcombine.high %v5981_v43, %v5982_v44 }
 0x217   :  { %v4715_v35 = vadd.f32 %v15156_v53, %v4714_v46  ;;  %v4752_v59 = vadd.f32 %v4751_v24, %v4737_v23  ;;  %v5139_v48 = vadd.f32 %v5124_v55, %v5123_v16  ;;  %v11535_v38 = vpop.f32.mrb[20].mxu1  ;;  %11783 = vmatprep.subr.bf16.mxu1 %v12400_v60  ;;  %v4739_v57 = vmul.f32 %v15164_v39, %v15164_v39 }
 0x218   :  { %v11536_v47 = vpop.f32.mrb[21].mxu1  ;;  %v4740_v60 = vmul.f32 %v15184_v36, %v15184_v36 }
 0x219   :  { %v4716_v37 = vadd.f32 %v15164_v39, %v4715_v35  ;;  %v4753_v58 = vadd.f32 %v4752_v59, %v4738_v40  ;;  %v11537_v53 = vadd.f32 %v11536_v47, %v11535_v38  ;;  %v11538_v23 = vpop.f32.mrb[22].mxu1  ;;  %v4741_v39 = vmul.f32 %v15192_v42, %v15192_v42 }
 0x21a   :  { %v11539_v16 = vpop.f32.mrb[23].mxu1  ;;  %11784 = vmatpush3.bf16.msra.mxu1 %v12401_v56 }
 0x21b   :  { %v4717_v24 = vadd.f32 %v15184_v36, %v4716_v37  ;;  %v4754_v46 = vadd.f32 %v4753_v58, %v4739_v57  ;;  %v5102_v55 = vadd.f32 %v11537_v53, %v5101_v50  ;;  %v5125_v7 = vmul.f32 %v11537_v53, %v11537_v53  ;;  %11897 = vmatprep.subr.bf16.mxu1 %v12406_v62  ;;  %v5983_v36 = vld [vmem:[%s18592_s0 + $0x320] sm:$0xff] }
 0x21c   :  { %v11540_v49 = vadd.f32 %v11539_v16, %v11538_v23  ;;  %6260 = vmatmul.mubr.bf16.gmra.mrb[128].mxu1 %v11212_v34  ;;  %v5984_v50 = vld [vmem:[%s18592_s0 + $0x360] sm:$0xff]  ;;  %v11214_v57 = vcombine.low %v5981_v43, %v5982_v44 }
 0x21d   :  { %v15262_v8 = vadd.f32 %v15192_v42, %v4717_v24  ;;  %v4755_v40 = vadd.f32 %v4754_v46, %v4740_v60  ;;  %v5140_v35 = vadd.f32 %v5139_v48, %v5125_v7  ;;  %6267 = vmatprep.mubr.bf16.mxu1 %v11215_v33  ;;  %v11217_v33 = vcombine.high %v5983_v36, %v5984_v50  ;;  %v5986_v43 = vld [vmem:[%s18592_s0 + $0x3e0] sm:$0xff] }
 0x21e   :  { %v5103_v59 = vadd.f32 %v11540_v49, %v5102_v55  ;;  %v5126_v38 = vmul.f32 %v11540_v49, %v11540_v49  ;;  %v15266_v56 = vpack.c.bf16 %v11540_v49, %v11537_v53  ;;  %v5985_v55 = vld [vmem:[%s18592_s0 + $0x3a0] sm:$0xff] }
 0x21f   :  { %v15274_v62 = vadd.f32 %v4755_v40, %v4741_v39  ;;  %v11541_v47 = vpop.f32.mrb[24].mxu1  ;;  %v11216_v40 = vcombine.low %v5983_v36, %v5984_v50  ;;  %v6369_v36 = vld [vmem:[%s18592_s0 + $0x68] sm:$0xff] }
 0x220   :  { %v5141_v34 = vadd.f32 %v5140_v35, %v5126_v38  ;;  %v11542_v42 = vpop.f32.mrb[25].mxu1  ;;  %v11219_v38 = vcombine.high %v5985_v55, %v5986_v43 }
 0x221   :  { %v11543_v7 = vadd.f32 %v11542_v42, %v11541_v47  ;;  %v11544_v48 = vpop.f32.mrb[26].mxu1 }
 0x222   :  { %v11545_v37 = vpop.f32.mrb[27].mxu1 }
 0x223   :  { %v5104_v58 = vadd.f32 %v11543_v7, %v5103_v59  ;;  %v5127_v53 = vmul.f32 %v11543_v7, %v11543_v7  ;;  %v11546_v23 = vadd.f32 %v11545_v37, %v11544_v48 }
 0x224   :  { %6268 = vmatmul.mubr.bf16.gmra.mrb[132].mxu1 %v11214_v57 }
 0x225   :  { %v5142_v60 = vadd.f32 %v5141_v34, %v5127_v53  ;;  %6275 = vmatprep.mubr.bf16.mxu1 %v11217_v33  ;;  %v5105_v16 = vadd.f32 %v11546_v23, %v5104_v58  ;;  %v5128_v24 = vmul.f32 %v11546_v23, %v11546_v23  ;;  %v15276_v46 = vpack.c.bf16 %v11546_v23, %v11543_v7  ;;  %v6368_v58 = vld [vmem:[%s18592_s0 + $0x28] sm:$0xff] }
 0x227   :  { %v11547_v44 = vpop.f32.mrb[28].mxu1  ;;  %v5143_v49 = vadd.f32 %v5142_v60, %v5128_v24  ;;  %v11218_v60 = vcombine.low %v5985_v55, %v5986_v43  ;;  %v6370_v55 = vld [vmem:[%s18592_s0 + $0xa8] sm:$0xff] }
 0x228   :  { %v11548_v39 = vpop.f32.mrb[29].mxu1  ;;  %v6371_v43 = vld [vmem:[%s18592_s0 + $0xe8] sm:$0xff] }
 0x229   :  { %v11549_v35 = vadd.f32 %v11548_v39, %v11547_v44  ;;  %v11550_v59 = vpop.f32.mrb[30].mxu1  ;;  %v11237_v44 = vcombine.high %v6368_v58, %v6369_v36 }
 0x22a   :  { %v11551_v47 = vpop.f32.mrb[31].mxu1 }
 0x22b   :  { %v5106_v34 = vadd.f32 %v11549_v35, %v5105_v16  ;;  %v5129_v42 = vmul.f32 %v11549_v35, %v11549_v35  ;;  %v11552_v57 = vadd.f32 %v11551_v47, %v11550_v59 }
 0x22c   :  { %6276 = vmatmul.mubr.bf16.gmra.mrb[136].mxu1 %v11216_v40 }
 0x22d   :  { %v5144_v7 = vadd.f32 %v5143_v49, %v5129_v42  ;;  %v5107_v48 = vadd.f32 %v11552_v57, %v5106_v34  ;;  %v5130_v33 = vmul.f32 %v11552_v57, %v11552_v57  ;;  %v15284_v37 = vpack.c.bf16 %v11552_v57, %v11549_v35  ;;  %6283 = vmatprep.mubr.bf16.mxu1 %v11219_v38 }
 0x22f   :  { %v5145_v50 = vadd.f32 %v5144_v7, %v5130_v33  ;;  %v11553_v53 = vpop.f32.mrb[32].mxu1 }
 0x230   :  { %v11554_v23 = vpop.f32.mrb[33].mxu1 }
 0x231   :  { %v11555_v16 = vadd.f32 %v11554_v23, %v11553_v53  ;;  %v11556_v24 = vpop.f32.mrb[34].mxu1 }
 0x232   :  { %v11557_v49 = vpop.f32.mrb[35].mxu1 }
 0x233   :  { %v5108_v39 = vadd.f32 %v11555_v16, %v5107_v48  ;;  %v5131_v40 = vmul.f32 %v11555_v16, %v11555_v16  ;;  %v11558_v35 = vadd.f32 %v11557_v49, %v11556_v24  ;;  %v11236_v48 = vcombine.low %v6368_v58, %v6369_v36  ;;  %v12409_v36 = vld [vmem:[%s18594_s2 + $0x8] sm:$0xff]  }
 0x234   :  { %6284 = vmatmul.mubr.bf16.gmra.mrb[140].mxu1 %v11218_v60  ;;  %v11239_v60 = vcombine.high %v6370_v55, %v6371_v43 }
 0x235   :  { %v5146_v59 = vadd.f32 %v5145_v50, %v5131_v40  ;;  %v5109_v38 = vadd.f32 %v11558_v35, %v5108_v39  ;;  %v5132_v47 = vmul.f32 %v11558_v35, %v11558_v35  ;;  %v15292_v34 = vpack.c.bf16 %v11558_v35, %v11555_v16  ;;  %6624 = vmatprep.mubr.bf16.mxu1 %v11237_v44  ;;  %v12407_v50 = vld [vmem:[%s18594_s2] sm:$0xff]   ;;  %v12408_v16 = vld [vmem:[%s18594_s2 + $0x48] sm:$0xff]  }
 0x237   :  { %v5147_v42 = vadd.f32 %v5146_v59, %v5132_v47  ;;  %v11559_v57 = vpop.f32.mrb[36].mxu1  ;;  %v6372_v59 = vld [vmem:[%s18592_s0 + $0x128] sm:$0xff]  ;;  %v12410_v47 = vld [vmem:[%s18594_s2 + $0x50] sm:$0xff]  }
 0x238   :  { %v11560_v7 = vpop.f32.mrb[37].mxu1 }
 0x239   :  { %v11561_v33 = vadd.f32 %v11560_v7, %v11559_v57  ;;  %v11562_v53 = vpop.f32.mrb[38].mxu1 }
 0x23a   :  { %v11563_v23 = vpop.f32.mrb[39].mxu1 }
 0x23b   :  { %v5110_v24 = vadd.f32 %v11561_v33, %v5109_v38  ;;  %v5133_v44 = vmul.f32 %v11561_v33, %v11561_v33  ;;  %v11564_v49 = vadd.f32 %v11563_v23, %v11562_v53  ;;  %v6373_v38 = vld [vmem:[%s18592_s0 + $0x168] sm:$0xff] }
 0x23c   :  { %6625 = vmatmul.mubr.bf16.vlgmr.msra.gmra.mrb[144].mxu1 %v11236_v48  ;;  %v11238_v48 = vcombine.low %v6370_v55, %v6371_v43 }
 0x23d   :  { %v5148_v39 = vadd.f32 %v5147_v42, %v5133_v44  ;;  %v5111_v40 = vadd.f32 %v11564_v49, %v5110_v24  ;;  %v5134_v35 = vmul.f32 %v11564_v49, %v11564_v49  ;;  %v15306_v58 = vpack.c.bf16 %v11564_v49, %v11561_v33  ;;  %11898 = vmatpush3.bf16.msra.mxu1 %v12407_v50  ;;  %v12412_v49 = vld [vmem:[%s18594_s2 + $0x58] sm:$0xff]  }
 0x23e   :  { %6632 = vmatprep.mubr.bf16.mxu1 %v11239_v60  ;;  %11899 = vmatprep.subr.bf16.mxu1 %v12408_v16  ;;  %v11241_v50 = vcombine.high %v6372_v59, %v6373_v38  ;;  %v12411_v60 = vld [vmem:[%s18594_s2 + $0x10] sm:$0xff]  }
 0x23f   :  { %v5149_v42 = vadd.f32 %v5148_v39, %v5134_v35  ;;  %v11565_v57 = vpop.f32.mrb[40].mxu1  ;;  %v4719_v39 = vrot.slane %v15262_v8, 4 }
 0x240   :  { %v11566_v7 = vpop.f32.mrb[41].mxu1 }
 0x241   :  { %v11567_v33 = vadd.f32 %v11566_v7, %v11565_v57  ;;  %v11568_v53 = vpop.f32.mrb[42].mxu1  ;;  %11900 = vmatpush3.bf16.msra.mxu1 %v12409_v36  ;;  %v6375_v57 = vld [vmem:[%s18592_s0 + $0x1e8] sm:$0xff] }
 0x242   :  { %v11569_v23 = vpop.f32.mrb[43].mxu1  ;;  %11901 = vmatprep.subr.bf16.mxu1 %v12410_v47  ;;  %v4757_v47 = vrot.slane %v15274_v62, 4 }
 0x243   :  { %v5112_v16 = vadd.f32 %v11567_v33, %v5111_v40  ;;  %v5135_v24 = vmul.f32 %v11567_v33, %v11567_v33  ;;  %v11570_v44 = vadd.f32 %v11569_v23, %v11568_v53  ;;  %v6374_v40 = vld [vmem:[%s18592_s0 + $0x1a8] sm:$0xff]  ;;  %v4720_v53 = vadd.f32 %v4719_v39, %v15262_v8 }
 0x244   :  { %6633 = vmatmul.mubr.bf16.gmra.mrb[148].mxu1 %v11238_v48  ;;  %v11240_v23 = vcombine.low %v6372_v59, %v6373_v38  ;;  %v12416_v8 = vld [vmem:[%s18594_s2 + $0x68] sm:$0xff]  }
 0x245   :  { %v5150_v55 = vadd.f32 %v5149_v42, %v5135_v24  ;;  %v5113_v43 = vadd.f32 %v11570_v44, %v5112_v16  ;;  %v5136_v35 = vmul.f32 %v11570_v44, %v11570_v44  ;;  %v15327_v36 = vpack.c.bf16 %v11570_v44, %v11567_v33  ;;  %6640 = vmatprep.mubr.bf16.mxu1 %v11241_v50  ;;  %v12413_v42 = vld [vmem:[%s18594_s2 + $0x18] sm:$0xff]   ;;  %v12414_v33 = vld [vmem:[%s18594_s2 + $0x60] sm:$0xff]  }
 0x246   :  { %11902 = vmatpush3.bf16.msra.mxu1 %v12411_v60  ;;  %v11243_v24 = vcombine.high %v6374_v40, %v6375_v57  ;;  %v4758_v44 = vadd.f32 %v4757_v47, %v15274_v62  ;;  %v4721_v59 = vrot.slane %v4720_v53, 2 }
 0x247   :  { %v5151_v7 = vadd.f32 %v5150_v55, %v5136_v35  ;;  %v11571_v48 = vpop.f32.mrb[44].mxu1  ;;  %11903 = vmatprep.subr.bf16.mxu1 %v12412_v49  ;;  %v12415_v55 = vld [vmem:[%s18594_s2 + $0x20] sm:$0xff]  }
 0x248   :  { %v11572_v50 = vpop.f32.mrb[45].mxu1  ;;  %v4759_v47 = vrot.slane %v4758_v44, 2 }
 0x249   :  { %v11573_v60 = vadd.f32 %v11572_v50, %v11571_v48  ;;  %v11574_v16 = vpop.f32.mrb[46].mxu1 }
 0x24a   :  { %v11575_v31 = vpop.f32.mrb[47].mxu1  ;;  %11904 = vmatpush3.bf16.msra.mxu1 %v12413_v42  ;;  %v12417_v42 = vld [vmem:[%s18594_s2 + $0x28] sm:$0xff]   ;;  %v4760_v6 = vadd.f32 %v4759_v47, %v4758_v44 }
 0x24b   :  { %v5114_v49 = vadd.f32 %v11573_v60, %v5113_v43  ;;  %v5137_v35 = vmul.f32 %v11573_v60, %v11573_v60  ;;  %v11576_v15 = vadd.f32 %v11575_v31, %v11574_v16  ;;  %11905 = vmatprep.subr.bf16.mxu1 %v12414_v33  ;;  %v6376_v43 = vld [vmem:[%s18592_s0 + $0x228] sm:$0xff]  ;;  %v11242_v16 = vcombine.low %v6374_v40, %v6375_v57  ;;  %v12420_v40 = vld [vmem:[%s18594_s2 + $0x78] sm:$0xff]  }
 0x24c   :  { %6641 = vmatmul.mubr.bf16.gmra.mrb[152].mxu1 %v11240_v23  ;;  %v6377_v31 = vld [vmem:[%s18592_s0 + $0x268] sm:$0xff]  ;;  %v4722_v23 = vadd.f32 %v4721_v59, %v4720_v53 }
 0x24d   :  { %v5152_v38 = vadd.f32 %v5151_v7, %v5137_v35  ;;  %v5115_v39 = vadd.f32 %v11576_v15, %v5114_v49  ;;  %v5138_v48 = vmul.f32 %v11576_v15, %v11576_v15  ;;  %v15350_v62 = vpack.c.bf16 %v11576_v15, %v11573_v60  ;;  %6648 = vmatprep.mubr.bf16.mxu1 %v11243_v24  ;;  %v12418_v15 = vld [vmem:[%s18594_s2 + $0x70] sm:$0xff]  }
 0x24e   :  { %11906 = vmatpush3.bf16.msra.mxu1 %v12415_v55  ;;  %v11245_v55 = vcombine.high %v6376_v43, %v6377_v31  ;;  %v4723_v57 = vrot.slane %v4722_v23, 1 }
 0x24f   :  { %v5116_v7 = vrot.slane %v5115_v39, 4  ;;  %v5153_v33 = vadd.f32 %v5152_v38, %v5138_v48  ;;  %v11593_v50 = vpop.f32.mrb[48].mxu1  ;;  %11907 = vmatprep.subr.bf16.mxu1 %v12416_v8  ;;  %v12419_v38 = vld [vmem:[%s18594_s2 + $0x30] sm:$0xff]  }
 0x250   :  { %v11594_v60 = vpop.f32.mrb[49].mxu1 }
 0x251   :  { %v5117_v24 = vadd.f32 %v5116_v7, %v5115_v39  ;;  %v5154_v49 = vrot.slane %v5153_v33, 4  ;;  %v11595_v35 = vadd.f32 %v11594_v60, %v11593_v50  ;;  %v11596_v22 = vpop.f32.mrb[50].mxu1 }
 0x252   :  { %v11597_v30 = vpop.f32.mrb[51].mxu1  ;;  %11908 = vmatpush3.bf16.msra.mxu1 %v12417_v42  ;;  %v6378_v42 = vld [vmem:[%s18592_s0 + $0x2a8] sm:$0xff] }
 0x253   :  { %v5118_v8 = vrot.slane %v5117_v24, 2  ;;  %v5155_v48 = vadd.f32 %v5154_v49, %v5153_v33  ;;  %v11598_v14 = vadd.f32 %v11597_v30, %v11596_v22  ;;  %11909 = vmatprep.subr.bf16.mxu1 %v12418_v15  ;;  %v5520_v53 = vmul.f32 %v11595_v35, %v11595_v35  ;;  %v6379_v22 = vld [vmem:[%s18592_s0 + $0x2e8] sm:$0xff]  ;;  %v12421_v33 = vld [vmem:[%s18594_s2 + $0x38] sm:$0xff]  }
 0x254   :  { %6649 = vmatmul.mubr.bf16.gmra.mrb[156].mxu1 %v11242_v16  ;;  %v4761_v30 = vrot.slane %v4760_v6, 1  ;;  %v11244_v49 = vcombine.low %v6376_v43, %v6377_v31 }
 0x255   :  { %v5119_v59 = vadd.f32 %v5118_v8, %v5117_v24  ;;  %v5156_v39 = vrot.slane %v5155_v48, 2  ;;  %v5498_v44 = vadd.f32 %v11598_v14, %v11595_v35  ;;  %v5521_v47 = vmul.f32 %v11598_v14, %v11598_v14  ;;  %6656 = vmatprep.mubr.bf16.mxu1 %v11245_v55 }
 0x256   :  { %v15376_v7 = vpack.c.bf16 %v11598_v14, %v11595_v35  ;;  %11910 = vmatpush3.bf16.msra.mxu1 %v12419_v38  ;;  %v11247_v55 = vcombine.high %v6378_v42, %v6379_v22  ;;  %v4724_v8 = vadd.f32 %v4723_v57, %v4722_v23  ;;  %v4762_v14 = vadd.f32 %v4761_v30, %v4760_v6  ;;  %v6380_v6 = vld [vmem:[%s18592_s0 + $0x328] sm:$0xff] }
 0x257   :  { %v5120_v50 = vrot.slane %v5119_v59, 1  ;;  %v5157_v15 = vadd.f32 %v5156_v39, %v5155_v48  ;;  %v5536_v60 = vadd.f32 %v5521_v47, %v5520_v53  ;;  %v11599_v16 = vpop.f32.mrb[52].mxu1  ;;  %11911 = vmatprep.subr.bf16.mxu1 %v12420_v40 }
 0x258   :  { %v11600_v24 = vpop.f32.mrb[53].mxu1 }
 0x259   :  { %v5121_v21 = vadd.f32 %v5120_v50, %v5119_v59  ;;  %v5158_v5 = vrot.slane %v5157_v15, 1  ;;  %v11601_v29 = vadd.f32 %v11600_v24, %v11599_v16  ;;  %v11602_v13 = vpop.f32.mrb[54].mxu1  ;;  %v11246_v59 = vcombine.low %v6378_v42, %v6379_v22  ;;  %v6383_v42 = vld [vmem:[%s18592_s0 + $0x3e8] sm:$0xff] }
 0x25a   :  { %v11603_v35 = vpop.f32.mrb[55].mxu1  ;;  %11912 = vmatpush3.bf16.msra.mxu1 %v12421_v33 }
 0x25b   :  { %v15381_v38 = vadd.f32 %v5121_v21, %v4724_v8  ;;  %v5159_v20 = vadd.f32 %v5158_v5, %v5157_v15  ;;  %v5499_v4 = vadd.f32 %v11601_v29, %v5498_v44  ;;  %v5522_v28 = vmul.f32 %v11601_v29, %v11601_v29  ;;  %v6381_v5 = vld [vmem:[%s18592_s0 + $0x368] sm:$0xff] }
 0x25c   :  { %v11604_v48 = vadd.f32 %v11603_v35, %v11602_v13  ;;  %6657 = vmatmul.mubr.bf16.gmra.mrb[160].mxu1 %v11244_v49  ;;  %v11248_v49 = vcombine.low %v6380_v6, %v6381_v5 }
 0x25d   :  { %v15383_v53 = vadd.f32 %v5159_v20, %v4762_v14  ;;  %v5537_v40 = vadd.f32 %v5536_v60, %v5522_v28  ;;  %6664 = vmatprep.mubr.bf16.mxu1 %v11247_v55  ;;  %v11249_v28 = vcombine.high %v6380_v6, %v6381_v5  ;;  %v6382_v60 = vld [vmem:[%s18592_s0 + $0x3a8] sm:$0xff]  ;;  %v7163_v6 = vld [vmem:[%s18592_s0 + $0x78] sm:$0xff] }
 0x25e   :  { %v5500_v43 = vadd.f32 %v11604_v48, %v5499_v4  ;;  %v5523_v31 = vmul.f32 %v11604_v48, %v11604_v48  ;;  %v15385_v23 = vpack.c.bf16 %v11604_v48, %v11601_v29  ;;  %v11251_v14 = vcombine.high %v6382_v60, %v6383_v42 }
 0x25f   :  { %v11605_v21 = vpop.f32.mrb[56].mxu1 }
 0x260   :  { %v5538_v57 = vadd.f32 %v5537_v40, %v5523_v31  ;;  %v11606_v13 = vpop.f32.mrb[57].mxu1 }
 0x261   :  { %v11607_v20 = vadd.f32 %v11606_v13, %v11605_v21  ;;  %v11608_v39 = vpop.f32.mrb[58].mxu1 }
 0x262   :  { %v11609_v44 = vpop.f32.mrb[59].mxu1 }
 0x263   :  { %v5501_v4 = vadd.f32 %v11607_v20, %v5500_v43  ;;  %v5524_v47 = vmul.f32 %v11607_v20, %v11607_v20  ;;  %v11610_v29 = vadd.f32 %v11609_v44, %v11608_v39 }
 0x264   :  { %6665 = vmatmul.mubr.bf16.gmra.mrb[164].mxu1 %v11246_v59  ;;  %v7162_v59 = vld [vmem:[%s18592_s0 + $0x38] sm:$0xff] }
 0x265   :  { %v5539_v30 = vadd.f32 %v5538_v57, %v5524_v47  ;;  %v5502_v33 = vadd.f32 %v11610_v29, %v5501_v4  ;;  %v5525_v50 = vmul.f32 %v11610_v29, %v11610_v29  ;;  %v15393_v15 = vpack.c.bf16 %v11610_v29, %v11607_v20  ;;  %6672 = vmatprep.mubr.bf16.mxu1 %v11249_v28 }
 0x266   :  { %v11250_v28 = vcombine.low %v6382_v60, %v6383_v42  ;;  %v11301_v47 = vcombine.high %v7162_v59, %v7163_v6  ;;  %v7165_v60 = vld [vmem:[%s18592_s0 + $0xf8] sm:$0xff] }
 0x267   :  { %v5540_v22 = vadd.f32 %v5539_v30, %v5525_v50  ;;  %v11611_v16 = vpop.f32.mrb[60].mxu1 }
 0x268   :  { %v11612_v24 = vpop.f32.mrb[61].mxu1 }
 0x269   :  { %v11613_v55 = vadd.f32 %v11612_v24, %v11611_v16  ;;  %v11614_v8 = vpop.f32.mrb[62].mxu1 }
 0x26a   :  { %v11615_v35 = vpop.f32.mrb[63].mxu1 }
 0x26b   :  { %v5503_v48 = vadd.f32 %v11613_v55, %v5502_v33  ;;  %v5526_v40 = vmul.f32 %v11613_v55, %v11613_v55  ;;  %v11616_v43 = vadd.f32 %v11615_v35, %v11614_v8  ;;  %v11300_v35 = vcombine.low %v7162_v59, %v7163_v6  ;;  %v7167_v59 = vld [vmem:[%s18592_s0 + $0x178] sm:$0xff] }
 0x26c   :  { %6673 = vmatmul.mubr.bf16.gmra.mrb[168].mxu1 %v11248_v49 }
 0x26d   :  { %v5541_v31 = vadd.f32 %v5540_v22, %v5526_v40  ;;  %v5504_v21 = vadd.f32 %v11616_v43, %v5503_v48  ;;  %v5527_v57 = vmul.f32 %v11616_v43, %v11616_v43  ;;  %v15401_v13 = vpack.c.bf16 %v11616_v43, %v11613_v55  ;;  %6680 = vmatprep.mubr.bf16.mxu1 %v11251_v14  ;;  %v7164_v55 = vld [vmem:[%s18592_s0 + $0xb8] sm:$0xff] }
 0x26e   :  { %v11303_v43 = vcombine.high %v7164_v55, %v7165_v60 }
 0x26f   :  { %v5542_v5 = vadd.f32 %v5541_v31, %v5527_v57  ;;  %v11617_v20 = vpop.f32.mrb[64].mxu1 }
 0x270   :  { %v11618_v39 = vpop.f32.mrb[65].mxu1 }
 0x271   :  { %v11619_v44 = vadd.f32 %v11618_v39, %v11617_v20  ;;  %v11620_v4 = vpop.f32.mrb[66].mxu1 }
 0x272   :  { %v11621_v29 = vpop.f32.mrb[67].mxu1 }
 0x273   :  { %v5505_v30 = vadd.f32 %v11619_v44, %v5504_v21  ;;  %v5528_v33 = vmul.f32 %v11619_v44, %v11619_v44  ;;  %v11622_v50 = vadd.f32 %v11621_v29, %v11620_v4  ;;  %v7166_v4 = vld [vmem:[%s18592_s0 + $0x138] sm:$0xff] }
 0x274   :  { %6681 = vmatmul.mubr.bf16.gmra.mrb[172].mxu1 %v11250_v28 }
 0x275   :  { %v5543_v22 = vadd.f32 %v5542_v5, %v5528_v33  ;;  %v5506_v16 = vadd.f32 %v11622_v50, %v5505_v30  ;;  %v5529_v24 = vmul.f32 %v11622_v50, %v11622_v50  ;;  %v15409_v49 = vpack.c.bf16 %v11622_v50, %v11619_v44  ;;  %7418 = vmatprep.mubr.bf16.mxu1 %v11301_v47 }
 0x276   :  { %v11302_v30 = vcombine.low %v7164_v55, %v7165_v60  ;;  %v7169_v55 = vld [vmem:[%s18592_s0 + $0x1f8] sm:$0xff] }
 0x277   :  { %v5544_v42 = vadd.f32 %v5543_v22, %v5529_v24  ;;  %v11623_v8 = vpop.f32.mrb[68].mxu1  ;;  %v11305_v22 = vcombine.high %v7166_v4, %v7167_v59 }
 0x278   :  { %v11624_v14 = vpop.f32.mrb[69].mxu1 }
 0x279   :  { %v11625_v48 = vadd.f32 %v11624_v14, %v11623_v8  ;;  %v11626_v40 = vpop.f32.mrb[70].mxu1 }
 0x27a   :  { %v11627_v31 = vpop.f32.mrb[71].mxu1 }
 0x27b   :  { %v5507_v21 = vadd.f32 %v11625_v48, %v5506_v16  ;;  %v5530_v57 = vmul.f32 %v11625_v48, %v11625_v48  ;;  %v11628_v5 = vadd.f32 %v11627_v31, %v11626_v40 }
 0x27c   :  { %7419 = vmatmul.mubr.bf16.vlgmr.msra.gmra.mrb[176].mxu1 %v11300_v35 }
 0x27d   :  { %v5545_v20 = vadd.f32 %v5544_v42, %v5530_v57  ;;  %v5508_v39 = vadd.f32 %v11628_v5, %v5507_v21  ;;  %v5531_v28 = vmul.f32 %v11628_v5, %v11628_v5  ;;  %v15417_v44 = vpack.c.bf16 %v11628_v5, %v11625_v48  ;;  %7426 = vmatprep.mubr.bf16.mxu1 %v11303_v43  ;;  %v7168_v43 = vld [vmem:[%s18592_s0 + $0x1b8] sm:$0xff] }
 0x27e   :  { %v11304_v57 = vcombine.low %v7166_v4, %v7167_v59  ;;  %v7171_v4 = vld [vmem:[%s18592_s0 + $0x278] sm:$0xff] }
 0x27f   :  { %v5546_v6 = vadd.f32 %v5545_v20, %v5531_v28  ;;  %v11629_v47 = vpop.f32.mrb[72].mxu1 }
 0x280   :  { %v11630_v29 = vpop.f32.mrb[73].mxu1 }
 0x281   :  { %v11631_v33 = vadd.f32 %v11630_v29, %v11629_v47  ;;  %v11632_v50 = vpop.f32.mrb[74].mxu1 }
 0x282   :  { %v11633_v16 = vpop.f32.mrb[75].mxu1 }
 0x283   :  { %v5509_v24 = vadd.f32 %v11631_v33, %v5508_v39  ;;  %v5532_v42 = vmul.f32 %v11631_v33, %v11631_v33  ;;  %v11634_v8 = vadd.f32 %v11633_v16, %v11632_v50  ;;  %v11307_v39 = vcombine.high %v7168_v43, %v7169_v55  ;;  %v7170_v16 = vld [vmem:[%s18592_s0 + $0x238] sm:$0xff] }
 0x284   :  { %7427 = vmatmul.mubr.bf16.gmra.mrb[180].mxu1 %v11302_v30 }
 0x285   :  { %v5547_v14 = vadd.f32 %v5546_v6, %v5532_v42  ;;  %v5510_v35 = vadd.f32 %v11634_v8, %v5509_v24  ;;  %v5533_v48 = vmul.f32 %v11634_v8, %v11634_v8  ;;  %v15425_v40 = vpack.c.bf16 %v11634_v8, %v11631_v33  ;;  %7434 = vmatprep.mubr.bf16.mxu1 %v11305_v22 }
 0x287   :  { %v5548_v60 = vadd.f32 %v5547_v14, %v5533_v48  ;;  %v11635_v31 = vpop.f32.mrb[76].mxu1  ;;  %v11306_v14 = vcombine.low %v7168_v43, %v7169_v55  ;;  %v7172_v43 = vld [vmem:[%s18592_s0 + $0x2b8] sm:$0xff] }
 0x288   :  { %v11636_v21 = vpop.f32.mrb[77].mxu1  ;;  %v7173_v55 = vld [vmem:[%s18592_s0 + $0x2f8] sm:$0xff] }
 0x289   :  { %v11637_v5 = vadd.f32 %v11636_v21, %v11635_v31  ;;  %v11638_v20 = vpop.f32.mrb[78].mxu1  ;;  %v11309_v21 = vcombine.high %v7170_v16, %v7171_v4 }
 0x28a   :  { %v11639_v28 = vpop.f32.mrb[79].mxu1 }
 0x28b   :  { %v5511_v6 = vadd.f32 %v11637_v5, %v5510_v35  ;;  %v5534_v47 = vmul.f32 %v11637_v5, %v11637_v5  ;;  %v11640_v29 = vadd.f32 %v11639_v28, %v11638_v20 }
 0x28c   :  { %7435 = vmatmul.mubr.bf16.gmra.mrb[184].mxu1 %v11304_v57 }
 0x28d   :  { %v5549_v30 = vadd.f32 %v5548_v60, %v5534_v47  ;;  %v5512_v33 = vadd.f32 %v11640_v29, %v5511_v6  ;;  %v5535_v50 = vmul.f32 %v11640_v29, %v11640_v29  ;;  %v15433_v22 = vpack.c.bf16 %v11640_v29, %v11637_v5  ;;  %7442 = vmatprep.mubr.bf16.mxu1 %v11307_v39 }
 0x28f   :  { %v5513_v59 = vrot.slane %v5512_v33, 4  ;;  %v5550_v24 = vadd.f32 %v5549_v30, %v5535_v50  ;;  %v11657_v42 = vpop.f32.mrb[80].mxu1 }
 0x290   :  { %v11658_v8 = vpop.f32.mrb[81].mxu1 }
 0x291   :  { %v5514_v35 = vadd.f32 %v5513_v59, %v5512_v33  ;;  %v5551_v48 = vrot.slane %v5550_v24, 4  ;;  %v11659_v60 = vadd.f32 %v11658_v8, %v11657_v42  ;;  %v11660_v31 = vpop.f32.mrb[82].mxu1  ;;  %v11308_v8 = vcombine.low %v7170_v16, %v7171_v4  ;;  %v7174_v16 = vld [vmem:[%s18592_s0 + $0x338] sm:$0xff] }
 0x292   :  { %v11661_v57 = vpop.f32.mrb[83].mxu1  ;;  %v7175_v4 = vld [vmem:[%s18592_s0 + $0x378] sm:$0xff] }
 0x293   :  { %v5515_v5 = vrot.slane %v5514_v35, 2  ;;  %v5552_v20 = vadd.f32 %v5551_v48, %v5550_v24  ;;  %v11662_v39 = vadd.f32 %v11661_v57, %v11660_v31  ;;  %v5917_v28 = vmul.f32 %v11659_v60, %v11659_v60 }
 0x294   :  { %7443 = vmatmul.mubr.bf16.gmra.mrb[188].mxu1 %v11306_v14 }
 0x295   :  { %v5516_v6 = vadd.f32 %v5515_v5, %v5514_v35  ;;  %v5553_v47 = vrot.slane %v5552_v20, 2  ;;  %v5895_v29 = vadd.f32 %v11662_v39, %v11659_v60  ;;  %v5918_v12 = vmul.f32 %v11662_v39, %v11662_v39  ;;  %7450 = vmatprep.mubr.bf16.mxu1 %v11309_v21 }
 0x296   :  { %v15441_v30 = vpack.c.bf16 %v11662_v39, %v11659_v60  ;;  %v11311_v60 = vcombine.high %v7172_v43, %v7173_v55 }
 0x297   :  { %v5517_v33 = vrot.slane %v5516_v6, 1  ;;  %v5554_v50 = vadd.f32 %v5553_v47, %v5552_v20  ;;  %v5933_v59 = vadd.f32 %v5918_v12, %v5917_v28  ;;  %v11663_v24 = vpop.f32.mrb[84].mxu1 }
 0x298   :  { %v11664_v42 = vpop.f32.mrb[85].mxu1 }
 0x299   :  { %v5518_v14 = vadd.f32 %v5517_v33, %v5516_v6  ;;  %v5555_v35 = vrot.slane %v5554_v50, 1  ;;  %v11665_v48 = vadd.f32 %v11664_v42, %v11663_v24  ;;  %v11666_v31 = vpop.f32.mrb[86].mxu1  ;;  %v11310_v33 = vcombine.low %v7172_v43, %v7173_v55 }
 0x29a   :  { %v11667_v21 = vpop.f32.mrb[87].mxu1 }
 0x29b   :  { %v5556_v57 = vadd.f32 %v5555_v35, %v5554_v50  ;;  %v5896_v5 = vadd.f32 %v11665_v48, %v5895_v29  ;;  %v5919_v39 = vmul.f32 %v11665_v48, %v11665_v48  ;;  %v11668_v19 = vadd.f32 %v11667_v21, %v11666_v31 }
 0x29c   :  { %7451 = vmatmul.mubr.bf16.gmra.mrb[192].mxu1 %v11308_v8  ;;  %v15450_v3 = vadd.f32 %v5518_v14, %v15381_v38 }
 0x29d   :  { %v5934_v27 = vadd.f32 %v5933_v59, %v5919_v39  ;;  %v5897_v20 = vadd.f32 %v11668_v19, %v5896_v5  ;;  %v5920_v12 = vmul.f32 %v11668_v19, %v11668_v19  ;;  %v15452_v28 = vpack.c.bf16 %v11668_v19, %v11665_v48  ;;  %7458 = vmatprep.mubr.bf16.mxu1 %v11311_v60 }
 0x29e   :  { %v15461_v6 = vadd.f32 %v5556_v57, %v15383_v53  ;;  %v11313_v19 = vcombine.high %v7174_v16, %v7175_v4  ;;  %v7177_v53 = vld [vmem:[%s18592_s0 + $0x3f8] sm:$0xff]  ;;  %v11312_v57 = vcombine.low %v7174_v16, %v7175_v4 }
 0x29f   :  { %v5935_v47 = vadd.f32 %v5934_v27, %v5920_v12  ;;  %v11669_v38 = vpop.f32.mrb[88].mxu1  ;;  %v7176_v27 = vld [vmem:[%s18592_s0 + $0x3b8] sm:$0xff]  ;;  %s13034_s0 = smov 64  }
 0x2a0   :  { %v11670_v29 = vpop.f32.mrb[89].mxu1  ;;  %v11314_v16 = vcombine.low %v7176_v27, %v7177_v53 }
 0x2a1   :  { %v11671_v50 = vadd.f32 %v11670_v29, %v11669_v38  ;;  %v11672_v59 = vpop.f32.mrb[90].mxu1 }
 0x2a2   :  { %v11673_v24 = vpop.f32.mrb[91].mxu1 }
 0x2a3   :  { %v5898_v42 = vadd.f32 %v11671_v50, %v5897_v20  ;;  %v5921_v8 = vmul.f32 %v11671_v50, %v11671_v50  ;;  %v11674_v14 = vadd.f32 %v11673_v24, %v11672_v59  ;;  %v11315_v20 = vcombine.high %v7176_v27, %v7177_v53  ;;  %v11849_v24 = vpop.f32.mrb[16].mxu0 }
 0x2a4   :  { %7459 = vmatmul.mubr.bf16.gmra.mrb[196].mxu1 %v11310_v33 }
 0x2a5   :  { %v5936_v35 = vadd.f32 %v5935_v47, %v5921_v8  ;;  %v5899_v48 = vadd.f32 %v11674_v14, %v5898_v42  ;;  %v5922_v31 = vmul.f32 %v11674_v14, %v11674_v14  ;;  %v15463_v60 = vpack.c.bf16 %v11674_v14, %v11671_v50  ;;  %7466 = vmatprep.mubr.bf16.mxu1 %v11313_v19  ;;  %v11850_v14 = vpop.f32.mrb[17].mxu0 }
 0x2a6   :  { %v11851_v4 = vadd.f32 %v11850_v14, %v11849_v24 }
 0x2a7   :  { %v5937_v43 = vadd.f32 %v5936_v35, %v5922_v31  ;;  %v11675_v55 = vpop.f32.mrb[92].mxu1  ;;  %v11852_v31 = vpop.f32.mrb[18].mxu0 }
 0x2a8   :  { %v11676_v21 = vpop.f32.mrb[93].mxu1 }
 0x2a9   :  { %v11677_v5 = vadd.f32 %v11676_v21, %v11675_v55  ;;  %v11678_v39 = vpop.f32.mrb[94].mxu1 }
 0x2aa   :  { %v11679_v12 = vpop.f32.mrb[95].mxu1 }
 0x2ab   :  { %v5900_v47 = vadd.f32 %v11677_v5, %v5899_v48  ;;  %v5923_v38 = vmul.f32 %v11677_v5, %v11677_v5  ;;  %v11680_v29 = vadd.f32 %v11679_v12, %v11678_v39  ;;  %v11853_v48 = vpop.f32.mrb[19].mxu0  ;;  %v7108_v39 = vmul.f32 %v11851_v4, %v11851_v4 }
 0x2ac   :  { %7467 = vmatmul.mubr.bf16.gmra.mrb[200].mxu1 %v11312_v57  ;;  %v11854_v57 = vadd.f32 %v11853_v48, %v11852_v31 }
 0x2ad   :  { %v5938_v33 = vadd.f32 %v5937_v43, %v5923_v38  ;;  %v5901_v50 = vadd.f32 %v11680_v29, %v5900_v47  ;;  %v5924_v59 = vmul.f32 %v11680_v29, %v11680_v29  ;;  %v15471_v19 = vpack.c.bf16 %v11680_v29, %v11677_v5  ;;  %7474 = vmatprep.mubr.bf16.mxu1 %v11315_v20  ;;  %v11855_v43 = vpop.f32.mrb[20].mxu0 }
 0x2ae   :  { %v11856_v38 = vpop.f32.mrb[21].mxu0  ;;  %v7086_v20 = vadd.f32 %v11854_v57, %v11851_v4  ;;  %v7109_v29 = vmul.f32 %v11854_v57, %v11854_v57 }
 0x2af   :  { %v5939_v42 = vadd.f32 %v5938_v33, %v5924_v59  ;;  %v11681_v8 = vpop.f32.mrb[96].mxu1  ;;  %v11857_v33 = vadd.f32 %v11856_v38, %v11855_v43  ;;  %v11858_v59 = vpop.f32.mrb[22].mxu0 }
 0x2b0   :  { %v11682_v35 = vpop.f32.mrb[97].mxu1  ;;  %v7124_v14 = vadd.f32 %v7109_v29, %v7108_v39 }
 0x2b1   :  { %v11683_v55 = vadd.f32 %v11682_v35, %v11681_v8  ;;  %v11684_v21 = vpop.f32.mrb[98].mxu1  ;;  %v11859_v8 = vpop.f32.mrb[23].mxu0  ;;  %v15475_v35 = vpack.c.bf16 %v11854_v57, %v11851_v4  ;;  %v7087_v31 = vadd.f32 %v11857_v33, %v7086_v20  ;;  %v7110_v48 = vmul.f32 %v11857_v33, %v11857_v33 }
 0x2b2   :  { %v11685_v11 = vpop.f32.mrb[99].mxu1 }
 0x2b3   :  { %v5902_v12 = vadd.f32 %v11683_v55, %v5901_v50  ;;  %v5925_v47 = vmul.f32 %v11683_v55, %v11683_v55  ;;  %v11686_v5 = vadd.f32 %v11685_v11, %v11684_v21  ;;  %18924 = vst [vmem:[#allocation77_spill] sm:$0xff] %v15475_v35  ;;  %v11861_v50 = vpop.f32.mrb[24].mxu0  ;;  %v11860_v21 = vadd.f32 %v11859_v8, %v11858_v59 }
 0x2b4   :  { %7475 = vmatmul.mubr.bf16.gmra.mrb[204].mxu1 %v11314_v16  ;;  %v11862_v16 = vpop.f32.mrb[25].mxu0  ;;  %v7125_v10 = vadd.f32 %v7124_v14, %v7110_v48 }
 0x2b5   :  { %v5940_v18 = vadd.f32 %v5939_v42, %v5925_v47  ;;  %v5903_v27 = vadd.f32 %v11686_v5, %v5902_v12  ;;  %v5926_v53 = vmul.f32 %v11686_v5, %v11686_v5  ;;  %v15473_v24 = vpack.c.bf16 %v11686_v5, %v11683_v55  ;;  %v11864_v38 = vpop.f32.mrb[26].mxu0 }
 0x2b6   :  { %v11863_v43 = vadd.f32 %v11862_v16, %v11861_v50  ;;  %v7088_v47 = vadd.f32 %v11860_v21, %v7087_v31  ;;  %v7111_v55 = vmul.f32 %v11860_v21, %v11860_v21  ;;  %v15477_v5 = vpack.c.bf16 %v11860_v21, %v11857_v33  ;;  %v11865_v39 = vpop.f32.mrb[27].mxu0 }
 0x2b7   :  { %18923 = vst [vmem:[#allocation76_spill] sm:$0xff] %v15473_v24  ;;  %v5941_v2 = vadd.f32 %v5940_v18, %v5926_v53  ;;  %v11687_v11 = vpop.f32.mrb[100].mxu1  ;;  %v11866_v20 = vadd.f32 %v11865_v39, %v11864_v38  ;;  %v11867_v29 = vpop.f32.mrb[28].mxu0 }
 0x2b8   :  { %v11688_v26 = vpop.f32.mrb[101].mxu1  ;;  %18925 = vst [vmem:[#allocation78_spill] sm:$0xff] %v15477_v5  ;;  %v7112_v57 = vmul.f32 %v11863_v43, %v11863_v43  ;;  %v7126_v59 = vadd.f32 %v7125_v10, %v7111_v55  ;;  %v11868_v8 = vpop.f32.mrb[29].mxu0  ;;  %v7089_v1 = vadd.f32 %v11863_v43, %v7088_v47 }
 0x2b9   :  { %v11689_v42 = vadd.f32 %v11688_v26, %v11687_v11  ;;  %v11690_v12 = vpop.f32.mrb[102].mxu1  ;;  %v7113_v14 = vmul.f32 %v11866_v20, %v11866_v20  ;;  %v11870_v48 = vpop.f32.mrb[30].mxu0  ;;  %v15481_v25 = vpack.c.bf16 %v11866_v20, %v11863_v43  ;;  %v11869_v38 = vadd.f32 %v11868_v8, %v11867_v29 }
 0x2ba   :  { %v11691_v4 = vpop.f32.mrb[103].mxu1  ;;  %v11871_v33 = vpop.f32.mrb[31].mxu0  ;;  %v7127_v21 = vadd.f32 %v7126_v59, %v7112_v57  ;;  %v7090_v16 = vadd.f32 %v11866_v20, %v7089_v1 }
 0x2bb   :  { %v5904_v17 = vadd.f32 %v11689_v42, %v5903_v27  ;;  %v5927_v18 = vmul.f32 %v11689_v42, %v11689_v42  ;;  %v11692_v53 = vadd.f32 %v11691_v4, %v11690_v12  ;;  %18927 = vst [vmem:[#allocation80_spill] sm:$0xff] %v15481_v25  ;;  %v11873_v39 = vpop.f32.mrb[32].mxu0  ;;  %v11872_v12 = vadd.f32 %v11871_v33, %v11870_v48 }
 0x2bc   :  { %v11874_v10 = vpop.f32.mrb[33].mxu0  ;;  %v7128_v47 = vadd.f32 %v7127_v21, %v7113_v14  ;;  %v7091_v4 = vadd.f32 %v11869_v38, %v7090_v16 }
 0x2bd   :  { %v5942_v50 = vadd.f32 %v5941_v2, %v5927_v18  ;;  %v5905_v26 = vadd.f32 %v11692_v53, %v5904_v17  ;;  %v5928_v11 = vmul.f32 %v11692_v53, %v11692_v53  ;;  %v15479_v31 = vpack.c.bf16 %v11692_v53, %v11689_v42  ;;  %v11876_v5 = vpop.f32.mrb[34].mxu0 }
 0x2be   :  { %v7114_v18 = vmul.f32 %v11869_v38, %v11869_v38  ;;  %v15483_v42 = vpack.c.bf16 %v11872_v12, %v11869_v38  ;;  %v11877_v53 = vpop.f32.mrb[35].mxu0  ;;  %v7092_v1 = vadd.f32 %v11872_v12, %v7091_v4  ;;  %v7115_v43 = vmul.f32 %v11872_v12, %v11872_v12 }
 0x2bf   :  { %18926 = vst [vmem:[#allocation79_spill] sm:$0xff] %v15479_v31  ;;  %v5943_v27 = vadd.f32 %v5942_v50, %v5928_v11  ;;  %v11693_v9 = vpop.f32.mrb[104].mxu1  ;;  %v11875_v20 = vadd.f32 %v11874_v10, %v11873_v39  ;;  %v11878_v29 = vadd.f32 %v11877_v53, %v11876_v5  ;;  %v11879_v59 = vpop.f32.mrb[36].mxu0 }
 0x2c0   :  { %v11694_v55 = vpop.f32.mrb[105].mxu1  ;;  %18928 = vst [vmem:[#allocation81_spill] sm:$0xff] %v15483_v42  ;;  %v7129_v11 = vadd.f32 %v7128_v47, %v7114_v18  ;;  %v11880_v33 = vpop.f32.mrb[37].mxu0 }
 0x2c1   :  { %v11695_v2 = vadd.f32 %v11694_v55, %v11693_v9  ;;  %v11696_v17 = vpop.f32.mrb[106].mxu1  ;;  %v7093_v14 = vadd.f32 %v11875_v20, %v7092_v1  ;;  %v7116_v21 = vmul.f32 %v11875_v20, %v11875_v20  ;;  %v11882_v16 = vpop.f32.mrb[38].mxu0  ;;  %v7117_v12 = vmul.f32 %v11878_v29, %v11878_v29 }
 0x2c2   :  { %v11697_v57 = vpop.f32.mrb[107].mxu1  ;;  %v11883_v42 = vpop.f32.mrb[39].mxu0  ;;  %v7130_v31 = vadd.f32 %v7129_v11, %v7115_v43  ;;  %v15487_v39 = vpack.c.bf16 %v11878_v29, %v11875_v20 }
 0x2c3   :  { %v5906_v8 = vadd.f32 %v11695_v2, %v5905_v26  ;;  %v5929_v50 = vmul.f32 %v11695_v2, %v11695_v2  ;;  %v11698_v48 = vadd.f32 %v11697_v57, %v11696_v17  ;;  %v7094_v4 = vadd.f32 %v11878_v29, %v7093_v14  ;;  %v11885_v5 = vpop.f32.mrb[40].mxu0 }
 0x2c4   :  { %18930 = vst [vmem:[#allocation83_spill] sm:$0xff] %v15487_v39  ;;  %v11881_v17 = vadd.f32 %v11880_v33, %v11879_v59  ;;  %v11886_v47 = vpop.f32.mrb[41].mxu0  ;;  %v7131_v53 = vadd.f32 %v7130_v31, %v7116_v21  ;;  %v11884_v57 = vadd.f32 %v11883_v42, %v11882_v16 }
 0x2c5   :  { %v5944_v9 = vadd.f32 %v5943_v27, %v5929_v50  ;;  %v5907_v55 = vadd.f32 %v11698_v48, %v5906_v8  ;;  %v5930_v25 = vmul.f32 %v11698_v48, %v11698_v48  ;;  %v15485_v38 = vpack.c.bf16 %v11698_v48, %v11695_v2  ;;  %v11888_v1 = vpop.f32.mrb[42].mxu0 }
 0x2c6   :  { %v7095_v50 = vadd.f32 %v11881_v17, %v7094_v4  ;;  %v7118_v2 = vmul.f32 %v11881_v17, %v11881_v17  ;;  %v11887_v48 = vadd.f32 %v11886_v47, %v11885_v5  ;;  %v7132_v11 = vadd.f32 %v7131_v53, %v7117_v12 }
 0x2c7   :  { %18929 = vst [vmem:[#allocation82_spill] sm:$0xff] %v15485_v38  ;;  %v5945_v26 = vadd.f32 %v5944_v9, %v5930_v25  ;;  %v11699_v10 = vpop.f32.mrb[108].mxu1  ;;  %v11889_v38 = vpop.f32.mrb[43].mxu0  ;;  %v7119_v14 = vmul.f32 %v11884_v57, %v11884_v57  ;;  %v15489_v20 = vpack.c.bf16 %v11884_v57, %v11881_v17 }
 0x2c8   :  { %v11700_v18 = vpop.f32.mrb[109].mxu1  ;;  %v11890_v29 = vadd.f32 %v11889_v38, %v11888_v1  ;;  %v7096_v33 = vadd.f32 %v11884_v57, %v7095_v50  ;;  %v7133_v31 = vadd.f32 %v7132_v11, %v7118_v2  ;;  %v7120_v42 = vmul.f32 %v11887_v48, %v11887_v48 }
 0x2c9   :  { %v11701_v27 = vadd.f32 %v11700_v18, %v11699_v10  ;;  %v11702_v8 = vpop.f32.mrb[110].mxu1  ;;  %18931 = vst [vmem:[#allocation84_spill] sm:$0xff] %v15489_v20  ;;  %v11891_v39 = vpop.f32.mrb[44].mxu0 }
 0x2ca   :  { %v11703_v43 = vpop.f32.mrb[111].mxu1  ;;  %v11892_v21 = vpop.f32.mrb[45].mxu0  ;;  %v7134_v47 = vadd.f32 %v7133_v31, %v7119_v14  ;;  %v7097_v12 = vadd.f32 %v11887_v48, %v7096_v33  ;;  %v7121_v53 = vmul.f32 %v11890_v29, %v11890_v29  ;;  %v15493_v17 = vpack.c.bf16 %v11890_v29, %v11887_v48 }
 0x2cb   :  { %v5908_v25 = vadd.f32 %v11701_v27, %v5907_v55  ;;  %v5931_v9 = vmul.f32 %v11701_v27, %v11701_v27  ;;  %v11704_v59 = vadd.f32 %v11703_v43, %v11702_v8  ;;  %v11894_v5 = vpop.f32.mrb[46].mxu0 }
 0x2cc   :  { %18933 = vst [vmem:[#allocation86_spill] sm:$0xff] %v15493_v17  ;;  %v11895_v38 = vpop.f32.mrb[47].mxu0  ;;  %v7135_v50 = vadd.f32 %v7134_v47, %v7120_v42  ;;  %v7098_v2 = vadd.f32 %v11890_v29, %v7097_v12 }
 0x2cd   :  { %v5946_v16 = vadd.f32 %v5945_v26, %v5931_v9  ;;  %v5909_v10 = vadd.f32 %v11704_v59, %v5908_v25  ;;  %v5932_v4 = vmul.f32 %v11704_v59, %v11704_v59  ;;  %v15491_v18 = vpack.c.bf16 %v11704_v59, %v11701_v27 }
 0x2ce   :  { %v11893_v9 = vadd.f32 %v11892_v21, %v11891_v39  ;;  %v7136_v59 = vadd.f32 %v7135_v50, %v7121_v53  ;;  %v11896_v20 = vadd.f32 %v11895_v38, %v11894_v5 }
 0x2cf   :  { %18932 = vst [vmem:[#allocation85_spill] sm:$0xff] %v15491_v18  ;;  %v5910_v55 = vrot.slane %v5909_v10, 4  ;;  %v5947_v1 = vadd.f32 %v5946_v16, %v5932_v4  ;;  %v11721_v8 = vpop.f32.mrb[112].mxu1 }
 0x2d0   :  { %v11722_v57 = vpop.f32.mrb[113].mxu1  ;;  %v7099_v17 = vadd.f32 %v11893_v9, %v7098_v2  ;;  %v7122_v18 = vmul.f32 %v11893_v9, %v11893_v9  ;;  %v7123_v35 = vmul.f32 %v11896_v20, %v11896_v20  ;;  %v15499_v53 = vpack.c.bf16 %v11896_v20, %v11893_v9 }
 0x2d1   :  { %v5911_v43 = vadd.f32 %v5910_v55, %v5909_v10  ;;  %v5948_v11 = vrot.slane %v5947_v1, 4  ;;  %v11723_v26 = vadd.f32 %v11722_v57, %v11721_v8  ;;  %v11724_v25 = vpop.f32.mrb[114].mxu1 }
 0x2d2   :  { %v11725_v27 = vpop.f32.mrb[115].mxu1  ;;  %v7137_v10 = vadd.f32 %v7136_v59, %v7122_v18  ;;  %v15497_v47 = vadd.f32 %v11896_v20, %v7099_v17  ;;  %18935 = vst [vmem:[#allocation88_spill] sm:$0xff] %v15499_v53 }
 0x2d3   :  { %v5912_v14 = vrot.slane %v5911_v43, 2  ;;  %v5949_v33 = vadd.f32 %v5948_v11, %v5947_v1  ;;  %v11726_v31 = vadd.f32 %v11725_v27, %v11724_v25  ;;  %v6314_v48 = vmul.f32 %v11723_v26, %v11723_v26 }
 0x2d4   :  { %v15501_v55 = vadd.f32 %v7137_v10, %v7123_v35 }
 0x2d5   :  { %v5913_v16 = vadd.f32 %v5912_v14, %v5911_v43  ;;  %v5950_v4 = vrot.slane %v5949_v33, 2  ;;  %v6292_v24 = vadd.f32 %v11726_v31, %v11723_v26  ;;  %v6315_v42 = vmul.f32 %v11726_v31, %v11726_v31 }
 0x2d6   :  { %v15495_v29 = vpack.c.bf16 %v11726_v31, %v11723_v26 }
 0x2d7   :  { %v5914_v39 = vrot.slane %v5913_v16, 1  ;;  %v5951_v21 = vadd.f32 %v5950_v4, %v5949_v33  ;;  %v6330_v12 = vadd.f32 %v6315_v42, %v6314_v48  ;;  %v11727_v5 = vpop.f32.mrb[116].mxu1 }
 0x2d8   :  { %18934 = vst [vmem:[#allocation87_spill] sm:$0xff] %v15495_v29  ;;  %v11728_v38 = vpop.f32.mrb[117].mxu1 }
 0x2d9   :  { %v5915_v1 = vadd.f32 %v5914_v39, %v5913_v16  ;;  %v5952_v8 = vrot.slane %v5951_v21, 1  ;;  %v11729_v57 = vadd.f32 %v11728_v38, %v11727_v5  ;;  %v11730_v50 = vpop.f32.mrb[118].mxu1 }
 0x2da   :  { %v11731_v2 = vpop.f32.mrb[119].mxu1 }
 0x2db   :  { %v5953_v43 = vadd.f32 %v5952_v8, %v5951_v21  ;;  %v6293_v11 = vadd.f32 %v11729_v57, %v6292_v24  ;;  %v6316_v26 = vmul.f32 %v11729_v57, %v11729_v57  ;;  %v11732_v18 = vadd.f32 %v11731_v2, %v11730_v50 }
 0x2dc   :  { %v15504_v17 = vadd.f32 %v5915_v1, %v15450_v3 }
 0x2dd   :  { %v6331_v25 = vadd.f32 %v6330_v12, %v6316_v26  ;;  %v6294_v27 = vadd.f32 %v11732_v18, %v6293_v11  ;;  %v6317_v59 = vmul.f32 %v11732_v18, %v11732_v18  ;;  %v15506_v20 = vpack.c.bf16 %v11732_v18, %v11729_v57 }
 0x2de   :  { %v15509_v35 = vadd.f32 %v5953_v43, %v15461_v6 }
 0x2df   :  { %18936 = vst [vmem:[#allocation89_spill] sm:$0xff] %v15506_v20  ;;  %v6332_v9 = vadd.f32 %v6331_v25, %v6317_v59  ;;  %v11733_v14 = vpop.f32.mrb[120].mxu1 }
 0x2e0   :  { %v11734_v33 = vpop.f32.mrb[121].mxu1 }
 0x2e1   :  { %v11735_v31 = vadd.f32 %v11734_v33, %v11733_v14  ;;  %v11736_v48 = vpop.f32.mrb[122].mxu1 }
 0x2e2   :  { %v11737_v16 = vpop.f32.mrb[123].mxu1 }
 0x2e3   :  { %v6295_v24 = vadd.f32 %v11735_v31, %v6294_v27  ;;  %v6318_v4 = vmul.f32 %v11735_v31, %v11735_v31  ;;  %v11738_v42 = vadd.f32 %v11737_v16, %v11736_v48 }
 0x2e5   :  { %v6333_v10 = vadd.f32 %v6332_v9, %v6318_v4  ;;  %v6296_v3 = vadd.f32 %v11738_v42, %v6295_v24  ;;  %v6319_v39 = vmul.f32 %v11738_v42, %v11738_v42  ;;  %v15511_v21 = vpack.c.bf16 %v11738_v42, %v11735_v31 }
 0x2e7   :  { %18937 = vst [vmem:[#allocation90_spill] sm:$0xff] %v15511_v21  ;;  %v6334_v12 = vadd.f32 %v6333_v10, %v6319_v39  ;;  %v11739_v5 = vpop.f32.mrb[124].mxu1 }
 0x2e8   :  { %v11740_v38 = vpop.f32.mrb[125].mxu1 }
 0x2e9   :  { %v11741_v1 = vadd.f32 %v11740_v38, %v11739_v5  ;;  %v11742_v6 = vpop.f32.mrb[126].mxu1 }
 0x2ea   :  { %v11743_v8 = vpop.f32.mrb[127].mxu1 }
 0x2eb   :  { %v6297_v57 = vadd.f32 %v11741_v1, %v6296_v3  ;;  %v6320_v50 = vmul.f32 %v11741_v1, %v11741_v1  ;;  %v11744_v2 = vadd.f32 %v11743_v8, %v11742_v6 }
 0x2ed   :  { %v6335_v43 = vadd.f32 %v6334_v12, %v6320_v50  ;;  %v6298_v11 = vadd.f32 %v11744_v2, %v6297_v57  ;;  %v6321_v26 = vmul.f32 %v11744_v2, %v11744_v2  ;;  %v15513_v18 = vpack.c.bf16 %v11744_v2, %v11741_v1 }
 0x2ef   :  { %18938 = vst [vmem:[#allocation91_spill] sm:$0xff] %v15513_v18  ;;  %v6336_v25 = vadd.f32 %v6335_v43, %v6321_v26  ;;  %v11745_v27 = vpop.f32.mrb[128].mxu1 }
 0x2f0   :  { %v11746_v59 = vpop.f32.mrb[129].mxu1 }
 0x2f1   :  { %v11747_v9 = vadd.f32 %v11746_v59, %v11745_v27  ;;  %v11748_v14 = vpop.f32.mrb[130].mxu1 }
 0x2f2   :  { %v11749_v33 = vpop.f32.mrb[131].mxu1 }
 0x2f3   :  { %v6299_v31 = vadd.f32 %v11747_v9, %v6298_v11  ;;  %v6322_v48 = vmul.f32 %v11747_v9, %v11747_v9  ;;  %v11750_v16 = vadd.f32 %v11749_v33, %v11748_v14 }
 0x2f5   :  { %v6337_v24 = vadd.f32 %v6336_v25, %v6322_v48  ;;  %v6300_v4 = vadd.f32 %v11750_v16, %v6299_v31  ;;  %v6323_v42 = vmul.f32 %v11750_v16, %v11750_v16  ;;  %v15515_v10 = vpack.c.bf16 %v11750_v16, %v11747_v9 }
 0x2f7   :  { %18939 = vst [vmem:[#allocation92_spill] sm:$0xff] %v15515_v10  ;;  %v6338_v3 = vadd.f32 %v6337_v24, %v6323_v42  ;;  %v11751_v39 = vpop.f32.mrb[132].mxu1 }
 0x2f8   :  { %v11752_v12 = vpop.f32.mrb[133].mxu1 }
 0x2f9   :  { %v11753_v5 = vadd.f32 %v11752_v12, %v11751_v39  ;;  %v11754_v38 = vpop.f32.mrb[134].mxu1 }
 0x2fa   :  { %v11755_v1 = vpop.f32.mrb[135].mxu1 }
 0x2fb   :  { %v6301_v6 = vadd.f32 %v11753_v5, %v6300_v4  ;;  %v6324_v8 = vmul.f32 %v11753_v5, %v11753_v5  ;;  %v11756_v57 = vadd.f32 %v11755_v1, %v11754_v38 }
 0x2fd   :  { %v6339_v50 = vadd.f32 %v6338_v3, %v6324_v8  ;;  %v6302_v2 = vadd.f32 %v11756_v57, %v6301_v6  ;;  %v6325_v43 = vmul.f32 %v11756_v57, %v11756_v57  ;;  %v15517_v11 = vpack.c.bf16 %v11756_v57, %v11753_v5 }
 0x2ff   :  { %18940 = vst [vmem:[#allocation93_spill] sm:$0xff] %v15517_v11  ;;  %v6340_v26 = vadd.f32 %v6339_v50, %v6325_v43  ;;  %v11757_v25 = vpop.f32.mrb[136].mxu1 }
 0x300   :  { %v11758_v27 = vpop.f32.mrb[137].mxu1 }
 0x301   :  { %v11759_v59 = vadd.f32 %v11758_v27, %v11757_v25  ;;  %v11760_v9 = vpop.f32.mrb[138].mxu1 }
 0x302   :  { %v11761_v14 = vpop.f32.mrb[139].mxu1 }
 0x303   :  { %v6303_v33 = vadd.f32 %v11759_v59, %v6302_v2  ;;  %v6326_v31 = vmul.f32 %v11759_v59, %v11759_v59  ;;  %v11762_v48 = vadd.f32 %v11761_v14, %v11760_v9 }
 0x305   :  { %v6341_v16 = vadd.f32 %v6340_v26, %v6326_v31  ;;  %v6304_v24 = vadd.f32 %v11762_v48, %v6303_v33  ;;  %v6327_v42 = vmul.f32 %v11762_v48, %v11762_v48  ;;  %v15519_v4 = vpack.c.bf16 %v11762_v48, %v11759_v59 }
 0x307   :  { %18941 = vst [vmem:[#allocation94_spill] sm:$0xff] %v15519_v4  ;;  %v6342_v39 = vadd.f32 %v6341_v16, %v6327_v42  ;;  %v11763_v3 = vpop.f32.mrb[140].mxu1 }
 0x308   :  { %v11764_v12 = vpop.f32.mrb[141].mxu1 }
 0x309   :  { %v11765_v38 = vadd.f32 %v11764_v12, %v11763_v3  ;;  %v11766_v5 = vpop.f32.mrb[142].mxu1 }
 0x30a   :  { %v11767_v1 = vpop.f32.mrb[143].mxu1 }
 0x30b   :  { %v6305_v6 = vadd.f32 %v11765_v38, %v6304_v24  ;;  %v6328_v8 = vmul.f32 %v11765_v38, %v11765_v38  ;;  %v11768_v57 = vadd.f32 %v11767_v1, %v11766_v5 }
 0x30d   :  { %v6343_v50 = vadd.f32 %v6342_v39, %v6328_v8  ;;  %v6306_v43 = vadd.f32 %v11768_v57, %v6305_v6  ;;  %v6329_v25 = vmul.f32 %v11768_v57, %v11768_v57  ;;  %v15521_v2 = vpack.c.bf16 %v11768_v57, %v11765_v38 }
 0x30f   :  { %18942 = vst [vmem:[#allocation95_spill] sm:$0xff] %v15521_v2  ;;  %v6307_v27 = vrot.slane %v6306_v43, 4  ;;  %v6344_v26 = vadd.f32 %v6343_v50, %v6329_v25  ;;  %v11785_v9 = vpop.f32.mrb[144].mxu1 }
 0x310   :  { %v11786_v14 = vpop.f32.mrb[145].mxu1 }
 0x311   :  { %v6308_v59 = vadd.f32 %v6307_v27, %v6306_v43  ;;  %v6345_v33 = vrot.slane %v6344_v26, 4  ;;  %v11787_v31 = vadd.f32 %v11786_v14, %v11785_v9  ;;  %v11788_v48 = vpop.f32.mrb[146].mxu1 }
 0x312   :  { %v11789_v16 = vpop.f32.mrb[147].mxu1 }
 0x313   :  { %v6309_v42 = vrot.slane %v6308_v59, 2  ;;  %v6346_v3 = vadd.f32 %v6345_v33, %v6344_v26  ;;  %v11790_v12 = vadd.f32 %v11789_v16, %v11788_v48  ;;  %v6711_v24 = vmul.f32 %v11787_v31, %v11787_v31 }
 0x315   :  { %v6310_v4 = vadd.f32 %v6309_v42, %v6308_v59  ;;  %v6347_v5 = vrot.slane %v6346_v3, 2  ;;  %v6689_v39 = vadd.f32 %v11790_v12, %v11787_v31  ;;  %v6712_v1 = vmul.f32 %v11790_v12, %v11790_v12 }
 0x316   :  { %v15523_v6 = vpack.c.bf16 %v11790_v12, %v11787_v31 }
 0x317   :  { %v6311_v38 = vrot.slane %v6310_v4, 1  ;;  %v6348_v8 = vadd.f32 %v6347_v5, %v6346_v3  ;;  %v6727_v57 = vadd.f32 %v6712_v1, %v6711_v24  ;;  %v11791_v50 = vpop.f32.mrb[148].mxu1 }
 0x318   :  { %18943 = vst [vmem:[#allocation96_spill] sm:$0xff] %v15523_v6  ;;  %v11792_v25 = vpop.f32.mrb[149].mxu1 }
 0x319   :  { %v6349_v43 = vrot.slane %v6348_v8, 1  ;;  %v11793_v27 = vadd.f32 %v11792_v25, %v11791_v50  ;;  %v11794_v9 = vpop.f32.mrb[150].mxu1  ;;  %v6312_v14 = vadd.f32 %v6311_v38, %v6310_v4 }
 0x31a   :  { %v11795_v2 = vpop.f32.mrb[151].mxu1 }
 0x31b   :  { %v6690_v11 = vadd.f32 %v11793_v27, %v6689_v39  ;;  %v6713_v26 = vmul.f32 %v11793_v27, %v11793_v27  ;;  %v11796_v33 = vadd.f32 %v11795_v2, %v11794_v9  ;;  %v15526_v59 = vadd.f32 %v6312_v14, %v15504_v17 }
 0x31c   :  { %v6350_v48 = vadd.f32 %v6349_v43, %v6348_v8 }
 0x31d   :  { %v6728_v16 = vadd.f32 %v6727_v57, %v6713_v26  ;;  %v6691_v31 = vadd.f32 %v11796_v33, %v6690_v11  ;;  %v6714_v42 = vmul.f32 %v11796_v33, %v11796_v33  ;;  %v15528_v12 = vpack.c.bf16 %v11796_v33, %v11793_v27 }
 0x31e   :  { %v15531_v3 = vadd.f32 %v6350_v48, %v15509_v35 }
 0x31f   :  { %18944 = vst [vmem:[#allocation97_spill] sm:$0xff] %v15528_v12  ;;  %v6729_v24 = vadd.f32 %v6728_v16, %v6714_v42  ;;  %v11797_v5 = vpop.f32.mrb[152].mxu1 }
 0x320   :  { %v11798_v1 = vpop.f32.mrb[153].mxu1 }
 0x321   :  { %v11799_v4 = vadd.f32 %v11798_v1, %v11797_v5  ;;  %v11800_v38 = vpop.f32.mrb[154].mxu1 }
 0x322   :  { %v11801_v39 = vpop.f32.mrb[155].mxu1 }
 0x323   :  { %v6692_v50 = vadd.f32 %v11799_v4, %v6691_v31  ;;  %v6715_v2 = vmul.f32 %v11799_v4, %v11799_v4  ;;  %v11802_v25 = vadd.f32 %v11801_v39, %v11800_v38 }
 0x325   :  { %v6730_v17 = vadd.f32 %v6729_v24, %v6715_v2  ;;  %v6693_v9 = vadd.f32 %v11802_v25, %v6692_v50  ;;  %v6716_v8 = vmul.f32 %v11802_v25, %v11802_v25  ;;  %v15533_v57 = vpack.c.bf16 %v11802_v25, %v11799_v4 }
 0x327   :  { %18945 = vst [vmem:[#allocation98_spill] sm:$0xff] %v15533_v57  ;;  %v6731_v11 = vadd.f32 %v6730_v17, %v6716_v8  ;;  %v11803_v43 = vpop.f32.mrb[156].mxu1 }
 0x328   :  { %v11804_v27 = vpop.f32.mrb[157].mxu1 }
 0x329   :  { %v11805_v14 = vadd.f32 %v11804_v27, %v11803_v43  ;;  %v11806_v35 = vpop.f32.mrb[158].mxu1 }
 0x32a   :  { %v11807_v26 = vpop.f32.mrb[159].mxu1 }
 0x32b   :  { %v6694_v33 = vadd.f32 %v11805_v14, %v6693_v9  ;;  %v6717_v48 = vmul.f32 %v11805_v14, %v11805_v14  ;;  %v11808_v16 = vadd.f32 %v11807_v26, %v11806_v35 }
 0x32d   :  { %v6732_v42 = vadd.f32 %v6731_v11, %v6717_v48  ;;  %v6695_v5 = vadd.f32 %v11808_v16, %v6694_v33  ;;  %v6718_v1 = vmul.f32 %v11808_v16, %v11808_v16  ;;  %v15535_v31 = vpack.c.bf16 %v11808_v16, %v11805_v14 }
 0x32f   :  { %18946 = vst [vmem:[#allocation99_spill] sm:$0xff] %v15535_v31  ;;  %v6733_v38 = vadd.f32 %v6732_v42, %v6718_v1  ;;  %v11809_v24 = vpop.f32.mrb[160].mxu1 }
 0x330   :  { %v11810_v39 = vpop.f32.mrb[161].mxu1 }
 0x331   :  { %v11811_v50 = vadd.f32 %v11810_v39, %v11809_v24  ;;  %v11812_v4 = vpop.f32.mrb[162].mxu1 }
 0x332   :  { %v11813_v2 = vpop.f32.mrb[163].mxu1 }
 0x333   :  { %v6696_v25 = vadd.f32 %v11811_v50, %v6695_v5  ;;  %v6719_v17 = vmul.f32 %v11811_v50, %v11811_v50  ;;  %v11814_v8 = vadd.f32 %v11813_v2, %v11812_v4 }
 0x335   :  { %v6734_v43 = vadd.f32 %v6733_v38, %v6719_v17  ;;  %v6697_v27 = vadd.f32 %v11814_v8, %v6696_v25  ;;  %v6720_v57 = vmul.f32 %v11814_v8, %v11814_v8  ;;  %v15537_v9 = vpack.c.bf16 %v11814_v8, %v11811_v50 }
 0x337   :  { %18947 = vst [vmem:[#allocation100_spill] sm:$0xff] %v15537_v9  ;;  %v6735_v35 = vadd.f32 %v6734_v43, %v6720_v57  ;;  %v11815_v11 = vpop.f32.mrb[164].mxu1 }
 0x338   :  { %v11816_v26 = vpop.f32.mrb[165].mxu1 }
 0x339   :  { %v11817_v33 = vadd.f32 %v11816_v26, %v11815_v11  ;;  %v11818_v14 = vpop.f32.mrb[166].mxu1 }
 0x33a   :  { %v11819_v48 = vpop.f32.mrb[167].mxu1 }
 0x33b   :  { %v6698_v16 = vadd.f32 %v11817_v33, %v6697_v27  ;;  %v6721_v42 = vmul.f32 %v11817_v33, %v11817_v33  ;;  %v11820_v1 = vadd.f32 %v11819_v48, %v11818_v14 }
 0x33d   :  { %v6736_v24 = vadd.f32 %v6735_v35, %v6721_v42  ;;  %v6699_v39 = vadd.f32 %v11820_v1, %v6698_v16  ;;  %v6722_v31 = vmul.f32 %v11820_v1, %v11820_v1  ;;  %v15539_v5 = vpack.c.bf16 %v11820_v1, %v11817_v33 }
 0x33e   :  { %v7101_v35 = vrot.slane %v15497_v47, 4 }
 0x33f   :  { %18948 = vst [vmem:[#allocation101_spill] sm:$0xff] %v15539_v5  ;;  %v6737_v4 = vadd.f32 %v6736_v24, %v6722_v31  ;;  %v11821_v38 = vpop.f32.mrb[168].mxu1  ;;  %v7139_v31 = vrot.slane %v15501_v55, 4 }
 0x340   :  { %v11822_v2 = vpop.f32.mrb[169].mxu1  ;;  %v7102_v24 = vadd.f32 %v7101_v35, %v15497_v47 }
 0x341   :  { %v11823_v25 = vadd.f32 %v11822_v2, %v11821_v38  ;;  %v11824_v50 = vpop.f32.mrb[170].mxu1 }
 0x342   :  { %v11825_v17 = vpop.f32.mrb[171].mxu1 }
 0x343   :  { %v6700_v57 = vadd.f32 %v11823_v25, %v6699_v39  ;;  %v6723_v8 = vmul.f32 %v11823_v25, %v11823_v25  ;;  %v11826_v43 = vadd.f32 %v11825_v17, %v11824_v50 }
 0x345   :  { %v6738_v11 = vadd.f32 %v6737_v4, %v6723_v8  ;;  %v6701_v26 = vadd.f32 %v11826_v43, %v6700_v57  ;;  %v6724_v9 = vmul.f32 %v11826_v43, %v11826_v43  ;;  %v15541_v27 = vpack.c.bf16 %v11826_v43, %v11823_v25 }
 0x346   :  { %v7140_v4 = vadd.f32 %v7139_v31, %v15501_v55 }
 0x347   :  { %18949 = vst [vmem:[#allocation102_spill] sm:$0xff] %v15541_v27  ;;  %v6739_v14 = vadd.f32 %v6738_v11, %v6724_v9  ;;  %v11827_v48 = vpop.f32.mrb[172].mxu1  ;;  %v7103_v9 = vrot.slane %v7102_v24, 2 }
 0x348   :  { %v11828_v33 = vpop.f32.mrb[173].mxu1  ;;  %v7141_v27 = vrot.slane %v7140_v4, 2 }
 0x349   :  { %v11829_v16 = vadd.f32 %v11828_v33, %v11827_v48  ;;  %v11830_v42 = vpop.f32.mrb[174].mxu1  ;;  %v7104_v35 = vadd.f32 %v7103_v9, %v7102_v24 }
 0x34a   :  { %v11831_v1 = vpop.f32.mrb[175].mxu1  ;;  %v7142_v31 = vadd.f32 %v7141_v27, %v7140_v4 }
 0x34b   :  { %v6702_v39 = vadd.f32 %v11829_v16, %v6701_v26  ;;  %v6725_v38 = vmul.f32 %v11829_v16, %v11829_v16  ;;  %v11832_v2 = vadd.f32 %v11831_v1, %v11830_v42 }
 0x34d   :  { %v6740_v50 = vadd.f32 %v6739_v14, %v6725_v38  ;;  %v6703_v25 = vadd.f32 %v11832_v2, %v6702_v39  ;;  %v6726_v17 = vmul.f32 %v11832_v2, %v11832_v2  ;;  %v15547_v57 = vpack.c.bf16 %v11832_v2, %v11829_v16 }
 0x34f   :  { %18950 = vst [vmem:[#allocation103_spill] sm:$0xff] %v15547_v57  ;;  %v6704_v8 = vrot.slane %v6703_v25, 4  ;;  %v6741_v43 = vadd.f32 %v6740_v50, %v6726_v17  ;;  %v11913_v11 = vpop.f32.mrb[176].mxu1  ;;  %v7105_v50 = vrot.slane %v7104_v35, 1 }
 0x350   :  { %v11914_v48 = vpop.f32.mrb[177].mxu1 }
 0x351   :  { %v6705_v33 = vadd.f32 %v6704_v8, %v6703_v25  ;;  %v6742_v5 = vrot.slane %v6741_v43, 4  ;;  %v11915_v12 = vadd.f32 %v11914_v48, %v11913_v11  ;;  %v11916_v47 = vpop.f32.mrb[178].mxu1  ;;  %v7143_v48 = vrot.slane %v7142_v31, 1 }
 0x352   :  { %v11917_v26 = vpop.f32.mrb[179].mxu1 }
 0x353   :  { %v6706_v42 = vrot.slane %v6705_v33, 2  ;;  %v6743_v1 = vadd.f32 %v6742_v5, %v6741_v43  ;;  %v11918_v55 = vadd.f32 %v11917_v26, %v11916_v47  ;;  %v7505_v14 = vmul.f32 %v11915_v12, %v11915_v12 }
 0x354   :  { %v7106_v47 = vadd.f32 %v7105_v50, %v7104_v35 }
 0x355   :  { %v6707_v39 = vadd.f32 %v6706_v42, %v6705_v33  ;;  %v6744_v16 = vrot.slane %v6743_v1, 2  ;;  %v7483_v38 = vadd.f32 %v11918_v55, %v11915_v12  ;;  %v7506_v2 = vmul.f32 %v11918_v55, %v11918_v55 }
 0x356   :  { %v15549_v57 = vpack.c.bf16 %v11918_v55, %v11915_v12  ;;  %v7144_v42 = vadd.f32 %v7143_v48, %v7142_v31 }
 0x357   :  { %v6745_v17 = vadd.f32 %v6744_v16, %v6743_v1  ;;  %v7521_v6 = vadd.f32 %v7506_v2, %v7505_v14  ;;  %v11919_v25 = vpop.f32.mrb[180].mxu1  ;;  %v6708_v8 = vrot.slane %v6707_v39, 1 }
 0x358   :  { %18951 = vst [vmem:[#allocation104_spill] sm:$0xff] %v15549_v57  ;;  %v11920_v11 = vpop.f32.mrb[181].mxu1 }
 0x359   :  { %v11921_v10 = vadd.f32 %v11920_v11, %v11919_v25  ;;  %v11922_v24 = vpop.f32.mrb[182].mxu1  ;;  %v6709_v9 = vadd.f32 %v6708_v8, %v6707_v39  ;;  %v6746_v5 = vrot.slane %v6745_v17, 1 }
 0x35a   :  { %v11923_v43 = vpop.f32.mrb[183].mxu1 }
 0x35b   :  { %v7484_v27 = vadd.f32 %v11921_v10, %v7483_v38  ;;  %v7507_v4 = vmul.f32 %v11921_v10, %v11921_v10  ;;  %v11924_v33 = vadd.f32 %v11923_v43, %v11922_v24  ;;  %v6710_v26 = vadd.f32 %v6709_v9, %v15526_v59 }
 0x35c   :  { %v6747_v12 = vadd.f32 %v6746_v5, %v6745_v17 }
 0x35d   :  { %v7522_v55 = vadd.f32 %v7521_v6, %v7507_v4  ;;  %v7485_v1 = vadd.f32 %v11924_v33, %v7484_v27  ;;  %v7508_v14 = vmul.f32 %v11924_v33, %v11924_v33  ;;  %v15552_v16 = vpack.c.bf16 %v11924_v33, %v11921_v10 }
 0x35e   :  { %v15554_v2 = vadd.f32 %v7106_v47, %v6710_v26  ;;  %v6748_v25 = vadd.f32 %v6747_v12, %v15531_v3 }
 0x35f   :  { %18952 = vst [vmem:[#allocation105_spill] sm:$0xff] %v15552_v16  ;;  %v7523_v39 = vadd.f32 %v7522_v55, %v7508_v14  ;;  %v11925_v8 = vpop.f32.mrb[184].mxu1 }
 0x360   :  { %v11926_v11 = vpop.f32.mrb[185].mxu1  ;;  %v15557_v35 = vadd.f32 %v7144_v42, %v6748_v25 }
 0x361   :  { %v11927_v38 = vadd.f32 %v11926_v11, %v11925_v8  ;;  %v11928_v50 = vpop.f32.mrb[186].mxu1 }
 0x362   :  { %v11929_v24 = vpop.f32.mrb[187].mxu1 }
 0x363   :  { %v7486_v59 = vadd.f32 %v11927_v38, %v7485_v1  ;;  %v7509_v17 = vmul.f32 %v11927_v38, %v11927_v38  ;;  %v11930_v31 = vadd.f32 %v11929_v24, %v11928_v50 }
 0x365   :  { %v7524_v6 = vadd.f32 %v7523_v39, %v7509_v17  ;;  %v7487_v48 = vadd.f32 %v11930_v31, %v7486_v59  ;;  %v7510_v9 = vmul.f32 %v11930_v31, %v11930_v31  ;;  %v15559_v10 = vpack.c.bf16 %v11930_v31, %v11927_v38 }
 0x367   :  { %18953 = vst [vmem:[#allocation106_spill] sm:$0xff] %v15559_v10  ;;  %v7525_v5 = vadd.f32 %v7524_v6, %v7510_v9  ;;  %v11931_v43 = vpop.f32.mrb[188].mxu1 }
 0x368   :  { %v11932_v47 = vpop.f32.mrb[189].mxu1 }
 0x369   :  { %v11933_v3 = vadd.f32 %v11932_v47, %v11931_v43  ;;  %v11934_v27 = vpop.f32.mrb[190].mxu1 }
 0x36a   :  { %v11935_v4 = vpop.f32.mrb[191].mxu1 }
 0x36b   :  { %v7488_v33 = vadd.f32 %v11933_v3, %v7487_v48  ;;  %v7511_v26 = vmul.f32 %v11933_v3, %v11933_v3  ;;  %v11936_v12 = vadd.f32 %v11935_v4, %v11934_v27 }
 0x36d   :  { %v7526_v42 = vadd.f32 %v7525_v5, %v7511_v26  ;;  %v7489_v55 = vadd.f32 %v11936_v12, %v7488_v33  ;;  %v7512_v14 = vmul.f32 %v11936_v12, %v11936_v12  ;;  %v15561_v1 = vpack.c.bf16 %v11936_v12, %v11933_v3 }
 0x36f   :  { %18954 = vst [vmem:[#allocation107_spill] sm:$0xff] %v15561_v1  ;;  %v7527_v25 = vadd.f32 %v7526_v42, %v7512_v14  ;;  %v11937_v39 = vpop.f32.mrb[192].mxu1 }
 0x370   :  { %v11938_v8 = vpop.f32.mrb[193].mxu1 }
 0x371   :  { %v11939_v11 = vadd.f32 %v11938_v8, %v11937_v39  ;;  %v11940_v38 = vpop.f32.mrb[194].mxu1 }
 0x372   :  { %v11941_v50 = vpop.f32.mrb[195].mxu1 }
 0x373   :  { %v7490_v24 = vadd.f32 %v11939_v11, %v7489_v55  ;;  %v7513_v59 = vmul.f32 %v11939_v11, %v11939_v11  ;;  %v11942_v17 = vadd.f32 %v11941_v50, %v11940_v38 }
 0x375   :  { %v7528_v31 = vadd.f32 %v7527_v25, %v7513_v59  ;;  %v7491_v6 = vadd.f32 %v11942_v17, %v7490_v24  ;;  %v7514_v9 = vmul.f32 %v11942_v17, %v11942_v17  ;;  %v15563_v48 = vpack.c.bf16 %v11942_v17, %v11939_v11 }
 0x377   :  { %18955 = vst [vmem:[#allocation108_spill] sm:$0xff] %v15563_v48  ;;  %v7529_v43 = vadd.f32 %v7528_v31, %v7514_v9  ;;  %v11943_v5 = vpop.f32.mrb[196].mxu1 }
 0x378   :  { %v11944_v47 = vpop.f32.mrb[197].mxu1 }
 0x379   :  { %v11945_v27 = vadd.f32 %v11944_v47, %v11943_v5  ;;  %v11946_v3 = vpop.f32.mrb[198].mxu1 }
 0x37a   :  { %v11947_v4 = vpop.f32.mrb[199].mxu1 }
 0x37b   :  { %v7492_v33 = vadd.f32 %v11945_v27, %v7491_v6  ;;  %v7515_v26 = vmul.f32 %v11945_v27, %v11945_v27  ;;  %v11948_v12 = vadd.f32 %v11947_v4, %v11946_v3 }
 0x37d   :  { %v7530_v42 = vadd.f32 %v7529_v43, %v7515_v26  ;;  %v7493_v14 = vadd.f32 %v11948_v12, %v7492_v33  ;;  %v7516_v39 = vmul.f32 %v11948_v12, %v11948_v12  ;;  %v15565_v55 = vpack.c.bf16 %v11948_v12, %v11945_v27 }
 0x37f   :  { %18956 = vst [vmem:[#allocation109_spill] sm:$0xff] %v15565_v55  ;;  %v7531_v8 = vadd.f32 %v7530_v42, %v7516_v39  ;;  %v11949_v25 = vpop.f32.mrb[200].mxu1 }
 0x380   :  { %v11950_v38 = vpop.f32.mrb[201].mxu1 }
 0x381   :  { %v11951_v50 = vadd.f32 %v11950_v38, %v11949_v25  ;;  %v11952_v11 = vpop.f32.mrb[202].mxu1 }
 0x382   :  { %v11953_v24 = vpop.f32.mrb[203].mxu1 }
 0x383   :  { %v7494_v59 = vadd.f32 %v11951_v50, %v7493_v14  ;;  %v7517_v17 = vmul.f32 %v11951_v50, %v11951_v50  ;;  %v11954_v31 = vadd.f32 %v11953_v24, %v11952_v11 }
 0x385   :  { %v7532_v9 = vadd.f32 %v7531_v8, %v7517_v17  ;;  %v7495_v5 = vadd.f32 %v11954_v31, %v7494_v59  ;;  %v7518_v47 = vmul.f32 %v11954_v31, %v11954_v31  ;;  %v15567_v6 = vpack.c.bf16 %v11954_v31, %v11951_v50 }
 0x387   :  { %18957 = vst [vmem:[#allocation110_spill] sm:$0xff] %v15567_v6  ;;  %v7533_v3 = vadd.f32 %v7532_v9, %v7518_v47  ;;  %v11955_v43 = vpop.f32.mrb[204].mxu1 }
 0x388   :  { %v11956_v4 = vpop.f32.mrb[205].mxu1 }
 0x389   :  { %v11957_v33 = vadd.f32 %v11956_v4, %v11955_v43  ;;  %v11958_v27 = vpop.f32.mrb[206].mxu1 }
 0x38a   :  { %v11959_v26 = vpop.f32.mrb[207].mxu1 }
 0x38b   :  { %v7496_v12 = vadd.f32 %v11957_v33, %v7495_v5  ;;  %v7519_v42 = vmul.f32 %v11957_v33, %v11957_v33  ;;  %v11960_v39 = vadd.f32 %v11959_v26, %v11958_v27 }
 0x38d   :  { %v7534_v25 = vadd.f32 %v7533_v3, %v7519_v42  ;;  %v7497_v38 = vadd.f32 %v11960_v39, %v7496_v12  ;;  %v7520_v55 = vmul.f32 %v11960_v39, %v11960_v39  ;;  %v15569_v14 = vpack.c.bf16 %v11960_v39, %v11957_v33 }
 0x38f   :  { %18958 = vst [vmem:[#allocation111_spill] sm:$0xff] %v15569_v14  ;;  %v7498_v11 = vrot.slane %v7497_v38, 4  ;;  %v7535_v8 = vadd.f32 %v7534_v25, %v7520_v55 }
 0x391   :  { %v7499_v24 = vadd.f32 %v7498_v11, %v7497_v38  ;;  %v7536_v59 = vrot.slane %v7535_v8, 4 }
 0x393   :  { %v7537_v50 = vadd.f32 %v7536_v59, %v7535_v8  ;;  %v7500_v17 = vrot.slane %v7499_v24, 2  ;;  %v18962_v59 = vld [vmem:[#allocation79_spill] sm:$0xff] }
 0x395   :  { %v7501_v31 = vadd.f32 %v7500_v17, %v7499_v24  ;;  %v7538_v9 = vrot.slane %v7537_v50, 2 }
 0x397   :  { %v7502_v47 = vrot.slane %v7501_v31, 1  ;;  %v7539_v43 = vadd.f32 %v7538_v9, %v7537_v50  ;;  %v7588_v9 = vlaneseq }
 0x399   :  { %v7503_v4 = vadd.f32 %v7502_v47, %v7501_v31  ;;  %v7540_v6 = vrot.slane %v7539_v43, 1  ;;  %v18960_v47 = vld [vmem:[#allocation76_spill] sm:$0xff]  ;;  %v15706_v50 = vshrl.u32 %v7588_v9, 7 }
 0x39b   :  { %v7504_v5 = vadd.f32 %v7503_v4, %v15554_v2  ;;  %v7541_v27 = vadd.f32 %v7540_v6, %v7539_v43  ;;  %18985 = vst [vmem:[#allocation76_spill] sm:$0xff] %v15706_v50  ;;  %v7591_v31 = vadd.s32 16, %v15706_v50  ;;  %v7594_v43 = vadd.s32 40, %v15706_v50 }
 0x39c   :  { %v7595_v9 = vadd.s32 48, %v15706_v50  ;;  %v7601_v14 = vadd.s32 96, %v15706_v50  ;;  %v7602_v57 = vadd.s32 104, %v15706_v50  ;;  %v7604_v48 = vadd.s32 120, %v15706_v50 }
 0x39d   :  { %7560 = vrot.lane.b32.xlu0 %v7504_v5, %s13034_s0  ;;  %v7542_v3 = vadd.f32 %v7541_v27, %v15557_v35  ;;  %v7609_v1 = vand.u32 7, %v15706_v50  ;;  %v7623_v16 = vand.u32 7, %v7591_v31 }
 0x39e   :  { %v7693_v21 = vand.u32 7, %v7601_v14  ;;  %v7700_v20 = vand.u32 7, %v7602_v57  ;;  %v7714_v4 = vand.u32 7, %v7604_v48  ;;  %v15744_v57 = vsub.s32 0, %v15706_v50 }
 0x39f   :  { %vm15727_vm1 = vcmp.lt.s32.totalorder %v7609_v1, 2  ;;  %vm15735_vm3 = vcmp.lt.s32.totalorder %v7623_v16, 2  ;;  %v19035_v1 = vunpack.c.l.bf16 %v15120_v0  ;;  %v19036_v16 = vunpack.c.h.bf16 %v15120_v0 }
 0x3a0   :  { %18994 = vst [vmem:[#allocation79_spill] sm:$0xff] %v15744_v57  ;;  %vm15778_vm13 = vcmp.lt.s32.totalorder %v7693_v21, 2  ;;  %vm15782_vm14 = vcmp.lt.s32.totalorder %v7700_v20, 2  ;;  %v19037_v14 = vunpack.c.l.bf16 %v15145_v63  ;;  %v19040_v0 = vunpack.c.h.bf16 %v15173_v41 }
 0x3a1   :  { %7567 = vrot.lane.b32.xlu0 %v7542_v3, %s13034_s0 }
 0x40f   :  { %v7561_v33 = vpop.permute.xlu0 %7560 }
 0x410   :  { %v7563_v55 = vadd.f32 %v7561_v33, %v7504_v5  ;;  %v7596_v33 = vadd.s32 56, %v15706_v50  ;;  %v7651_v5 = vand.u32 7, %v7595_v9 }
 0x412   :  { %v15573_v26 = vmul.f32 0.001953125, %v7563_v55  ;;  %v7600_v55 = vadd.s32 88, %v15706_v50  ;;  %v7658_v53 = vand.u32 7, %v7596_v33  ;;  %vm15754_vm7 = vcmp.lt.s32.totalorder %v7651_v5, 2 }
 0x413   :  { %v7568_v12 = vpop.permute.xlu0 %7567  ;;  %v18675_v33 = vmov 0.0  }
 0x414   :  { %v7570_v42 = vadd.f32 %v7568_v12, %v7542_v3  ;;  %7578 = vrot.lane.b32.xlu1 %v15573_v26, %s13034_s0  ;;  %v7572_v39 = vmul.f32 %v15573_v26, %v15573_v26  ;;  %v7597_v12 = vadd.s32 64, %v15706_v50  ;;  %v7644_v3 = vand.u32 7, %v7594_v43 }
 0x415   :  { %v7686_v18 = vand.u32 7, %v7600_v55  ;;  %vm15758_vm8 = vcmp.lt.s32.totalorder %v7658_v53, 2  ;;  %v15799_v21 = vsel %vm15727_vm1, 1.0, %v18675_v33  ;;  %v15862_v9 = vsel %vm15778_vm13, 1.0, %v18675_v33 }
 0x416   :  { %v7571_v25 = vmul.f32 0.001953125, %v7570_v42  ;;  %v7598_v42 = vadd.s32 72, %v15706_v50  ;;  %vm15750_vm6 = vcmp.lt.s32.totalorder %v7644_v3, 2  ;;  %19031 = vst [vmem:[#allocation124_spill] sm:$0xff] %v15862_v9  ;;  %v19061_v9 = vunpack.c.l.bf16 %v15306_v58 }
 0x417   :  { %vm15774_vm12 = vcmp.lt.s32.totalorder %v7686_v18, 2  ;;  %v15827_v55 = vsel %vm15750_vm6, 1.0, %v18675_v33 }
 0x418   :  { %v7573_v38 = vsub.f32 %v7571_v25, %v7572_v39  ;;  %v7590_v25 = vadd.s32 8, %v15706_v50  ;;  %v7599_v39 = vadd.s32 80, %v15706_v50  ;;  %v7672_v24 = vand.u32 7, %v7598_v42  ;;  %19023 = vst [vmem:[#allocation117_spill] sm:$0xff] %v15827_v55 }
 0x419   :  { %v15837_v42 = vsel %vm15758_vm8, 1.0, %v18675_v33  ;;  %v19075_v55 = vunpack.c.l.bf16 %v15409_v49 }
 0x41a   :  { %v7574_v2 = vmax.f32 %v7573_v38, 0.0  ;;  %v7603_v38 = vadd.s32 112, %v15706_v50  ;;  %v7616_v10 = vand.u32 7, %v7590_v25  ;;  %v7679_v17 = vand.u32 7, %v7599_v39  ;;  %19025 = vst [vmem:[#allocation119_spill] sm:$0xff] %v15837_v42 }
 0x41b   :  { %vm15766_vm10 = vcmp.lt.s32.totalorder %v7672_v24, 2  ;;  %v15867_v25 = vsel %vm15782_vm14, 1.0, %v18675_v33  ;;  %v19041_v24 = vunpack.c.l.bf16 %v15194_v51  ;;  %v19071_v42 = vunpack.c.l.bf16 %v15393_v15 }
 0x41c   :  { %v7575_v6 = vadd.f32 1e-05, %v7574_v2  ;;  %v7592_v2 = vadd.s32 24, %v15706_v50  ;;  %v7707_v29 = vand.u32 7, %v7603_v38  ;;  %vm15731_vm2 = vcmp.lt.s32.totalorder %v7616_v10, 2  ;;  %19032 = vst [vmem:[#allocation125_spill] sm:$0xff] %v15867_v25 }
 0x41d   :  { %vm15770_vm11 = vcmp.lt.s32.totalorder %v7679_v17, 2  ;;  %v15847_v38 = vsel %vm15766_vm10, 1.0, %v18675_v33  ;;  %v19059_v25 = vunpack.c.l.bf16 %v15292_v34 }
 0x41e   :  { %12422 = vrsqrt.f32 %v7575_v6  ;;  %v7593_v6 = vadd.s32 32, %v15706_v50  ;;  %v7630_v8 = vand.u32 7, %v7592_v2  ;;  %vm15786_vm15 = vcmp.lt.s32.totalorder %v7707_v29, 2  ;;  %19027 = vst [vmem:[#allocation121_spill] sm:$0xff] %v15847_v38 }
 0x41f   :  { %v15804_v29 = vsel %vm15731_vm2, 1.0, %v18675_v33  ;;  %v15872_v31 = vsel %vm15786_vm15, 1.0, %v18675_v33  ;;  %v19053_v50 = vunpack.c.l.bf16 %v15266_v56  ;;  %v19067_v38 = vunpack.c.l.bf16 %v15376_v7 }
 0x420   :  { %v7637_v35 = vand.u32 7, %v7593_v6  ;;  %vm15739_vm4 = vcmp.lt.s32.totalorder %v7630_v8, 2  ;;  %v19007_v8 = vmov 0  ;;  %19019 = vst [vmem:[#allocation113_spill] sm:$0xff] %v15804_v29  ;;  %v15857_v6 = vsel %vm15774_vm12, 1.0, %v18675_v33  ;;  %19033 = vst [vmem:[#allocation126_spill] sm:$0xff] %v15872_v31 }
 0x421   :  { %v19008_v8 = vsel %vm15770_vm11, 4294967295, %v19007_v8  ;;  %vm15792_vm11 = vcmp.lt.s32.totalorder %v7714_v4, 2  ;;  %v15817_v4 = vsel %vm15739_vm4, 1.0, %v18675_v33  ;;  %19030 = vst [vmem:[#allocation123_spill] sm:$0xff] %v15857_v6  ;;  %v19057_v31 = vunpack.c.l.bf16 %v15284_v37 }
 0x422   :  { %vm15746_vm5 = vcmp.lt.s32.totalorder %v7637_v35, 2  ;;  %19021 = vst [vmem:[#allocation115_spill] sm:$0xff] %v15817_v4  ;;  %vm19028_vm1 = vnez %v19008_v8  ;;  %v15877_v43 = vsel %vm15792_vm11, 1.0, %v18675_v33  ;;  %v19038_v8 = vunpack.c.h.bf16 %v15145_v63 }
 0x423   :  { %v15822_v27 = vsel %vm15746_vm5, 1.0, %v18675_v33  ;;  %v15852_v2 = vsel %vm19028_vm1, 1.0, %v18675_v33  ;;  %19034 = vst [vmem:[#allocation127_spill] sm:$0xff] %v15877_v43  ;;  %v19042_v63 = vunpack.c.h.bf16 %v15194_v51  ;;  %v19046_v51 = vunpack.c.h.bf16 %v15140_v45 }
 0x424   :  { %19022 = vst [vmem:[#allocation116_spill] sm:$0xff] %v15822_v27  ;;  %19029 = vst [vmem:[#allocation122_spill] sm:$0xff] %v15852_v2  ;;  %v19055_v43 = vunpack.c.l.bf16 %v15276_v46  ;;  %v19063_v6 = vunpack.c.l.bf16 %v15327_v36  ;;  %v19065_v2 = vunpack.c.l.bf16 %v15350_v62  ;;  %v19077_v27 = vunpack.c.l.bf16 %v15417_v44 }
 0x425   :  { %v19079_v4 = vunpack.c.l.bf16 %v15425_v40  ;;  %v19086_v29 = vunpack.c.l.bf16 %v15441_v30 }
 0x428   :  { %v15578_v11 = vpop.eup %12422 }
 0x429   :  { %18959 = vst [vmem:[#allocation112_spill] sm:$0xff] %v15578_v11  ;;  %7584 = vrot.lane.b32.xlu1 %v15578_v11, %s13034_s0  ;;  %v7665_v11 = vand.u32 7, %v7597_v12  ;;  %v15832_v12 = vsel %vm15754_vm7, 1.0, %v18675_v33 }
 0x42a   :  { %19024 = vst [vmem:[#allocation118_spill] sm:$0xff] %v15832_v12  ;;  %v19073_v12 = vunpack.c.l.bf16 %v15401_v13 }
 0x42b   :  { %vm15762_vm9 = vcmp.lt.s32.totalorder %v7665_v11, 2 }
 0x42c   :  { %v15842_v39 = vsel %vm15762_vm9, 1.0, %v18675_v33 }
 0x42d   :  { %19026 = vst [vmem:[#allocation120_spill] sm:$0xff] %v15842_v39  ;;  %v19069_v39 = vunpack.c.l.bf16 %v15385_v23 }
 0x486   :  { %v7579_v53 = vpop.permute.xlu1 %7578 }
 0x487   :  { %v7582_v17 = vsel %vm7581_vm0, %v15573_v26, %v7579_v53  ;;  %v15812_v26 = vsel %vm15735_vm3, 1.0, %v18675_v33  ;;  %v19039_v53 = vunpack.c.l.bf16 %v15173_v41  ;;  %v19044_v41 = vunpack.c.h.bf16 %v15118_v61 }
 0x488   :  { %v15807_v20 = vrot.slane %v7582_v17, %v15744_v57  ;;  %19020 = vst [vmem:[#allocation114_spill] sm:$0xff] %v15812_v26  ;;  %v19051_v33 = vunpack.c.l.bf16 %v15242_v52  ;;  %v19082_v26 = vunpack.c.l.bf16 %v15433_v22 }
 0x48a   :  { %v15882_v10 = vsub.f32 %v19035_v1, %v15807_v20  ;;  %v15887_v48 = vsub.f32 %v19036_v16, %v15807_v20  ;;  %v15892_v35 = vsub.f32 %v19037_v14, %v15807_v20  ;;  %v15897_v5 = vsub.f32 %v19038_v8, %v15807_v20 }
 0x48b   :  { %v15902_v3 = vsub.f32 %v19039_v53, %v15807_v20  ;;  %v15907_v11 = vsub.f32 %v19040_v0, %v15807_v20  ;;  %v15912_v17 = vsub.f32 %v19041_v24, %v15807_v20  ;;  %v15917_v18 = vsub.f32 %v19042_v63, %v15807_v20 }
 0x48c   :  { %v19043_v1 = vunpack.c.l.bf16 %v15118_v61  ;;  %v15927_v14 = vsub.f32 %v19044_v41, %v15807_v20  ;;  %v19045_v8 = vunpack.c.l.bf16 %v15140_v45  ;;  %v15937_v0 = vsub.f32 %v19046_v51, %v15807_v20 }
 0x48d   :  { %v19047_v24 = vunpack.c.l.bf16 %v15168_v54  ;;  %v19048_v61 = vunpack.c.h.bf16 %v15168_v54  ;;  %v19049_v41 = vunpack.c.l.bf16 %v15208_v32  ;;  %v19050_v45 = vunpack.c.h.bf16 %v15208_v32 }
 0x48e   :  { %v15922_v16 = vsub.f32 %v19043_v1, %v15807_v20  ;;  %v15932_v53 = vsub.f32 %v19045_v8, %v15807_v20  ;;  %v19052_v54 = vunpack.c.h.bf16 %v15242_v52  ;;  %v19054_v32 = vunpack.c.h.bf16 %v15266_v56 }
 0x48f   :  { %v15942_v63 = vsub.f32 %v19047_v24, %v15807_v20  ;;  %v15947_v1 = vsub.f32 %v19048_v61, %v15807_v20  ;;  %v15952_v8 = vsub.f32 %v19049_v41, %v15807_v20  ;;  %v15957_v51 = vsub.f32 %v19050_v45, %v15807_v20 }
 0x490   :  { %v15962_v24 = vsub.f32 %v19051_v33, %v15807_v20  ;;  %v15967_v61 = vsub.f32 %v19052_v54, %v15807_v20  ;;  %v15972_v41 = vsub.f32 %v19053_v50, %v15807_v20  ;;  %v15977_v45 = vsub.f32 %v19054_v32, %v15807_v20 }
 0x491   :  { %v15982_v33 = vsub.f32 %v19055_v43, %v15807_v20  ;;  %v19056_v52 = vunpack.c.h.bf16 %v15276_v46  ;;  %v15992_v50 = vsub.f32 %v19057_v31, %v15807_v20  ;;  %v19058_v56 = vunpack.c.h.bf16 %v15284_v37 }
 0x492   :  { %v16002_v43 = vsub.f32 %v19059_v25, %v15807_v20  ;;  %v19060_v46 = vunpack.c.h.bf16 %v15292_v34  ;;  %v16012_v31 = vsub.f32 %v19061_v9, %v15807_v20  ;;  %v19062_v37 = vunpack.c.h.bf16 %v15306_v58 }
 0x493   :  { %v15987_v54 = vsub.f32 %v19056_v52, %v15807_v20  ;;  %v15997_v32 = vsub.f32 %v19058_v56, %v15807_v20  ;;  %v16022_v25 = vsub.f32 %v19063_v6, %v15807_v20  ;;  %v19064_v34 = vunpack.c.h.bf16 %v15327_v36 }
 0x494   :  { %v16007_v52 = vsub.f32 %v19060_v46, %v15807_v20  ;;  %v16017_v56 = vsub.f32 %v19062_v37, %v15807_v20  ;;  %v16032_v9 = vsub.f32 %v19065_v2, %v15807_v20  ;;  %v19066_v58 = vunpack.c.h.bf16 %v15350_v62 }
 0x495   :  { %v16027_v46 = vsub.f32 %v19064_v34, %v15807_v20  ;;  %v16042_v6 = vsub.f32 %v19067_v38, %v15807_v20  ;;  %v19068_v36 = vunpack.c.h.bf16 %v15376_v7  ;;  %v16052_v2 = vsub.f32 %v19069_v39, %v15807_v20 }
 0x496   :  { %v16037_v37 = vsub.f32 %v19066_v58, %v15807_v20  ;;  %v19070_v62 = vunpack.c.h.bf16 %v15385_v23  ;;  %v16062_v38 = vsub.f32 %v19071_v42, %v15807_v20  ;;  %v19072_v7 = vunpack.c.h.bf16 %v15393_v15 }
 0x497   :  { %v16047_v34 = vsub.f32 %v19068_v36, %v15807_v20  ;;  %v16072_v39 = vsub.f32 %v19073_v12, %v15807_v20  ;;  %v19074_v23 = vunpack.c.h.bf16 %v15401_v13  ;;  %v16082_v42 = vsub.f32 %v19075_v55, %v15807_v20 }
 0x498   :  { %v16057_v58 = vsub.f32 %v19070_v62, %v15807_v20  ;;  %v16067_v36 = vsub.f32 %v19072_v7, %v15807_v20  ;;  %v19076_v15 = vunpack.c.h.bf16 %v15409_v49  ;;  %v16092_v12 = vsub.f32 %v19077_v27, %v15807_v20 }
 0x499   :  { %v16077_v62 = vsub.f32 %v19074_v23, %v15807_v20  ;;  %v19078_v13 = vunpack.c.h.bf16 %v15417_v44  ;;  %v16102_v55 = vsub.f32 %v19079_v4, %v15807_v20  ;;  %v19080_v49 = vunpack.c.h.bf16 %v15425_v40 }
 0x49a   :  { %v16087_v7 = vsub.f32 %v19076_v15, %v15807_v20  ;;  %v16112_v27 = vsub.f32 %v19082_v26, %v15807_v20  ;;  %v19084_v44 = vunpack.c.h.bf16 %v15433_v22  ;;  %v16122_v4 = vsub.f32 %v19086_v29, %v15807_v20 }
 0x49b   :  { %v16097_v23 = vsub.f32 %v19078_v13, %v15807_v20  ;;  %v16107_v15 = vsub.f32 %v19080_v49, %v15807_v20  ;;  %v19088_v40 = vunpack.c.h.bf16 %v15441_v30  ;;  %v19092_v22 = vunpack.c.h.bf16 %v15452_v28 }
 0x49c   :  { %19083 = vst [vmem:[#allocation129_spill] sm:$0xff] %v16112_v27  ;;  %v16117_v13 = vsub.f32 %v19084_v44, %v15807_v20  ;;  %19087 = vst [vmem:[#allocation131_spill] sm:$0xff] %v16122_v4  ;;  %v19096_v30 = vunpack.c.h.bf16 %v15463_v60 }
 0x49d   :  { %19081 = vst [vmem:[#allocation128_spill] sm:$0xff] %v16107_v15  ;;  %v16127_v49 = vsub.f32 %v19088_v40, %v15807_v20  ;;  %v19090_v15 = vunpack.c.l.bf16 %v15452_v28  ;;  %v16137_v44 = vsub.f32 %v19092_v22, %v15807_v20  ;;  %v19100_v28 = vunpack.c.h.bf16 %v15471_v19 }
 0x49e   :  { %19085 = vst [vmem:[#allocation130_spill] sm:$0xff] %v16117_v13  ;;  %v19094_v13 = vunpack.c.l.bf16 %v15463_v60  ;;  %v16147_v40 = vsub.f32 %v19096_v30, %v15807_v20  ;;  %v19104_v60 = vunpack.c.h.bf16 %v18960_v47 }
 0x49f   :  { %19089 = vst [vmem:[#allocation132_spill] sm:$0xff] %v16127_v49  ;;  %v16132_v26 = vsub.f32 %v19090_v15, %v15807_v20  ;;  %19093 = vst [vmem:[#allocation134_spill] sm:$0xff] %v16137_v44  ;;  %v19098_v49 = vunpack.c.l.bf16 %v15471_v19  ;;  %v16157_v22 = vsub.f32 %v19100_v28, %v15807_v20  ;;  %v19102_v44 = vunpack.c.l.bf16 %v18960_v47 }
 0x4a0   :  { %v16142_v29 = vsub.f32 %v19094_v13, %v15807_v20  ;;  %19097 = vst [vmem:[#allocation136_spill] sm:$0xff] %v16147_v40  ;;  %v16167_v30 = vsub.f32 %v19104_v60, %v15807_v20  ;;  %v19106_v40 = vunpack.c.l.bf16 %v18962_v59  ;;  %v19108_v19 = vunpack.c.h.bf16 %v18962_v59 }
 0x4a1   :  { %19091 = vst [vmem:[#allocation133_spill] sm:$0xff] %v16132_v26  ;;  %v16152_v15 = vsub.f32 %v19098_v49, %v15807_v20  ;;  %19101 = vst [vmem:[#allocation138_spill] sm:$0xff] %v16157_v22  ;;  %v16162_v13 = vsub.f32 %v19102_v44, %v15807_v20  ;;  %v19110_v22 = vld [vmem:[#allocation82_spill] sm:$0xff] }
 0x4a2   :  { %19095 = vst [vmem:[#allocation135_spill] sm:$0xff] %v16142_v29  ;;  %19105 = vst [vmem:[#allocation140_spill] sm:$0xff] %v16167_v30  ;;  %v16172_v49 = vsub.f32 %v19106_v40, %v15807_v20  ;;  %v16177_v28 = vsub.f32 %v19108_v19, %v15807_v20  ;;  %v19113_v47 = vunpack.c.h.bf16 %v19110_v22  ;;  %v19115_v30 = vld [vmem:[#allocation85_spill] sm:$0xff] }
 0x4a3   :  { %19099 = vst [vmem:[#allocation137_spill] sm:$0xff] %v16152_v15  ;;  %19103 = vst [vmem:[#allocation139_spill] sm:$0xff] %v16162_v13  ;;  %v19111_v15 = vunpack.c.l.bf16 %v19110_v22  ;;  %v19116_v13 = vunpack.c.l.bf16 %v19115_v30  ;;  %v19118_v59 = vunpack.c.h.bf16 %v19115_v30 }
 0x4a4   :  { %19107 = vst [vmem:[#allocation141_spill] sm:$0xff] %v16172_v49  ;;  %19109 = vst [vmem:[#allocation142_spill] sm:$0xff] %v16177_v28  ;;  %v16187_v60 = vsub.f32 %v19113_v47, %v15807_v20  ;;  %v19120_v28 = vld [vmem:[#allocation87_spill] sm:$0xff] }
 0x4a5   :  { %v16182_v44 = vsub.f32 %v19111_v15, %v15807_v20  ;;  %v16192_v40 = vsub.f32 %v19116_v13, %v15807_v20  ;;  %v16197_v19 = vsub.f32 %v19118_v59, %v15807_v20  ;;  %v19121_v49 = vunpack.c.l.bf16 %v19120_v28 }
 0x4a6   :  { %19114 = vst [vmem:[#allocation143_spill] sm:$0xff] %v16187_v60  ;;  %v19123_v22 = vunpack.c.h.bf16 %v19120_v28  ;;  %v19125_v60 = vld [vmem:[#allocation89_spill] sm:$0xff] }
 0x4a7   :  { %19112 = vst [vmem:[#allocation82_spill] sm:$0xff] %v16182_v44  ;;  %19117 = vst [vmem:[#allocation85_spill] sm:$0xff] %v16192_v40  ;;  %v16202_v15 = vsub.f32 %v19121_v49, %v15807_v20  ;;  %v19126_v44 = vunpack.c.l.bf16 %v19125_v60  ;;  %v19128_v30 = vunpack.c.h.bf16 %v19125_v60 }
 0x4a8   :  { %19119 = vst [vmem:[#allocation144_spill] sm:$0xff] %v16197_v19  ;;  %v16207_v47 = vsub.f32 %v19123_v22, %v15807_v20  ;;  %v19130_v19 = vld [vmem:[#allocation90_spill] sm:$0xff] }
 0x4a9   :  { %19122 = vst [vmem:[#allocation87_spill] sm:$0xff] %v16202_v15  ;;  %v16212_v13 = vsub.f32 %v19126_v44, %v15807_v20  ;;  %v16217_v59 = vsub.f32 %v19128_v30, %v15807_v20  ;;  %v19131_v40 = vunpack.c.l.bf16 %v19130_v19  ;;  %v19133_v28 = vunpack.c.h.bf16 %v19130_v19 }
 0x4aa   :  { %19124 = vst [vmem:[#allocation145_spill] sm:$0xff] %v16207_v47  ;;  %v19135_v47 = vld [vmem:[#allocation91_spill] sm:$0xff] }
 0x4ab   :  { %19127 = vst [vmem:[#allocation89_spill] sm:$0xff] %v16212_v13  ;;  %19129 = vst [vmem:[#allocation146_spill] sm:$0xff] %v16217_v59  ;;  %v16222_v49 = vsub.f32 %v19131_v40, %v15807_v20  ;;  %v16227_v22 = vsub.f32 %v19133_v28, %v15807_v20  ;;  %v19136_v15 = vunpack.c.l.bf16 %v19135_v47  ;;  %v19138_v60 = vunpack.c.h.bf16 %v19135_v47  ;;  %v19140_v59 = vld [vmem:[#allocation92_spill] sm:$0xff] }
 0x4ac   :  { %v19141_v13 = vunpack.c.l.bf16 %v19140_v59  ;;  %v19143_v19 = vunpack.c.h.bf16 %v19140_v59 }
 0x4ad   :  { %19132 = vst [vmem:[#allocation90_spill] sm:$0xff] %v16222_v49  ;;  %19134 = vst [vmem:[#allocation147_spill] sm:$0xff] %v16227_v22  ;;  %v16232_v44 = vsub.f32 %v19136_v15, %v15807_v20  ;;  %v16237_v30 = vsub.f32 %v19138_v60, %v15807_v20  ;;  %v19145_v22 = vld [vmem:[#allocation93_spill] sm:$0xff] }
 0x4ae   :  { %v16242_v40 = vsub.f32 %v19141_v13, %v15807_v20  ;;  %v16247_v28 = vsub.f32 %v19143_v19, %v15807_v20  ;;  %v19146_v49 = vunpack.c.l.bf16 %v19145_v22  ;;  %v19148_v47 = vunpack.c.h.bf16 %v19145_v22 }
 0x4af   :  { %19137 = vst [vmem:[#allocation91_spill] sm:$0xff] %v16232_v44  ;;  %19139 = vst [vmem:[#allocation148_spill] sm:$0xff] %v16237_v30  ;;  %v19150_v30 = vld [vmem:[#allocation94_spill] sm:$0xff] }
 0x4b0   :  { %19142 = vst [vmem:[#allocation92_spill] sm:$0xff] %v16242_v40  ;;  %19144 = vst [vmem:[#allocation149_spill] sm:$0xff] %v16247_v28  ;;  %v16252_v15 = vsub.f32 %v19146_v49, %v15807_v20  ;;  %v16257_v60 = vsub.f32 %v19148_v47, %v15807_v20  ;;  %v19151_v44 = vunpack.c.l.bf16 %v19150_v30  ;;  %v19153_v59 = vunpack.c.h.bf16 %v19150_v30  ;;  %v19155_v28 = vld [vmem:[#allocation95_spill] sm:$0xff] }
 0x4b1   :  { %v19156_v40 = vunpack.c.l.bf16 %v19155_v28  ;;  %v19158_v22 = vunpack.c.h.bf16 %v19155_v28 }
 0x4b2   :  { %19147 = vst [vmem:[#allocation93_spill] sm:$0xff] %v16252_v15  ;;  %19149 = vst [vmem:[#allocation150_spill] sm:$0xff] %v16257_v60  ;;  %v16262_v13 = vsub.f32 %v19151_v44, %v15807_v20  ;;  %v16267_v19 = vsub.f32 %v19153_v59, %v15807_v20  ;;  %v19160_v60 = vld [vmem:[#allocation96_spill] sm:$0xff] }
 0x4b3   :  { %v16272_v49 = vsub.f32 %v19156_v40, %v15807_v20  ;;  %v16277_v47 = vsub.f32 %v19158_v22, %v15807_v20  ;;  %v19161_v15 = vunpack.c.l.bf16 %v19160_v60  ;;  %v19163_v30 = vunpack.c.h.bf16 %v19160_v60 }
 0x4b4   :  { %19152 = vst [vmem:[#allocation94_spill] sm:$0xff] %v16262_v13  ;;  %19154 = vst [vmem:[#allocation151_spill] sm:$0xff] %v16267_v19  ;;  %v19165_v19 = vld [vmem:[#allocation97_spill] sm:$0xff] }
 0x4b5   :  { %19157 = vst [vmem:[#allocation95_spill] sm:$0xff] %v16272_v49  ;;  %19159 = vst [vmem:[#allocation152_spill] sm:$0xff] %v16277_v47  ;;  %v16282_v44 = vsub.f32 %v19161_v15, %v15807_v20  ;;  %v16287_v59 = vsub.f32 %v19163_v30, %v15807_v20  ;;  %v19166_v13 = vunpack.c.l.bf16 %v19165_v19  ;;  %v19168_v28 = vunpack.c.h.bf16 %v19165_v19  ;;  %v19170_v47 = vld [vmem:[#allocation98_spill] sm:$0xff] }
 0x4b6   :  { %v19171_v49 = vunpack.c.l.bf16 %v19170_v47  ;;  %v19173_v60 = vunpack.c.h.bf16 %v19170_v47 }
 0x4b7   :  { %19162 = vst [vmem:[#allocation96_spill] sm:$0xff] %v16282_v44  ;;  %19164 = vst [vmem:[#allocation153_spill] sm:$0xff] %v16287_v59  ;;  %v16292_v40 = vsub.f32 %v19166_v13, %v15807_v20  ;;  %v16297_v22 = vsub.f32 %v19168_v28, %v15807_v20  ;;  %v19175_v59 = vld [vmem:[#allocation99_spill] sm:$0xff] }
 0x4b8   :  { %v16302_v15 = vsub.f32 %v19171_v49, %v15807_v20  ;;  %v16307_v30 = vsub.f32 %v19173_v60, %v15807_v20  ;;  %v19176_v44 = vunpack.c.l.bf16 %v19175_v59  ;;  %v19178_v19 = vunpack.c.h.bf16 %v19175_v59 }
 0x4b9   :  { %19167 = vst [vmem:[#allocation97_spill] sm:$0xff] %v16292_v40  ;;  %19169 = vst [vmem:[#allocation154_spill] sm:$0xff] %v16297_v22  ;;  %v19180_v22 = vld [vmem:[#allocation100_spill] sm:$0xff] }
 0x4ba   :  { %19172 = vst [vmem:[#allocation98_spill] sm:$0xff] %v16302_v15  ;;  %19174 = vst [vmem:[#allocation155_spill] sm:$0xff] %v16307_v30  ;;  %v16312_v13 = vsub.f32 %v19176_v44, %v15807_v20  ;;  %v16317_v28 = vsub.f32 %v19178_v19, %v15807_v20  ;;  %v19181_v40 = vunpack.c.l.bf16 %v19180_v22  ;;  %v19183_v47 = vunpack.c.h.bf16 %v19180_v22  ;;  %v19185_v30 = vld [vmem:[#allocation101_spill] sm:$0xff] }
 0x4bb   :  { %v19186_v15 = vunpack.c.l.bf16 %v19185_v30  ;;  %v19188_v59 = vunpack.c.h.bf16 %v19185_v30 }
 0x4bc   :  { %19177 = vst [vmem:[#allocation99_spill] sm:$0xff] %v16312_v13  ;;  %19179 = vst [vmem:[#allocation156_spill] sm:$0xff] %v16317_v28  ;;  %v16322_v49 = vsub.f32 %v19181_v40, %v15807_v20  ;;  %v16327_v60 = vsub.f32 %v19183_v47, %v15807_v20  ;;  %v19190_v28 = vld [vmem:[#allocation102_spill] sm:$0xff] }
 0x4bd   :  { %v16332_v44 = vsub.f32 %v19186_v15, %v15807_v20  ;;  %v16337_v19 = vsub.f32 %v19188_v59, %v15807_v20  ;;  %v19191_v13 = vunpack.c.l.bf16 %v19190_v28  ;;  %v19193_v22 = vunpack.c.h.bf16 %v19190_v28 }
 0x4be   :  { %19182 = vst [vmem:[#allocation100_spill] sm:$0xff] %v16322_v49  ;;  %19184 = vst [vmem:[#allocation157_spill] sm:$0xff] %v16327_v60  ;;  %v19195_v60 = vld [vmem:[#allocation103_spill] sm:$0xff] }
 0x4bf   :  { %19187 = vst [vmem:[#allocation101_spill] sm:$0xff] %v16332_v44  ;;  %19189 = vst [vmem:[#allocation158_spill] sm:$0xff] %v16337_v19  ;;  %v16342_v40 = vsub.f32 %v19191_v13, %v15807_v20  ;;  %v16347_v47 = vsub.f32 %v19193_v22, %v15807_v20  ;;  %v19196_v49 = vunpack.c.l.bf16 %v19195_v60  ;;  %v19198_v30 = vunpack.c.h.bf16 %v19195_v60  ;;  %v19200_v19 = vld [vmem:[#allocation77_spill] sm:$0xff] }
 0x4c0   :  { %v19201_v44 = vunpack.c.l.bf16 %v19200_v19  ;;  %v19203_v28 = vunpack.c.h.bf16 %v19200_v19 }
 0x4c1   :  { %19192 = vst [vmem:[#allocation102_spill] sm:$0xff] %v16342_v40  ;;  %19194 = vst [vmem:[#allocation159_spill] sm:$0xff] %v16347_v47  ;;  %v16352_v15 = vsub.f32 %v19196_v49, %v15807_v20  ;;  %v16357_v59 = vsub.f32 %v19198_v30, %v15807_v20  ;;  %v19205_v47 = vld [vmem:[#allocation78_spill] sm:$0xff] }
 0x4c2   :  { %v16362_v13 = vsub.f32 %v19201_v44, %v15807_v20  ;;  %v16367_v22 = vsub.f32 %v19203_v28, %v15807_v20  ;;  %v19206_v40 = vunpack.c.l.bf16 %v19205_v47  ;;  %v19208_v60 = vunpack.c.h.bf16 %v19205_v47 }
 0x4c3   :  { %19197 = vst [vmem:[#allocation103_spill] sm:$0xff] %v16352_v15  ;;  %19199 = vst [vmem:[#allocation160_spill] sm:$0xff] %v16357_v59  ;;  %v19210_v59 = vld [vmem:[#allocation80_spill] sm:$0xff] }
 0x4c4   :  { %19202 = vst [vmem:[#allocation77_spill] sm:$0xff] %v16362_v13  ;;  %19204 = vst [vmem:[#allocation161_spill] sm:$0xff] %v16367_v22  ;;  %v16372_v49 = vsub.f32 %v19206_v40, %v15807_v20  ;;  %v16377_v30 = vsub.f32 %v19208_v60, %v15807_v20  ;;  %v19211_v15 = vunpack.c.l.bf16 %v19210_v59  ;;  %v19213_v19 = vunpack.c.h.bf16 %v19210_v59  ;;  %v19215_v22 = vld [vmem:[#allocation81_spill] sm:$0xff] }
 0x4c5   :  { %v19216_v13 = vunpack.c.l.bf16 %v19215_v22  ;;  %v19218_v47 = vunpack.c.h.bf16 %v19215_v22 }
 0x4c6   :  { %19207 = vst [vmem:[#allocation78_spill] sm:$0xff] %v16372_v49  ;;  %19209 = vst [vmem:[#allocation162_spill] sm:$0xff] %v16377_v30  ;;  %v16382_v44 = vsub.f32 %v19211_v15, %v15807_v20  ;;  %v16387_v28 = vsub.f32 %v19213_v19, %v15807_v20  ;;  %v19220_v30 = vld [vmem:[#allocation83_spill] sm:$0xff] }
 0x4c7   :  { %v16392_v40 = vsub.f32 %v19216_v13, %v15807_v20  ;;  %v16397_v60 = vsub.f32 %v19218_v47, %v15807_v20  ;;  %v19221_v49 = vunpack.c.l.bf16 %v19220_v30  ;;  %v19223_v59 = vunpack.c.h.bf16 %v19220_v30 }
 0x4c8   :  { %19212 = vst [vmem:[#allocation80_spill] sm:$0xff] %v16382_v44  ;;  %19214 = vst [vmem:[#allocation163_spill] sm:$0xff] %v16387_v28  ;;  %v19225_v28 = vld [vmem:[#allocation84_spill] sm:$0xff] }
 0x4c9   :  { %19217 = vst [vmem:[#allocation81_spill] sm:$0xff] %v16392_v40  ;;  %19219 = vst [vmem:[#allocation164_spill] sm:$0xff] %v16397_v60  ;;  %v16402_v15 = vsub.f32 %v19221_v49, %v15807_v20  ;;  %v16407_v19 = vsub.f32 %v19223_v59, %v15807_v20  ;;  %v19226_v44 = vunpack.c.l.bf16 %v19225_v28  ;;  %v19228_v22 = vunpack.c.h.bf16 %v19225_v28  ;;  %v19230_v60 = vld [vmem:[#allocation86_spill] sm:$0xff] }
 0x4ca   :  { %v19231_v40 = vunpack.c.l.bf16 %v19230_v60  ;;  %v19233_v30 = vunpack.c.h.bf16 %v19230_v60 }
 0x4cb   :  { %19222 = vst [vmem:[#allocation83_spill] sm:$0xff] %v16402_v15  ;;  %19224 = vst [vmem:[#allocation165_spill] sm:$0xff] %v16407_v19  ;;  %v16412_v13 = vsub.f32 %v19226_v44, %v15807_v20  ;;  %v16417_v47 = vsub.f32 %v19228_v22, %v15807_v20  ;;  %v7585_v19 = vpop.permute.xlu1 %7584  ;;  %v19235_v15 = vld [vmem:[#allocation88_spill] sm:$0xff] }
 0x4cc   :  { %v16422_v49 = vsub.f32 %v19231_v40, %v15807_v20  ;;  %v16427_v59 = vsub.f32 %v19233_v30, %v15807_v20  ;;  %v19236_v44 = vunpack.c.l.bf16 %v19235_v15  ;;  %v19238_v28 = vunpack.c.h.bf16 %v19235_v15 }
 0x4cd   :  { %19227 = vst [vmem:[#allocation84_spill] sm:$0xff] %v16412_v13  ;;  %19229 = vst [vmem:[#allocation166_spill] sm:$0xff] %v16417_v47  ;;  %v19240_v47 = vld [vmem:[#allocation104_spill] sm:$0xff] }
 0x4ce   :  { %19232 = vst [vmem:[#allocation86_spill] sm:$0xff] %v16422_v49  ;;  %19234 = vst [vmem:[#allocation167_spill] sm:$0xff] %v16427_v59  ;;  %v16432_v13 = vsub.f32 %v19236_v44, %v15807_v20  ;;  %v16437_v22 = vsub.f32 %v19238_v28, %v15807_v20  ;;  %v19241_v40 = vunpack.c.l.bf16 %v19240_v47  ;;  %v19243_v60 = vunpack.c.h.bf16 %v19240_v47  ;;  %v19245_v59 = vld [vmem:[#allocation105_spill] sm:$0xff] }
 0x4cf   :  { %v19246_v29 = vunpack.c.l.bf16 %v19245_v59  ;;  %v19248_v15 = vunpack.c.h.bf16 %v19245_v59 }
 0x4d0   :  { %19237 = vst [vmem:[#allocation88_spill] sm:$0xff] %v16432_v13  ;;  %19239 = vst [vmem:[#allocation168_spill] sm:$0xff] %v16437_v22  ;;  %v16442_v49 = vsub.f32 %v19241_v40, %v15807_v20  ;;  %v16447_v30 = vsub.f32 %v19243_v60, %v15807_v20  ;;  %v19250_v22 = vld [vmem:[#allocation106_spill] sm:$0xff] }
 0x4d1   :  { %v16452_v44 = vsub.f32 %v19246_v29, %v15807_v20  ;;  %v16457_v28 = vsub.f32 %v19248_v15, %v15807_v20  ;;  %v19251_v13 = vunpack.c.l.bf16 %v19250_v22  ;;  %v19253_v47 = vunpack.c.h.bf16 %v19250_v22 }
 0x4d2   :  { %19242 = vst [vmem:[#allocation104_spill] sm:$0xff] %v16442_v49  ;;  %19244 = vst [vmem:[#allocation169_spill] sm:$0xff] %v16447_v30  ;;  %v19255_v30 = vld [vmem:[#allocation107_spill] sm:$0xff] }
 0x4d3   :  { %19247 = vst [vmem:[#allocation105_spill] sm:$0xff] %v16452_v44  ;;  %19249 = vst [vmem:[#allocation170_spill] sm:$0xff] %v16457_v28  ;;  %v16462_v40 = vsub.f32 %v19251_v13, %v15807_v20  ;;  %v16467_v60 = vsub.f32 %v19253_v47, %v15807_v20  ;;  %v19256_v49 = vunpack.c.l.bf16 %v19255_v30  ;;  %v19258_v59 = vunpack.c.h.bf16 %v19255_v30  ;;  %v19260_v28 = vld [vmem:[#allocation108_spill] sm:$0xff] }
 0x4d4   :  { %v19261_v44 = vunpack.c.l.bf16 %v19260_v28  ;;  %v19264_v47 = vunpack.c.h.bf16 %v19260_v28 }
 0x4d5   :  { %19252 = vst [vmem:[#allocation106_spill] sm:$0xff] %v16462_v40  ;;  %19254 = vst [vmem:[#allocation171_spill] sm:$0xff] %v16467_v60  ;;  %v16472_v29 = vsub.f32 %v19256_v49, %v15807_v20  ;;  %v16477_v15 = vsub.f32 %v19258_v59, %v15807_v20  ;;  %v19263_v40 = vld [vmem:[#allocation112_spill] sm:$0xff]  ;;  %v19266_v49 = vld [vmem:[#allocation109_spill] sm:$0xff] }
 0x4d6   :  { %v16482_v13 = vsub.f32 %v19261_v44, %v15807_v20  ;;  %v7587_v22 = vsel %vm7581_vm0, %v19263_v40, %v7585_v19  ;;  %v16489_v60 = vsub.f32 %v19264_v47, %v15807_v20  ;;  %v19269_v30 = vunpack.c.h.bf16 %v19266_v49  ;;  %v19272_v19 = vld [vmem:[#allocation110_spill] sm:$0xff] }
 0x4d7   :  { %19257 = vst [vmem:[#allocation107_spill] sm:$0xff] %v16472_v29  ;;  %19259 = vst [vmem:[#allocation172_spill] sm:$0xff] %v16477_v15  ;;  %v19267_v29 = vunpack.c.l.bf16 %v19266_v49  ;;  %v16502_v44 = vrot.slane %v7587_v22, %v15744_v57  ;;  %v19273_v40 = vunpack.c.l.bf16 %v19272_v19  ;;  %v19275_v28 = vunpack.c.h.bf16 %v19272_v19 }
 0x4d8   :  { %19262 = vst [vmem:[#allocation108_spill] sm:$0xff] %v16482_v13  ;;  %19265 = vst [vmem:[#allocation112_spill] sm:$0xff] %v16489_v60  ;;  %v16499_v59 = vsub.f32 %v19269_v30, %v15807_v20 }
 0x4d9   :  { %v16494_v26 = vsub.f32 %v19267_v29, %v15807_v20  ;;  %19271 = vst [vmem:[#allocation174_spill] sm:$0xff] %v16502_v44  ;;  %v16507_v13 = vsub.f32 %v19273_v40, %v15807_v20  ;;  %v16512_v47 = vsub.f32 %v19275_v28, %v15807_v20  ;;  %v19277_v29 = vld [vmem:[#allocation111_spill] sm:$0xff]  ;;  %v16526_v30 = vmul.f32 %v16502_v44, %v15882_v10 }
 0x4da   :  { %19270 = vst [vmem:[#allocation173_spill] sm:$0xff] %v16499_v59  ;;  %v19280_v49 = vunpack.c.h.bf16 %v19277_v29  ;;  %v16530_v40 = vmul.f32 %v16502_v44, %v15887_v48  ;;  %v16534_v19 = vmul.f32 %v16502_v44, %v15892_v35  ;;  %v16546_v10 = vmul.f32 %v16502_v44, %v15907_v11 }
 0x4db   :  { %19268 = vst [vmem:[#allocation109_spill] sm:$0xff] %v16494_v26  ;;  %19274 = vst [vmem:[#allocation110_spill] sm:$0xff] %v16507_v13  ;;  %v19278_v26 = vunpack.c.l.bf16 %v19277_v29  ;;  %v16550_v48 = vmul.f32 %v16502_v44, %v15912_v17  ;;  %v16554_v35 = vmul.f32 %v16502_v44, %v15917_v18  ;;  %v16566_v11 = vmul.f32 %v16502_v44, %v15932_v53 }
 0x4dc   :  { %19276 = vst [vmem:[#allocation175_spill] sm:$0xff] %v16512_v47  ;;  %v16522_v22 = vsub.f32 %v19280_v49, %v15807_v20  ;;  %19283 = vst [vmem:[#allocation178_spill] sm:$0xff] %v16546_v10  ;;  %v16570_v17 = vmul.f32 %v16502_v44, %v15937_v0  ;;  %v16574_v18 = vmul.f32 %v16502_v44, %v15942_v63  ;;  %v7909_v28 = vsub.f32 0.0, %v16526_v30 }
 0x4dd   :  { %v16517_v60 = vsub.f32 %v19278_v26, %v15807_v20  ;;  %v16538_v26 = vmul.f32 %v16502_v44, %v15897_v5  ;;  %v16542_v20 = vmul.f32 %v16502_v44, %v15902_v3  ;;  %19284 = vst [vmem:[#allocation179_spill] sm:$0xff] %v16550_v48  ;;  %19285 = vst [vmem:[#allocation180_spill] sm:$0xff] %v16554_v35  ;;  %v7910_v0 = vsub.f32 0.0, %v16530_v40 }
 0x4de   :  { %19281 = vst [vmem:[#allocation176_spill] sm:$0xff] %v16522_v22  ;;  %v16558_v5 = vmul.f32 %v16502_v44, %v15922_v16  ;;  %v16562_v3 = vmul.f32 %v16502_v44, %v15927_v14  ;;  %19288 = vst [vmem:[#allocation183_spill] sm:$0xff] %v16566_v11  ;;  %v16578_v16 = vmul.f32 %v16502_v44, %v15947_v1  ;;  %v7911_v29 = vsub.f32 0.0, %v16534_v19 }
 0x4df   :  { %19279 = vst [vmem:[#allocation111_spill] sm:$0xff] %v16517_v60  ;;  %19282 = vst [vmem:[#allocation177_spill] sm:$0xff] %v16542_v20  ;;  %v16582_v14 = vmul.f32 %v16502_v44, %v15952_v8  ;;  %v16586_v53 = vmul.f32 %v16502_v44, %v15957_v51  ;;  %v7912_v63 = vsub.f32 0.0, %v16538_v26  ;;  %v7913_v49 = vsub.f32 0.0, %v16542_v20 }
 0x4e0   :  { %19286 = vst [vmem:[#allocation181_spill] sm:$0xff] %v16558_v5  ;;  %19287 = vst [vmem:[#allocation182_spill] sm:$0xff] %v16562_v3  ;;  %v7914_v1 = vsub.f32 0.0, %v16546_v10  ;;  %v7915_v57 = vsub.f32 0.0, %v16550_v48  ;;  %v7916_v8 = vsub.f32 0.0, %v16554_v35  ;;  %v7917_v22 = vsub.f32 0.0, %v16558_v5 }
 0x4e1   :  { %19289 = vst [vmem:[#allocation184_spill] sm:$0xff] %v16570_v17  ;;  %19290 = vst [vmem:[#allocation185_spill] sm:$0xff] %v16574_v18  ;;  %v7918_v51 = vsub.f32 0.0, %v16562_v3  ;;  %v7919_v60 = vsub.f32 0.0, %v16566_v11  ;;  %v7920_v47 = vsub.f32 0.0, %v16570_v17  ;;  %v7921_v13 = vsub.f32 0.0, %v16574_v18 }
 0x4e2   :  { %19291 = vst [vmem:[#allocation186_spill] sm:$0xff] %v16578_v16  ;;  %19292 = vst [vmem:[#allocation187_spill] sm:$0xff] %v16582_v14  ;;  %v7922_v59 = vsub.f32 0.0, %v16578_v16  ;;  %v7923_v15 = vsub.f32 0.0, %v16582_v14  ;;  %v7924_v4 = vsub.f32 0.0, %v16586_v53  ;;  %v16606_v5 = vmul.f32 %v15962_v24, %v16502_v44 }
 0x4e3   :  { %19293 = vst [vmem:[#allocation188_spill] sm:$0xff] %v16586_v53  ;;  %v7925_v10 = vmul.f32 1.442695, %v7909_v28  ;;  %v7927_v48 = vmul.f32 1.442695, %v7910_v0  ;;  %v16610_v17 = vmul.f32 %v15967_v61, %v16502_v44  ;;  %v16618_v61 = vmul.f32 %v15977_v45, %v16502_v44 }
 0x4e4   :  { %v7929_v20 = vmul.f32 1.442695, %v7911_v29  ;;  %v7931_v3 = vmul.f32 1.442695, %v7912_v63  ;;  %v7933_v35 = vmul.f32 1.442695, %v7913_v49  ;;  %v16614_v49 = vmul.f32 %v15972_v41, %v16502_v44 }
 0x4e5   :  { %v7935_v11 = vmul.f32 1.442695, %v7914_v1  ;;  %12424 = vpow2.f32 %v7925_v10  ;;  %v7937_v16 = vmul.f32 1.442695, %v7915_v57  ;;  %v7939_v18 = vmul.f32 1.442695, %v7916_v8 }
 0x4e6   :  { %v7941_v14 = vmul.f32 1.442695, %v7917_v22  ;;  %12426 = vpow2.f32 %v7927_v48  ;;  %v7943_v53 = vmul.f32 1.442695, %v7918_v51  ;;  %v7945_v28 = vmul.f32 1.442695, %v7919_v60 }
 0x4e7   :  { %v7947_v0 = vmul.f32 1.442695, %v7920_v47  ;;  %12428 = vpow2.f32 %v7929_v20  ;;  %v7949_v29 = vmul.f32 1.442695, %v7921_v13  ;;  %v7951_v27 = vmul.f32 1.442695, %v7922_v59 }
 0x4e8   :  { %v7953_v24 = vmul.f32 1.442695, %v7923_v15  ;;  %12430 = vpow2.f32 %v7931_v3  ;;  %v7955_v63 = vmul.f32 1.442695, %v7924_v4  ;;  %v16622_v57 = vmul.f32 %v15982_v33, %v16502_v44 }
 0x4e9   :  { %12432 = vpow2.f32 %v7933_v35  ;;  %v16626_v60 = vmul.f32 %v15987_v54, %v16502_v44  ;;  %v16630_v4 = vmul.f32 %v15992_v50, %v16502_v44  ;;  %v16634_v41 = vmul.f32 %v15997_v32, %v16502_v44 }
 0x4ea   :  { %12434 = vpow2.f32 %v7935_v11  ;;  %v16638_v45 = vmul.f32 %v16002_v43, %v16502_v44  ;;  %v16642_v33 = vmul.f32 %v16007_v52, %v16502_v44  ;;  %v16646_v54 = vmul.f32 %v16012_v31, %v16502_v44 }
 0x4eb   :  { %12436 = vpow2.f32 %v7937_v16  ;;  %v16650_v50 = vmul.f32 %v16017_v56, %v16502_v44  ;;  %v16654_v32 = vmul.f32 %v16022_v25, %v16502_v44  ;;  %v16658_v43 = vmul.f32 %v16027_v46, %v16502_v44 }
 0x4ec   :  { %19294 = vst [vmem:[#allocation189_spill] sm:$0xff] %v16638_v45  ;;  %19295 = vst [vmem:[#allocation190_spill] sm:$0xff] %v16642_v33  ;;  %12438 = vpow2.f32 %v7939_v18  ;;  %v16662_v52 = vmul.f32 %v16032_v9, %v16502_v44  ;;  %v16666_v31 = vmul.f32 %v16037_v37, %v16502_v44  ;;  %v8093_v56 = vsub.f32 0.0, %v16606_v5 }
 0x4ed   :  { %19296 = vst [vmem:[#allocation191_spill] sm:$0xff] %v16646_v54  ;;  %19297 = vst [vmem:[#allocation192_spill] sm:$0xff] %v16650_v50  ;;  %12440 = vpow2.f32 %v7941_v14  ;;  %v8094_v15 = vsub.f32 0.0, %v16610_v17  ;;  %v8095_v25 = vsub.f32 0.0, %v16614_v49  ;;  %v8096_v13 = vsub.f32 0.0, %v16618_v61 }
 0x4ee   :  { %19298 = vst [vmem:[#allocation193_spill] sm:$0xff] %v16654_v32  ;;  %19299 = vst [vmem:[#allocation194_spill] sm:$0xff] %v16658_v43  ;;  %12442 = vpow2.f32 %v7943_v53  ;;  %v8097_v46 = vsub.f32 0.0, %v16622_v57  ;;  %v8098_v59 = vsub.f32 0.0, %v16626_v60  ;;  %v8099_v47 = vsub.f32 0.0, %v16630_v4 }
 0x4ef   :  { %19300 = vst [vmem:[#allocation195_spill] sm:$0xff] %v16662_v52  ;;  %19301 = vst [vmem:[#allocation196_spill] sm:$0xff] %v16666_v31  ;;  %v12425_v9 = vpop.eup %12424  ;;  %12444 = vpow2.f32 %v7945_v28  ;;  %v8100_v37 = vsub.f32 0.0, %v16634_v41  ;;  %v8101_v22 = vsub.f32 0.0, %v16638_v45  ;;  %v8102_v48 = vsub.f32 0.0, %v16642_v33 }
 0x4f0   :  { %v12427_v20 = vpop.eup %12426  ;;  %12446 = vpow2.f32 %v7947_v0  ;;  %v7957_v10 = vadd.f32 1.0, %v12425_v9  ;;  %v8103_v35 = vsub.f32 0.0, %v16646_v54  ;;  %v8104_v18 = vsub.f32 0.0, %v16650_v50 }
 0x4f1   :  { %v12429_v3 = vpop.eup %12428  ;;  %12448 = vpow2.f32 %v7949_v29  ;;  %v7958_v11 = vadd.f32 1.0, %v12427_v20  ;;  %v8105_v16 = vsub.f32 0.0, %v16654_v32  ;;  %v8106_v1 = vsub.f32 0.0, %v16658_v43 }
 0x4f2   :  { %v12431_v14 = vpop.eup %12430  ;;  %12450 = vpow2.f32 %v7951_v27  ;;  %v7959_v53 = vadd.f32 1.0, %v12429_v3  ;;  %v8107_v8 = vsub.f32 0.0, %v16662_v52  ;;  %v8108_v0 = vsub.f32 0.0, %v16666_v31 }
 0x4f3   :  { %v12433_v51 = vpop.eup %12432  ;;  %12452 = vpow2.f32 %v7953_v24  ;;  %v7960_v28 = vadd.f32 1.0, %v12431_v14  ;;  %v16684_v9 = vmul.f32 1.442695, %v8093_v56  ;;  %v16686_v50 = vmul.f32 1.442695, %v8094_v15 }
 0x4f4   :  { %v12435_v29 = vpop.eup %12434  ;;  %12454 = vpow2.f32 %v7955_v63  ;;  %v7961_v20 = vadd.f32 1.0, %v12433_v51  ;;  %v16688_v32 = vmul.f32 1.442695, %v8095_v25  ;;  %v16690_v43 = vmul.f32 1.442695, %v8096_v13 }
 0x4f5   :  { %v12437_v27 = vpop.eup %12436  ;;  %v7962_v3 = vadd.f32 1.0, %v12435_v29  ;;  %12456 = vrcp.f32 %v7957_v10  ;;  %v16692_v52 = vmul.f32 1.442695, %v8097_v46  ;;  %v16694_v31 = vmul.f32 1.442695, %v8098_v59 }
 0x4f6   :  { %v12439_v24 = vpop.eup %12438  ;;  %v7963_v14 = vadd.f32 1.0, %v12437_v27  ;;  %12458 = vrcp.f32 %v7958_v11  ;;  %v16696_v56 = vmul.f32 1.442695, %v8099_v47  ;;  %v16698_v15 = vmul.f32 1.442695, %v8100_v37 }
 0x4f7   :  { %v12441_v63 = vpop.eup %12440  ;;  %v7964_v51 = vadd.f32 1.0, %v12439_v24  ;;  %12460 = vrcp.f32 %v7959_v53  ;;  %v16700_v25 = vmul.f32 1.442695, %v8101_v22  ;;  %v16702_v13 = vmul.f32 1.442695, %v8102_v48 }
 0x4f8   :  { %v12443_v29 = vpop.eup %12442  ;;  %v7965_v10 = vadd.f32 1.0, %v12441_v63  ;;  %12462 = vrcp.f32 %v7960_v28  ;;  %v16704_v46 = vmul.f32 1.442695, %v8103_v35  ;;  %v16706_v59 = vmul.f32 1.442695, %v8104_v18 }
 0x4f9   :  { %v12445_v27 = vpop.eup %12444  ;;  %v7966_v11 = vadd.f32 1.0, %v12443_v29  ;;  %12464 = vrcp.f32 %v7961_v20  ;;  %v16708_v47 = vmul.f32 1.442695, %v8105_v16  ;;  %v16710_v37 = vmul.f32 1.442695, %v8106_v1 }
 0x4fa   :  { %v12447_v24 = vpop.eup %12446  ;;  %v7967_v53 = vadd.f32 1.0, %v12445_v27  ;;  %12466 = vrcp.f32 %v7962_v3  ;;  %v16712_v22 = vmul.f32 1.442695, %v8107_v8  ;;  %v16714_v48 = vmul.f32 1.442695, %v8108_v0 }
 0x4fb   :  { %v12449_v63 = vpop.eup %12448  ;;  %v7968_v28 = vadd.f32 1.0, %v12447_v24  ;;  %12468 = vrcp.f32 %v7963_v14  ;;  %v16718_v35 = vmul.f32 %v16042_v6, %v16502_v44  ;;  %v16722_v16 = vmul.f32 %v16047_v34, %v16502_v44 }
 0x4fc   :  { %v12451_v18 = vpop.eup %12450  ;;  %v7969_v20 = vadd.f32 1.0, %v12449_v63  ;;  %12470 = vrcp.f32 %v7964_v51  ;;  %v16726_v1 = vmul.f32 %v16052_v2, %v16502_v44  ;;  %v16730_v0 = vmul.f32 %v16057_v58, %v16502_v44 }
 0x4fd   :  { %v12453_v8 = vpop.eup %12452  ;;  %v7970_v3 = vadd.f32 1.0, %v12451_v18  ;;  %12472 = vrcp.f32 %v7965_v10  ;;  %v16734_v6 = vmul.f32 %v16062_v38, %v16502_v44  ;;  %v16738_v34 = vmul.f32 %v16067_v36, %v16502_v44  ;;  %v19314_v18 = vld [vmem:[#allocation113_spill] sm:$0xff] }
 0x4fe   :  { %v12455_v14 = vpop.eup %12454  ;;  %v7971_v51 = vadd.f32 1.0, %v12453_v8  ;;  %12474 = vrcp.f32 %v7966_v11  ;;  %v16742_v2 = vmul.f32 %v16072_v39, %v16502_v44  ;;  %v16746_v58 = vmul.f32 %v16077_v62, %v16502_v44 }
 0x4ff   :  { %19302 = vst [vmem:[#allocation197_spill] sm:$0xff] %v16734_v6  ;;  %19303 = vst [vmem:[#allocation198_spill] sm:$0xff] %v16738_v34  ;;  %v12457_v29 = vpop.eup %12456  ;;  %v7972_v10 = vadd.f32 1.0, %v12455_v14  ;;  %12476 = vrcp.f32 %v7967_v53  ;;  %v16750_v38 = vmul.f32 %v16082_v42, %v16502_v44  ;;  %v16755_v11 = vmul.f32 %v16087_v7, %v16502_v44 }
 0x500   :  { %19304 = vst [vmem:[#allocation199_spill] sm:$0xff] %v16742_v2  ;;  %19305 = vst [vmem:[#allocation200_spill] sm:$0xff] %v16746_v58  ;;  %v12459_v27 = vpop.eup %12458  ;;  %12478 = vrcp.f32 %v7968_v28  ;;  %v7989_v36 = vmul.f32 %v12457_v29, %v16526_v30  ;;  %v16759_v39 = vmul.f32 %v16092_v12, %v16502_v44  ;;  %v16764_v42 = vmul.f32 %v16097_v23, %v16502_v44  ;;  %v19312_v12 = vld [vmem:[#allocation128_spill] sm:$0xff]  ;;  %v19319_v29 = vld [vmem:[#allocation114_spill] sm:$0xff] }
 0x501   :  { %19306 = vst [vmem:[#allocation201_spill] sm:$0xff] %v16750_v38  ;;  %19307 = vst [vmem:[#allocation202_spill] sm:$0xff] %v16755_v11  ;;  %v12461_v24 = vpop.eup %12460  ;;  %12480 = vrcp.f32 %v7969_v20  ;;  %v7990_v62 = vmul.f32 %v12459_v27, %v16530_v40  ;;  %v16768_v53 = vmul.f32 %v16102_v55, %v16502_v44  ;;  %v16776_v28 = vmul.f32 %v19312_v12, %v16502_v44  ;;  %v19316_v55 = vld [vmem:[#allocation129_spill] sm:$0xff] }
 0x502   :  { %19308 = vst [vmem:[#allocation203_spill] sm:$0xff] %v16759_v39  ;;  %19309 = vst [vmem:[#allocation204_spill] sm:$0xff] %v16764_v42  ;;  %v12463_v30 = vpop.eup %12462  ;;  %12482 = vrcp.f32 %v7970_v3  ;;  %v7991_v7 = vmul.f32 %v12461_v24, %v16534_v19  ;;  %v16772_v63 = vmul.f32 %v15799_v21, %v7989_v36  ;;  %v16784_v8 = vmul.f32 %v19316_v55, %v16502_v44  ;;  %v19318_v19 = vld [vmem:[#allocation177_spill] sm:$0xff]  ;;  %v19321_v36 = vld [vmem:[#allocation130_spill] sm:$0xff] }
 0x503   :  { %19310 = vst [vmem:[#allocation205_spill] sm:$0xff] %v16768_v53  ;;  %19313 = vst [vmem:[#allocation128_spill] sm:$0xff] %v16776_v28  ;;  %v12465_v40 = vpop.eup %12464  ;;  %12484 = vrcp.f32 %v7971_v51  ;;  %v7992_v23 = vmul.f32 %v12463_v30, %v16538_v26  ;;  %v16780_v20 = vmul.f32 %v19314_v18, %v7990_v62  ;;  %v16792_v24 = vmul.f32 %v19321_v36, %v16502_v44  ;;  %v19323_v26 = vld [vmem:[#allocation178_spill] sm:$0xff]  ;;  %v19324_v62 = vld [vmem:[#allocation115_spill] sm:$0xff] }
 0x504   :  { %19311 = vst [vmem:[#allocation206_spill] sm:$0xff] %v16772_v63  ;;  %19317 = vst [vmem:[#allocation129_spill] sm:$0xff] %v16784_v8  ;;  %v12467_v3 = vpop.eup %12466  ;;  %12486 = vrcp.f32 %v7972_v10  ;;  %v7993_v14 = vmul.f32 %v12465_v40, %v19318_v19  ;;  %v16788_v27 = vmul.f32 %v19319_v29, %v7991_v7  ;;  %v19326_v40 = vld [vmem:[#allocation179_spill] sm:$0xff]  ;;  %v19327_v7 = vld [vmem:[#allocation116_spill] sm:$0xff]  ;;  %v8283_v55 = vsub.f32 0.0, %v16742_v2 }
 0x505   :  { %19315 = vst [vmem:[#allocation113_spill] sm:$0xff] %v16780_v20  ;;  %19322 = vst [vmem:[#allocation114_spill] sm:$0xff] %v16792_v24  ;;  %v12469_v51 = vpop.eup %12468  ;;  %v7994_v30 = vmul.f32 %v12467_v3, %v19323_v26  ;;  %v16796_v12 = vmul.f32 %v19324_v62, %v7992_v23  ;;  %12488 = vpow2.f32 %v16684_v9  ;;  %v19329_v3 = vld [vmem:[#allocation180_spill] sm:$0xff]  ;;  %v19330_v23 = vld [vmem:[#allocation117_spill] sm:$0xff] }
 0x506   :  { %19320 = vst [vmem:[#allocation177_spill] sm:$0xff] %v16788_v27  ;;  %v12471_v10 = vpop.eup %12470  ;;  %v7995_v19 = vmul.f32 %v12469_v51, %v19326_v40  ;;  %v16803_v54 = vmul.f32 %v19327_v7, %v7993_v14  ;;  %12490 = vpow2.f32 %v16686_v50  ;;  %v19332_v51 = vld [vmem:[#allocation181_spill] sm:$0xff]  ;;  %v19333_v14 = vld [vmem:[#allocation118_spill] sm:$0xff] }
 0x507   :  { %19325 = vst [vmem:[#allocation130_spill] sm:$0xff] %v16796_v12  ;;  %v12473_v33 = vpop.eup %12472  ;;  %v7996_v26 = vmul.f32 %v12471_v10, %v19329_v3  ;;  %v16809_v45 = vmul.f32 %v19330_v23, %v7994_v30  ;;  %12492 = vpow2.f32 %v16688_v32  ;;  %v19335_v10 = vld [vmem:[#allocation182_spill] sm:$0xff]  ;;  %v19336_v30 = vld [vmem:[#allocation119_spill] sm:$0xff] }
 0x508   :  { %19328 = vst [vmem:[#allocation178_spill] sm:$0xff] %v16803_v54  ;;  %v12475_v9 = vpop.eup %12474  ;;  %v7997_v40 = vmul.f32 %v12473_v33, %v19332_v51  ;;  %v16816_v63 = vmul.f32 %v19333_v14, %v7995_v19  ;;  %12494 = vpow2.f32 %v16690_v43  ;;  %v19338_v33 = vld [vmem:[#allocation183_spill] sm:$0xff]  ;;  %v19339_v19 = vld [vmem:[#allocation120_spill] sm:$0xff] }
 0x509   :  { %19331 = vst [vmem:[#allocation115_spill] sm:$0xff] %v16809_v45  ;;  %v12477_v36 = vpop.eup %12476  ;;  %v7998_v3 = vmul.f32 %v12475_v9, %v19335_v10  ;;  %v16822_v20 = vmul.f32 %v19336_v30, %v7996_v26  ;;  %12496 = vpow2.f32 %v16692_v52  ;;  %v19341_v9 = vld [vmem:[#allocation184_spill] sm:$0xff]  ;;  %v19342_v26 = vld [vmem:[#allocation121_spill] sm:$0xff] }
 0x50a   :  { %19334 = vst [vmem:[#allocation179_spill] sm:$0xff] %v16816_v63  ;;  %v12479_v32 = vpop.eup %12478  ;;  %v7999_v51 = vmul.f32 %v12477_v36, %v19338_v33  ;;  %v16829_v27 = vmul.f32 %v19339_v19, %v7997_v40  ;;  %12498 = vpow2.f32 %v16694_v31  ;;  %v19344_v36 = vld [vmem:[#allocation185_spill] sm:$0xff]  ;;  %v19345_v40 = vld [vmem:[#allocation122_spill] sm:$0xff] }
 0x50b   :  { %19337 = vst [vmem:[#allocation116_spill] sm:$0xff] %v16822_v20  ;;  %v12481_v50 = vpop.eup %12480  ;;  %v8000_v10 = vmul.f32 %v12479_v32, %v19341_v9  ;;  %v16835_v12 = vmul.f32 %v19342_v26, %v7998_v3  ;;  %12500 = vpow2.f32 %v16696_v56  ;;  %v19347_v32 = vld [vmem:[#allocation186_spill] sm:$0xff]  ;;  %v19348_v3 = vld [vmem:[#allocation123_spill] sm:$0xff] }
 0x50c   :  { %19340 = vst [vmem:[#allocation180_spill] sm:$0xff] %v16829_v27  ;;  %v12483_v52 = vpop.eup %12482  ;;  %v8001_v33 = vmul.f32 %v12481_v50, %v19344_v36  ;;  %v16842_v54 = vmul.f32 %v19345_v40, %v7999_v51  ;;  %12502 = vpow2.f32 %v16698_v15  ;;  %v19350_v50 = vld [vmem:[#allocation187_spill] sm:$0xff]  ;;  %v19351_v51 = vld [vmem:[#allocation124_spill] sm:$0xff]  ;;  %v8281_v15 = vsub.f32 0.0, %v16734_v6 }
 0x50d   :  { %19343 = vst [vmem:[#allocation117_spill] sm:$0xff] %v16835_v12  ;;  %v12485_v43 = vpop.eup %12484  ;;  %v8002_v9 = vmul.f32 %v12483_v52, %v19347_v32  ;;  %v16848_v45 = vmul.f32 %v19348_v3, %v8000_v10  ;;  %12504 = vpow2.f32 %v16700_v25  ;;  %v19353_v52 = vld [vmem:[#allocation188_spill] sm:$0xff]  ;;  %v19354_v10 = vld [vmem:[#allocation125_spill] sm:$0xff]  ;;  %v19358_v12 = vld [vmem:[#allocation127_spill] sm:$0xff] }
 0x50e   :  { %19346 = vst [vmem:[#allocation181_spill] sm:$0xff] %v16842_v54  ;;  %v12487_v56 = vpop.eup %12486  ;;  %v8003_v36 = vmul.f32 %v12485_v43, %v19350_v50  ;;  %v16855_v63 = vmul.f32 %v19351_v51, %v8001_v33  ;;  %12506 = vpow2.f32 %v16702_v13  ;;  %v19356_v43 = vld [vmem:[#allocation126_spill] sm:$0xff]  ;;  %v8282_v33 = vsub.f32 0.0, %v16738_v34 }
 0x50f   :  { %19349 = vst [vmem:[#allocation118_spill] sm:$0xff] %v16848_v45  ;;  %v12489_v31 = vpop.eup %12488  ;;  %v8004_v32 = vmul.f32 %v12487_v56, %v19353_v52  ;;  %v16861_v20 = vmul.f32 %v19354_v10, %v8002_v9  ;;  %12508 = vpow2.f32 %v16704_v46  ;;  %v8285_v9 = vsub.f32 0.0, %v16750_v38 }
 0x510   :  { %19352 = vst [vmem:[#allocation182_spill] sm:$0xff] %v16855_v63  ;;  %v12491_v25 = vpop.eup %12490  ;;  %v16867_v50 = vmul.f32 %v19356_v43, %v8003_v36  ;;  %12510 = vpow2.f32 %v16706_v59  ;;  %v8141_v13 = vadd.f32 1.0, %v12489_v31  ;;  %v8284_v59 = vsub.f32 0.0, %v16746_v58 }
 0x511   :  { %19355 = vst [vmem:[#allocation119_spill] sm:$0xff] %v16861_v20  ;;  %v12493_v27 = vpop.eup %12492  ;;  %v16872_v56 = vmul.f32 %v19358_v12, %v8004_v32  ;;  %12512 = vpow2.f32 %v16708_v47  ;;  %v8142_v52 = vadd.f32 1.0, %v12491_v25  ;;  %v8288_v45 = vsub.f32 0.0, %v16764_v42 }
 0x512   :  { %19357 = vst [vmem:[#allocation183_spill] sm:$0xff] %v16867_v50  ;;  %v12495_v46 = vpop.eup %12494  ;;  %12514 = vpow2.f32 %v16710_v37  ;;  %v8143_v36 = vadd.f32 1.0, %v12493_v27  ;;  %v8286_v37 = vsub.f32 0.0, %v16755_v11  ;;  %v8287_v27 = vsub.f32 0.0, %v16759_v39 }
 0x513   :  { %19359 = vst [vmem:[#allocation120_spill] sm:$0xff] %v16872_v56  ;;  %v12497_v31 = vpop.eup %12496  ;;  %12516 = vpow2.f32 %v16712_v22  ;;  %v8144_v32 = vadd.f32 1.0, %v12495_v46  ;;  %v8289_v54 = vsub.f32 0.0, %v16768_v53  ;;  %v8290_v46 = vsub.f32 0.0, %v16776_v28 }
 0x514   :  { %v12499_v63 = vpop.eup %12498  ;;  %12518 = vpow2.f32 %v16714_v48  ;;  %v8145_v47 = vadd.f32 1.0, %v12497_v31  ;;  %v8291_v56 = vsub.f32 0.0, %v16784_v8  ;;  %v8292_v11 = vsub.f32 0.0, %v16792_v24 }
 0x515   :  { %v12501_v25 = vpop.eup %12500  ;;  %v8146_v20 = vadd.f32 1.0, %v12499_v63  ;;  %12520 = vrcp.f32 %v8141_v13  ;;  %v19360_v39 = vsub.f32 0.0, %v16718_v35  ;;  %v19361_v53 = vsub.f32 0.0, %v16722_v16 }
 0x516   :  { %v12503_v50 = vpop.eup %12502  ;;  %v8147_v22 = vadd.f32 1.0, %v12501_v25  ;;  %12522 = vrcp.f32 %v8142_v52  ;;  %v19362_v52 = vsub.f32 0.0, %v16726_v1 }
 0x517   :  { %v12505_v48 = vpop.eup %12504  ;;  %v8148_v31 = vadd.f32 1.0, %v12503_v50  ;;  %12524 = vrcp.f32 %v8143_v36  ;;  %v16894_v63 = vmul.f32 1.442695, %v19360_v39  ;;  %v16898_v25 = vmul.f32 1.442695, %v19361_v53 }
 0x518   :  { %v12507_v13 = vpop.eup %12506  ;;  %v8149_v42 = vadd.f32 1.0, %v12505_v48  ;;  %12526 = vrcp.f32 %v8144_v32  ;;  %v16902_v28 = vmul.f32 1.442695, %v19362_v52  ;;  %v19363_v36 = vsub.f32 0.0, %v16730_v0 }
 0x519   :  { %v12509_v8 = vpop.eup %12508  ;;  %v8150_v50 = vadd.f32 1.0, %v12507_v13  ;;  %12528 = vrcp.f32 %v8145_v47  ;;  %v16908_v39 = vmul.f32 1.442695, %v8281_v15  ;;  %v16910_v32 = vmul.f32 1.442695, %v8282_v33 }
 0x51a   :  { %v16906_v24 = vmul.f32 1.442695, %v19363_v36  ;;  %v12511_v38 = vpop.eup %12510  ;;  %v8151_v48 = vadd.f32 1.0, %v12509_v8  ;;  %12530 = vrcp.f32 %v8146_v20  ;;  %v16912_v53 = vmul.f32 1.442695, %v8283_v55 }
 0x51b   :  { %v12513_v58 = vpop.eup %12512  ;;  %v8152_v2 = vadd.f32 1.0, %v12511_v38  ;;  %12532 = vrcp.f32 %v8147_v22  ;;  %v16914_v52 = vmul.f32 1.442695, %v8284_v59  ;;  %v16916_v13 = vmul.f32 1.442695, %v8285_v9 }
 0x51c   :  { %v12515_v47 = vpop.eup %12514  ;;  %v8153_v34 = vadd.f32 1.0, %v12513_v58  ;;  %12534 = vrcp.f32 %v8148_v31  ;;  %v16918_v36 = vmul.f32 1.442695, %v8286_v37  ;;  %v16920_v15 = vmul.f32 1.442695, %v8287_v27  ;;  %v19364_v27 = vld [vmem:[#allocation131_spill] sm:$0xff] }
 0x51d   :  { %v12517_v8 = vpop.eup %12516  ;;  %v8154_v20 = vadd.f32 1.0, %v12515_v47  ;;  %12536 = vrcp.f32 %v8149_v42  ;;  %v16922_v33 = vmul.f32 1.442695, %v8288_v45  ;;  %v16924_v55 = vmul.f32 1.442695, %v8289_v54  ;;  %v19365_v42 = vld [vmem:[#allocation132_spill] sm:$0xff] }
 0x51e   :  { %v12519_v38 = vpop.eup %12518  ;;  %v8155_v22 = vadd.f32 1.0, %v12517_v8  ;;  %12538 = vrcp.f32 %v8150_v50  ;;  %v16926_v59 = vmul.f32 1.442695, %v8290_v46  ;;  %v16928_v9 = vmul.f32 1.442695, %v8291_v56  ;;  %v19366_v56 = vld [vmem:[#allocation133_spill] sm:$0xff] }
 0x51f   :  { %v12521_v58 = vpop.eup %12520  ;;  %v8156_v31 = vadd.f32 1.0, %v12519_v38  ;;  %12540 = vrcp.f32 %v8151_v48  ;;  %v16930_v37 = vmul.f32 1.442695, %v8292_v11  ;;  %v16934_v47 = vmul.f32 %v19364_v27, %v16502_v44  ;;  %v19367_v48 = vld [vmem:[#allocation134_spill] sm:$0xff] }
 0x520   :  { %v12523_v45 = vpop.eup %12522  ;;  %12542 = vrcp.f32 %v8152_v2  ;;  %v8173_v54 = vmul.f32 %v12521_v58, %v16606_v5  ;;  %v16939_v50 = vmul.f32 %v19365_v42, %v16502_v44  ;;  %v16943_v46 = vmul.f32 %v19366_v56, %v16502_v44  ;;  %v19368_v2 = vld [vmem:[#allocation135_spill] sm:$0xff]  ;;  %v19370_v56 = vld [vmem:[#allocation136_spill] sm:$0xff] }
 0x521   :  { %v12525_v8 = vpop.eup %12524  ;;  %12544 = vrcp.f32 %v8153_v34  ;;  %v8174_v11 = vmul.f32 %v12523_v45, %v16610_v17  ;;  %v16948_v38 = vmul.f32 %v19367_v48, %v16502_v44  ;;  %v16952_v27 = vmul.f32 %v19368_v2, %v16502_v44  ;;  %v19373_v2 = vld [vmem:[#allocation137_spill] sm:$0xff] }
 0x522   :  { %v12527_v5 = vpop.eup %12526  ;;  %12546 = vrcp.f32 %v8154_v20  ;;  %v8175_v58 = vmul.f32 %v12525_v8, %v16614_v49  ;;  %v16956_v42 = vmul.f32 %v15799_v21, %v8173_v54  ;;  %v16960_v34 = vmul.f32 %v19370_v56, %v16502_v44  ;;  %v19376_v8 = vld [vmem:[#allocation138_spill] sm:$0xff] }
 0x523   :  { %v12529_v17 = vpop.eup %12528  ;;  %12548 = vrcp.f32 %v8155_v22  ;;  %v8176_v45 = vmul.f32 %v12527_v5, %v16618_v61  ;;  %v16964_v48 = vmul.f32 %v19314_v18, %v8174_v11  ;;  %v16968_v6 = vmul.f32 %v19373_v2, %v16502_v44 }
 0x524   :  { %19369 = vst [vmem:[#allocation184_spill] sm:$0xff] %v16956_v42  ;;  %19371 = vst [vmem:[#allocation121_spill] sm:$0xff] %v16960_v34  ;;  %v12531_v20 = vpop.eup %12530  ;;  %12550 = vrcp.f32 %v8156_v31  ;;  %v8177_v49 = vmul.f32 %v12529_v17, %v16622_v57  ;;  %v16972_v54 = vmul.f32 %v19319_v29, %v8175_v58  ;;  %v16976_v56 = vmul.f32 %v19376_v8, %v16502_v44  ;;  %v19380_v17 = vld [vmem:[#allocation139_spill] sm:$0xff] }
 0x525   :  { %19372 = vst [vmem:[#allocation185_spill] sm:$0xff] %v16964_v48  ;;  %19374 = vst [vmem:[#allocation122_spill] sm:$0xff] %v16968_v6  ;;  %v12533_v22 = vpop.eup %12532  ;;  %v8178_v61 = vmul.f32 %v12531_v20, %v16626_v60  ;;  %v16980_v11 = vmul.f32 %v19324_v62, %v8176_v45  ;;  %12552 = vpow2.f32 %v16894_v63  ;;  %v16992_v2 = vmul.f32 %v19380_v17, %v16502_v44 }
 0x526   :  { %19375 = vst [vmem:[#allocation186_spill] sm:$0xff] %v16972_v54  ;;  %19377 = vst [vmem:[#allocation123_spill] sm:$0xff] %v16976_v56  ;;  %v12535_v31 = vpop.eup %12534  ;;  %v8179_v57 = vmul.f32 %v12533_v22, %v16630_v4  ;;  %v16987_v58 = vmul.f32 %v19327_v7, %v8177_v49  ;;  %12554 = vpow2.f32 %v16898_v25  ;;  %v19383_v49 = vld [vmem:[#allocation189_spill] sm:$0xff]  ;;  %v19385_v22 = vld [vmem:[#allocation140_spill] sm:$0xff] }
 0x527   :  { %19378 = vst [vmem:[#allocation187_spill] sm:$0xff] %v16980_v11  ;;  %19381 = vst [vmem:[#allocation188_spill] sm:$0xff] %v16992_v2  ;;  %v12537_v60 = vpop.eup %12536  ;;  %v8180_v45 = vmul.f32 %v12535_v31, %v16634_v41  ;;  %v16996_v20 = vmul.f32 %v19330_v23, %v8178_v61  ;;  %12556 = vpow2.f32 %v16902_v28  ;;  %v17008_v17 = vmul.f32 %v19385_v22, %v16502_v44  ;;  %v19387_v61 = vld [vmem:[#allocation190_spill] sm:$0xff]  ;;  %v19391_v22 = vld [vmem:[#allocation141_spill] sm:$0xff] }
 0x528   :  { %19379 = vst [vmem:[#allocation124_spill] sm:$0xff] %v16987_v58  ;;  %v12539_v4 = vpop.eup %12538  ;;  %v8181_v8 = vmul.f32 %v12537_v60, %v19383_v49  ;;  %v17003_v25 = vmul.f32 %v19333_v14, %v8179_v57  ;;  %12558 = vpow2.f32 %v16906_v24  ;;  %v19389_v57 = vld [vmem:[#allocation191_spill] sm:$0xff]  ;;  %v17024_v63 = vmul.f32 %v19391_v22, %v16502_v44  ;;  %v19397_v22 = vld [vmem:[#allocation142_spill] sm:$0xff] }
 0x529   :  { %19382 = vst [vmem:[#allocation125_spill] sm:$0xff] %v16996_v20  ;;  %19386 = vst [vmem:[#allocation132_spill] sm:$0xff] %v17008_v17  ;;  %v12541_v41 = vpop.eup %12540  ;;  %v8182_v31 = vmul.f32 %v12539_v4, %v19387_v61  ;;  %v17012_v5 = vmul.f32 %v19336_v30, %v8180_v45  ;;  %12560 = vpow2.f32 %v16908_v39  ;;  %v19393_v45 = vld [vmem:[#allocation192_spill] sm:$0xff]  ;;  %v17040_v28 = vmul.f32 %v19397_v22, %v16502_v44  ;;  %v19403_v22 = vld [vmem:[#allocation82_spill] sm:$0xff] }
 0x52a   :  { %19384 = vst [vmem:[#allocation131_spill] sm:$0xff] %v17003_v25  ;;  %v12543_v60 = vpop.eup %12542  ;;  %v8183_v49 = vmul.f32 %v12541_v41, %v19389_v57  ;;  %v17019_v24 = vmul.f32 %v19339_v19, %v8181_v8  ;;  %12562 = vpow2.f32 %v16910_v32  ;;  %19392 = vst [vmem:[#allocation135_spill] sm:$0xff] %v17024_v63  ;;  %v19395_v8 = vld [vmem:[#allocation193_spill] sm:$0xff]  ;;  %v17056_v39 = vmul.f32 %v19403_v22, %v16502_v44 }
 0x52b   :  { %19388 = vst [vmem:[#allocation133_spill] sm:$0xff] %v17012_v5  ;;  %v12545_v4 = vpop.eup %12544  ;;  %v8184_v61 = vmul.f32 %v12543_v60, %v19393_v45  ;;  %v17028_v54 = vmul.f32 %v19342_v26, %v8182_v31  ;;  %12564 = vpow2.f32 %v16912_v53  ;;  %19398 = vst [vmem:[#allocation138_spill] sm:$0xff] %v17040_v28  ;;  %v19399_v31 = vld [vmem:[#allocation194_spill] sm:$0xff]  ;;  %v8471_v5 = vsub.f32 0.0, %v17024_v63 }
 0x52c   :  { %19390 = vst [vmem:[#allocation134_spill] sm:$0xff] %v17019_v24  ;;  %v12547_v41 = vpop.eup %12546  ;;  %v8185_v57 = vmul.f32 %v12545_v4, %v19395_v8  ;;  %v17035_v32 = vmul.f32 %v19345_v40, %v8183_v49  ;;  %12566 = vpow2.f32 %v16914_v52  ;;  %v19401_v49 = vld [vmem:[#allocation195_spill] sm:$0xff]  ;;  %19404 = vst [vmem:[#allocation140_spill] sm:$0xff] %v17056_v39  ;;  %v8469_v24 = vsub.f32 0.0, %v16992_v2 }
 0x52d   :  { %19394 = vst [vmem:[#allocation136_spill] sm:$0xff] %v17028_v54  ;;  %v12549_v60 = vpop.eup %12548  ;;  %v8186_v45 = vmul.f32 %v12547_v41, %v19399_v31  ;;  %v17044_v58 = vmul.f32 %v19348_v3, %v8184_v61  ;;  %12568 = vpow2.f32 %v16916_v13  ;;  %v19405_v61 = vld [vmem:[#allocation196_spill] sm:$0xff]  ;;  %v8470_v54 = vsub.f32 0.0, %v17008_v17 }
 0x52e   :  { %19396 = vst [vmem:[#allocation137_spill] sm:$0xff] %v17035_v32  ;;  %v12551_v4 = vpop.eup %12550  ;;  %v8187_v8 = vmul.f32 %v12549_v60, %v19401_v49  ;;  %v17051_v52 = vmul.f32 %v19351_v51, %v8185_v57  ;;  %12570 = vpow2.f32 %v16918_v36  ;;  %v19408_v49 = vld [vmem:[#allocation143_spill] sm:$0xff]  ;;  %v8465_v32 = vsub.f32 0.0, %v16952_v27 }
 0x52f   :  { %19400 = vst [vmem:[#allocation139_spill] sm:$0xff] %v17044_v58  ;;  %v12553_v41 = vpop.eup %12552  ;;  %v8188_v31 = vmul.f32 %v12551_v4, %v19405_v61  ;;  %v17060_v25 = vmul.f32 %v19354_v10, %v8186_v45  ;;  %12572 = vpow2.f32 %v16920_v15  ;;  %v17071_v22 = vmul.f32 %v19408_v49, %v16502_v44  ;;  %v19413_v49 = vld [vmem:[#allocation144_spill] sm:$0xff] }
 0x530   :  { %19402 = vst [vmem:[#allocation189_spill] sm:$0xff] %v17051_v52  ;;  %v12555_v60 = vpop.eup %12554  ;;  %v17066_v57 = vmul.f32 %v19356_v43, %v8187_v8  ;;  %12574 = vpow2.f32 %v16922_v33  ;;  %v8325_v36 = vadd.f32 1.0, %v12553_v41  ;;  %v19411_v33 = vld [vmem:[#allocation85_spill] sm:$0xff]  ;;  %v17086_v53 = vmul.f32 %v19413_v49, %v16502_v44 }
 0x531   :  { %19406 = vst [vmem:[#allocation190_spill] sm:$0xff] %v17060_v25  ;;  %19409 = vst [vmem:[#allocation141_spill] sm:$0xff] %v17071_v22  ;;  %v12557_v4 = vpop.eup %12556  ;;  %v17074_v45 = vmul.f32 %v19358_v12, %v8188_v31  ;;  %12576 = vpow2.f32 %v16924_v55  ;;  %v8326_v15 = vadd.f32 1.0, %v12555_v60  ;;  %v17082_v41 = vmul.f32 %v19411_v33, %v16502_v44 }
 0x532   :  { %19407 = vst [vmem:[#allocation191_spill] sm:$0xff] %v17066_v57  ;;  %v12559_v13 = vpop.eup %12558  ;;  %12578 = vpow2.f32 %v16926_v59  ;;  %v8327_v8 = vadd.f32 1.0, %v12557_v4  ;;  %v8461_v60 = vsub.f32 0.0, %v16934_v47  ;;  %v8462_v4 = vsub.f32 0.0, %v16939_v50 }
 0x533   :  { %19410 = vst [vmem:[#allocation192_spill] sm:$0xff] %v17074_v45  ;;  %19412 = vst [vmem:[#allocation193_spill] sm:$0xff] %v17082_v41  ;;  %v12561_v31 = vpop.eup %12560  ;;  %12580 = vpow2.f32 %v16928_v9  ;;  %v8328_v55 = vadd.f32 1.0, %v12559_v13  ;;  %v8463_v33 = vsub.f32 0.0, %v16943_v46  ;;  %v8464_v25 = vsub.f32 0.0, %v16948_v38 }
 0x534   :  { %v12563_v61 = vpop.eup %12562  ;;  %12582 = vpow2.f32 %v16930_v37  ;;  %v8329_v59 = vadd.f32 1.0, %v12561_v31  ;;  %v8466_v13 = vsub.f32 0.0, %v16960_v34  ;;  %v8467_v45 = vsub.f32 0.0, %v16968_v6 }
 0x535   :  { %v12565_v52 = vpop.eup %12564  ;;  %v8330_v49 = vadd.f32 1.0, %v12563_v61  ;;  %12584 = vrcp.f32 %v8325_v36  ;;  %v8468_v58 = vsub.f32 0.0, %v16976_v56  ;;  %v8472_v20 = vsub.f32 0.0, %v17040_v28 }
 0x536   :  { %v12567_v57 = vpop.eup %12566  ;;  %v8331_v9 = vadd.f32 1.0, %v12565_v52  ;;  %12586 = vrcp.f32 %v8326_v15  ;;  %v8473_v11 = vsub.f32 0.0, %v17056_v39  ;;  %v8474_v42 = vsub.f32 0.0, %v17071_v22 }
 0x537   :  { %v12569_v37 = vpop.eup %12568  ;;  %v8332_v31 = vadd.f32 1.0, %v12567_v57  ;;  %12588 = vrcp.f32 %v8327_v8  ;;  %v8475_v48 = vsub.f32 0.0, %v17082_v41  ;;  %v8476_v17 = vsub.f32 0.0, %v17086_v53 }
 0x538   :  { %v12571_v61 = vpop.eup %12570  ;;  %v8333_v36 = vadd.f32 1.0, %v12569_v37  ;;  %12590 = vrcp.f32 %v8328_v55  ;;  %v8477_v63 = vmul.f32 1.442695, %v8461_v60  ;;  %v8481_v28 = vmul.f32 1.442695, %v8463_v33 }
 0x539   :  { %v12573_v52 = vpop.eup %12572  ;;  %v8334_v15 = vadd.f32 1.0, %v12571_v61  ;;  %12592 = vrcp.f32 %v8329_v59  ;;  %v8479_v59 = vmul.f32 1.442695, %v8462_v4  ;;  %v8487_v41 = vmul.f32 1.442695, %v8466_v13 }
 0x53a   :  { %v12575_v57 = vpop.eup %12574  ;;  %v8335_v8 = vadd.f32 1.0, %v12573_v52  ;;  %12594 = vrcp.f32 %v8330_v49  ;;  %v8483_v52 = vmul.f32 1.442695, %v8464_v25  ;;  %v8485_v49 = vmul.f32 1.442695, %v8465_v32 }
 0x53b   :  { %v12577_v37 = vpop.eup %12576  ;;  %v8336_v55 = vadd.f32 1.0, %v12575_v57  ;;  %12596 = vrcp.f32 %v8331_v9  ;;  %v17108_v34 = vmul.f32 1.442695, %v8467_v45  ;;  %v17110_v60 = vmul.f32 1.442695, %v8468_v58 }
 0x53c   :  { %v12579_v2 = vpop.eup %12578  ;;  %v8337_v61 = vadd.f32 1.0, %v12577_v37  ;;  %12598 = vrcp.f32 %v8332_v31  ;;  %v17112_v37 = vmul.f32 1.442695, %v8469_v24  ;;  %v17115_v33 = vmul.f32 1.442695, %v8470_v54 }
 0x53d   :  { %v12581_v56 = vpop.eup %12580  ;;  %v8338_v39 = vadd.f32 1.0, %v12579_v2  ;;  %12600 = vrcp.f32 %v8333_v36  ;;  %v17117_v25 = vmul.f32 1.442695, %v8471_v5  ;;  %v17120_v45 = vmul.f32 1.442695, %v8472_v20  ;;  %v19416_v20 = vld [vmem:[#allocation197_spill] sm:$0xff] }
 0x53e   :  { %v12583_v6 = vpop.eup %12582  ;;  %v8339_v22 = vadd.f32 1.0, %v12581_v56  ;;  %12602 = vrcp.f32 %v8334_v15  ;;  %v17140_v36 = vmul.f32 1.442695, %v8476_v17  ;;  %v19418_v15 = vld [vmem:[#allocation198_spill] sm:$0xff]  ;;  %v19422_v17 = vld [vmem:[#allocation87_spill] sm:$0xff] }
 0x53f   :  { %v12585_v9 = vpop.eup %12584  ;;  %v8340_v57 = vadd.f32 1.0, %v12583_v6  ;;  %12604 = vrcp.f32 %v8335_v8  ;;  %v17122_v6 = vmul.f32 1.442695, %v8473_v11 }
 0x540   :  { %v12587_v4 = vpop.eup %12586  ;;  %12606 = vrcp.f32 %v8336_v55  ;;  %v8357_v2 = vmul.f32 %v12585_v9, %v16718_v35  ;;  %v17128_v35 = vmul.f32 1.442695, %v8474_v42  ;;  %v19420_v55 = vld [vmem:[#allocation199_spill] sm:$0xff] }
 0x541   :  { %v12589_v56 = vpop.eup %12588  ;;  %12608 = vrcp.f32 %v8337_v61  ;;  %v8358_v32 = vmul.f32 %v12587_v4, %v16722_v16  ;;  %v17134_v16 = vmul.f32 1.442695, %v8475_v48 }
 0x542   :  { %v12591_v58 = vpop.eup %12590  ;;  %12610 = vrcp.f32 %v8338_v39  ;;  %v8359_v24 = vmul.f32 %v12589_v56, %v16726_v1  ;;  %v17126_v13 = vmul.f32 %v15799_v21, %v8357_v2  ;;  %v19423_v2 = vld [vmem:[#allocation200_spill] sm:$0xff] }
 0x543   :  { %v12593_v54 = vpop.eup %12592  ;;  %12612 = vrcp.f32 %v8339_v22  ;;  %v8360_v5 = vmul.f32 %v12591_v58, %v16730_v0  ;;  %v17132_v31 = vmul.f32 %v19314_v18, %v8358_v32 }
 0x544   :  { %19414 = vst [vmem:[#allocation142_spill] sm:$0xff] %v17126_v13  ;;  %v12595_v11 = vpop.eup %12594  ;;  %12614 = vrcp.f32 %v8340_v57  ;;  %v8361_v39 = vmul.f32 %v12593_v54, %v19416_v20  ;;  %v17138_v1 = vmul.f32 %v19319_v29, %v8359_v24  ;;  %v17154_v57 = vmul.f32 %v19422_v17, %v16502_v44  ;;  %v19425_v24 = vld [vmem:[#allocation201_spill] sm:$0xff] }
 0x545   :  { %19415 = vst [vmem:[#allocation194_spill] sm:$0xff] %v17132_v31  ;;  %v12597_v42 = vpop.eup %12596  ;;  %v8362_v8 = vmul.f32 %v12595_v11, %v19418_v15  ;;  %v17144_v22 = vmul.f32 %v19324_v62, %v8360_v5  ;;  %12616 = vpow2.f32 %v8477_v63 }
 0x546   :  { %19417 = vst [vmem:[#allocation195_spill] sm:$0xff] %v17138_v1  ;;  %v12599_v48 = vpop.eup %12598  ;;  %v8363_v61 = vmul.f32 %v12597_v42, %v19420_v55  ;;  %v17150_v9 = vmul.f32 %v19327_v7, %v8361_v39  ;;  %12618 = vpow2.f32 %v8479_v59  ;;  %v19427_v59 = vld [vmem:[#allocation145_spill] sm:$0xff]  ;;  %v19428_v39 = vld [vmem:[#allocation202_spill] sm:$0xff] }
 0x547   :  { %19419 = vst [vmem:[#allocation82_spill] sm:$0xff] %v17144_v22  ;;  %v12601_v4 = vpop.eup %12600  ;;  %v8364_v56 = vmul.f32 %v12599_v48, %v19423_v2  ;;  %v17158_v32 = vmul.f32 %v19330_v23, %v8362_v8  ;;  %12620 = vpow2.f32 %v8481_v28  ;;  %v17168_v11 = vmul.f32 %v19427_v59, %v16502_v44  ;;  %v19430_v48 = vld [vmem:[#allocation203_spill] sm:$0xff]  ;;  %v19433_v2 = vld [vmem:[#allocation204_spill] sm:$0xff]  ;;  %v19435_v59 = vld [vmem:[#allocation205_spill] sm:$0xff] }
 0x548   :  { %19421 = vst [vmem:[#allocation196_spill] sm:$0xff] %v17150_v9  ;;  %v12603_v58 = vpop.eup %12602  ;;  %v8365_v54 = vmul.f32 %v12601_v4, %v19425_v24  ;;  %v17164_v5 = vmul.f32 %v19333_v14, %v8363_v61  ;;  %12622 = vpow2.f32 %v8483_v52  ;;  %v19432_v52 = vld [vmem:[#allocation89_spill] sm:$0xff] }
 0x549   :  { %19424 = vst [vmem:[#allocation143_spill] sm:$0xff] %v17158_v32  ;;  %v12605_v20 = vpop.eup %12604  ;;  %v8366_v42 = vmul.f32 %v12603_v58, %v19428_v39  ;;  %v17172_v15 = vmul.f32 %v19336_v30, %v8364_v56  ;;  %12624 = vpow2.f32 %v8485_v49  ;;  %v17182_v17 = vmul.f32 %v19432_v52, %v16502_v44 }
 0x54a   :  { %19426 = vst [vmem:[#allocation85_spill] sm:$0xff] %v17164_v5  ;;  %v12607_v8 = vpop.eup %12606  ;;  %v8367_v55 = vmul.f32 %v12605_v20, %v19430_v48  ;;  %v17178_v61 = vmul.f32 %v19339_v19, %v8365_v54  ;;  %12626 = vpow2.f32 %v8487_v41  ;;  %v19437_v20 = vld [vmem:[#allocation146_spill] sm:$0xff] }
 0x54b   :  { %19429 = vst [vmem:[#allocation144_spill] sm:$0xff] %v17172_v15  ;;  %v12609_v4 = vpop.eup %12608  ;;  %v8368_v58 = vmul.f32 %v12607_v8, %v19433_v2  ;;  %v17186_v56 = vmul.f32 %v19342_v26, %v8366_v42  ;;  %12628 = vpow2.f32 %v17108_v34  ;;  %v17198_v39 = vmul.f32 %v19437_v20, %v16502_v44  ;;  %v19438_v42 = vld [vmem:[#allocation128_spill] sm:$0xff] }
 0x54c   :  { %19431 = vst [vmem:[#allocation197_spill] sm:$0xff] %v17178_v61  ;;  %v12611_v24 = vpop.eup %12610  ;;  %v8369_v54 = vmul.f32 %v12609_v4, %v19435_v59  ;;  %v17193_v41 = vmul.f32 %v19345_v40, %v8367_v55  ;;  %12630 = vpow2.f32 %v17110_v60  ;;  %v19440_v55 = vld [vmem:[#allocation129_spill] sm:$0xff]  ;;  %v19442_v59 = vld [vmem:[#allocation90_spill] sm:$0xff] }
 0x54d   :  { %19434 = vst [vmem:[#allocation198_spill] sm:$0xff] %v17186_v56  ;;  %v12613_v8 = vpop.eup %12612  ;;  %v8370_v48 = vmul.f32 %v12611_v24, %v19438_v42  ;;  %v17202_v52 = vmul.f32 %v19348_v3, %v8368_v58  ;;  %12632 = vpow2.f32 %v17112_v37  ;;  %v17214_v20 = vmul.f32 %v19442_v59, %v16502_v44  ;;  %v19443_v58 = vld [vmem:[#allocation114_spill] sm:$0xff] }
 0x54e   :  { %19436 = vst [vmem:[#allocation199_spill] sm:$0xff] %v17193_v41  ;;  %v12615_v4 = vpop.eup %12614  ;;  %v8371_v2 = vmul.f32 %v12613_v8, %v19440_v55  ;;  %v17209_v60 = vmul.f32 %v19351_v51, %v8369_v54  ;;  %12634 = vpow2.f32 %v17115_v33  ;;  %v19446_v55 = vld [vmem:[#allocation147_spill] sm:$0xff] }
 0x54f   :  { %19439 = vst [vmem:[#allocation87_spill] sm:$0xff] %v17202_v52  ;;  %v12617_v24 = vpop.eup %12616  ;;  %v8372_v42 = vmul.f32 %v12615_v4, %v19443_v58  ;;  %v17218_v49 = vmul.f32 %v19354_v10, %v8370_v48  ;;  %12636 = vpow2.f32 %v17117_v25  ;;  %v17229_v59 = vmul.f32 %v19446_v55, %v16502_v44  ;;  %v19451_v55 = vld [vmem:[#allocation148_spill] sm:$0xff] }
 0x550   :  { %19441 = vst [vmem:[#allocation200_spill] sm:$0xff] %v17209_v60  ;;  %v12619_v8 = vpop.eup %12618  ;;  %v17224_v54 = vmul.f32 %v19356_v43, %v8371_v2  ;;  %12638 = vpow2.f32 %v17120_v45  ;;  %v8509_v33 = vadd.f32 1.0, %v12617_v24  ;;  %v19449_v45 = vld [vmem:[#allocation91_spill] sm:$0xff]  ;;  %v17244_v34 = vmul.f32 %v19451_v55, %v16502_v44  ;;  %v19457_v55 = vld [vmem:[#allocation93_spill] sm:$0xff] }
 0x551   :  { %19444 = vst [vmem:[#allocation201_spill] sm:$0xff] %v17218_v49  ;;  %19447 = vst [vmem:[#allocation202_spill] sm:$0xff] %v17229_v59  ;;  %v12621_v4 = vpop.eup %12620  ;;  %v17232_v48 = vmul.f32 %v19358_v12, %v8372_v42  ;;  %12640 = vpow2.f32 %v17122_v6  ;;  %v8510_v25 = vadd.f32 1.0, %v12619_v8  ;;  %v17240_v24 = vmul.f32 %v19449_v45, %v16502_v44  ;;  %v19453_v8 = vld [vmem:[#allocation92_spill] sm:$0xff]  ;;  %v19455_v45 = vld [vmem:[#allocation149_spill] sm:$0xff] }
 0x552   :  { %19445 = vst [vmem:[#allocation145_spill] sm:$0xff] %v17224_v54  ;;  %v12623_v37 = vpop.eup %12622  ;;  %12642 = vpow2.f32 %v17128_v35  ;;  %v8511_v2 = vadd.f32 1.0, %v12621_v4  ;;  %19452 = vst [vmem:[#allocation204_spill] sm:$0xff] %v17244_v34  ;;  %v17251_v58 = vmul.f32 %v19453_v8, %v16502_v44  ;;  %v17256_v63 = vmul.f32 %v19455_v45, %v16502_v44  ;;  %v19459_v8 = vld [vmem:[#allocation94_spill] sm:$0xff]  ;;  %v19460_v45 = vld [vmem:[#allocation151_spill] sm:$0xff] }
 0x553   :  { %19448 = vst [vmem:[#allocation203_spill] sm:$0xff] %v17232_v48  ;;  %19450 = vst [vmem:[#allocation89_spill] sm:$0xff] %v17240_v24  ;;  %v12625_v42 = vpop.eup %12624  ;;  %12644 = vpow2.f32 %v17134_v16  ;;  %v8512_v6 = vadd.f32 1.0, %v12623_v37  ;;  %v17260_v0 = vmul.f32 %v19457_v55, %v16502_v44  ;;  %v19458_v16 = vld [vmem:[#allocation150_spill] sm:$0xff]  ;;  %v17268_v48 = vmul.f32 %v19459_v8, %v16502_v44  ;;  %v19461_v55 = vld [vmem:[#allocation95_spill] sm:$0xff] }
 0x554   :  { %19454 = vst [vmem:[#allocation205_spill] sm:$0xff] %v17251_v58  ;;  %v12627_v35 = vpop.eup %12626  ;;  %12646 = vpow2.f32 %v17140_v36  ;;  %v8513_v4 = vadd.f32 1.0, %v12625_v42  ;;  %19456 = vst [vmem:[#allocation146_spill] sm:$0xff] %v17256_v63  ;;  %v17264_v37 = vmul.f32 %v19458_v16, %v16502_v44  ;;  %v17272_v60 = vmul.f32 %v19460_v45, %v16502_v44  ;;  %v19462_v16 = vld [vmem:[#allocation152_spill] sm:$0xff] }
 0x555   :  { %v12629_v28 = vpop.eup %12628  ;;  %v8514_v54 = vadd.f32 1.0, %v12627_v35  ;;  %12648 = vrcp.f32 %v8509_v33  ;;  %v17276_v49 = vmul.f32 %v19461_v55, %v16502_v44  ;;  %v17280_v41 = vmul.f32 %v19462_v16, %v16502_v44 }
 0x556   :  { %v12631_v36 = vpop.eup %12630  ;;  %v8515_v42 = vadd.f32 1.0, %v12629_v28  ;;  %12650 = vrcp.f32 %v8510_v25  ;;  %v8645_v8 = vsub.f32 0.0, %v17154_v57  ;;  %v8646_v25 = vsub.f32 0.0, %v17168_v11 }
 0x557   :  { %v12633_v33 = vpop.eup %12632  ;;  %v8516_v35 = vadd.f32 1.0, %v12631_v36  ;;  %12652 = vrcp.f32 %v8511_v2  ;;  %v8647_v45 = vsub.f32 0.0, %v17182_v17  ;;  %v8648_v55 = vsub.f32 0.0, %v17198_v39 }
 0x558   :  { %v12635_v52 = vpop.eup %12634  ;;  %v8517_v28 = vadd.f32 1.0, %v12633_v33  ;;  %12654 = vrcp.f32 %v8512_v6  ;;  %v8649_v2 = vsub.f32 0.0, %v17214_v20  ;;  %v8650_v16 = vsub.f32 0.0, %v17229_v59 }
 0x559   :  { %v12637_v61 = vpop.eup %12636  ;;  %v8518_v56 = vadd.f32 1.0, %v12635_v52  ;;  %12656 = vrcp.f32 %v8513_v4  ;;  %v8651_v15 = vsub.f32 0.0, %v17240_v24  ;;  %v8652_v9 = vsub.f32 0.0, %v17244_v34 }
 0x55a   :  { %v12639_v36 = vpop.eup %12638  ;;  %v8519_v5 = vadd.f32 1.0, %v12637_v61  ;;  %12658 = vrcp.f32 %v8514_v54  ;;  %v8653_v32 = vsub.f32 0.0, %v17251_v58  ;;  %v8654_v1 = vsub.f32 0.0, %v17256_v63 }
 0x55b   :  { %v12641_v33 = vpop.eup %12640  ;;  %v8520_v6 = vadd.f32 1.0, %v12639_v36  ;;  %12660 = vrcp.f32 %v8515_v42  ;;  %v8659_v58 = vsub.f32 0.0, %v17276_v49  ;;  %v8661_v22 = vmul.f32 1.442695, %v8645_v8 }
 0x55c   :  { %v12643_v52 = vpop.eup %12642  ;;  %v8521_v4 = vadd.f32 1.0, %v12641_v33  ;;  %12662 = vrcp.f32 %v8516_v35  ;;  %v8665_v13 = vmul.f32 1.442695, %v8647_v45  ;;  %v8669_v34 = vmul.f32 1.442695, %v8649_v2 }
 0x55d   :  { %v12645_v61 = vpop.eup %12644  ;;  %v8522_v54 = vadd.f32 1.0, %v12643_v52  ;;  %12664 = vrcp.f32 %v8517_v28  ;;  %v8663_v52 = vmul.f32 1.442695, %v8646_v25  ;;  %v8671_v8 = vmul.f32 1.442695, %v8650_v16 }
 0x55e   :  { %v12647_v36 = vpop.eup %12646  ;;  %v8523_v42 = vadd.f32 1.0, %v12645_v61  ;;  %12666 = vrcp.f32 %v8518_v56  ;;  %v8667_v61 = vmul.f32 1.442695, %v8648_v55  ;;  %v8673_v45 = vmul.f32 1.442695, %v8651_v15  ;;  %v19466_v55 = vld [vmem:[#allocation121_spill] sm:$0xff] }
 0x55f   :  { %v12649_v33 = vpop.eup %12648  ;;  %v8524_v35 = vadd.f32 1.0, %v12647_v36  ;;  %12668 = vrcp.f32 %v8519_v5  ;;  %v19468_v15 = vld [vmem:[#allocation122_spill] sm:$0xff] }
 0x560   :  { %v12651_v24 = vpop.eup %12650  ;;  %12670 = vrcp.f32 %v8520_v6  ;;  %v8541_v28 = vmul.f32 %v12649_v33, %v16934_v47 }
 0x561   :  { %v12653_v31 = vpop.eup %12652  ;;  %12672 = vrcp.f32 %v8521_v4  ;;  %v8542_v56 = vmul.f32 %v12651_v24, %v16939_v50 }
 0x562   :  { %v12655_v59 = vpop.eup %12654  ;;  %12674 = vrcp.f32 %v8522_v54  ;;  %v8543_v36 = vmul.f32 %v12653_v31, %v16943_v46  ;;  %v17302_v5 = vmul.f32 %v15799_v21, %v8541_v28  ;;  %v8675_v46 = vmul.f32 1.442695, %v8652_v9  ;;  %v19470_v9 = vld [vmem:[#allocation123_spill] sm:$0xff] }
 0x563   :  { %v12657_v63 = vpop.eup %12656  ;;  %12676 = vrcp.f32 %v8523_v42  ;;  %v8544_v47 = vmul.f32 %v12655_v59, %v16948_v38  ;;  %v17306_v25 = vmul.f32 %v19314_v18, %v8542_v56 }
 0x564   :  { %19463 = vst [vmem:[#allocation128_spill] sm:$0xff] %v17302_v5  ;;  %v12659_v6 = vpop.eup %12658  ;;  %12678 = vrcp.f32 %v8524_v35  ;;  %v8545_v50 = vmul.f32 %v12657_v63, %v16952_v27  ;;  %v17310_v24 = vmul.f32 %v19319_v29, %v8543_v36  ;;  %v8677_v27 = vmul.f32 1.442695, %v8653_v32  ;;  %v19474_v32 = vld [vmem:[#allocation132_spill] sm:$0xff] }
 0x565   :  { %19464 = vst [vmem:[#allocation129_spill] sm:$0xff] %v17306_v25  ;;  %v12661_v31 = vpop.eup %12660  ;;  %v8546_v2 = vmul.f32 %v12659_v6, %v19466_v55  ;;  %v17314_v16 = vmul.f32 %v19324_v62, %v8544_v47  ;;  %12680 = vpow2.f32 %v8661_v22  ;;  %v19472_v22 = vld [vmem:[#allocation188_spill] sm:$0xff]  ;;  %v8679_v47 = vmul.f32 1.442695, %v8654_v1 }
 0x566   :  { %19465 = vst [vmem:[#allocation90_spill] sm:$0xff] %v17310_v24  ;;  %v12663_v59 = vpop.eup %12662  ;;  %v8547_v4 = vmul.f32 %v12661_v31, %v19468_v15  ;;  %v17320_v54 = vmul.f32 %v19327_v7, %v8545_v50  ;;  %12682 = vpow2.f32 %v8663_v52 }
 0x567   :  { %19467 = vst [vmem:[#allocation114_spill] sm:$0xff] %v17314_v16  ;;  %v12665_v63 = vpop.eup %12664  ;;  %v8548_v42 = vmul.f32 %v12663_v59, %v19470_v9  ;;  %v17324_v33 = vmul.f32 %v19330_v23, %v8546_v2  ;;  %12684 = vpow2.f32 %v8665_v13  ;;  %v19476_v13 = vld [vmem:[#allocation135_spill] sm:$0xff] }
 0x568   :  { %19469 = vst [vmem:[#allocation147_spill] sm:$0xff] %v17320_v54  ;;  %v12667_v28 = vpop.eup %12666  ;;  %v8549_v56 = vmul.f32 %v12665_v63, %v19472_v22  ;;  %v17330_v36 = vmul.f32 %v19333_v14, %v8547_v4  ;;  %12686 = vpow2.f32 %v8667_v61  ;;  %v19478_v61 = vsub.f32 0.0, %v17260_v0  ;;  %v19479_v4 = vld [vmem:[#allocation138_spill] sm:$0xff] }
 0x569   :  { %19471 = vst [vmem:[#allocation91_spill] sm:$0xff] %v17324_v33  ;;  %v12669_v52 = vpop.eup %12668  ;;  %v8550_v6 = vmul.f32 %v12667_v28, %v19474_v32  ;;  %v17334_v50 = vmul.f32 %v19336_v30, %v8548_v42  ;;  %12688 = vpow2.f32 %v8669_v34  ;;  %v19481_v28 = vld [vmem:[#allocation140_spill] sm:$0xff] }
 0x56a   :  { %19473 = vst [vmem:[#allocation148_spill] sm:$0xff] %v17330_v36  ;;  %v12671_v55 = vpop.eup %12670  ;;  %v8551_v2 = vmul.f32 %v12669_v52, %v19476_v13  ;;  %v17340_v59 = vmul.f32 %v19339_v19, %v8549_v56  ;;  %12690 = vpow2.f32 %v8671_v8  ;;  %v8681_v1 = vmul.f32 1.442695, %v19478_v61  ;;  %v19484_v13 = vld [vmem:[#allocation141_spill] sm:$0xff] }
 0x56b   :  { %19475 = vst [vmem:[#allocation92_spill] sm:$0xff] %v17334_v50  ;;  %v12673_v15 = vpop.eup %12672  ;;  %v8552_v63 = vmul.f32 %v12671_v55, %v19479_v4  ;;  %v17346_v9 = vmul.f32 %v19342_v26, %v8550_v6  ;;  %12692 = vpow2.f32 %v8673_v45  ;;  %v19483_v8 = vsub.f32 0.0, %v17264_v37  ;;  %v19486_v4 = vld [vmem:[#allocation193_spill] sm:$0xff] }
 0x56c   :  { %19477 = vst [vmem:[#allocation149_spill] sm:$0xff] %v17340_v59  ;;  %v12675_v34 = vpop.eup %12674  ;;  %v8553_v22 = vmul.f32 %v12673_v15, %v19481_v28  ;;  %v17352_v56 = vmul.f32 %v19345_v40, %v8551_v2  ;;  %12694 = vpow2.f32 %v8675_v46  ;;  %v19488_v46 = vsub.f32 0.0, %v17268_v48 }
 0x56d   :  { %19480 = vst [vmem:[#allocation93_spill] sm:$0xff] %v17346_v9  ;;  %v8683_v52 = vmul.f32 1.442695, %v19483_v8  ;;  %v12677_v32 = vpop.eup %12676  ;;  %v8554_v55 = vmul.f32 %v12675_v34, %v19484_v13  ;;  %v17358_v6 = vmul.f32 %v19348_v3, %v8552_v63  ;;  %12696 = vpow2.f32 %v8677_v27 }
 0x56e   :  { %19482 = vst [vmem:[#allocation150_spill] sm:$0xff] %v17352_v56  ;;  %v12679_v45 = vpop.eup %12678  ;;  %v8555_v15 = vmul.f32 %v12677_v32, %v19486_v4  ;;  %v17364_v2 = vmul.f32 %v19351_v51, %v8553_v22  ;;  %12698 = vpow2.f32 %v8679_v47  ;;  %v8685_v28 = vmul.f32 1.442695, %v19488_v46 }
 0x56f   :  { %19485 = vst [vmem:[#allocation94_spill] sm:$0xff] %v17358_v6  ;;  %v12681_v8 = vpop.eup %12680  ;;  %v8556_v34 = vmul.f32 %v12679_v45, %v17086_v53  ;;  %v17370_v63 = vmul.f32 %v19354_v10, %v8554_v55  ;;  %12700 = vpow2.f32 %v8681_v1  ;;  %v19491_v47 = vsub.f32 0.0, %v17272_v60 }
 0x570   :  { %19487 = vst [vmem:[#allocation151_spill] sm:$0xff] %v17364_v2  ;;  %v12683_v27 = vpop.eup %12682  ;;  %v17375_v32 = vmul.f32 %v19356_v43, %v8555_v15  ;;  %12702 = vpow2.f32 %v8683_v52  ;;  %v8689_v4 = vmul.f32 1.442695, %v8659_v58  ;;  %v19493_v1 = vsub.f32 0.0, %v17280_v41 }
 0x571   :  { %19489 = vst [vmem:[#allocation95_spill] sm:$0xff] %v17370_v63  ;;  %v8687_v22 = vmul.f32 1.442695, %v19491_v47  ;;  %v12685_v46 = vpop.eup %12684  ;;  %v17382_v53 = vmul.f32 %v19358_v12, %v8556_v34  ;;  %12704 = vpow2.f32 %v8685_v28  ;;  %v8693_v52 = vadd.f32 1.0, %v12681_v8  ;;  %v19494_v34 = vld [vmem:[#allocation96_spill] sm:$0xff]  ;;  %v19496_v8 = vld [vmem:[#allocation97_spill] sm:$0xff] }
 0x572   :  { %19490 = vst [vmem:[#allocation152_spill] sm:$0xff] %v17375_v32  ;;  %v8691_v45 = vmul.f32 1.442695, %v19493_v1  ;;  %v12687_v15 = vpop.eup %12686  ;;  %v8694_v13 = vadd.f32 1.0, %v12683_v27  ;;  %v8695_v61 = vadd.f32 1.0, %v12685_v46  ;;  %v17392_v31 = vmul.f32 %v19494_v34, %v16502_v44  ;;  %v19495_v1 = vld [vmem:[#allocation153_spill] sm:$0xff] }
 0x573   :  { %19492 = vst [vmem:[#allocation121_spill] sm:$0xff] %v17382_v53  ;;  %12706 = vpow2.f32 %v8687_v22  ;;  %v12689_v47 = vpop.eup %12688  ;;  %v8696_v42 = vadd.f32 1.0, %v12687_v15  ;;  %v17396_v35 = vmul.f32 %v19495_v1, %v16502_v44  ;;  %v17400_v27 = vmul.f32 %v19496_v8, %v16502_v44  ;;  %v19499_v34 = vld [vmem:[#allocation98_spill] sm:$0xff]  ;;  %v19500_v1 = vld [vmem:[#allocation155_spill] sm:$0xff] }
 0x574   :  { %12708 = vpow2.f32 %v8689_v4  ;;  %v12691_v55 = vpop.eup %12690  ;;  %v8697_v28 = vadd.f32 1.0, %v12689_v47  ;;  %v19498_v4 = vld [vmem:[#allocation154_spill] sm:$0xff]  ;;  %v17408_v58 = vmul.f32 %v19499_v34, %v16502_v44  ;;  %v17412_v38 = vmul.f32 %v19500_v1, %v16502_v44  ;;  %v19501_v8 = vld [vmem:[#allocation99_spill] sm:$0xff]  ;;  %v19503_v34 = vld [vmem:[#allocation100_spill] sm:$0xff] }
 0x575   :  { %12710 = vpow2.f32 %v8691_v45  ;;  %19497 = vst [vmem:[#allocation122_spill] sm:$0xff] %v17400_v27  ;;  %v12693_v22 = vpop.eup %12692  ;;  %v8698_v46 = vadd.f32 1.0, %v12691_v55  ;;  %v17404_v15 = vmul.f32 %v19498_v4, %v16502_v44  ;;  %v17416_v32 = vmul.f32 %v19501_v8, %v16502_v44  ;;  %v19502_v4 = vld [vmem:[#allocation156_spill] sm:$0xff]  ;;  %v19504_v1 = vld [vmem:[#allocation157_spill] sm:$0xff] }
 0x576   :  { %12712 = vrcp.f32 %v8693_v52  ;;  %v12695_v45 = vpop.eup %12694  ;;  %v8699_v47 = vadd.f32 1.0, %v12693_v22  ;;  %v17420_v53 = vmul.f32 %v19502_v4, %v16502_v44  ;;  %v17424_v2 = vmul.f32 %v19503_v34, %v16502_v44  ;;  %v19505_v8 = vld [vmem:[#allocation101_spill] sm:$0xff]  ;;  %v19506_v4 = vld [vmem:[#allocation158_spill] sm:$0xff] }
 0x577   :  { %12714 = vrcp.f32 %v8694_v13  ;;  %v12697_v55 = vpop.eup %12696  ;;  %v8700_v52 = vadd.f32 1.0, %v12695_v45  ;;  %v17428_v63 = vmul.f32 %v19504_v1, %v16502_v44  ;;  %v17432_v56 = vmul.f32 %v19505_v8, %v16502_v44  ;;  %v19507_v34 = vld [vmem:[#allocation102_spill] sm:$0xff]  ;;  %v19508_v1 = vld [vmem:[#allocation159_spill] sm:$0xff] }
 0x578   :  { %12716 = vrcp.f32 %v8695_v61  ;;  %v12699_v13 = vpop.eup %12698  ;;  %v8701_v22 = vadd.f32 1.0, %v12697_v55  ;;  %v17436_v6 = vmul.f32 %v19506_v4, %v16502_v44  ;;  %v17440_v59 = vmul.f32 %v19507_v34, %v16502_v44  ;;  %v19509_v8 = vld [vmem:[#allocation103_spill] sm:$0xff]  ;;  %v19510_v4 = vld [vmem:[#allocation160_spill] sm:$0xff] }
 0x579   :  { %12718 = vrcp.f32 %v8696_v42  ;;  %v12701_v61 = vpop.eup %12700  ;;  %v8702_v45 = vadd.f32 1.0, %v12699_v13  ;;  %v17444_v9 = vmul.f32 %v19508_v1, %v16502_v44  ;;  %v17448_v36 = vmul.f32 %v19509_v8, %v16502_v44 }
 0x57a   :  { %12720 = vrcp.f32 %v8697_v28  ;;  %v12703_v42 = vpop.eup %12702  ;;  %v8703_v55 = vadd.f32 1.0, %v12701_v61  ;;  %v17452_v50 = vmul.f32 %v19510_v4, %v16502_v44  ;;  %v8829_v34 = vsub.f32 0.0, %v17392_v31 }
 0x57b   :  { %12722 = vrcp.f32 %v8698_v46  ;;  %v12705_v28 = vpop.eup %12704  ;;  %v8704_v13 = vadd.f32 1.0, %v12703_v42  ;;  %v8830_v46 = vsub.f32 0.0, %v17396_v35  ;;  %v8831_v1 = vsub.f32 0.0, %v17400_v27 }
 0x57c   :  { %12724 = vrcp.f32 %v8699_v47  ;;  %v8705_v61 = vadd.f32 1.0, %v12705_v28  ;;  %v8832_v8 = vsub.f32 0.0, %v17404_v15  ;;  %v8836_v25 = vsub.f32 0.0, %v17420_v53 }
 0x57d   :  { %v12707_v54 = vpop.eup %12706  ;;  %12726 = vrcp.f32 %v8700_v52 }
 0x57e   :  { %v12709_v33 = vpop.eup %12708  ;;  %v8706_v24 = vadd.f32 1.0, %v12707_v54  ;;  %12728 = vrcp.f32 %v8701_v22 }
 0x57f   :  { %v12711_v42 = vpop.eup %12710  ;;  %v8707_v16 = vadd.f32 1.0, %v12709_v33  ;;  %12730 = vrcp.f32 %v8702_v45 }
 0x580   :  { %v12713_v28 = vpop.eup %12712  ;;  %v8708_v52 = vadd.f32 1.0, %v12711_v42  ;;  %12732 = vrcp.f32 %v8703_v55 }
 0x581   :  { %v12715_v54 = vpop.eup %12714  ;;  %12734 = vrcp.f32 %v8704_v13  ;;  %v8725_v22 = vmul.f32 %v12713_v28, %v17154_v57  ;;  %v19514_v57 = vld [vmem:[#allocation202_spill] sm:$0xff] }
 0x582   :  { %v12717_v45 = vpop.eup %12716  ;;  %12736 = vrcp.f32 %v8705_v61  ;;  %v8726_v4 = vmul.f32 %v12715_v54, %v17168_v11  ;;  %v19516_v11 = vld [vmem:[#allocation89_spill] sm:$0xff] }
 0x583   :  { %v12719_v42 = vpop.eup %12718  ;;  %12738 = vrcp.f32 %v8706_v24  ;;  %v8727_v27 = vmul.f32 %v12717_v45, %v17182_v17  ;;  %v17471_v13 = vmul.f32 %v15799_v21, %v8725_v22  ;;  %v19518_v22 = vld [vmem:[#allocation204_spill] sm:$0xff] }
 0x584   :  { %v12721_v28 = vpop.eup %12720  ;;  %12740 = vrcp.f32 %v8707_v16  ;;  %v8728_v33 = vmul.f32 %v12719_v42, %v17198_v39  ;;  %v17476_v61 = vmul.f32 %v19314_v18, %v8726_v4  ;;  %v8845_v4 = vmul.f32 1.442695, %v8829_v34  ;;  %v19520_v34 = vld [vmem:[#allocation205_spill] sm:$0xff] }
 0x585   :  { %19511 = vst [vmem:[#allocation123_spill] sm:$0xff] %v17471_v13  ;;  %v12723_v54 = vpop.eup %12722  ;;  %12742 = vrcp.f32 %v8708_v52  ;;  %v8729_v24 = vmul.f32 %v12721_v28, %v17214_v20  ;;  %v17481_v17 = vmul.f32 %v19319_v29, %v8727_v27  ;;  %v8847_v27 = vmul.f32 1.442695, %v8830_v46 }
 0x586   :  { %19512 = vst [vmem:[#allocation188_spill] sm:$0xff] %v17476_v61  ;;  %v12725_v45 = vpop.eup %12724  ;;  %v8730_v55 = vmul.f32 %v12723_v54, %v19514_v57  ;;  %v17486_v16 = vmul.f32 %v19324_v62, %v8728_v33  ;;  %v8849_v28 = vmul.f32 1.442695, %v8831_v1  ;;  %12744 = vpow2.f32 %v8845_v4  ;;  %v19522_v1 = vld [vmem:[#allocation146_spill] sm:$0xff] }
 0x587   :  { %19513 = vst [vmem:[#allocation132_spill] sm:$0xff] %v17481_v17  ;;  %v12727_v42 = vpop.eup %12726  ;;  %v8731_v52 = vmul.f32 %v12725_v45, %v19516_v11  ;;  %v17492_v20 = vmul.f32 %v19327_v7, %v8729_v24  ;;  %12746 = vpow2.f32 %v8847_v27  ;;  %v8851_v24 = vmul.f32 1.442695, %v8832_v8 }
 0x588   :  { %19515 = vst [vmem:[#allocation135_spill] sm:$0xff] %v17486_v16  ;;  %v12729_v5 = vpop.eup %12728  ;;  %v8732_v47 = vmul.f32 %v12727_v42, %v19518_v22  ;;  %v17496_v57 = vmul.f32 %v19330_v23, %v8730_v55  ;;  %12748 = vpow2.f32 %v8849_v28  ;;  %v19527_v28 = vsub.f32 0.0, %v17412_v38 }
 0x589   :  { %19517 = vst [vmem:[#allocation138_spill] sm:$0xff] %v17492_v20  ;;  %v12731_v54 = vpop.eup %12730  ;;  %v8733_v39 = vmul.f32 %v12729_v5, %v19520_v34  ;;  %v17502_v11 = vmul.f32 %v19333_v14, %v8731_v52  ;;  %12750 = vpow2.f32 %v8851_v24  ;;  %v19525_v52 = vsub.f32 0.0, %v17408_v58  ;;  %v19566_v20 = vld [vmem:[#allocation167_spill] sm:$0xff] }
 0x58a   :  { %19519 = vst [vmem:[#allocation140_spill] sm:$0xff] %v17496_v57  ;;  %v12733_v46 = vpop.eup %12732  ;;  %v8734_v45 = vmul.f32 %v12731_v54, %v19522_v1  ;;  %v17506_v22 = vmul.f32 %v19336_v30, %v8732_v47  ;;  %v8855_v1 = vmul.f32 1.442695, %v19527_v28 }
 0x58b   :  { %19521 = vst [vmem:[#allocation141_spill] sm:$0xff] %v17502_v11  ;;  %v12735_v42 = vpop.eup %12734  ;;  %v8735_v4 = vmul.f32 %v12733_v46, %v17260_v0  ;;  %v17512_v5 = vmul.f32 %v19339_v19, %v8733_v39  ;;  %v8853_v8 = vmul.f32 1.442695, %v19525_v52  ;;  %v19529_v46 = vsub.f32 0.0, %v17416_v32 }
 0x58c   :  { %19523 = vst [vmem:[#allocation193_spill] sm:$0xff] %v17506_v22  ;;  %v12737_v27 = vpop.eup %12736  ;;  %v8736_v54 = vmul.f32 %v12735_v42, %v17264_v37  ;;  %v17518_v47 = vmul.f32 %v19342_v26, %v8734_v45 }
 0x58d   :  { %19524 = vst [vmem:[#allocation96_spill] sm:$0xff] %v17512_v5  ;;  %v12739_v0 = vpop.eup %12738  ;;  %v8737_v39 = vmul.f32 %v12737_v27, %v17268_v48  ;;  %v17526_v24 = vmul.f32 %v19345_v40, %v8735_v4  ;;  %12752 = vpow2.f32 %v8853_v8  ;;  %v8857_v52 = vmul.f32 1.442695, %v19529_v46 }
 0x58e   :  { %19526 = vst [vmem:[#allocation153_spill] sm:$0xff] %v17518_v47  ;;  %v12741_v37 = vpop.eup %12740  ;;  %v8738_v45 = vmul.f32 %v12739_v0, %v17272_v60  ;;  %v17532_v42 = vmul.f32 %v19348_v3, %v8736_v54  ;;  %12754 = vpow2.f32 %v8855_v1  ;;  %v8859_v8 = vmul.f32 1.442695, %v8836_v25 }
 0x58f   :  { %19528 = vst [vmem:[#allocation97_spill] sm:$0xff] %v17526_v24  ;;  %v12743_v28 = vpop.eup %12742  ;;  %v8739_v48 = vmul.f32 %v12741_v37, %v17276_v49  ;;  %v17538_v4 = vmul.f32 %v19351_v51, %v8737_v39  ;;  %12756 = vpow2.f32 %v8857_v52  ;;  %v19533_v1 = vsub.f32 0.0, %v17424_v2 }
 0x590   :  { %19530 = vst [vmem:[#allocation154_spill] sm:$0xff] %v17532_v42  ;;  %v8740_v27 = vmul.f32 %v12743_v28, %v17280_v41  ;;  %v17544_v60 = vmul.f32 %v19354_v10, %v8738_v45  ;;  %12758 = vpow2.f32 %v8859_v8  ;;  %v19535_v39 = vsub.f32 0.0, %v17428_v63  ;;  %v12745_v41 = vpop.eup %12744 }
 0x591   :  { %19531 = vst [vmem:[#allocation98_spill] sm:$0xff] %v17538_v4  ;;  %v8861_v0 = vmul.f32 1.442695, %v19533_v1  ;;  %v17551_v49 = vmul.f32 %v19356_v43, %v8739_v48  ;;  %v19536_v25 = vsub.f32 0.0, %v17432_v56  ;;  %v19538_v28 = vsub.f32 0.0, %v17436_v6  ;;  %v12747_v48 = vpop.eup %12746 }
 0x592   :  { %19532 = vst [vmem:[#allocation155_spill] sm:$0xff] %v17544_v60  ;;  %v8863_v46 = vmul.f32 1.442695, %v19535_v39  ;;  %v17558_v37 = vmul.f32 %v19358_v12, %v8740_v27  ;;  %v19539_v8 = vsub.f32 0.0, %v17440_v59  ;;  %v19540_v39 = vsub.f32 0.0, %v17444_v9  ;;  %v12749_v27 = vpop.eup %12748 }
 0x593   :  { %19534 = vst [vmem:[#allocation99_spill] sm:$0xff] %v17551_v49  ;;  %v8865_v52 = vmul.f32 1.442695, %v19536_v25  ;;  %12760 = vpow2.f32 %v8861_v0  ;;  %v8867_v1 = vmul.f32 1.442695, %v19538_v28  ;;  %v19541_v25 = vsub.f32 0.0, %v17448_v36  ;;  %v12751_v4 = vpop.eup %12750 }
 0x594   :  { %19537 = vst [vmem:[#allocation156_spill] sm:$0xff] %v17558_v37  ;;  %12762 = vpow2.f32 %v8863_v46  ;;  %v8869_v54 = vmul.f32 1.442695, %v19539_v8  ;;  %v8871_v34 = vmul.f32 1.442695, %v19540_v39  ;;  %v19542_v0 = vsub.f32 0.0, %v17452_v50 }
 0x595   :  { %v8873_v55 = vmul.f32 1.442695, %v19541_v25  ;;  %12764 = vpow2.f32 %v8865_v52  ;;  %v8877_v28 = vadd.f32 1.0, %v12745_v41  ;;  %v8878_v46 = vadd.f32 1.0, %v12747_v48  ;;  %v19543_v8 = vld [vmem:[#allocation77_spill] sm:$0xff]  ;;  %v19547_v52 = vld [vmem:[#allocation78_spill] sm:$0xff] }
 0x596   :  { %v8875_v45 = vmul.f32 1.442695, %v19542_v0  ;;  %12766 = vpow2.f32 %v8867_v1  ;;  %v8879_v60 = vadd.f32 1.0, %v12749_v27  ;;  %v17576_v24 = vmul.f32 %v19543_v8, %v16502_v44  ;;  %v19545_v25 = vld [vmem:[#allocation161_spill] sm:$0xff]  ;;  %v19549_v41 = vld [vmem:[#allocation162_spill] sm:$0xff]  ;;  %v19551_v48 = vld [vmem:[#allocation80_spill] sm:$0xff] }
 0x597   :  { %12768 = vpow2.f32 %v8869_v54  ;;  %v8880_v39 = vadd.f32 1.0, %v12751_v4  ;;  %v17580_v42 = vmul.f32 %v19545_v25, %v16502_v44  ;;  %v17584_v33 = vmul.f32 %v19547_v52, %v16502_v44  ;;  %v12753_v0 = vpop.eup %12752  ;;  %v19553_v4 = vld [vmem:[#allocation163_spill] sm:$0xff]  ;;  %v19555_v52 = vld [vmem:[#allocation81_spill] sm:$0xff] }
 0x598   :  { %19544 = vst [vmem:[#allocation100_spill] sm:$0xff] %v17576_v24  ;;  %12770 = vpow2.f32 %v8871_v34  ;;  %v17588_v1 = vmul.f32 %v19549_v41, %v16502_v44  ;;  %v17592_v27 = vmul.f32 %v19551_v48, %v16502_v44  ;;  %v17596_v54 = vmul.f32 %v19553_v4, %v16502_v44  ;;  %v12755_v8 = vpop.eup %12754  ;;  %v19557_v34 = vld [vmem:[#allocation164_spill] sm:$0xff]  ;;  %v19559_v48 = vld [vmem:[#allocation83_spill] sm:$0xff]  ;;  %v19561_v4 = vld [vmem:[#allocation165_spill] sm:$0xff] }
 0x599   :  { %19546 = vst [vmem:[#allocation157_spill] sm:$0xff] %v17580_v42  ;;  %19548 = vst [vmem:[#allocation101_spill] sm:$0xff] %v17584_v33  ;;  %12772 = vpow2.f32 %v8873_v55  ;;  %v8881_v25 = vadd.f32 1.0, %v12753_v0  ;;  %v17600_v49 = vmul.f32 %v19555_v52, %v16502_v44  ;;  %v17604_v37 = vmul.f32 %v19557_v34, %v16502_v44  ;;  %v12757_v41 = vpop.eup %12756  ;;  %v19563_v0 = vld [vmem:[#allocation84_spill] sm:$0xff]  ;;  %v19564_v34 = vld [vmem:[#allocation166_spill] sm:$0xff] }
 0x59a   :  { %19550 = vst [vmem:[#allocation158_spill] sm:$0xff] %v17588_v1  ;;  %19552 = vst [vmem:[#allocation102_spill] sm:$0xff] %v17592_v27  ;;  %12774 = vpow2.f32 %v8875_v45  ;;  %v8882_v5 = vadd.f32 1.0, %v12755_v8  ;;  %v17608_v47 = vmul.f32 %v19559_v48, %v16502_v44  ;;  %v17612_v11 = vmul.f32 %v19561_v4, %v16502_v44  ;;  %v12759_v45 = vpop.eup %12758  ;;  %v19565_v8 = vld [vmem:[#allocation86_spill] sm:$0xff] }
 0x59b   :  { %19554 = vst [vmem:[#allocation159_spill] sm:$0xff] %v17596_v54  ;;  %19556 = vst [vmem:[#allocation103_spill] sm:$0xff] %v17600_v49  ;;  %v8883_v55 = vadd.f32 1.0, %v12757_v41  ;;  %12776 = vrcp.f32 %v8877_v28  ;;  %v17616_v52 = vmul.f32 %v19563_v0, %v16502_v44  ;;  %v17620_v22 = vmul.f32 %v19564_v34, %v16502_v44  ;;  %v19568_v28 = vld [vmem:[#allocation88_spill] sm:$0xff] }
 0x59c   :  { %19558 = vst [vmem:[#allocation160_spill] sm:$0xff] %v17604_v37  ;;  %19560 = vst [vmem:[#allocation202_spill] sm:$0xff] %v17608_v47  ;;  %12778 = vrcp.f32 %v8878_v46  ;;  %v17624_v48 = vmul.f32 %v19565_v8, %v16502_v44  ;;  %v17628_v4 = vmul.f32 %v19566_v20, %v16502_v44  ;;  %v17632_v41 = vmul.f32 %v19568_v28, %v16502_v44  ;;  %v19569_v34 = vld [vmem:[#allocation168_spill] sm:$0xff] }
 0x59d   :  { %19562 = vst [vmem:[#allocation89_spill] sm:$0xff] %v17612_v11  ;;  %v12761_v0 = vpop.eup %12760  ;;  %v8884_v57 = vadd.f32 1.0, %v12759_v45  ;;  %12780 = vrcp.f32 %v8879_v60  ;;  %v17636_v17 = vmul.f32 %v19569_v34, %v16502_v44  ;;  %v9013_v46 = vsub.f32 0.0, %v17576_v24 }
 0x59e   :  { %19567 = vst [vmem:[#allocation204_spill] sm:$0xff] %v17628_v4  ;;  %v12763_v16 = vpop.eup %12762  ;;  %v8885_v8 = vadd.f32 1.0, %v12761_v0  ;;  %12782 = vrcp.f32 %v8880_v39  ;;  %v9014_v13 = vsub.f32 0.0, %v17580_v42  ;;  %v9015_v20 = vsub.f32 0.0, %v17584_v33 }
 0x59f   :  { %v12765_v61 = vpop.eup %12764  ;;  %v8886_v12 = vadd.f32 1.0, %v12763_v16  ;;  %12784 = vrcp.f32 %v8881_v25  ;;  %v9016_v28 = vsub.f32 0.0, %v17588_v1  ;;  %v9017_v60 = vsub.f32 0.0, %v17592_v27 }
 0x5a0   :  { %v12767_v45 = vpop.eup %12766  ;;  %v8887_v43 = vadd.f32 1.0, %v12765_v61  ;;  %12786 = vrcp.f32 %v8882_v5  ;;  %v9018_v34 = vsub.f32 0.0, %v17596_v54  ;;  %v9019_v24 = vsub.f32 0.0, %v17600_v49 }
 0x5a1   :  { %v12769_v0 = vpop.eup %12768  ;;  %v8888_v39 = vadd.f32 1.0, %v12767_v45  ;;  %12788 = vrcp.f32 %v8883_v55  ;;  %v9020_v42 = vsub.f32 0.0, %v17604_v37  ;;  %v9021_v33 = vsub.f32 0.0, %v17608_v47  ;;  %v19570_v47 = vld [vmem:[#allocation122_spill] sm:$0xff] }
 0x5a2   :  { %v12771_v16 = vpop.eup %12770  ;;  %v8889_v25 = vadd.f32 1.0, %v12769_v0  ;;  %12790 = vrcp.f32 %v8884_v57  ;;  %v9022_v1 = vsub.f32 0.0, %v17612_v11  ;;  %v9029_v27 = vmul.f32 1.442695, %v9013_v46 }
 0x5a3   :  { %v12773_v61 = vpop.eup %12772  ;;  %v8890_v5 = vadd.f32 1.0, %v12771_v16  ;;  %12792 = vrcp.f32 %v8885_v8  ;;  %v9031_v16 = vmul.f32 1.442695, %v9014_v13  ;;  %v9033_v54 = vmul.f32 1.442695, %v9015_v20 }
 0x5a4   :  { %v12775_v45 = vpop.eup %12774  ;;  %v8891_v55 = vadd.f32 1.0, %v12773_v61  ;;  %12794 = vrcp.f32 %v8886_v12  ;;  %v9035_v61 = vmul.f32 1.442695, %v9016_v28  ;;  %v9037_v37 = vmul.f32 1.442695, %v9017_v60 }
 0x5a5   :  { %v12777_v0 = vpop.eup %12776  ;;  %v8892_v57 = vadd.f32 1.0, %v12775_v45  ;;  %12796 = vrcp.f32 %v8887_v43  ;;  %v9039_v46 = vmul.f32 1.442695, %v9018_v34  ;;  %v9041_v20 = vmul.f32 1.442695, %v9019_v24 }
 0x5a6   :  { %v12779_v44 = vpop.eup %12778  ;;  %12798 = vrcp.f32 %v8888_v39  ;;  %v8909_v8 = vmul.f32 %v12777_v0, %v17392_v31 }
 0x5a7   :  { %v12781_v49 = vpop.eup %12780  ;;  %12800 = vrcp.f32 %v8889_v25  ;;  %v8910_v12 = vmul.f32 %v12779_v44, %v17396_v35 }
 0x5a8   :  { %v12783_v4 = vpop.eup %12782  ;;  %12802 = vrcp.f32 %v8890_v5  ;;  %v8911_v45 = vmul.f32 %v12781_v49, %v19570_v47  ;;  %v17658_v43 = vmul.f32 %v15799_v21, %v8909_v8  ;;  %v9043_v47 = vmul.f32 1.442695, %v9020_v42 }
 0x5a9   :  { %v12785_v11 = vpop.eup %12784  ;;  %12804 = vrcp.f32 %v8891_v55  ;;  %v8912_v31 = vmul.f32 %v12783_v4, %v17404_v15  ;;  %v17662_v13 = vmul.f32 %v19314_v18, %v8910_v12  ;;  %v9047_v55 = vmul.f32 1.442695, %v9022_v1 }
 0x5aa   :  { %19571 = vst [vmem:[#allocation205_spill] sm:$0xff] %v17658_v43  ;;  %v12787_v39 = vpop.eup %12786  ;;  %12806 = vrcp.f32 %v8892_v57  ;;  %v8913_v44 = vmul.f32 %v12785_v11, %v17408_v58  ;;  %v17666_v35 = vmul.f32 %v19319_v29, %v8911_v45  ;;  %v9045_v58 = vmul.f32 1.442695, %v9021_v33 }
 0x5ab   :  { %v12789_v49 = vpop.eup %12788  ;;  %v8914_v28 = vmul.f32 %v12787_v39, %v17412_v38  ;;  %v17670_v60 = vmul.f32 %v19324_v62, %v8912_v31  ;;  %12808 = vpow2.f32 %v9029_v27 }
 0x5ac   :  { %19572 = vst [vmem:[#allocation146_spill] sm:$0xff] %v17666_v35  ;;  %v12791_v4 = vpop.eup %12790  ;;  %v8915_v24 = vmul.f32 %v12789_v49, %v17416_v32  ;;  %v17676_v34 = vmul.f32 %v19327_v7, %v8913_v44  ;;  %12810 = vpow2.f32 %v9031_v16  ;;  %v19579_v16 = vsub.f32 0.0, %v17616_v52 }
 0x5ad   :  { %19573 = vst [vmem:[#allocation77_spill] sm:$0xff] %v17670_v60  ;;  %v12793_v11 = vpop.eup %12792  ;;  %v8916_v42 = vmul.f32 %v12791_v4, %v17420_v53  ;;  %v17680_v38 = vmul.f32 %v19330_v23, %v8914_v28  ;;  %12812 = vpow2.f32 %v9033_v54 }
 0x5ae   :  { %19574 = vst [vmem:[#allocation161_spill] sm:$0xff] %v17676_v34  ;;  %v12795_v5 = vpop.eup %12794  ;;  %v8917_v27 = vmul.f32 %v12793_v11, %v17424_v2  ;;  %v17686_v32 = vmul.f32 %v19333_v14, %v8915_v24  ;;  %12814 = vpow2.f32 %v9035_v61  ;;  %v9049_v1 = vmul.f32 1.442695, %v19579_v16 }
 0x5af   :  { %19575 = vst [vmem:[#allocation78_spill] sm:$0xff] %v17680_v38  ;;  %v12797_v0 = vpop.eup %12796  ;;  %v8918_v33 = vmul.f32 %v12795_v5, %v17428_v63  ;;  %v17690_v53 = vmul.f32 %v19336_v30, %v8916_v42  ;;  %12816 = vpow2.f32 %v9037_v37 }
 0x5b0   :  { %19576 = vst [vmem:[#allocation162_spill] sm:$0xff] %v17686_v32  ;;  %v12799_v8 = vpop.eup %12798  ;;  %v8919_v54 = vmul.f32 %v12797_v0, %v17432_v56  ;;  %v17696_v2 = vmul.f32 %v19339_v19, %v8917_v27  ;;  %12818 = vpow2.f32 %v9039_v46  ;;  %v19582_v46 = vsub.f32 0.0, %v17620_v22  ;;  %v19587_v27 = vld [vmem:[#allocation126_spill] sm:$0xff]  ;;  %v19589_v0 = vld [vmem:[#allocation204_spill] sm:$0xff] }
 0x5b1   :  { %19577 = vst [vmem:[#allocation80_spill] sm:$0xff] %v17690_v53  ;;  %v12801_v12 = vpop.eup %12800  ;;  %v8920_v63 = vmul.f32 %v12799_v8, %v17436_v6  ;;  %v17702_v61 = vmul.f32 %v19342_v26, %v8918_v33  ;;  %12820 = vpow2.f32 %v9041_v20  ;;  %v19591_v8 = vsub.f32 0.0, %v17632_v41  ;;  %v19614_v53 = vld [vmem:[#allocation101_spill] sm:$0xff] }
 0x5b2   :  { %19578 = vst [vmem:[#allocation163_spill] sm:$0xff] %v17696_v2  ;;  %v12803_v37 = vpop.eup %12802  ;;  %v8921_v56 = vmul.f32 %v12801_v12, %v17440_v59  ;;  %v17708_v31 = vmul.f32 %v19345_v40, %v8919_v54  ;;  %12822 = vpow2.f32 %v9043_v47  ;;  %v9051_v39 = vmul.f32 1.442695, %v19582_v46 }
 0x5b3   :  { %19580 = vst [vmem:[#allocation81_spill] sm:$0xff] %v17702_v61  ;;  %v12805_v44 = vpop.eup %12804  ;;  %v8922_v6 = vmul.f32 %v12803_v37, %v17444_v9  ;;  %v17714_v49 = vmul.f32 %v19348_v3, %v8920_v63  ;;  %12824 = vpow2.f32 %v9045_v58  ;;  %v19585_v47 = vsub.f32 0.0, %v17624_v48 }
 0x5b4   :  { %19581 = vst [vmem:[#allocation164_spill] sm:$0xff] %v17708_v31  ;;  %v12807_v20 = vpop.eup %12806  ;;  %v8923_v59 = vmul.f32 %v12805_v44, %v17448_v36  ;;  %v17720_v4 = vmul.f32 %v19351_v51, %v8921_v56  ;;  %12826 = vpow2.f32 %v9047_v55  ;;  %v19590_v55 = vsub.f32 0.0, %v19589_v0 }
 0x5b5   :  { %19583 = vst [vmem:[#allocation83_spill] sm:$0xff] %v17714_v49  ;;  %v9053_v24 = vmul.f32 1.442695, %v19585_v47  ;;  %v12809_v11 = vpop.eup %12808  ;;  %v8924_v9 = vmul.f32 %v12807_v20, %v17452_v50  ;;  %v17726_v42 = vmul.f32 %v19354_v10, %v8922_v6  ;;  %12828 = vpow2.f32 %v9049_v1  ;;  %v19592_v50 = vld [vmem:[#allocation127_spill] sm:$0xff]  ;;  %v19595_v47 = vld [vmem:[#allocation174_spill] sm:$0xff] }
 0x5b6   :  { %19584 = vst [vmem:[#allocation165_spill] sm:$0xff] %v17720_v4  ;;  %v12811_v58 = vpop.eup %12810  ;;  %v17731_v36 = vmul.f32 %v19587_v27, %v8923_v59  ;;  %12830 = vpow2.f32 %v9051_v39  ;;  %v9055_v33 = vmul.f32 1.442695, %v19590_v55  ;;  %v9057_v54 = vmul.f32 1.442695, %v19591_v8 }
 0x5b7   :  { %19586 = vst [vmem:[#allocation84_spill] sm:$0xff] %v17726_v42  ;;  %v12813_v16 = vpop.eup %12812  ;;  %v17738_v12 = vmul.f32 %v19592_v50, %v8924_v9  ;;  %12832 = vpow2.f32 %v9053_v24  ;;  %v19594_v1 = vsub.f32 0.0, %v17636_v17  ;;  %v9061_v46 = vadd.f32 1.0, %v12809_v11  ;;  %v19596_v9 = vld [vmem:[#allocation104_spill] sm:$0xff]  ;;  %v19598_v11 = vld [vmem:[#allocation105_spill] sm:$0xff] }
 0x5b8   :  { %19588 = vst [vmem:[#allocation166_spill] sm:$0xff] %v17731_v36  ;;  %v12815_v56 = vpop.eup %12814  ;;  %12834 = vpow2.f32 %v9055_v33  ;;  %v9062_v39 = vadd.f32 1.0, %v12811_v58  ;;  %v9063_v44 = vadd.f32 1.0, %v12813_v16  ;;  %v17748_v55 = vmul.f32 %v19596_v9, %v19595_v47  ;;  %v19600_v9 = vld [vmem:[#allocation106_spill] sm:$0xff] }
 0x5b9   :  { %19593 = vst [vmem:[#allocation86_spill] sm:$0xff] %v17738_v12  ;;  %v9059_v37 = vmul.f32 1.442695, %v19594_v1  ;;  %v12817_v6 = vpop.eup %12816  ;;  %12836 = vpow2.f32 %v9057_v54  ;;  %v9064_v59 = vadd.f32 1.0, %v12815_v56  ;;  %v19597_v1 = vld [vmem:[#allocation169_spill] sm:$0xff]  ;;  %v17756_v58 = vmul.f32 %v19598_v11, %v19595_v47  ;;  %v19599_v54 = vld [vmem:[#allocation170_spill] sm:$0xff] }
 0x5ba   :  { %v12819_v8 = vpop.eup %12818  ;;  %v9065_v24 = vadd.f32 1.0, %v12817_v6  ;;  %v17752_v63 = vmul.f32 %v19597_v1, %v19595_v47  ;;  %v17760_v56 = vmul.f32 %v19599_v54, %v19595_v47  ;;  %v17764_v20 = vmul.f32 %v19600_v9, %v19595_v47  ;;  %v19601_v1 = vld [vmem:[#allocation171_spill] sm:$0xff]  ;;  %v19603_v54 = vld [vmem:[#allocation172_spill] sm:$0xff] }
 0x5bb   :  { %12838 = vpow2.f32 %v9059_v37  ;;  %v12821_v33 = vpop.eup %12820  ;;  %v9066_v16 = vadd.f32 1.0, %v12819_v8  ;;  %v17768_v5 = vmul.f32 %v19601_v1, %v19595_v47  ;;  %v19602_v11 = vld [vmem:[#allocation107_spill] sm:$0xff]  ;;  %v17776_v45 = vmul.f32 %v19603_v54, %v19595_v47  ;;  %v19604_v9 = vld [vmem:[#allocation108_spill] sm:$0xff]  ;;  %v19607_v54 = vld [vmem:[#allocation173_spill] sm:$0xff] }
 0x5bc   :  { %12840 = vrcp.f32 %v9061_v46  ;;  %v12823_v37 = vpop.eup %12822  ;;  %v9067_v6 = vadd.f32 1.0, %v12821_v33  ;;  %v17772_v28 = vmul.f32 %v19602_v11, %v19595_v47  ;;  %v17780_v57 = vmul.f32 %v19604_v9, %v19595_v47  ;;  %v19605_v1 = vld [vmem:[#allocation112_spill] sm:$0xff]  ;;  %v19606_v11 = vld [vmem:[#allocation109_spill] sm:$0xff]  ;;  %v19608_v9 = vld [vmem:[#allocation110_spill] sm:$0xff] }
 0x5bd   :  { %12842 = vrcp.f32 %v9062_v39  ;;  %v12825_v46 = vpop.eup %12824  ;;  %v9068_v8 = vadd.f32 1.0, %v12823_v37  ;;  %v17784_v25 = vmul.f32 %v19605_v1, %v19595_v47  ;;  %v17788_v15 = vmul.f32 %v19606_v11, %v19595_v47  ;;  %v19609_v1 = vld [vmem:[#allocation175_spill] sm:$0xff] }
 0x5be   :  { %12844 = vrcp.f32 %v9063_v44  ;;  %v12827_v39 = vpop.eup %12826  ;;  %v9069_v33 = vadd.f32 1.0, %v12825_v46  ;;  %v17792_v36 = vmul.f32 %v19607_v54, %v19595_v47  ;;  %v17796_v12 = vmul.f32 %v19608_v9, %v19595_v47  ;;  %v19610_v11 = vld [vmem:[#allocation111_spill] sm:$0xff]  ;;  %v19611_v54 = vld [vmem:[#allocation176_spill] sm:$0xff] }
 0x5bf   :  { %12846 = vrcp.f32 %v9064_v59  ;;  %v12829_v44 = vpop.eup %12828  ;;  %v9070_v37 = vadd.f32 1.0, %v12827_v39  ;;  %v17800_v4 = vmul.f32 %v19609_v1, %v19595_v47  ;;  %v17804_v42 = vmul.f32 %v19610_v11, %v19595_v47 }
 0x5c0   :  { %12848 = vrcp.f32 %v9065_v24  ;;  %v12831_v59 = vpop.eup %12830  ;;  %v9071_v46 = vadd.f32 1.0, %v12829_v44  ;;  %v17808_v31 = vmul.f32 %v19611_v54, %v19595_v47  ;;  %v9197_v9 = vsub.f32 0.0, %v17748_v55  ;;  %v19613_v47 = vld [vmem:[#allocation157_spill] sm:$0xff] }
 0x5c1   :  { %12850 = vrcp.f32 %v9066_v16  ;;  %v12833_v24 = vpop.eup %12832  ;;  %v9072_v39 = vadd.f32 1.0, %v12831_v59  ;;  %v9198_v16 = vsub.f32 0.0, %v17752_v63  ;;  %v9199_v1 = vsub.f32 0.0, %v17756_v58 }
 0x5c2   :  { %12852 = vrcp.f32 %v9067_v6  ;;  %v12835_v49 = vpop.eup %12834  ;;  %v9073_v44 = vadd.f32 1.0, %v12833_v24  ;;  %v9200_v11 = vsub.f32 0.0, %v17760_v56 }
 0x5c3   :  { %12854 = vrcp.f32 %v9068_v8  ;;  %v12837_v2 = vpop.eup %12836  ;;  %v9074_v61 = vadd.f32 1.0, %v12835_v49 }
 0x5c4   :  { %12856 = vrcp.f32 %v9069_v33  ;;  %v9075_v32 = vadd.f32 1.0, %v12837_v2  ;;  %v19612_v33 = vld [vmem:[#allocation100_spill] sm:$0xff]  ;;  %v19615_v2 = vld [vmem:[#allocation158_spill] sm:$0xff] }
 0x5c5   :  { %v12839_v59 = vpop.eup %12838  ;;  %12858 = vrcp.f32 %v9070_v37 }
 0x5c6   :  { %v12841_v24 = vpop.eup %12840  ;;  %v9076_v8 = vadd.f32 1.0, %v12839_v59  ;;  %12860 = vrcp.f32 %v9071_v46  ;;  %v19616_v46 = vld [vmem:[#allocation102_spill] sm:$0xff] }
 0x5c7   :  { %v12843_v49 = vpop.eup %12842  ;;  %12862 = vrcp.f32 %v9072_v39  ;;  %v9093_v38 = vmul.f32 %v12841_v24, %v19612_v33  ;;  %v19617_v24 = vld [vmem:[#allocation159_spill] sm:$0xff] }
 0x5c8   :  { %v12845_v37 = vpop.eup %12844  ;;  %12864 = vrcp.f32 %v9073_v44  ;;  %v9094_v35 = vmul.f32 %v12843_v49, %v19613_v47  ;;  %v19618_v47 = vld [vmem:[#allocation103_spill] sm:$0xff] }
 0x5c9   :  { %v12847_v59 = vpop.eup %12846  ;;  %12866 = vrcp.f32 %v9074_v61  ;;  %v9095_v34 = vmul.f32 %v12845_v37, %v19614_v53  ;;  %v17827_v39 = vmul.f32 %v15799_v21, %v9093_v38  ;;  %v19619_v38 = vld [vmem:[#allocation160_spill] sm:$0xff] }
 0x5ca   :  { %v12849_v33 = vpop.eup %12848  ;;  %12868 = vrcp.f32 %v9075_v32  ;;  %v9096_v6 = vmul.f32 %v12847_v59, %v19615_v2  ;;  %v17832_v44 = vmul.f32 %v19314_v18, %v9094_v35  ;;  %v9213_v2 = vmul.f32 1.442695, %v9197_v9  ;;  %v19620_v9 = vld [vmem:[#allocation202_spill] sm:$0xff] }
 0x5cb   :  { %v12851_v49 = vpop.eup %12850  ;;  %12870 = vrcp.f32 %v9076_v8  ;;  %v9097_v61 = vmul.f32 %v12849_v33, %v19616_v46  ;;  %v17837_v53 = vmul.f32 %v19319_v29, %v9095_v34  ;;  %v9215_v34 = vmul.f32 1.442695, %v9198_v16 }
 0x5cc   :  { %v12853_v37 = vpop.eup %12852  ;;  %v9098_v54 = vmul.f32 %v12851_v49, %v19617_v24  ;;  %v17842_v32 = vmul.f32 %v19324_v62, %v9096_v6  ;;  %v9217_v33 = vmul.f32 1.442695, %v9199_v1  ;;  %12872 = vpow2.f32 %v9213_v2  ;;  %v19621_v1 = vld [vmem:[#allocation89_spill] sm:$0xff] }
 0x5cd   :  { %v12855_v59 = vpop.eup %12854  ;;  %v9099_v8 = vmul.f32 %v12853_v37, %v19618_v47  ;;  %v17848_v46 = vmul.f32 %v19327_v7, %v9097_v61  ;;  %12874 = vpow2.f32 %v9215_v34  ;;  %v9219_v61 = vmul.f32 1.442695, %v9200_v11 }
 0x5ce   :  { %v12857_v60 = vpop.eup %12856  ;;  %v9100_v43 = vmul.f32 %v12855_v59, %v19619_v38  ;;  %v17852_v24 = vmul.f32 %v19330_v23, %v9098_v54  ;;  %12876 = vpow2.f32 %v9217_v33  ;;  %v19623_v33 = vsub.f32 0.0, %v17768_v5 }
 0x5cf   :  { %v12859_v49 = vpop.eup %12858  ;;  %v9101_v35 = vmul.f32 %v12857_v60, %v19620_v9  ;;  %v17858_v47 = vmul.f32 %v19333_v14, %v9099_v8  ;;  %12878 = vpow2.f32 %v9219_v61  ;;  %v19622_v8 = vsub.f32 0.0, %v17764_v20 }
 0x5d0   :  { %v12861_v16 = vpop.eup %12860  ;;  %v9102_v37 = vmul.f32 %v12859_v49, %v19621_v1  ;;  %v17862_v38 = vmul.f32 %v19336_v30, %v9100_v43  ;;  %v9223_v1 = vmul.f32 1.442695, %v19623_v33  ;;  %v19638_v6 = vsub.f32 0.0, %v17804_v42 }
 0x5d1   :  { %v12863_v59 = vpop.eup %12862  ;;  %v9103_v2 = vmul.f32 %v12861_v16, %v17616_v52  ;;  %v17868_v60 = vmul.f32 %v19339_v19, %v9101_v35  ;;  %v9221_v11 = vmul.f32 1.442695, %v19622_v8  ;;  %v19625_v16 = vsub.f32 0.0, %v17772_v28 }
 0x5d2   :  { %v12865_v34 = vpop.eup %12864  ;;  %v9104_v49 = vmul.f32 %v12863_v59, %v17620_v22  ;;  %v17874_v43 = vmul.f32 %v19342_v26, %v9102_v37 }
 0x5d3   :  { %v12867_v52 = vpop.eup %12866  ;;  %v9105_v35 = vmul.f32 %v12865_v34, %v17624_v48  ;;  %v17882_v61 = vmul.f32 %v19345_v40, %v9103_v2  ;;  %12880 = vpow2.f32 %v9221_v11  ;;  %v9225_v8 = vmul.f32 1.442695, %v19625_v16 }
 0x5d4   :  { %v12869_v22 = vpop.eup %12868  ;;  %v9106_v37 = vmul.f32 %v12867_v52, %v19589_v0  ;;  %v17888_v59 = vmul.f32 %v19348_v3, %v9104_v49  ;;  %12882 = vpow2.f32 %v9223_v1  ;;  %v19628_v11 = vsub.f32 0.0, %v17776_v45 }
 0x5d5   :  { %19624 = vst [vmem:[#allocation167_spill] sm:$0xff] %v17882_v61  ;;  %v12871_v33 = vpop.eup %12870  ;;  %v9107_v48 = vmul.f32 %v12869_v22, %v17632_v41  ;;  %v17894_v2 = vmul.f32 %v19351_v51, %v9105_v35  ;;  %12884 = vpow2.f32 %v9225_v8  ;;  %v19630_v1 = vsub.f32 0.0, %v17780_v57 }
 0x5d6   :  { %19626 = vst [vmem:[#allocation88_spill] sm:$0xff] %v17888_v59  ;;  %v9227_v34 = vmul.f32 1.442695, %v19628_v11  ;;  %v9108_v16 = vmul.f32 %v12871_v33, %v17636_v17  ;;  %v17900_v0 = vmul.f32 %v19354_v10, %v9106_v37  ;;  %v19632_v35 = vsub.f32 0.0, %v17784_v25  ;;  %v12873_v17 = vpop.eup %12872 }
 0x5d7   :  { %19627 = vst [vmem:[#allocation168_spill] sm:$0xff] %v17894_v2  ;;  %v9229_v52 = vmul.f32 1.442695, %v19630_v1  ;;  %v17907_v41 = vmul.f32 %v19587_v27, %v9107_v48  ;;  %v19633_v22 = vsub.f32 0.0, %v17788_v15  ;;  %v19635_v1 = vsub.f32 0.0, %v17792_v36  ;;  %v12875_v48 = vpop.eup %12874 }
 0x5d8   :  { %19629 = vst [vmem:[#allocation122_spill] sm:$0xff] %v17900_v0  ;;  %12886 = vpow2.f32 %v9227_v34  ;;  %v9231_v8 = vmul.f32 1.442695, %v19632_v35  ;;  %v17914_v37 = vmul.f32 %v19592_v50, %v9108_v16  ;;  %v19636_v34 = vsub.f32 0.0, %v17796_v12 }
 0x5d9   :  { %19631 = vst [vmem:[#allocation126_spill] sm:$0xff] %v17907_v41  ;;  %v9233_v11 = vmul.f32 1.442695, %v19633_v22  ;;  %12888 = vpow2.f32 %v9229_v52  ;;  %v9235_v49 = vmul.f32 1.442695, %v19635_v1  ;;  %v19637_v35 = vsub.f32 0.0, %v17800_v4  ;;  %v12877_v22 = vpop.eup %12876 }
 0x5da   :  { %19634 = vst [vmem:[#allocation204_spill] sm:$0xff] %v17914_v37  ;;  %12890 = vpow2.f32 %v9231_v8  ;;  %v9237_v9 = vmul.f32 1.442695, %v19636_v34  ;;  %v9241_v33 = vmul.f32 1.442695, %v19638_v6  ;;  %v12879_v52 = vpop.eup %12878  ;;  %v19639_v1 = vsub.f32 0.0, %v17808_v31 }
 0x5db   :  { %v9239_v54 = vmul.f32 1.442695, %v19637_v35  ;;  %12892 = vpow2.f32 %v9233_v11  ;;  %v9245_v8 = vadd.f32 1.0, %v12873_v17  ;;  %v9246_v34 = vadd.f32 1.0, %v12875_v48 }
 0x5dc   :  { %12894 = vpow2.f32 %v9235_v49  ;;  %v9243_v2 = vmul.f32 1.442695, %v19639_v1  ;;  %v9247_v35 = vadd.f32 1.0, %v12877_v22  ;;  %v9248_v16 = vadd.f32 1.0, %v12879_v52 }
 0x5dd   :  { %12896 = vpow2.f32 %v9237_v9  ;;  %v12881_v0 = vpop.eup %12880 }
 0x5de   :  { %12898 = vpow2.f32 %v9239_v54  ;;  %v12883_v61 = vpop.eup %12882  ;;  %v9249_v11 = vadd.f32 1.0, %v12881_v0 }
 0x5df   :  { %12900 = vpow2.f32 %v9241_v33  ;;  %v12885_v59 = vpop.eup %12884  ;;  %v9250_v6 = vadd.f32 1.0, %v12883_v61 }
 0x5e0   :  { %12902 = vpow2.f32 %v9243_v2  ;;  %v9251_v37 = vadd.f32 1.0, %v12885_v59 }
 0x5e1   :  { %12904 = vrcp.f32 %v9245_v8 }
 0x5e2   :  { %v12887_v41 = vpop.eup %12886  ;;  %12906 = vrcp.f32 %v9246_v34 }
 0x5e3   :  { %v12889_v49 = vpop.eup %12888  ;;  %12908 = vrcp.f32 %v9247_v35  ;;  %v9252_v9 = vadd.f32 1.0, %v12887_v41 }
 0x5e4   :  { %v12891_v1 = vpop.eup %12890  ;;  %12910 = vrcp.f32 %v9248_v16  ;;  %v9253_v54 = vadd.f32 1.0, %v12889_v49 }
 0x5e5   :  { %v12893_v17 = vpop.eup %12892  ;;  %12912 = vrcp.f32 %v9249_v11  ;;  %v9254_v33 = vadd.f32 1.0, %v12891_v1 }
 0x5e6   :  { %v12895_v48 = vpop.eup %12894  ;;  %12914 = vrcp.f32 %v9250_v6  ;;  %v9255_v2 = vadd.f32 1.0, %v12893_v17 }
 0x5e7   :  { %v12897_v22 = vpop.eup %12896  ;;  %12916 = vrcp.f32 %v9251_v37  ;;  %v9256_v52 = vadd.f32 1.0, %v12895_v48 }
 0x5e8   :  { %v12899_v0 = vpop.eup %12898  ;;  %12918 = vrcp.f32 %v9252_v9  ;;  %v9257_v8 = vadd.f32 1.0, %v12897_v22 }
 0x5e9   :  { %v12901_v61 = vpop.eup %12900  ;;  %12920 = vrcp.f32 %v9253_v54  ;;  %v9258_v34 = vadd.f32 1.0, %v12899_v0 }
 0x5ea   :  { %v12903_v59 = vpop.eup %12902  ;;  %12922 = vrcp.f32 %v9254_v33  ;;  %v9259_v16 = vadd.f32 1.0, %v12901_v61 }
 0x5eb   :  { %v12905_v41 = vpop.eup %12904  ;;  %12924 = vrcp.f32 %v9255_v2  ;;  %v9260_v11 = vadd.f32 1.0, %v12903_v59 }
 0x5ec   :  { %v12907_v35 = vpop.eup %12906  ;;  %12926 = vrcp.f32 %v9256_v52  ;;  %v9277_v6 = vmul.f32 %v12905_v41, %v17748_v55 }
 0x5ed   :  { %v12909_v49 = vpop.eup %12908  ;;  %12928 = vrcp.f32 %v9257_v8  ;;  %v9278_v37 = vmul.f32 %v12907_v35, %v17752_v63 }
 0x5ee   :  { %v12911_v1 = vpop.eup %12910  ;;  %12930 = vrcp.f32 %v9258_v34  ;;  %v9279_v9 = vmul.f32 %v12909_v49, %v17756_v58  ;;  %v17934_v17 = vmul.f32 %v15799_v21, %v9277_v6 }
 0x5ef   :  { %v12913_v54 = vpop.eup %12912  ;;  %12932 = vrcp.f32 %v9259_v16  ;;  %v9280_v48 = vmul.f32 %v12911_v1, %v17760_v56  ;;  %v17938_v33 = vmul.f32 %v19314_v18, %v9278_v37 }
 0x5f0   :  { %v12915_v22 = vpop.eup %12914  ;;  %12934 = vrcp.f32 %v9260_v11  ;;  %v9281_v55 = vmul.f32 %v12913_v54, %v17764_v20  ;;  %v17942_v63 = vmul.f32 %v19319_v29, %v9279_v9  ;;  %v19640_v54 = vld [vmem:[#allocation20_spill] sm:$0xff] }
 0x5f1   :  { %v12917_v2 = vpop.eup %12916  ;;  %v9282_v58 = vmul.f32 %v12915_v22, %v17768_v5  ;;  %v17946_v21 = vmul.f32 %v19324_v62, %v9280_v48  ;;  %v9309_v0 = vpack.c.bf16 %v17938_v33, %v17934_v17  ;;  %11961 = vmatprep.subr.bf16.mxu0 %v19640_v54 }
 0x5f2   :  { %v12919_v56 = vpop.eup %12918  ;;  %v9283_v18 = vmul.f32 %v12917_v2, %v17772_v28  ;;  %v17952_v52 = vmul.f32 %v19327_v7, %v9281_v55 }
 0x5f3   :  { %v12921_v61 = vpop.eup %12920  ;;  %v9284_v20 = vmul.f32 %v12919_v56, %v17776_v45  ;;  %v17956_v29 = vmul.f32 %v19330_v23, %v9282_v58  ;;  %v9310_v5 = vpack.c.bf16 %v17946_v21, %v17942_v63 }
 0x5f4   :  { %v12923_v62 = vpop.eup %12922  ;;  %v9285_v8 = vmul.f32 %v12921_v61, %v17780_v57  ;;  %v17962_v59 = vmul.f32 %v19333_v14, %v9283_v18 }
 0x5f5   :  { %v12925_v34 = vpop.eup %12924  ;;  %v9286_v28 = vmul.f32 %v12923_v62, %v17784_v25  ;;  %v17966_v7 = vmul.f32 %v19336_v30, %v9284_v20  ;;  %v9311_v45 = vpack.c.bf16 %v17956_v29, %v17952_v52 }
 0x5f6   :  { %v12927_v23 = vpop.eup %12926  ;;  %v9287_v41 = vmul.f32 %v12925_v34, %v17788_v15  ;;  %v17972_v16 = vmul.f32 %v19339_v19, %v9285_v8 }
 0x5f7   :  { %v12929_v35 = vpop.eup %12928  ;;  %v9288_v57 = vmul.f32 %v12927_v23, %v17792_v36  ;;  %v17976_v14 = vmul.f32 %v19342_v26, %v9286_v28  ;;  %v9312_v25 = vpack.c.bf16 %v17966_v7, %v17962_v59 }
 0x5f8   :  { %v12931_v30 = vpop.eup %12930  ;;  %v9289_v11 = vmul.f32 %v12929_v35, %v17796_v12  ;;  %v17982_v6 = vmul.f32 %v19345_v40, %v9287_v41 }
 0x5f9   :  { %v12933_v49 = vpop.eup %12932  ;;  %v9290_v15 = vmul.f32 %v12931_v30, %v17800_v4  ;;  %v17986_v19 = vmul.f32 %v19348_v3, %v9288_v57  ;;  %v9313_v36 = vpack.c.bf16 %v17976_v14, %v17972_v16 }
 0x5fa   :  { %v12935_v26 = vpop.eup %12934  ;;  %v9291_v37 = vmul.f32 %v12933_v49, %v17804_v42  ;;  %v17992_v1 = vmul.f32 %v19351_v51, %v9289_v11 }
 0x5fb   :  { %v9292_v12 = vmul.f32 %v12935_v26, %v17808_v31  ;;  %v17996_v40 = vmul.f32 %v19354_v10, %v9290_v15  ;;  %v9314_v4 = vpack.c.bf16 %v17986_v19, %v17982_v6  ;;  %v19641_v31 = vld [vmem:[#allocation36_spill] sm:$0xff] }
 0x5fc   :  { %v18001_v3 = vmul.f32 %v19587_v27, %v9291_v37  ;;  %12025 = vmatprep.subr.bf16.mxu1 %v19641_v31 }
 0x5fd   :  { %v18004_v9 = vmul.f32 %v19592_v50, %v9292_v12  ;;  %v9315_v42 = vpack.c.bf16 %v17996_v40, %v17992_v1 }
 0x5ff   :  { %v9316_v51 = vpack.c.bf16 %v18004_v9, %v18001_v3 }
 0x600   :  { %13030 = dma.done.wait [#allocation6], 8192 }
 0x601   :  { %13031 = vsyncadd [#allocation6], 4294959104  ;;  %v19642_v10 = vld [vmem:[#allocation12_spill] sm:$0xff]  ;;  %v19644_v27 = vld [vmem:[#allocation21_spill] sm:$0xff]  ;;  %v19812_v33 = vpack.c.bf16 %v17842_v32, %v17837_v53  ;;  %v19819_v21 = vpack.c.bf16 %v17852_v24, %v17848_v46  ;;  %v19826_v29 = vpack.c.bf16 %v17862_v38, %v17858_v47  ;;  %v19833_v7 = vpack.c.bf16 %v17874_v43, %v17868_v60 }
 0x602   :  { %11962 = vmatpush3.bf16.msra.mxu0 %v19642_v10  ;;  %v19643_v48 = vld [vmem:[#allocation28_spill] sm:$0xff]  ;;  %v19645_v50 = vld [vmem:[#allocation37_spill] sm:$0xff]  ;;  %v19654_v62 = vld [vmem:[#allocation22_spill] sm:$0xff] }
 0x603   :  { %12026 = vmatpush3.bf16.msra.mxu1 %v19643_v48  ;;  %11963 = vmatprep.subr.bf16.mxu0 %v19644_v27  ;;  %v19646_v22 = vld [vmem:[#allocation185_spill] sm:$0xff]  ;;  %v19647_v55 = vld [vmem:[#allocation184_spill] sm:$0xff]  ;;  %v19655_v8 = vld [vmem:[#allocation38_spill] sm:$0xff] }
 0x604   :  { %12027 = vmatprep.subr.bf16.mxu1 %v19645_v50  ;;  %v19648_v2 = vpack.c.bf16 %v19646_v22, %v19647_v55  ;;  %v19649_v58 = vld [vmem:[#allocation129_spill] sm:$0xff]  ;;  %v19650_v56 = vld [vmem:[#allocation128_spill] sm:$0xff]  ;;  %v19656_v34 = vld [vmem:[#allocation14_spill] sm:$0xff] }
 0x605   :  { %v19651_v18 = vpack.c.bf16 %v19649_v58, %v19650_v56  ;;  %v19652_v61 = vld [vmem:[#allocation13_spill] sm:$0xff]  ;;  %v19657_v28 = vld [vmem:[#allocation30_spill] sm:$0xff]  ;;  %v19658_v23 = vld [vmem:[#allocation23_spill] sm:$0xff] }
 0x606   :  { %9489 = vmatprep.mubr.bf16.mxu0 %v19648_v2  ;;  %11964 = vmatpush3.bf16.msra.mxu0 %v19652_v61  ;;  %v19653_v20 = vld [vmem:[#allocation29_spill] sm:$0xff]  ;;  %v19659_v41 = vld [vmem:[#allocation39_spill] sm:$0xff]  ;;  %v19662_v30 = vld [vmem:[#allocation24_spill] sm:$0xff] }
 0x607   :  { %9586 = vmatprep.mubr.bf16.mxu1 %v19651_v18  ;;  %12028 = vmatpush3.bf16.msra.mxu1 %v19653_v20  ;;  %v19660_v35 = vld [vmem:[#allocation15_spill] sm:$0xff]  ;;  %v19663_v11 = vld [vmem:[#allocation40_spill] sm:$0xff]  ;;  %v19666_v26 = vld [vmem:[#allocation25_spill] sm:$0xff] }
 0x608   :  { %11965 = vmatprep.subr.bf16.mxu0 %v19654_v62  ;;  %12029 = vmatprep.subr.bf16.mxu1 %v19655_v8  ;;  %v19661_v57 = vld [vmem:[#allocation31_spill] sm:$0xff]  ;;  %v19664_v49 = vld [vmem:[#allocation16_spill] sm:$0xff]  ;;  %v19667_v37 = vld [vmem:[#allocation41_spill] sm:$0xff] }
 0x609   :  { %v19665_v15 = vld [vmem:[#allocation32_spill] sm:$0xff]  ;;  %v19668_v12 = vld [vmem:[#allocation17_spill] sm:$0xff]  ;;  %v19670_v31 = vld [vmem:[#allocation26_spill] sm:$0xff] }
 0x60a   :  { %11966 = vmatpush3.bf16.msra.mxu0 %v19656_v34  ;;  %v19669_v54 = vld [vmem:[#allocation33_spill] sm:$0xff]  ;;  %v19671_v10 = vld [vmem:[#allocation42_spill] sm:$0xff]  ;;  %v19674_v50 = vld [vmem:[#allocation27_spill] sm:$0xff] }
 0x60b   :  { %12030 = vmatpush3.bf16.msra.mxu1 %v19657_v28  ;;  %11967 = vmatprep.subr.bf16.mxu0 %v19658_v23  ;;  %v19672_v48 = vld [vmem:[#allocation18_spill] sm:$0xff]  ;;  %v19675_v22 = vld [vmem:[#allocation43_spill] sm:$0xff]  ;;  %v19678_v58 = vld [vmem:[#allocation52_spill] sm:$0xff] }
 0x60c   :  { %12031 = vmatprep.subr.bf16.mxu1 %v19659_v41  ;;  %v19673_v27 = vld [vmem:[#allocation34_spill] sm:$0xff]  ;;  %v19676_v55 = vld [vmem:[#allocation19_spill] sm:$0xff]  ;;  %v19679_v56 = vld [vmem:[#allocation68_spill] sm:$0xff] }
 0x60d   :  { %v19677_v2 = vld [vmem:[#allocation35_spill] sm:$0xff]  ;;  %v19680_v18 = vld [vmem:[#allocation113_spill] sm:$0xff]  ;;  %v19681_v61 = vld [vmem:[#allocation206_spill] sm:$0xff] }
 0x60e   :  { %11968 = vmatpush3.bf16.msra.mxu0 %v19660_v35  ;;  %v19682_v20 = vpack.c.bf16 %v19680_v18, %v19681_v61  ;;  %v19683_v62 = vld [vmem:[#allocation194_spill] sm:$0xff]  ;;  %v19686_v28 = vld [vmem:[#allocation44_spill] sm:$0xff]  ;;  %v19688_v41 = vld [vmem:[#allocation187_spill] sm:$0xff] }
 0x60f   :  { %12032 = vmatpush3.bf16.msra.mxu1 %v19661_v57  ;;  %11969 = vmatprep.subr.bf16.mxu0 %v19662_v30  ;;  %v19684_v8 = vld [vmem:[#allocation142_spill] sm:$0xff]  ;;  %v19687_v23 = vld [vmem:[#allocation60_spill] sm:$0xff]  ;;  %v19709_v18 = vld [vmem:[#allocation91_spill] sm:$0xff] }
 0x610   :  { %12033 = vmatprep.subr.bf16.mxu1 %v19663_v11  ;;  %v19685_v34 = vpack.c.bf16 %v19683_v62, %v19684_v8  ;;  %v19689_v35 = vld [vmem:[#allocation186_spill] sm:$0xff]  ;;  %v19710_v61 = vld [vmem:[#allocation147_spill] sm:$0xff]  ;;  %v19823_v32 = vld [vmem:[#allocation193_spill] sm:$0xff] }
 0x611   :  { %v19690_v57 = vpack.c.bf16 %v19688_v41, %v19689_v35  ;;  %v19691_v30 = vld [vmem:[#allocation114_spill] sm:$0xff]  ;;  %v19717_v41 = vld [vmem:[#allocation63_spill] sm:$0xff]  ;;  %v19718_v35 = vld [vmem:[#allocation56_spill] sm:$0xff] }
 0x612   :  { %11970 = vmatpush3.bf16.msra.mxu0 %v19664_v49  ;;  %v19692_v11 = vld [vmem:[#allocation90_spill] sm:$0xff]  ;;  %v19830_v24 = vld [vmem:[#allocation153_spill] sm:$0xff]  ;;  %v19840_v14 = vld [vmem:[#allocation88_spill] sm:$0xff] }
 0x613   :  { %12034 = vmatpush3.bf16.msra.mxu1 %v19665_v15  ;;  %11971 = vmatprep.subr.bf16.mxu0 %v19666_v26  ;;  %v19693_v49 = vpack.c.bf16 %v19691_v30, %v19692_v11  ;;  %v19694_v15 = vld [vmem:[#allocation53_spill] sm:$0xff]  ;;  %v19712_v62 = vld [vmem:[#allocation46_spill] sm:$0xff]  ;;  %v19720_v30 = vld [vmem:[#allocation115_spill] sm:$0xff] }
 0x614   :  { %12035 = vmatprep.subr.bf16.mxu1 %v19667_v37  ;;  %v19695_v26 = vld [vmem:[#allocation69_spill] sm:$0xff]  ;;  %v19713_v8 = vld [vmem:[#allocation62_spill] sm:$0xff]  ;;  %v19846_v43 = vld [vmem:[#allocation155_spill] sm:$0xff] }
 0x615   :  { %v19696_v37 = vld [vmem:[#allocation45_spill] sm:$0xff]  ;;  %v19721_v11 = vld [vmem:[#allocation178_spill] sm:$0xff]  ;;  %v19858_v40 = vld [vmem:[#allocation204_spill] sm:$0xff] }
 0x616   :  { %11972 = vmatpush3.bf16.msra.mxu0 %v19668_v12  ;;  %v19697_v12 = vld [vmem:[#allocation61_spill] sm:$0xff]  ;;  %v19837_v38 = vld [vmem:[#allocation154_spill] sm:$0xff] }
 0x617   :  { %12036 = vmatpush3.bf16.msra.mxu1 %v19669_v54  ;;  %11973 = vmatprep.subr.bf16.mxu0 %v19670_v31  ;;  %v19698_v54 = vld [vmem:[#allocation54_spill] sm:$0xff] }
 0x618   :  { %12037 = vmatprep.subr.bf16.mxu1 %v19671_v10  ;;  %v19699_v31 = vld [vmem:[#allocation70_spill] sm:$0xff] }
 0x619   :  { %v19700_v10 = vld [vmem:[#allocation130_spill] sm:$0xff] }
 0x61a   :  { %11974 = vmatpush3.bf16.msra.mxu0 %v19672_v48  ;;  %v19701_v48 = vld [vmem:[#allocation177_spill] sm:$0xff]  ;;  %v19849_v19 = vld [vmem:[#allocation122_spill] sm:$0xff] }
 0x61b   :  { %12038 = vmatpush3.bf16.msra.mxu1 %v19673_v27  ;;  %11975 = vmatprep.subr.bf16.mxu0 %v19674_v50  ;;  %v19702_v27 = vpack.c.bf16 %v19700_v10, %v19701_v48  ;;  %v19703_v50 = vld [vmem:[#allocation82_spill] sm:$0xff]  ;;  %v19729_v10 = vld [vmem:[#allocation92_spill] sm:$0xff] }
 0x61c   :  { %12039 = vmatprep.subr.bf16.mxu1 %v19675_v22  ;;  %v19704_v22 = vld [vmem:[#allocation195_spill] sm:$0xff]  ;;  %v19730_v48 = vld [vmem:[#allocation148_spill] sm:$0xff] }
 0x61e   :  { %11976 = vmatpush3.bf16.msra.mxu0 %v19676_v55  ;;  %v19705_v55 = vpack.c.bf16 %v19703_v50, %v19704_v22  ;;  %v19732_v50 = vld [vmem:[#allocation48_spill] sm:$0xff] }
 0x61f   :  { %12040 = vmatpush3.bf16.msra.mxu1 %v19677_v2  ;;  %12089 = vmatprep.subr.bf16.mxu0 %v19678_v58  ;;  %v19706_v2 = vld [vmem:[#allocation125_spill] sm:$0xff]  ;;  %v19707_v58 = vld [vmem:[#allocation124_spill] sm:$0xff] }
 0x620   :  { %12153 = vmatprep.subr.bf16.mxu1 %v19679_v56  ;;  %v19708_v56 = vpack.c.bf16 %v19706_v2, %v19707_v58  ;;  %v19733_v22 = vld [vmem:[#allocation64_spill] sm:$0xff]  ;;  %v19735_v2 = vld [vmem:[#allocation73_spill] sm:$0xff] }
 0x621   :  { %9490 = vmatmul.mubr.bf16.vlgmr.msra.gmra.mrb[48].mxu0 %v19682_v20  ;;  %v19711_v20 = vpack.c.bf16 %v19709_v18, %v19710_v61  ;;  %v19736_v58 = vld [vmem:[#allocation49_spill] sm:$0xff]  ;;  %v19738_v18 = vld [vmem:[#allocation58_spill] sm:$0xff] }
 0x622   :  { %9587 = vmatmul.mubr.bf16.vlgmr.msra.gmra.mrb[208].mxu1 %v19685_v34  ;;  %12090 = vmatpush3.bf16.msra.mxu0 %v19686_v28  ;;  %v19714_v34 = vld [vmem:[#allocation55_spill] sm:$0xff]  ;;  %v19739_v61 = vld [vmem:[#allocation74_spill] sm:$0xff] }
 0x623   :  { %12154 = vmatpush3.bf16.msra.mxu1 %v19687_v23  ;;  %9497 = vmatprep.mubr.bf16.mxu0 %v19690_v57  ;;  %v19715_v28 = vld [vmem:[#allocation71_spill] sm:$0xff]  ;;  %v19719_v57 = vld [vmem:[#allocation72_spill] sm:$0xff] }
 0x624   :  { %9594 = vmatprep.mubr.bf16.mxu1 %v19693_v49  ;;  %12091 = vmatprep.subr.bf16.mxu0 %v19694_v15  ;;  %v19716_v23 = vld [vmem:[#allocation47_spill] sm:$0xff]  ;;  %v19722_v49 = vpack.c.bf16 %v19720_v30, %v19721_v11  ;;  %v19749_v30 = vld [vmem:[#allocation93_spill] sm:$0xff] }
 0x625   :  { %12155 = vmatprep.subr.bf16.mxu1 %v19695_v26  ;;  %v19723_v15 = vld [vmem:[#allocation143_spill] sm:$0xff]  ;;  %v19724_v26 = vld [vmem:[#allocation196_spill] sm:$0xff]  ;;  %v19750_v11 = vld [vmem:[#allocation149_spill] sm:$0xff] }
 0x626   :  { %12092 = vmatpush3.bf16.msra.mxu0 %v19696_v37  ;;  %v19725_v37 = vpack.c.bf16 %v19723_v15, %v19724_v26  ;;  %v19752_v15 = vld [vmem:[#allocation50_spill] sm:$0xff] }
 0x627   :  { %12156 = vmatpush3.bf16.msra.mxu1 %v19697_v12  ;;  %12093 = vmatprep.subr.bf16.mxu0 %v19698_v54  ;;  %v19726_v12 = vld [vmem:[#allocation133_spill] sm:$0xff]  ;;  %v19727_v54 = vld [vmem:[#allocation131_spill] sm:$0xff]  ;;  %v19753_v26 = vld [vmem:[#allocation66_spill] sm:$0xff] }
 0x628   :  { %12157 = vmatprep.subr.bf16.mxu1 %v19699_v31  ;;  %v19728_v31 = vpack.c.bf16 %v19726_v12, %v19727_v54  ;;  %v19755_v12 = vld [vmem:[#allocation75_spill] sm:$0xff] }
 0x629   :  { %9498 = vmatmul.mubr.bf16.gmra.mrb[52].mxu0 %v19702_v27  ;;  %v19731_v27 = vpack.c.bf16 %v19729_v10, %v19730_v48  ;;  %v19756_v54 = vld [vmem:[#allocation51_spill] sm:$0xff]  ;;  %v19758_v10 = vld [vmem:[#allocation117_spill] sm:$0xff]  ;;  %v19759_v48 = vld [vmem:[#allocation180_spill] sm:$0xff] }
 0x62a   :  { %9595 = vmatmul.mubr.bf16.gmra.mrb[212].mxu1 %v19705_v55  ;;  %9505 = vmatprep.mubr.bf16.mxu0 %v19708_v56  ;;  %v19734_v55 = vld [vmem:[#allocation57_spill] sm:$0xff] }
 0x62b   :  { %9602 = vmatprep.mubr.bf16.mxu1 %v19711_v20  ;;  %12094 = vmatpush3.bf16.msra.mxu0 %v19712_v62  ;;  %v19737_v56 = vld [vmem:[#allocation65_spill] sm:$0xff]  ;;  %v19740_v20 = vld [vmem:[#allocation116_spill] sm:$0xff]  ;;  %v19741_v62 = vld [vmem:[#allocation179_spill] sm:$0xff] }
 0x62c   :  { %12158 = vmatpush3.bf16.msra.mxu1 %v19713_v8  ;;  %12095 = vmatprep.subr.bf16.mxu0 %v19714_v34  ;;  %v19742_v8 = vpack.c.bf16 %v19740_v20, %v19741_v62  ;;  %v19743_v34 = vld [vmem:[#allocation144_spill] sm:$0xff]  ;;  %v19770_v62 = vld [vmem:[#allocation118_spill] sm:$0xff] }
 0x62d   :  { %12159 = vmatprep.subr.bf16.mxu1 %v19715_v28  ;;  %v19744_v28 = vld [vmem:[#allocation85_spill] sm:$0xff] }
 0x62f   :  { %12096 = vmatpush3.bf16.msra.mxu0 %v19716_v23  ;;  %v19745_v23 = vpack.c.bf16 %v19743_v34, %v19744_v28  ;;  %v19773_v28 = vld [vmem:[#allocation87_spill] sm:$0xff] }
 0x630   :  { %12160 = vmatpush3.bf16.msra.mxu1 %v19717_v41  ;;  %12097 = vmatprep.subr.bf16.mxu0 %v19718_v35  ;;  %v19746_v41 = vld [vmem:[#allocation136_spill] sm:$0xff]  ;;  %v19747_v35 = vld [vmem:[#allocation134_spill] sm:$0xff] }
 0x631   :  { %12161 = vmatprep.subr.bf16.mxu1 %v19719_v57  ;;  %9506 = vmatmul.mubr.bf16.gmra.mrb[56].mxu0 %v19722_v49  ;;  %v19748_v57 = vpack.c.bf16 %v19746_v41, %v19747_v35  ;;  %v19751_v49 = vpack.c.bf16 %v19749_v30, %v19750_v11  ;;  %v19776_v35 = vld [vmem:[#allocation190_spill] sm:$0xff]  ;;  %v19779_v11 = vld [vmem:[#allocation95_spill] sm:$0xff] }
 0x632   :  { %9603 = vmatmul.mubr.bf16.gmra.mrb[216].mxu1 %v19725_v37  ;;  %9513 = vmatprep.mubr.bf16.mxu0 %v19728_v31  ;;  %v19754_v37 = vld [vmem:[#allocation59_spill] sm:$0xff] }
 0x633   :  { %9610 = vmatprep.mubr.bf16.mxu1 %v19731_v27  ;;  %12098 = vmatpush3.bf16.msra.mxu0 %v19732_v50  ;;  %v19757_v31 = vld [vmem:[#allocation67_spill] sm:$0xff]  ;;  %v19760_v27 = vpack.c.bf16 %v19758_v10, %v19759_v48  ;;  %v19761_v50 = vld [vmem:[#allocation198_spill] sm:$0xff]  ;;  %v19788_v48 = vld [vmem:[#allocation192_spill] sm:$0xff] }
 0x634   :  { %12162 = vmatpush3.bf16.msra.mxu1 %v19733_v22  ;;  %12099 = vmatprep.subr.bf16.mxu0 %v19734_v55  ;;  %v19762_v22 = vld [vmem:[#allocation197_spill] sm:$0xff] }
 0x635   :  { %12163 = vmatprep.subr.bf16.mxu1 %v19735_v2  ;;  %v19763_v55 = vpack.c.bf16 %v19761_v50, %v19762_v22  ;;  %v19764_v2 = vld [vmem:[#allocation139_spill] sm:$0xff]  ;;  %v19791_v22 = vld [vmem:[#allocation121_spill] sm:$0xff] }
 0x637   :  { %12100 = vmatpush3.bf16.msra.mxu0 %v19736_v58  ;;  %v19765_v58 = vld [vmem:[#allocation137_spill] sm:$0xff] }
 0x638   :  { %12164 = vmatpush3.bf16.msra.mxu1 %v19737_v56  ;;  %12101 = vmatprep.subr.bf16.mxu0 %v19738_v18  ;;  %v19766_v56 = vpack.c.bf16 %v19764_v2, %v19765_v58  ;;  %v19767_v18 = vld [vmem:[#allocation94_spill] sm:$0xff]  ;;  %v19794_v58 = vld [vmem:[#allocation120_spill] sm:$0xff] }
 0x639   :  { %12165 = vmatprep.subr.bf16.mxu1 %v19739_v61  ;;  %9514 = vmatmul.mubr.bf16.gmra.mrb[60].mxu0 %v19742_v8  ;;  %v19768_v61 = vld [vmem:[#allocation150_spill] sm:$0xff]  ;;  %v19771_v8 = vld [vmem:[#allocation181_spill] sm:$0xff] }
 0x63a   :  { %9611 = vmatmul.mubr.bf16.gmra.mrb[220].mxu1 %v19745_v23  ;;  %9521 = vmatprep.mubr.bf16.mxu0 %v19748_v57  ;;  %v19769_v20 = vpack.c.bf16 %v19767_v18, %v19768_v61  ;;  %v19772_v34 = vpack.c.bf16 %v19770_v62, %v19771_v8  ;;  %v19774_v23 = vld [vmem:[#allocation199_spill] sm:$0xff]  ;;  %v19777_v57 = vld [vmem:[#allocation189_spill] sm:$0xff] }
 0x63b   :  { %9618 = vmatprep.mubr.bf16.mxu1 %v19751_v49  ;;  %12102 = vmatpush3.bf16.msra.mxu0 %v19752_v15  ;;  %v19775_v41 = vpack.c.bf16 %v19773_v28, %v19774_v23  ;;  %v19778_v30 = vpack.c.bf16 %v19776_v35, %v19777_v57  ;;  %v19780_v49 = vld [vmem:[#allocation151_spill] sm:$0xff]  ;;  %v19800_v8 = vld [vmem:[#allocation205_spill] sm:$0xff]  ;;  %v19802_v28 = vld [vmem:[#allocation188_spill] sm:$0xff]  ;;  %v19805_v35 = vpack.c.bf16 %v17832_v44, %v17827_v39 }
 0x63c   :  { %12166 = vmatpush3.bf16.msra.mxu1 %v19753_v26  ;;  %12103 = vmatprep.subr.bf16.mxu0 %v19754_v37  ;;  %v19781_v15 = vpack.c.bf16 %v19779_v11, %v19780_v49  ;;  %v19782_v26 = vld [vmem:[#allocation119_spill] sm:$0xff]  ;;  %v19783_v37 = vld [vmem:[#allocation182_spill] sm:$0xff]  ;;  %v19806_v57 = vld [vmem:[#allocation77_spill] sm:$0xff] }
 0x63d   :  { %12167 = vmatprep.subr.bf16.mxu1 %v19755_v12  ;;  %v19784_v12 = vpack.c.bf16 %v19782_v26, %v19783_v37  ;;  %v19797_v61 = vld [vmem:[#allocation203_spill] sm:$0xff]  ;;  %v19810_v49 = vld [vmem:[#allocation132_spill] sm:$0xff]  ;;  %v19817_v26 = vld [vmem:[#allocation138_spill] sm:$0xff] }
 0x63e   :  { %v19803_v23 = vld [vmem:[#allocation123_spill] sm:$0xff]  ;;  %v19816_v44 = vld [vmem:[#allocation140_spill] sm:$0xff]  ;;  %v19821_v37 = vld [vmem:[#allocation162_spill] sm:$0xff] }
 0x63f   :  { %12104 = vmatpush3.bf16.msra.mxu0 %v19756_v54  ;;  %v19785_v54 = vld [vmem:[#allocation201_spill] sm:$0xff]  ;;  %v19818_v63 = vpack.c.bf16 %v19816_v44, %v19817_v26 }
 0x640   :  { %12168 = vmatpush3.bf16.msra.mxu1 %v19757_v31  ;;  %v19786_v31 = vld [vmem:[#allocation200_spill] sm:$0xff] }
 0x641   :  { %9522 = vmatmul.mubr.bf16.gmra.mrb[64].mxu0 %v19760_v27  ;;  %v19787_v10 = vpack.c.bf16 %v19785_v54, %v19786_v31  ;;  %v19789_v27 = vld [vmem:[#allocation191_spill] sm:$0xff]  ;;  %v19831_v31 = vld [vmem:[#allocation96_spill] sm:$0xff] }
 0x642   :  { %9619 = vmatmul.mubr.bf16.gmra.mrb[224].mxu1 %v19763_v55  ;;  %9529 = vmatprep.mubr.bf16.mxu0 %v19766_v56  ;;  %v19790_v50 = vpack.c.bf16 %v19788_v48, %v19789_v27  ;;  %v19792_v55 = vld [vmem:[#allocation152_spill] sm:$0xff]  ;;  %v19795_v56 = vld [vmem:[#allocation183_spill] sm:$0xff]  ;;  %v19832_v59 = vpack.c.bf16 %v19830_v24, %v19831_v31  ;;  %v19838_v48 = vld [vmem:[#allocation97_spill] sm:$0xff] }
 0x643   :  { %9626 = vmatprep.mubr.bf16.mxu1 %v19769_v20  ;;  %v19793_v2 = vpack.c.bf16 %v19791_v22, %v19792_v55  ;;  %v19796_v18 = vpack.c.bf16 %v19794_v58, %v19795_v56  ;;  %v19798_v20 = vld [vmem:[#allocation145_spill] sm:$0xff]  ;;  %v19828_v54 = vld [vmem:[#allocation163_spill] sm:$0xff]  ;;  %v19839_v16 = vpack.c.bf16 %v19837_v38, %v19838_v48  ;;  %v19847_v55 = vld [vmem:[#allocation98_spill] sm:$0xff] }
 0x644   :  { %v19799_v62 = vpack.c.bf16 %v19797_v61, %v19798_v20  ;;  %v19844_v22 = vld [vmem:[#allocation165_spill] sm:$0xff]  ;;  %v19848_v6 = vpack.c.bf16 %v19846_v43, %v19847_v55  ;;  %v19852_v58 = vld [vmem:[#allocation86_spill] sm:$0xff]  ;;  %v19855_v61 = vld [vmem:[#allocation156_spill] sm:$0xff] }
 0x645   :  { %v19853_v56 = vld [vmem:[#allocation166_spill] sm:$0xff]  ;;  %v19856_v20 = vld [vmem:[#allocation99_spill] sm:$0xff] }
 0x646   :  { %v19857_v1 = vpack.c.bf16 %v19855_v61, %v19856_v20 }
 0x649   :  { %9530 = vmatmul.mubr.bf16.gmra.mrb[68].mxu0 %v19772_v34  ;;  %v19801_v34 = vpack.c.bf16 %v17662_v13, %v19800_v8  ;;  %v19809_v13 = vld [vmem:[#allocation135_spill] sm:$0xff] }
 0x64a   :  { %9627 = vmatmul.mubr.bf16.gmra.mrb[228].mxu1 %v19775_v41  ;;  %9537 = vmatprep.mubr.bf16.mxu0 %v19778_v30  ;;  %v19804_v41 = vpack.c.bf16 %v19802_v28, %v19803_v23  ;;  %v19807_v30 = vld [vmem:[#allocation146_spill] sm:$0xff]  ;;  %v19811_v17 = vpack.c.bf16 %v19809_v13, %v19810_v49 }
 0x64b   :  { %9634 = vmatprep.mubr.bf16.mxu1 %v19781_v15  ;;  %v19808_v11 = vpack.c.bf16 %v19806_v57, %v19807_v30  ;;  %v19814_v15 = vld [vmem:[#allocation161_spill] sm:$0xff] }
 0x651   :  { %9538 = vmatmul.mubr.bf16.gmra.mrb[72].mxu0 %v19784_v12  ;;  %v19824_v12 = vld [vmem:[#allocation141_spill] sm:$0xff] }
 0x652   :  { %9635 = vmatmul.mubr.bf16.gmra.mrb[232].mxu1 %v19787_v10  ;;  %9545 = vmatprep.mubr.bf16.mxu0 %v19790_v50  ;;  %v19825_v52 = vpack.c.bf16 %v19823_v32, %v19824_v12  ;;  %v19835_v10 = vld [vmem:[#allocation164_spill] sm:$0xff] }
 0x653   :  { %9642 = vmatprep.mubr.bf16.mxu1 %v19793_v2  ;;  %v19843_v50 = vld [vmem:[#allocation84_spill] sm:$0xff] }
 0x654   :  { %v19845_v60 = vpack.c.bf16 %v19843_v50, %v19844_v22 }
 0x659   :  { %9546 = vmatmul.mubr.bf16.gmra.mrb[76].mxu0 %v19796_v18  ;;  %v19854_v18 = vpack.c.bf16 %v19852_v58, %v19853_v56 }
 0x65a   :  { %9643 = vmatmul.mubr.bf16.gmra.mrb[236].mxu1 %v19799_v62  ;;  %9683 = vmatprep.mubr.bf16.mxu0 %v19801_v34 }
 0x65b   :  { %9780 = vmatprep.mubr.bf16.mxu1 %v9309_v0  ;;  %v19813_v0 = vld [vmem:[#allocation78_spill] sm:$0xff] }
 0x65c   :  { %v19815_v39 = vpack.c.bf16 %v19813_v0, %v19814_v15 }
 0x661   :  { %9684 = vmatmul.mubr.bf16.vlgmr.msra.gmra.mrb[80].mxu0 %v19804_v41 }
 0x662   :  { %9781 = vmatmul.mubr.bf16.vlgmr.msra.gmra.mrb[240].mxu1 %v19805_v35  ;;  %9691 = vmatprep.mubr.bf16.mxu0 %v19808_v11 }
 0x663   :  { %9788 = vmatprep.mubr.bf16.mxu1 %v9310_v5  ;;  %v19820_v5 = vld [vmem:[#allocation80_spill] sm:$0xff] }
 0x664   :  { %v19822_v53 = vpack.c.bf16 %v19820_v5, %v19821_v37 }
 0x669   :  { %9692 = vmatmul.mubr.bf16.gmra.mrb[84].mxu0 %v19811_v17 }
 0x66a   :  { %9789 = vmatmul.mubr.bf16.gmra.mrb[244].mxu1 %v19812_v33  ;;  %9699 = vmatprep.mubr.bf16.mxu0 %v19815_v39 }
 0x66b   :  { %9796 = vmatprep.mubr.bf16.mxu1 %v9311_v45  ;;  %v19827_v45 = vld [vmem:[#allocation81_spill] sm:$0xff] }
 0x66c   :  { %v19829_v46 = vpack.c.bf16 %v19827_v45, %v19828_v54 }
 0x671   :  { %9700 = vmatmul.mubr.bf16.gmra.mrb[88].mxu0 %v19818_v63 }
 0x672   :  { %9797 = vmatmul.mubr.bf16.gmra.mrb[248].mxu1 %v19819_v21  ;;  %9707 = vmatprep.mubr.bf16.mxu0 %v19822_v53 }
 0x673   :  { %9804 = vmatprep.mubr.bf16.mxu1 %v9312_v25  ;;  %v19834_v25 = vld [vmem:[#allocation83_spill] sm:$0xff] }
 0x674   :  { %v19836_v47 = vpack.c.bf16 %v19834_v25, %v19835_v10 }
 0x679   :  { %9708 = vmatmul.mubr.bf16.gmra.mrb[92].mxu0 %v19825_v52 }
 0x67a   :  { %9805 = vmatmul.mubr.bf16.gmra.mrb[252].mxu1 %v19826_v29  ;;  %9715 = vmatprep.mubr.bf16.mxu0 %v19829_v46 }
 0x67b   :  { %9812 = vmatprep.mubr.bf16.mxu1 %v9313_v36  ;;  %v19841_v36 = vld [vmem:[#allocation167_spill] sm:$0xff] }
 0x67c   :  { %v19842_v27 = vpack.c.bf16 %v19840_v14, %v19841_v36 }
 0x681   :  { %9716 = vmatmul.mubr.bf16.gmra.mrb[96].mxu0 %v19832_v59 }
 0x682   :  { %9813 = vmatmul.mubr.bf16.gmra.mrb[0].mxu1 %v19833_v7  ;;  %9723 = vmatprep.mubr.bf16.mxu0 %v19836_v47 }
 0x683   :  { %9820 = vmatprep.mubr.bf16.mxu1 %v9314_v4  ;;  %v19850_v4 = vld [vmem:[#allocation168_spill] sm:$0xff] }
 0x684   :  { %v19851_v2 = vpack.c.bf16 %v19849_v19, %v19850_v4 }
 0x689   :  { %9724 = vmatmul.mubr.bf16.gmra.mrb[100].mxu0 %v19839_v16 }
 0x68a   :  { %9821 = vmatmul.mubr.bf16.gmra.mrb[4].mxu1 %v19842_v27  ;;  %9731 = vmatprep.mubr.bf16.mxu0 %v19845_v60 }
 0x68b   :  { %9828 = vmatprep.mubr.bf16.mxu1 %v9315_v42  ;;  %v19859_v42 = vld [vmem:[#allocation126_spill] sm:$0xff] }
 0x68c   :  { %v19860_v62 = vpack.c.bf16 %v19858_v40, %v19859_v42 }
 0x691   :  { %9732 = vmatmul.mubr.bf16.gmra.mrb[104].mxu0 %v19848_v6 }
 0x692   :  { %9829 = vmatmul.mubr.bf16.gmra.mrb[8].mxu1 %v19851_v2  ;;  %9739 = vmatprep.mubr.bf16.mxu0 %v19854_v18 }
 0x693   :  { %9836 = vmatprep.mubr.bf16.mxu1 %v9316_v51 }
 0x699   :  { %9740 = vmatmul.mubr.bf16.gmra.mrb[108].mxu0 %v19857_v1 }
 0x69a   :  { %9837 = vmatmul.mubr.bf16.gmra.mrb[12].mxu1 %v19860_v62 }
 0x6f4   :  { %v11977_v8 = vpop.f32.mrb[48].mxu0 }
 0x6f5   :  { %v12041_v34 = vpop.f32.mrb[208].mxu1  ;;  %v11978_v28 = vpop.f32.mrb[49].mxu0 }
 0x6f6   :  { %v12042_v23 = vpop.f32.mrb[209].mxu1  ;;  %v11979_v41 = vadd.f32 %v11978_v28, %v11977_v8  ;;  %v11980_v57 = vpop.f32.mrb[50].mxu0 }
 0x6f7   :  { %v12043_v35 = vadd.f32 %v12042_v23, %v12041_v34  ;;  %v12044_v30 = vpop.f32.mrb[210].mxu1  ;;  %v11981_v11 = vpop.f32.mrb[51].mxu0 }
 0x6f8   :  { %v12045_v13 = vpop.f32.mrb[211].mxu1  ;;  %v11982_v9 = vadd.f32 %v11981_v11, %v11980_v57 }
 0x6f9   :  { %v18266_v3 = vadd.f32 %v12043_v35, %v11979_v41  ;;  %v12046_v51 = vadd.f32 %v12045_v13, %v12044_v30 }
 0x6fb   :  { %v18268_v49 = vadd.f32 %v12046_v51, %v11982_v9 }
 0x6fc   :  { %v11983_v17 = vpop.f32.mrb[52].mxu0 }
 0x6fd   :  { %v12047_v33 = vpop.f32.mrb[212].mxu1  ;;  %v11984_v0 = vpop.f32.mrb[53].mxu0 }
 0x6fe   :  { %v12048_v15 = vpop.f32.mrb[213].mxu1  ;;  %v11985_v39 = vadd.f32 %v11984_v0, %v11983_v17  ;;  %v11986_v26 = vpop.f32.mrb[54].mxu0 }
 0x6ff   :  { %v12049_v44 = vadd.f32 %v12048_v15, %v12047_v33  ;;  %v12050_v63 = vpop.f32.mrb[214].mxu1  ;;  %v11987_v21 = vpop.f32.mrb[55].mxu0 }
 0x700   :  { %v12051_v5 = vpop.f32.mrb[215].mxu1  ;;  %v11988_v53 = vadd.f32 %v11987_v21, %v11986_v26 }
 0x701   :  { %v18270_v37 = vadd.f32 %v12049_v44, %v11985_v39  ;;  %v12052_v32 = vadd.f32 %v12051_v5, %v12050_v63 }
 0x703   :  { %v18272_v12 = vadd.f32 %v12052_v32, %v11988_v53 }
 0x704   :  { %v11989_v52 = vpop.f32.mrb[56].mxu0 }
 0x705   :  { %v12053_v29 = vpop.f32.mrb[216].mxu1  ;;  %v11990_v45 = vpop.f32.mrb[57].mxu0 }
 0x706   :  { %v12054_v54 = vpop.f32.mrb[217].mxu1  ;;  %v11991_v46 = vadd.f32 %v11990_v45, %v11989_v52  ;;  %v11992_v31 = vpop.f32.mrb[58].mxu0 }
 0x707   :  { %v12055_v24 = vadd.f32 %v12054_v54, %v12053_v29  ;;  %v12056_v59 = vpop.f32.mrb[218].mxu1  ;;  %v11993_v7 = vpop.f32.mrb[59].mxu0 }
 0x708   :  { %v12057_v25 = vpop.f32.mrb[219].mxu1  ;;  %v11994_v47 = vadd.f32 %v11993_v7, %v11992_v31 }
 0x709   :  { %v18274_v10 = vadd.f32 %v12055_v24, %v11991_v46  ;;  %v12058_v38 = vadd.f32 %v12057_v25, %v12056_v59 }
 0x70b   :  { %v18276_v48 = vadd.f32 %v12058_v38, %v11994_v47 }
 0x70c   :  { %v11995_v16 = vpop.f32.mrb[60].mxu0 }
 0x70d   :  { %v12059_v14 = vpop.f32.mrb[220].mxu1  ;;  %v11996_v36 = vpop.f32.mrb[61].mxu0 }
 0x70e   :  { %v12060_v27 = vpop.f32.mrb[221].mxu1  ;;  %v11997_v50 = vadd.f32 %v11996_v36, %v11995_v16  ;;  %v11998_v60 = vpop.f32.mrb[62].mxu0 }
 0x70f   :  { %v12061_v22 = vadd.f32 %v12060_v27, %v12059_v14  ;;  %v12062_v43 = vpop.f32.mrb[222].mxu1  ;;  %v11999_v55 = vpop.f32.mrb[63].mxu0 }
 0x710   :  { %v12063_v6 = vpop.f32.mrb[223].mxu1  ;;  %v12000_v4 = vadd.f32 %v11999_v55, %v11998_v60 }
 0x711   :  { %v18278_v19 = vadd.f32 %v12061_v22, %v11997_v50  ;;  %v12064_v2 = vadd.f32 %v12063_v6, %v12062_v43 }
 0x713   :  { %v18280_v58 = vadd.f32 %v12064_v2, %v12000_v4 }
 0x714   :  { %v12001_v56 = vpop.f32.mrb[64].mxu0 }
 0x715   :  { %v12065_v18 = vpop.f32.mrb[224].mxu1  ;;  %v12002_v61 = vpop.f32.mrb[65].mxu0 }
 0x716   :  { %v12066_v20 = vpop.f32.mrb[225].mxu1  ;;  %v12003_v1 = vadd.f32 %v12002_v61, %v12001_v56  ;;  %v12004_v42 = vpop.f32.mrb[66].mxu0 }
 0x717   :  { %v12067_v40 = vadd.f32 %v12066_v20, %v12065_v18  ;;  %v12068_v62 = vpop.f32.mrb[226].mxu1  ;;  %v12005_v8 = vpop.f32.mrb[67].mxu0 }
 0x718   :  { %v12069_v34 = vpop.f32.mrb[227].mxu1  ;;  %v12006_v23 = vadd.f32 %v12005_v8, %v12004_v42 }
 0x719   :  { %v18282_v28 = vadd.f32 %v12067_v40, %v12003_v1  ;;  %v12070_v41 = vadd.f32 %v12069_v34, %v12068_v62 }
 0x71b   :  { %v18284_v35 = vadd.f32 %v12070_v41, %v12006_v23 }
 0x71c   :  { %v12007_v57 = vpop.f32.mrb[68].mxu0 }
 0x71d   :  { %v12071_v30 = vpop.f32.mrb[228].mxu1  ;;  %v12008_v11 = vpop.f32.mrb[69].mxu0 }
 0x71e   :  { %v12072_v13 = vpop.f32.mrb[229].mxu1  ;;  %v12009_v9 = vadd.f32 %v12008_v11, %v12007_v57  ;;  %v12010_v17 = vpop.f32.mrb[70].mxu0 }
 0x71f   :  { %v12073_v51 = vadd.f32 %v12072_v13, %v12071_v30  ;;  %v12074_v33 = vpop.f32.mrb[230].mxu1  ;;  %v12011_v0 = vpop.f32.mrb[71].mxu0 }
 0x720   :  { %v12075_v15 = vpop.f32.mrb[231].mxu1  ;;  %v12012_v44 = vadd.f32 %v12011_v0, %v12010_v17 }
 0x721   :  { %v18286_v39 = vadd.f32 %v12073_v51, %v12009_v9  ;;  %v12076_v26 = vadd.f32 %v12075_v15, %v12074_v33 }
 0x723   :  { %v18288_v63 = vadd.f32 %v12076_v26, %v12012_v44 }
 0x724   :  { %v12013_v21 = vpop.f32.mrb[72].mxu0 }
 0x725   :  { %v12077_v5 = vpop.f32.mrb[232].mxu1  ;;  %v12014_v53 = vpop.f32.mrb[73].mxu0 }
 0x726   :  { %v12078_v32 = vpop.f32.mrb[233].mxu1  ;;  %v12015_v52 = vadd.f32 %v12014_v53, %v12013_v21  ;;  %v12016_v45 = vpop.f32.mrb[74].mxu0 }
 0x727   :  { %v12079_v29 = vadd.f32 %v12078_v32, %v12077_v5  ;;  %v12080_v54 = vpop.f32.mrb[234].mxu1  ;;  %v12017_v46 = vpop.f32.mrb[75].mxu0 }
 0x728   :  { %v12081_v24 = vpop.f32.mrb[235].mxu1  ;;  %v12018_v59 = vadd.f32 %v12017_v46, %v12016_v45 }
 0x729   :  { %v18290_v31 = vadd.f32 %v12079_v29, %v12015_v52  ;;  %v12082_v7 = vadd.f32 %v12081_v24, %v12080_v54 }
 0x72b   :  { %v18292_v25 = vadd.f32 %v12082_v7, %v12018_v59 }
 0x72c   :  { %v12019_v47 = vpop.f32.mrb[76].mxu0 }
 0x72d   :  { %v12083_v38 = vpop.f32.mrb[236].mxu1  ;;  %v12020_v16 = vpop.f32.mrb[77].mxu0 }
 0x72e   :  { %v12084_v14 = vpop.f32.mrb[237].mxu1  ;;  %v12021_v36 = vadd.f32 %v12020_v16, %v12019_v47  ;;  %v12022_v50 = vpop.f32.mrb[78].mxu0 }
 0x72f   :  { %v12085_v27 = vadd.f32 %v12084_v14, %v12083_v38  ;;  %v12086_v22 = vpop.f32.mrb[238].mxu1  ;;  %v12023_v60 = vpop.f32.mrb[79].mxu0 }
 0x730   :  { %v12087_v43 = vpop.f32.mrb[239].mxu1  ;;  %v12024_v6 = vadd.f32 %v12023_v60, %v12022_v50 }
 0x731   :  { %v18294_v55 = vadd.f32 %v12085_v27, %v12021_v36  ;;  %v12088_v4 = vadd.f32 %v12087_v43, %v12086_v22 }
 0x733   :  { %v18296_v2 = vadd.f32 %v12088_v4, %v12024_v6 }
 0x734   :  { %v12105_v56 = vpop.f32.mrb[80].mxu0 }
 0x735   :  { %v12169_v18 = vpop.f32.mrb[240].mxu1  ;;  %v12106_v61 = vpop.f32.mrb[81].mxu0 }
 0x736   :  { %v12170_v20 = vpop.f32.mrb[241].mxu1  ;;  %v12107_v1 = vadd.f32 %v12106_v61, %v12105_v56  ;;  %v12108_v42 = vpop.f32.mrb[82].mxu0 }
 0x737   :  { %v12171_v40 = vadd.f32 %v12170_v20, %v12169_v18  ;;  %v12172_v62 = vpop.f32.mrb[242].mxu1  ;;  %v12109_v8 = vpop.f32.mrb[83].mxu0 }
 0x738   :  { %v12173_v34 = vpop.f32.mrb[243].mxu1  ;;  %v9686_v23 = vadd.f32 %v12107_v1, %v18266_v3  ;;  %v12110_v41 = vadd.f32 %v12109_v8, %v12108_v42 }
 0x739   :  { %v12174_v57 = vadd.f32 %v12173_v34, %v12172_v62 }
 0x73a   :  { %v18299_v30 = vadd.f32 %v12171_v40, %v9686_v23  ;;  %v9689_v11 = vadd.f32 %v12110_v41, %v18268_v49 }
 0x73c   :  { %v18302_v13 = vadd.f32 %v12174_v57, %v9689_v11  ;;  %v12111_v9 = vpop.f32.mrb[84].mxu0  ;;  %v9868_v17 = vmul.f32 %v18299_v30, %v18299_v30 }
 0x73d   :  { %v12175_v51 = vpop.f32.mrb[244].mxu1  ;;  %v12112_v33 = vpop.f32.mrb[85].mxu0 }
 0x73e   :  { %v12176_v0 = vpop.f32.mrb[245].mxu1  ;;  %v9845_v15 = vadd.f32 %v18302_v13, %v18299_v30  ;;  %v9869_v3 = vmul.f32 %v18302_v13, %v18302_v13  ;;  %v12113_v44 = vadd.f32 %v12112_v33, %v12111_v9  ;;  %v12114_v21 = vpop.f32.mrb[86].mxu0 }
 0x73f   :  { %v12177_v26 = vadd.f32 %v12176_v0, %v12175_v51  ;;  %v12178_v5 = vpop.f32.mrb[246].mxu1  ;;  %v12115_v49 = vpop.f32.mrb[87].mxu0 }
 0x740   :  { %v12179_v53 = vpop.f32.mrb[247].mxu1  ;;  %v9884_v32 = vadd.f32 %v9869_v3, %v9868_v17  ;;  %v9694_v52 = vadd.f32 %v12113_v44, %v18270_v37  ;;  %v12116_v29 = vadd.f32 %v12115_v49, %v12114_v21 }
 0x741   :  { %v12180_v45 = vadd.f32 %v12179_v53, %v12178_v5 }
 0x742   :  { %v18311_v54 = vadd.f32 %v12177_v26, %v9694_v52  ;;  %v9697_v46 = vadd.f32 %v12116_v29, %v18272_v12 }
 0x744   :  { %v9846_v24 = vadd.f32 %v9845_v15, %v18311_v54  ;;  %v9870_v59 = vmul.f32 %v18311_v54, %v18311_v54  ;;  %v18317_v7 = vadd.f32 %v12180_v45, %v9697_v46  ;;  %v12117_v47 = vpop.f32.mrb[88].mxu0 }
 0x745   :  { %v12181_v38 = vpop.f32.mrb[248].mxu1  ;;  %v12118_v16 = vpop.f32.mrb[89].mxu0 }
 0x746   :  { %v12182_v14 = vpop.f32.mrb[249].mxu1  ;;  %v9885_v36 = vadd.f32 %v9884_v32, %v9870_v59  ;;  %v9847_v37 = vadd.f32 %v9846_v24, %v18317_v7  ;;  %v9871_v27 = vmul.f32 %v18317_v7, %v18317_v7  ;;  %v12119_v50 = vadd.f32 %v12118_v16, %v12117_v47  ;;  %v12120_v22 = vpop.f32.mrb[90].mxu0 }
 0x747   :  { %v12184_v12 = vpop.f32.mrb[250].mxu1  ;;  %v12183_v60 = vadd.f32 %v12182_v14, %v12181_v38  ;;  %v12121_v43 = vpop.f32.mrb[91].mxu0 }
 0x748   :  { %v12185_v6 = vpop.f32.mrb[251].mxu1  ;;  %v9886_v4 = vadd.f32 %v9885_v36, %v9871_v27  ;;  %v9702_v56 = vadd.f32 %v12119_v50, %v18274_v10  ;;  %v12122_v18 = vadd.f32 %v12121_v43, %v12120_v22 }
 0x749   :  { %v12186_v61 = vadd.f32 %v12185_v6, %v12184_v12 }
 0x74a   :  { %v18323_v20 = vadd.f32 %v12183_v60, %v9702_v56  ;;  %v9705_v1 = vadd.f32 %v12122_v18, %v18276_v48 }
 0x74c   :  { %v9848_v40 = vadd.f32 %v9847_v37, %v18323_v20  ;;  %v9872_v42 = vmul.f32 %v18323_v20, %v18323_v20  ;;  %v18329_v62 = vadd.f32 %v12186_v61, %v9705_v1  ;;  %v12123_v8 = vpop.f32.mrb[92].mxu0 }
 0x74d   :  { %v12187_v34 = vpop.f32.mrb[252].mxu1  ;;  %v12124_v23 = vpop.f32.mrb[93].mxu0 }
 0x74e   :  { %v12188_v41 = vpop.f32.mrb[253].mxu1  ;;  %v9887_v57 = vadd.f32 %v9886_v4, %v9872_v42  ;;  %v9849_v10 = vadd.f32 %v9848_v40, %v18329_v62  ;;  %v9873_v11 = vmul.f32 %v18329_v62, %v18329_v62  ;;  %v12125_v9 = vadd.f32 %v12124_v23, %v12123_v8  ;;  %v12126_v51 = vpop.f32.mrb[94].mxu0 }
 0x74f   :  { %v12190_v48 = vpop.f32.mrb[254].mxu1  ;;  %v12189_v17 = vadd.f32 %v12188_v41, %v12187_v34  ;;  %v12127_v33 = vpop.f32.mrb[95].mxu0 }
 0x750   :  { %v12191_v0 = vpop.f32.mrb[255].mxu1  ;;  %v9888_v15 = vadd.f32 %v9887_v57, %v9873_v11  ;;  %v9710_v3 = vadd.f32 %v12125_v9, %v18278_v19  ;;  %v12128_v44 = vadd.f32 %v12127_v33, %v12126_v51 }
 0x751   :  { %v12192_v26 = vadd.f32 %v12191_v0, %v12190_v48 }
 0x752   :  { %v18335_v21 = vadd.f32 %v12189_v17, %v9710_v3  ;;  %v9713_v5 = vadd.f32 %v12128_v44, %v18280_v58 }
 0x754   :  { %v9850_v49 = vadd.f32 %v9849_v10, %v18335_v21  ;;  %v9874_v53 = vmul.f32 %v18335_v21, %v18335_v21  ;;  %v18341_v32 = vadd.f32 %v12192_v26, %v9713_v5  ;;  %v12129_v52 = vpop.f32.mrb[96].mxu0 }
 0x755   :  { %v12193_v29 = vpop.f32.mrb[0].mxu1  ;;  %v12130_v45 = vpop.f32.mrb[97].mxu0 }
 0x756   :  { %v12194_v46 = vpop.f32.mrb[1].mxu1  ;;  %v9889_v24 = vadd.f32 %v9888_v15, %v9874_v53  ;;  %v9851_v19 = vadd.f32 %v9850_v49, %v18341_v32  ;;  %v9875_v59 = vmul.f32 %v18341_v32, %v18341_v32  ;;  %v12131_v47 = vadd.f32 %v12130_v45, %v12129_v52  ;;  %v12132_v38 = vpop.f32.mrb[98].mxu0 }
 0x757   :  { %v12196_v58 = vpop.f32.mrb[2].mxu1  ;;  %v12195_v16 = vadd.f32 %v12194_v46, %v12193_v29  ;;  %v12133_v14 = vpop.f32.mrb[99].mxu0 }
 0x758   :  { %v12197_v36 = vpop.f32.mrb[3].mxu1  ;;  %v9890_v37 = vadd.f32 %v9889_v24, %v9875_v59  ;;  %v9718_v27 = vadd.f32 %v12131_v47, %v18282_v28  ;;  %v12134_v50 = vadd.f32 %v12133_v14, %v12132_v38 }
 0x759   :  { %v12198_v22 = vadd.f32 %v12197_v36, %v12196_v58 }
 0x75a   :  { %v18347_v12 = vadd.f32 %v12195_v16, %v9718_v27  ;;  %v9721_v60 = vadd.f32 %v12134_v50, %v18284_v35 }
 0x75c   :  { %v9852_v43 = vadd.f32 %v9851_v19, %v18347_v12  ;;  %v9876_v6 = vmul.f32 %v18347_v12, %v18347_v12  ;;  %v18353_v4 = vadd.f32 %v12198_v22, %v9721_v60  ;;  %v12135_v56 = vpop.f32.mrb[100].mxu0 }
 0x75d   :  { %v12199_v18 = vpop.f32.mrb[4].mxu1  ;;  %v12136_v61 = vpop.f32.mrb[101].mxu0 }
 0x75e   :  { %v12200_v1 = vpop.f32.mrb[5].mxu1  ;;  %v9891_v40 = vadd.f32 %v9890_v37, %v9876_v6  ;;  %v9853_v28 = vadd.f32 %v9852_v43, %v18353_v4  ;;  %v9877_v42 = vmul.f32 %v18353_v4, %v18353_v4  ;;  %v12137_v8 = vadd.f32 %v12136_v61, %v12135_v56  ;;  %v12138_v34 = vpop.f32.mrb[102].mxu0 }
 0x75f   :  { %v12202_v35 = vpop.f32.mrb[6].mxu1  ;;  %v12201_v23 = vadd.f32 %v12200_v1, %v12199_v18  ;;  %v12139_v41 = vpop.f32.mrb[103].mxu0 }
 0x760   :  { %v12203_v57 = vpop.f32.mrb[7].mxu1  ;;  %v9892_v10 = vadd.f32 %v9891_v40, %v9877_v42  ;;  %v9726_v11 = vadd.f32 %v12137_v8, %v18286_v39  ;;  %v12140_v9 = vadd.f32 %v12139_v41, %v12138_v34 }
 0x761   :  { %v12204_v51 = vadd.f32 %v12203_v57, %v12202_v35 }
 0x762   :  { %v18359_v48 = vadd.f32 %v12201_v23, %v9726_v11  ;;  %v9729_v17 = vadd.f32 %v12140_v9, %v18288_v63 }
 0x764   :  { %v9854_v33 = vadd.f32 %v9853_v28, %v18359_v48  ;;  %v9878_v0 = vmul.f32 %v18359_v48, %v18359_v48  ;;  %v18365_v15 = vadd.f32 %v12204_v51, %v9729_v17  ;;  %v12141_v3 = vpop.f32.mrb[104].mxu0 }
 0x765   :  { %v12205_v44 = vpop.f32.mrb[8].mxu1  ;;  %v12142_v26 = vpop.f32.mrb[105].mxu0 }
 0x766   :  { %v12206_v5 = vpop.f32.mrb[9].mxu1  ;;  %v9893_v49 = vadd.f32 %v9892_v10, %v9878_v0  ;;  %v9855_v39 = vadd.f32 %v9854_v33, %v18365_v15  ;;  %v9879_v53 = vmul.f32 %v18365_v15, %v18365_v15  ;;  %v12143_v52 = vadd.f32 %v12142_v26, %v12141_v3  ;;  %v12144_v29 = vpop.f32.mrb[106].mxu0 }
 0x767   :  { %v12208_v63 = vpop.f32.mrb[10].mxu1  ;;  %v12207_v45 = vadd.f32 %v12206_v5, %v12205_v44  ;;  %v12145_v46 = vpop.f32.mrb[107].mxu0 }
 0x768   :  { %v12209_v24 = vpop.f32.mrb[11].mxu1  ;;  %v9894_v19 = vadd.f32 %v9893_v49, %v9879_v53  ;;  %v9734_v59 = vadd.f32 %v12143_v52, %v18290_v31  ;;  %v12146_v47 = vadd.f32 %v12145_v46, %v12144_v29 }
 0x769   :  { %v12210_v38 = vadd.f32 %v12209_v24, %v12208_v63 }
 0x76a   :  { %v18371_v58 = vadd.f32 %v12207_v45, %v9734_v59  ;;  %v9737_v16 = vadd.f32 %v12146_v47, %v18292_v25 }
 0x76c   :  { %v9856_v14 = vadd.f32 %v9855_v39, %v18371_v58  ;;  %v9880_v36 = vmul.f32 %v18371_v58, %v18371_v58  ;;  %v18377_v37 = vadd.f32 %v12210_v38, %v9737_v16  ;;  %v12147_v27 = vpop.f32.mrb[108].mxu0 }
 0x76d   :  { %v12211_v50 = vpop.f32.mrb[12].mxu1  ;;  %v12148_v22 = vpop.f32.mrb[109].mxu0 }
 0x76e   :  { %v12212_v60 = vpop.f32.mrb[13].mxu1  ;;  %v9895_v43 = vadd.f32 %v9894_v19, %v9880_v36  ;;  %v9857_v31 = vadd.f32 %v9856_v14, %v18377_v37  ;;  %v9881_v6 = vmul.f32 %v18377_v37, %v18377_v37  ;;  %v12149_v56 = vadd.f32 %v12148_v22, %v12147_v27  ;;  %v12150_v18 = vpop.f32.mrb[110].mxu0 }
 0x76f   :  { %v12214_v25 = vpop.f32.mrb[14].mxu1  ;;  %v12213_v61 = vadd.f32 %v12212_v60, %v12211_v50  ;;  %v12151_v1 = vpop.f32.mrb[111].mxu0 }
 0x770   :  { %v12215_v40 = vpop.f32.mrb[15].mxu1  ;;  %v9896_v28 = vadd.f32 %v9895_v43, %v9881_v6  ;;  %v9742_v42 = vadd.f32 %v12149_v56, %v18294_v55  ;;  %v12152_v8 = vadd.f32 %v12151_v1, %v12150_v18 }
 0x771   :  { %v12216_v34 = vadd.f32 %v12215_v40, %v12214_v25 }
 0x772   :  { %v9839_v35 = vadd.f32 %v12213_v61, %v9742_v42  ;;  %v9745_v23 = vadd.f32 %v12152_v8, %v18296_v2 }
 0x774   :  { %v9858_v41 = vadd.f32 %v9857_v31, %v9839_v35  ;;  %v9882_v57 = vmul.f32 %v9839_v35, %v9839_v35  ;;  %v9842_v10 = vadd.f32 %v12216_v34, %v9745_v23 }
 0x776   :  { %v9897_v11 = vadd.f32 %v9896_v28, %v9882_v57  ;;  %v9859_v9 = vadd.f32 %v9858_v41, %v9842_v10  ;;  %v9883_v51 = vmul.f32 %v9842_v10, %v9842_v10 }
 0x778   :  { %v9860_v17 = vrot.slane %v9859_v9, 4  ;;  %v9898_v33 = vadd.f32 %v9897_v11, %v9883_v51 }
 0x77a   :  { %v9861_v0 = vadd.f32 %v9860_v17, %v9859_v9  ;;  %v9899_v3 = vrot.slane %v9898_v33, 4 }
 0x77c   :  { %v9862_v44 = vrot.slane %v9861_v0, 2  ;;  %v9900_v26 = vadd.f32 %v9899_v3, %v9898_v33 }
 0x77e   :  { %v9863_v5 = vadd.f32 %v9862_v44, %v9861_v0  ;;  %v9901_v49 = vrot.slane %v9900_v26, 2 }
 0x780   :  { %v9864_v55 = vrot.slane %v9863_v5, 1  ;;  %v9902_v39 = vadd.f32 %v9901_v49, %v9900_v26 }
 0x782   :  { %v9865_v53 = vadd.f32 %v9864_v55, %v9863_v5  ;;  %v9903_v52 = vrot.slane %v9902_v39, 1 }
 0x784   :  { %v9867_v29 = vmul.f32 0.03125, %v9865_v53  ;;  %v9904_v2 = vadd.f32 %v9903_v52, %v9902_v39 }
 0x786   :  { %v9905_v63 = vmul.f32 0.03125, %v9904_v2  ;;  %v9906_v45 = vmul.f32 %v9867_v29, %v9867_v29  ;;  %v9909_v46 = vsub.f32 %v18299_v30, %v9867_v29  ;;  %v9910_v24 = vsub.f32 %v18302_v13, %v9867_v29 }
 0x787   :  { %v9911_v19 = vsub.f32 %v18311_v54, %v9867_v29  ;;  %v9912_v59 = vsub.f32 %v18317_v7, %v9867_v29  ;;  %v9913_v47 = vsub.f32 %v18323_v20, %v9867_v29  ;;  %v9914_v38 = vsub.f32 %v18329_v62, %v9867_v29 }
 0x788   :  { %v9907_v16 = vsub.f32 %v9905_v63, %v9906_v45  ;;  %v9915_v14 = vsub.f32 %v18335_v21, %v9867_v29  ;;  %v9916_v36 = vsub.f32 %v18341_v32, %v9867_v29  ;;  %v9917_v27 = vsub.f32 %v18347_v12, %v9867_v29 }
 0x789   :  { %v9918_v50 = vsub.f32 %v18353_v4, %v9867_v29  ;;  %v9919_v30 = vsub.f32 %v18359_v48, %v9867_v29  ;;  %v9920_v13 = vsub.f32 %v18365_v15, %v9867_v29  ;;  %v9921_v54 = vsub.f32 %v18371_v58, %v9867_v29 }
 0x78a   :  { %v9908_v7 = vmax.f32 %v9907_v16, 0.0  ;;  %v9922_v20 = vsub.f32 %v18377_v37, %v9867_v29  ;;  %v9923_v22 = vsub.f32 %v9839_v35, %v9867_v29  ;;  %v9924_v62 = vsub.f32 %v9842_v10, %v9867_v29 }
 0x78c   :  { %v9925_v60 = vadd.f32 1e-05, %v9908_v7 }
 0x78e   :  { %12936 = vrsqrt.f32 %v9925_v60 }
 0x798   :  { %v12937_v21 = vpop.eup %12936 }
 0x799   :  { %v18398_v43 = vmul.f32 %v12937_v21, %v9909_v46  ;;  %v18400_v32 = vmul.f32 %v12937_v21, %v9910_v24  ;;  %v18402_v12 = vmul.f32 %v12937_v21, %v9911_v19  ;;  %v18404_v4 = vmul.f32 %v12937_v21, %v9912_v59 }
 0x79a   :  { %v18406_v48 = vmul.f32 %v12937_v21, %v9913_v47  ;;  %v18408_v15 = vmul.f32 %v12937_v21, %v9914_v38  ;;  %v18410_v58 = vmul.f32 %v12937_v21, %v9915_v14  ;;  %v18412_v37 = vmul.f32 %v12937_v21, %v9916_v36 }
 0x79b   :  { %v18414_v31 = vmul.f32 %v12937_v21, %v9917_v27  ;;  %v18416_v6 = vmul.f32 %v12937_v21, %v9918_v50  ;;  %v18418_v56 = vmul.f32 %v12937_v21, %v9919_v30  ;;  %v18420_v18 = vmul.f32 %v12937_v21, %v9920_v13 }
 0x79c   :  { %v18422_v25 = vmul.f32 %v12937_v21, %v9921_v54  ;;  %v18424_v61 = vmul.f32 %v12937_v21, %v9922_v20  ;;  %v18426_v1 = vmul.f32 %v12937_v21, %v9923_v22  ;;  %v18428_v40 = vmul.f32 %v12937_v21, %v9924_v62 }
 0x79d   :  { %v9943_v28 = vsub.f32 0.0, %v18398_v43  ;;  %v9944_v42 = vsub.f32 0.0, %v18400_v32  ;;  %v9945_v8 = vsub.f32 0.0, %v18402_v12  ;;  %v9946_v34 = vsub.f32 0.0, %v18404_v4 }
 0x79e   :  { %v9947_v35 = vsub.f32 0.0, %v18406_v48  ;;  %v9948_v23 = vsub.f32 0.0, %v18408_v15  ;;  %v9949_v41 = vsub.f32 0.0, %v18410_v58  ;;  %v9950_v9 = vsub.f32 0.0, %v18412_v37 }
 0x79f   :  { %v9959_v57 = vmul.f32 1.442695, %v9943_v28  ;;  %v9961_v10 = vmul.f32 1.442695, %v9944_v42  ;;  %v9963_v11 = vmul.f32 1.442695, %v9945_v8 }
 0x7a0   :  { %v9965_v51 = vmul.f32 1.442695, %v9946_v34  ;;  %v9951_v17 = vsub.f32 0.0, %v18414_v31  ;;  %v9967_v33 = vmul.f32 1.442695, %v9947_v35  ;;  %v9952_v0 = vsub.f32 0.0, %v18416_v6 }
 0x7a1   :  { %12938 = vpow2.f32 %v9959_v57  ;;  %v9969_v3 = vmul.f32 1.442695, %v9948_v23  ;;  %v9953_v44 = vsub.f32 0.0, %v18418_v56  ;;  %v9971_v26 = vmul.f32 1.442695, %v9949_v41 }
 0x7a2   :  { %12940 = vpow2.f32 %v9961_v10  ;;  %v9954_v5 = vsub.f32 0.0, %v18420_v18  ;;  %v9973_v49 = vmul.f32 1.442695, %v9950_v9  ;;  %v9955_v55 = vsub.f32 0.0, %v18422_v25 }
 0x7a3   :  { %12942 = vpow2.f32 %v9963_v11  ;;  %v9975_v39 = vmul.f32 1.442695, %v9951_v17  ;;  %v9956_v53 = vsub.f32 0.0, %v18424_v61  ;;  %v9977_v52 = vmul.f32 1.442695, %v9952_v0 }
 0x7a4   :  { %12944 = vpow2.f32 %v9965_v51  ;;  %v9957_v29 = vsub.f32 0.0, %v18426_v1  ;;  %v9979_v2 = vmul.f32 1.442695, %v9953_v44  ;;  %v9958_v63 = vsub.f32 0.0, %v18428_v40 }
 0x7a5   :  { %12946 = vpow2.f32 %v9967_v33  ;;  %v9981_v45 = vmul.f32 1.442695, %v9954_v5  ;;  %v9983_v46 = vmul.f32 1.442695, %v9955_v55  ;;  %v9985_v24 = vmul.f32 1.442695, %v9956_v53 }
 0x7a6   :  { %12948 = vpow2.f32 %v9969_v3  ;;  %v9987_v59 = vmul.f32 1.442695, %v9957_v29  ;;  %v9989_v38 = vmul.f32 1.442695, %v9958_v63 }
 0x7a7   :  { %12950 = vpow2.f32 %v9971_v26 }
 0x7a8   :  { %12952 = vpow2.f32 %v9973_v49 }
 0x7a9   :  { %12954 = vpow2.f32 %v9975_v39 }
 0x7aa   :  { %12956 = vpow2.f32 %v9977_v52 }
 0x7ab   :  { %v12939_v19 = vpop.eup %12938  ;;  %12958 = vpow2.f32 %v9979_v2 }
 0x7ac   :  { %v12941_v47 = vpop.eup %12940  ;;  %12960 = vpow2.f32 %v9981_v45  ;;  %v9991_v14 = vadd.f32 1.0, %v12939_v19 }
 0x7ad   :  { %v12943_v16 = vpop.eup %12942  ;;  %12962 = vpow2.f32 %v9983_v46  ;;  %v9992_v27 = vadd.f32 1.0, %v12941_v47 }
 0x7ae   :  { %v12945_v36 = vpop.eup %12944  ;;  %12964 = vpow2.f32 %v9985_v24  ;;  %v9993_v30 = vadd.f32 1.0, %v12943_v16 }
 0x7af   :  { %v12947_v50 = vpop.eup %12946  ;;  %12966 = vpow2.f32 %v9987_v59  ;;  %v9994_v54 = vadd.f32 1.0, %v12945_v36 }
 0x7b0   :  { %v12949_v13 = vpop.eup %12948  ;;  %12968 = vpow2.f32 %v9989_v38  ;;  %v9995_v20 = vadd.f32 1.0, %v12947_v50 }
 0x7b1   :  { %v12951_v7 = vpop.eup %12950  ;;  %12970 = vrcp.f32 %v9991_v14  ;;  %v9996_v62 = vadd.f32 1.0, %v12949_v13 }
 0x7b2   :  { %v12953_v22 = vpop.eup %12952  ;;  %12972 = vrcp.f32 %v9992_v27  ;;  %v9997_v21 = vadd.f32 1.0, %v12951_v7 }
 0x7b3   :  { %v12955_v60 = vpop.eup %12954  ;;  %12974 = vrcp.f32 %v9993_v30  ;;  %v9998_v42 = vadd.f32 1.0, %v12953_v22 }
 0x7b4   :  { %v12957_v28 = vpop.eup %12956  ;;  %12976 = vrcp.f32 %v9994_v54  ;;  %v9999_v34 = vadd.f32 1.0, %v12955_v60 }
 0x7b5   :  { %v12959_v8 = vpop.eup %12958  ;;  %12978 = vrcp.f32 %v9995_v20  ;;  %v10000_v23 = vadd.f32 1.0, %v12957_v28 }
 0x7b6   :  { %v12961_v35 = vpop.eup %12960  ;;  %12980 = vrcp.f32 %v9996_v62  ;;  %v10001_v57 = vadd.f32 1.0, %v12959_v8 }
 0x7b7   :  { %v12963_v41 = vpop.eup %12962  ;;  %12982 = vrcp.f32 %v9997_v21  ;;  %v10002_v11 = vadd.f32 1.0, %v12961_v35 }
 0x7b8   :  { %v12965_v10 = vpop.eup %12964  ;;  %12984 = vrcp.f32 %v9998_v42  ;;  %v10003_v51 = vadd.f32 1.0, %v12963_v41 }
 0x7b9   :  { %v12967_v9 = vpop.eup %12966  ;;  %12986 = vrcp.f32 %v9999_v34  ;;  %v10004_v33 = vadd.f32 1.0, %v12965_v10 }
 0x7ba   :  { %v12969_v17 = vpop.eup %12968  ;;  %12988 = vrcp.f32 %v10000_v23  ;;  %v10005_v3 = vadd.f32 1.0, %v12967_v9 }
 0x7bb   :  { %v12971_v0 = vpop.eup %12970  ;;  %12990 = vrcp.f32 %v10001_v57  ;;  %v10006_v26 = vadd.f32 1.0, %v12969_v17 }
 0x7bc   :  { %v12973_v44 = vpop.eup %12972  ;;  %12992 = vrcp.f32 %v10002_v11  ;;  %v18447_v5 = vmul.f32 %v12971_v0, %v18398_v43 }
 0x7bd   :  { %v12975_v49 = vpop.eup %12974  ;;  %12994 = vrcp.f32 %v10003_v51  ;;  %v18450_v55 = vmul.f32 %v12973_v44, %v18400_v32 }
 0x7be   :  { %v12977_v39 = vpop.eup %12976  ;;  %12996 = vrcp.f32 %v10004_v33  ;;  %v18453_v53 = vmul.f32 %v12975_v49, %v18402_v12 }
 0x7bf   :  { %v12979_v52 = vpop.eup %12978  ;;  %12998 = vrcp.f32 %v10005_v3  ;;  %v10026_v29 = vmul.f32 %v12977_v39, %v18404_v4 }
 0x7c0   :  { %v12981_v2 = vpop.eup %12980  ;;  %13000 = vrcp.f32 %v10006_v26  ;;  %v18457_v63 = vmul.f32 %v12979_v52, %v18406_v48 }
 0x7c1   :  { %v12983_v43 = vpop.eup %12982  ;;  %v18460_v45 = vmul.f32 %v12981_v2, %v18408_v15 }
 0x7c2   :  { %v12985_v32 = vpop.eup %12984  ;;  %v18463_v46 = vmul.f32 %v12983_v43, %v18410_v58 }
 0x7c3   :  { %v12987_v24 = vpop.eup %12986  ;;  %v18466_v12 = vmul.f32 %v12985_v32, %v18412_v37 }
 0x7c4   :  { %v12989_v19 = vpop.eup %12988  ;;  %v18469_v4 = vmul.f32 %v12987_v24, %v18414_v31 }
 0x7c5   :  { %v12991_v59 = vpop.eup %12990  ;;  %v18472_v48 = vmul.f32 %v12989_v19, %v18416_v6 }
 0x7c6   :  { %v12993_v47 = vpop.eup %12992  ;;  %v18475_v15 = vmul.f32 %v12991_v59, %v18418_v56 }
 0x7c7   :  { %v12995_v38 = vpop.eup %12994  ;;  %v18478_v58 = vmul.f32 %v12993_v47, %v18420_v18 }
 0x7c8   :  { %v12997_v16 = vpop.eup %12996  ;;  %v18481_v37 = vmul.f32 %v12995_v38, %v18422_v25 }
 0x7c9   :  { %v12999_v14 = vpop.eup %12998  ;;  %v18484_v31 = vmul.f32 %v12997_v16, %v18424_v61 }
 0x7ca   :  { %v13001_v36 = vpop.eup %13000  ;;  %v18487_v6 = vmul.f32 %v12999_v14, %v18426_v1 }
 0x7cb   :  { %v18490_v27 = vmul.f32 %v13001_v36, %v18428_v40 }
 0x7cc   :  { %13032 = dma.done.wait [#allocation6 + $0x1], 32768 }
 0x7cd   :  { %13033 = vsyncadd [#allocation6 + $0x1], 4294934528  ;;  %v11436_v56 = vpack.c.bf16 %v10026_v29, %v10026_v29  ;;  %v10116_v18 = vld [vmem:[#allocation5 + $0x108] sm:$0xff]  ;;  %v10115_v50 = vld [vmem:[#allocation5 + $0x100] sm:$0xff]  ;;  %v11435_v49 = vpack.c.bf16 %v18453_v53, %v18453_v53  ;;  %v11438_v39 = vpack.c.bf16 %v18460_v45, %v18460_v45  ;;  %vm10787_vm0 = vcmask 1041408  }
 0x7ce   :  { %v10118_v30 = vld [vmem:[#allocation5 + $0x118] sm:$0xff]  ;;  %10448 = vmatprep.subr.bf16.mxu0 %v10116_v18  ;;  %v10117_v25 = vld [vmem:[#allocation5 + $0x110] sm:$0xff]  ;;  %v10120_v61 = vld [vmem:[#allocation5 + $0x128] sm:$0xff]  ;;  %vm13036_vm2 = vmmov 0   ;;  %vm10783_vm3 = vcmask 31744   ;;  %vm10999_vm4 = vcmask 7168  }
 0x7cf   :  { %10480 = vmatprep.mubr.bf16.mxu0 %v11436_v56  ;;  %10449 = vmatpush1.bf16.msra.mxu0 %v10115_v50  ;;  %v10119_v13 = vld [vmem:[#allocation5 + $0x120] sm:$0xff]  ;;  %v10122_v1 = vld [vmem:[#allocation5 + $0x138] sm:$0xff]  ;;  %v10121_v40 = vld [vmem:[#allocation5 + $0x130] sm:$0xff] }
 0x7d0   :  { %10450 = vmatprep.subr.bf16.mxu0 %v10118_v30  ;;  %v10124_v54 = vld [vmem:[#allocation5 + $0x148] sm:$0xff]  ;;  %v10123_v7 = vld [vmem:[#allocation5 + $0x140] sm:$0xff]  ;;  %v10126_v20 = vld [vmem:[#allocation5 + $0x158] sm:$0xff] }
 0x7d1   :  { %v10125_v22 = vld [vmem:[#allocation5 + $0x150] sm:$0xff]  ;;  %v10128_v62 = vld [vmem:[#allocation5 + $0x168] sm:$0xff]  ;;  %v10127_v60 = vld [vmem:[#allocation5 + $0x160] sm:$0xff] }
 0x7d2   :  { %v10130_v21 = vld [vmem:[#allocation5 + $0x178] sm:$0xff]  ;;  %v10129_v28 = vld [vmem:[#allocation5 + $0x170] sm:$0xff]  ;;  %v10132_v42 = vld [vmem:[#allocation5 + $0x188] sm:$0xff] }
 0x7d3   :  { %10451 = vmatpush1.bf16.msra.mxu0 %v10117_v25  ;;  %v10131_v8 = vld [vmem:[#allocation5 + $0x180] sm:$0xff]  ;;  %v10134_v34 = vld [vmem:[#allocation5 + $0x198] sm:$0xff]  ;;  %v10133_v35 = vld [vmem:[#allocation5 + $0x190] sm:$0xff] }
 0x7d4   :  { %10452 = vmatprep.subr.bf16.mxu0 %v10120_v61  ;;  %v10136_v23 = vld [vmem:[#allocation5 + $0x1a8] sm:$0xff]  ;;  %v10135_v41 = vld [vmem:[#allocation5 + $0x1a0] sm:$0xff]  ;;  %v10138_v57 = vld [vmem:[#allocation5 + $0x1b8] sm:$0xff] }
 0x7d5   :  { %v10137_v10 = vld [vmem:[#allocation5 + $0x1b0] sm:$0xff]  ;;  %v10140_v11 = vld [vmem:[#allocation5 + $0x1c8] sm:$0xff]  ;;  %v10139_v9 = vld [vmem:[#allocation5 + $0x1c0] sm:$0xff] }
 0x7d6   :  { %v10142_v51 = vld [vmem:[#allocation5 + $0x1d8] sm:$0xff]  ;;  %v10141_v17 = vld [vmem:[#allocation5 + $0x1d0] sm:$0xff]  ;;  %v10144_v33 = vld [vmem:[#allocation5 + $0x1e8] sm:$0xff] }
 0x7d7   :  { %10453 = vmatpush1.bf16.msra.mxu0 %v10119_v13  ;;  %v10143_v0 = vld [vmem:[#allocation5 + $0x1e0] sm:$0xff]  ;;  %v10146_v3 = vld [vmem:[#allocation5 + $0x1f8] sm:$0xff]  ;;  %v10145_v44 = vld [vmem:[#allocation5 + $0x1f0] sm:$0xff] }
 0x7d8   :  { %10454 = vmatprep.subr.bf16.mxu0 %v10122_v1  ;;  %v10148_v26 = vld [vmem:[#allocation5 + $0x208] sm:$0xff]  ;;  %v10147_v52 = vld [vmem:[#allocation5 + $0x200] sm:$0xff]  ;;  %v10150_v29 = vld [vmem:[#allocation5 + $0x218] sm:$0xff] }
 0x7d9   :  { %v10149_v2 = vld [vmem:[#allocation5 + $0x210] sm:$0xff]  ;;  %v10152_v43 = vld [vmem:[#allocation5 + $0x228] sm:$0xff]  ;;  %v10151_v32 = vld [vmem:[#allocation5 + $0x220] sm:$0xff] }
 0x7da   :  { %v10154_v24 = vld [vmem:[#allocation5 + $0x238] sm:$0xff]  ;;  %v10153_v53 = vld [vmem:[#allocation5 + $0x230] sm:$0xff]  ;;  %v10156_v19 = vld [vmem:[#allocation5 + $0x248] sm:$0xff] }
 0x7db   :  { %10455 = vmatpush1.bf16.msra.mxu0 %v10121_v40  ;;  %v10155_v45 = vld [vmem:[#allocation5 + $0x240] sm:$0xff]  ;;  %v10158_v59 = vld [vmem:[#allocation5 + $0x258] sm:$0xff]  ;;  %v10157_v47 = vld [vmem:[#allocation5 + $0x250] sm:$0xff] }
 0x7dc   :  { %10456 = vmatprep.subr.bf16.mxu0 %v10124_v54  ;;  %v10160_v38 = vld [vmem:[#allocation5 + $0x268] sm:$0xff]  ;;  %v10159_v16 = vld [vmem:[#allocation5 + $0x260] sm:$0xff]  ;;  %v10162_v14 = vld [vmem:[#allocation5 + $0x278] sm:$0xff] }
 0x7dd   :  { %v10161_v36 = vld [vmem:[#allocation5 + $0x270] sm:$0xff]  ;;  %v10164_v56 = vld [vmem:[#allocation5 + $0x288] sm:$0xff]  ;;  %v10163_v18 = vld [vmem:[#allocation5 + $0x280] sm:$0xff] }
 0x7de   :  { %v10166_v50 = vld [vmem:[#allocation5 + $0x298] sm:$0xff]  ;;  %v10165_v30 = vld [vmem:[#allocation5 + $0x290] sm:$0xff]  ;;  %v10168_v25 = vld [vmem:[#allocation5 + $0x2a8] sm:$0xff] }
 0x7df   :  { %10457 = vmatpush1.bf16.msra.mxu0 %v10123_v7  ;;  %v10167_v61 = vld [vmem:[#allocation5 + $0x2a0] sm:$0xff]  ;;  %v10170_v13 = vld [vmem:[#allocation5 + $0x2b8] sm:$0xff]  ;;  %v10169_v1 = vld [vmem:[#allocation5 + $0x2b0] sm:$0xff] }
 0x7e0   :  { %10458 = vmatprep.subr.bf16.mxu0 %v10126_v20  ;;  %v10172_v40 = vld [vmem:[#allocation5 + $0x2c8] sm:$0xff]  ;;  %v10171_v54 = vld [vmem:[#allocation5 + $0x2c0] sm:$0xff]  ;;  %v10174_v7 = vld [vmem:[#allocation5 + $0x2d8] sm:$0xff] }
 0x7e1   :  { %v10173_v20 = vld [vmem:[#allocation5 + $0x2d0] sm:$0xff] }
 0x7e3   :  { %10459 = vmatpush1.bf16.msra.mxu0 %v10125_v22  ;;  %v10176_v22 = vld [vmem:[#allocation5 + $0x2e8] sm:$0xff] }
 0x7e4   :  { %10460 = vmatprep.subr.bf16.mxu0 %v10128_v62  ;;  %v10175_v62 = vld [vmem:[#allocation5 + $0x2e0] sm:$0xff] }
 0x7e7   :  { %10461 = vmatpush1.bf16.msra.mxu0 %v10127_v60  ;;  %v10178_v60 = vld [vmem:[#allocation5 + $0x2f8] sm:$0xff] }
 0x7e8   :  { %10462 = vmatprep.subr.bf16.mxu0 %v10130_v21  ;;  %v10177_v21 = vld [vmem:[#allocation5 + $0x2f0] sm:$0xff] }
 0x7eb   :  { %10463 = vmatpush1.bf16.msra.mxu0 %v10129_v28  ;;  %v10180_v28 = vld [vmem:[#allocation5 + $0x308] sm:$0xff] }
 0x7ec   :  { %10464 = vmatprep.subr.bf16.mxu0 %v10132_v42  ;;  %v11437_v42 = vpack.c.bf16 %v18457_v63, %v18457_v63  ;;  %v10185_v63 = vld [vmem:[#allocation5 + $0x330] sm:$0xff] }
 0x7ef   :  { %10465 = vmatpush1.bf16.msra.mxu0 %v10131_v8  ;;  %v11440_v8 = vpack.c.bf16 %v18466_v12, %v18466_v12  ;;  %v10187_v12 = vld [vmem:[#allocation5 + $0x340] sm:$0xff] }
 0x7f0   :  { %10466 = vmatprep.subr.bf16.mxu0 %v10134_v34  ;;  %v10179_v34 = vld [vmem:[#allocation5 + $0x300] sm:$0xff] }
 0x7f3   :  { %10467 = vmatpush1.bf16.msra.mxu0 %v10133_v35  ;;  %v10182_v35 = vld [vmem:[#allocation5 + $0x318] sm:$0xff] }
 0x7f4   :  { %10468 = vmatprep.subr.bf16.mxu0 %v10136_v23  ;;  %v10181_v23 = vld [vmem:[#allocation5 + $0x310] sm:$0xff] }
 0x7f7   :  { %10469 = vmatpush1.bf16.msra.mxu0 %v10135_v41  ;;  %v10184_v41 = vld [vmem:[#allocation5 + $0x328] sm:$0xff] }
 0x7f8   :  { %10470 = vmatprep.subr.bf16.mxu0 %v10138_v57  ;;  %v10183_v57 = vld [vmem:[#allocation5 + $0x320] sm:$0xff] }
 0x7fb   :  { %10471 = vmatpush1.bf16.msra.mxu0 %v10137_v10  ;;  %v10186_v10 = vld [vmem:[#allocation5 + $0x338] sm:$0xff] }
 0x7fc   :  { %10472 = vmatprep.subr.bf16.mxu0 %v10140_v11  ;;  %v10188_v11 = vld [vmem:[#allocation5 + $0x348] sm:$0xff] }
 0x7ff   :  { %10473 = vmatpush1.bf16.msra.mxu0 %v10139_v9  ;;  %v10190_v9 = vld [vmem:[#allocation5 + $0x358] sm:$0xff] }
 0x800   :  { %10474 = vmatprep.subr.bf16.mxu0 %v10142_v51  ;;  %v10189_v51 = vld [vmem:[#allocation5 + $0x350] sm:$0xff] }
 0x803   :  { %10475 = vmatpush1.bf16.msra.mxu0 %v10141_v17  ;;  %v10192_v17 = vld [vmem:[#allocation5 + $0x368] sm:$0xff] }
 0x804   :  { %10476 = vmatprep.subr.bf16.mxu0 %v10144_v33  ;;  %v10191_v33 = vld [vmem:[#allocation5 + $0x360] sm:$0xff] }
 0x807   :  { %10477 = vmatpush1.bf16.msra.mxu0 %v10143_v0  ;;  %v10194_v0 = vld [vmem:[#allocation5 + $0x378] sm:$0xff] }
 0x808   :  { %10478 = vmatprep.subr.bf16.mxu0 %v10146_v3  ;;  %v10193_v3 = vld [vmem:[#allocation5 + $0x370] sm:$0xff] }
 0x80b   :  { %10479 = vmatpush1.bf16.msra.mxu0 %v10145_v44  ;;  %v10196_v44 = vld [vmem:[#allocation5 + $0x388] sm:$0xff] }
 0x80c   :  { %10489 = vmatprep.subr.bf16.mxu0 %v10148_v26  ;;  %v10195_v26 = vld [vmem:[#allocation5 + $0x380] sm:$0xff] }
 0x80e   :  { %10481 = vmatmul.mubr.bf16.vlgmr.msra.gmra.mrb[112].mxu0 %v11435_v49  ;;  %v10198_v49 = vld [vmem:[#allocation5 + $0x398] sm:$0xff] }
 0x80f   :  { %10490 = vmatpush1.bf16.msra.mxu0 %v10147_v52  ;;  %10521 = vmatprep.mubr.bf16.mxu0 %v11438_v39  ;;  %v10197_v39 = vld [vmem:[#allocation5 + $0x390] sm:$0xff]  ;;  %v10200_v52 = vld [vmem:[#allocation5 + $0x3a8] sm:$0xff] }
 0x810   :  { %10491 = vmatprep.subr.bf16.mxu0 %v10150_v29  ;;  %v10199_v29 = vld [vmem:[#allocation5 + $0x3a0] sm:$0xff] }
 0x813   :  { %10492 = vmatpush1.bf16.msra.mxu0 %v10149_v2  ;;  %v10202_v2 = vld [vmem:[#allocation5 + $0x3b8] sm:$0xff] }
 0x814   :  { %10493 = vmatprep.subr.bf16.mxu0 %v10152_v43  ;;  %v10201_v43 = vld [vmem:[#allocation5 + $0x3b0] sm:$0xff] }
 0x817   :  { %10494 = vmatpush1.bf16.msra.mxu0 %v10151_v32  ;;  %v10204_v32 = vld [vmem:[#allocation5 + $0x3c8] sm:$0xff] }
 0x818   :  { %10495 = vmatprep.subr.bf16.mxu0 %v10154_v24  ;;  %v10203_v24 = vld [vmem:[#allocation5 + $0x3c0] sm:$0xff] }
 0x81b   :  { %10496 = vmatpush1.bf16.msra.mxu0 %v10153_v53  ;;  %v10206_v53 = vld [vmem:[#allocation5 + $0x3d8] sm:$0xff] }
 0x81c   :  { %10497 = vmatprep.subr.bf16.mxu0 %v10156_v19  ;;  %v10205_v19 = vld [vmem:[#allocation5 + $0x3d0] sm:$0xff] }
 0x81f   :  { %10498 = vmatpush1.bf16.msra.mxu0 %v10155_v45  ;;  %v10208_v45 = vld [vmem:[#allocation5 + $0x3e8] sm:$0xff] }
 0x820   :  { %10499 = vmatprep.subr.bf16.mxu0 %v10158_v59  ;;  %v10207_v59 = vld [vmem:[#allocation5 + $0x3e0] sm:$0xff] }
 0x823   :  { %10500 = vmatpush1.bf16.msra.mxu0 %v10157_v47  ;;  %v10210_v47 = vld [vmem:[#allocation5 + $0x3f8] sm:$0xff] }
 0x824   :  { %10501 = vmatprep.subr.bf16.mxu0 %v10160_v38  ;;  %v10209_v38 = vld [vmem:[#allocation5 + $0x3f0] sm:$0xff] }
 0x827   :  { %10502 = vmatpush1.bf16.msra.mxu0 %v10159_v16  ;;  %v10212_v16 = vld [vmem:[#allocation5 + $0x408] sm:$0xff] }
 0x828   :  { %10503 = vmatprep.subr.bf16.mxu0 %v10162_v14  ;;  %v11439_v14 = vpack.c.bf16 %v18463_v46, %v18463_v46  ;;  %v10217_v46 = vld [vmem:[#allocation5 + $0x430] sm:$0xff] }
 0x82b   :  { %10504 = vmatpush1.bf16.msra.mxu0 %v10161_v36  ;;  %v11442_v36 = vpack.c.bf16 %v18472_v48, %v18472_v48  ;;  %v10219_v48 = vld [vmem:[#allocation5 + $0x440] sm:$0xff] }
 0x82c   :  { %10505 = vmatprep.subr.bf16.mxu0 %v10164_v56  ;;  %v10211_v56 = vld [vmem:[#allocation5 + $0x400] sm:$0xff] }
 0x82f   :  { %10506 = vmatpush1.bf16.msra.mxu0 %v10163_v18  ;;  %v10214_v18 = vld [vmem:[#allocation5 + $0x418] sm:$0xff] }
 0x830   :  { %10507 = vmatprep.subr.bf16.mxu0 %v10166_v50  ;;  %v10213_v50 = vld [vmem:[#allocation5 + $0x410] sm:$0xff] }
 0x833   :  { %10508 = vmatpush1.bf16.msra.mxu0 %v10165_v30  ;;  %v10216_v30 = vld [vmem:[#allocation5 + $0x428] sm:$0xff] }
 0x834   :  { %10509 = vmatprep.subr.bf16.mxu0 %v10168_v25  ;;  %v10215_v25 = vld [vmem:[#allocation5 + $0x420] sm:$0xff] }
 0x837   :  { %10510 = vmatpush1.bf16.msra.mxu0 %v10167_v61  ;;  %v10218_v61 = vld [vmem:[#allocation5 + $0x438] sm:$0xff] }
 0x838   :  { %10511 = vmatprep.subr.bf16.mxu0 %v10170_v13  ;;  %v10220_v13 = vld [vmem:[#allocation5 + $0x448] sm:$0xff] }
 0x83b   :  { %10512 = vmatpush1.bf16.msra.mxu0 %v10169_v1  ;;  %v10222_v1 = vld [vmem:[#allocation5 + $0x458] sm:$0xff] }
 0x83c   :  { %10513 = vmatprep.subr.bf16.mxu0 %v10172_v40  ;;  %v10221_v40 = vld [vmem:[#allocation5 + $0x450] sm:$0xff] }
 0x83f   :  { %10514 = vmatpush1.bf16.msra.mxu0 %v10171_v54  ;;  %v10224_v54 = vld [vmem:[#allocation5 + $0x468] sm:$0xff] }
 0x840   :  { %10515 = vmatprep.subr.bf16.mxu0 %v10174_v7  ;;  %v10223_v7 = vld [vmem:[#allocation5 + $0x460] sm:$0xff] }
 0x843   :  { %10516 = vmatpush1.bf16.msra.mxu0 %v10173_v20  ;;  %v10226_v20 = vld [vmem:[#allocation5 + $0x478] sm:$0xff] }
 0x844   :  { %10517 = vmatprep.subr.bf16.mxu0 %v10176_v22  ;;  %v10225_v22 = vld [vmem:[#allocation5 + $0x470] sm:$0xff] }
 0x847   :  { %10518 = vmatpush1.bf16.msra.mxu0 %v10175_v62  ;;  %v10228_v62 = vld [vmem:[#allocation5 + $0x488] sm:$0xff] }
 0x848   :  { %10519 = vmatprep.subr.bf16.mxu0 %v10178_v60  ;;  %v10227_v60 = vld [vmem:[#allocation5 + $0x480] sm:$0xff] }
 0x84b   :  { %10520 = vmatpush1.bf16.msra.mxu0 %v10177_v21  ;;  %v10230_v21 = vld [vmem:[#allocation5 + $0x498] sm:$0xff] }
 0x84c   :  { %10530 = vmatprep.subr.bf16.mxu0 %v10180_v28  ;;  %v10229_v28 = vld [vmem:[#allocation5 + $0x490] sm:$0xff] }
 0x84e   :  { %10522 = vmatmul.mubr.bf16.vlgmr.msra.gmra.mrb[112].mxu0 %v11437_v42  ;;  %v10232_v42 = vld [vmem:[#allocation5 + $0x4a8] sm:$0xff] }
 0x84f   :  { %10531 = vmatpush1.bf16.msra.mxu0 %v10179_v34  ;;  %10562 = vmatprep.mubr.bf16.mxu0 %v11440_v8  ;;  %v10231_v8 = vld [vmem:[#allocation5 + $0x4a0] sm:$0xff]  ;;  %v10234_v34 = vld [vmem:[#allocation5 + $0x4b8] sm:$0xff] }
 0x850   :  { %10532 = vmatprep.subr.bf16.mxu0 %v10182_v35  ;;  %v10233_v35 = vld [vmem:[#allocation5 + $0x4b0] sm:$0xff] }
 0x853   :  { %10533 = vmatpush1.bf16.msra.mxu0 %v10181_v23  ;;  %v10236_v23 = vld [vmem:[#allocation5 + $0x4c8] sm:$0xff] }
 0x854   :  { %10534 = vmatprep.subr.bf16.mxu0 %v10184_v41  ;;  %v10235_v41 = vld [vmem:[#allocation5 + $0x4c0] sm:$0xff] }
 0x857   :  { %10535 = vmatpush1.bf16.msra.mxu0 %v10183_v57  ;;  %v10238_v57 = vld [vmem:[#allocation5 + $0x4d8] sm:$0xff] }
 0x858   :  { %10536 = vmatprep.subr.bf16.mxu0 %v10186_v10  ;;  %v10237_v10 = vld [vmem:[#allocation5 + $0x4d0] sm:$0xff] }
 0x85b   :  { %10537 = vmatpush1.bf16.msra.mxu0 %v10185_v63  ;;  %v10240_v63 = vld [vmem:[#allocation5 + $0x4e8] sm:$0xff] }
 0x85c   :  { %10538 = vmatprep.subr.bf16.mxu0 %v10188_v11  ;;  %v10239_v11 = vld [vmem:[#allocation5 + $0x4e0] sm:$0xff] }
 0x85f   :  { %10539 = vmatpush1.bf16.msra.mxu0 %v10187_v12  ;;  %v10242_v12 = vld [vmem:[#allocation5 + $0x4f8] sm:$0xff] }
 0x860   :  { %10540 = vmatprep.subr.bf16.mxu0 %v10190_v9  ;;  %v10084_v9 = vld [vmem:[#allocation5 + $0x8] sm:$0xff] }
 0x861   :  { %10407 = vmatprep.subr.bf16.mxu1 %v10084_v9  ;;  %v10270_v9 = vld [vmem:[#allocation5 + $0x5d8] sm:$0xff] }
 0x863   :  { %10541 = vmatpush1.bf16.msra.mxu0 %v10189_v51  ;;  %v10083_v51 = vld [vmem:[#allocation5] sm:$0xff] }
 0x864   :  { %10542 = vmatprep.subr.bf16.mxu0 %v10192_v17  ;;  %v10241_v17 = vld [vmem:[#allocation5 + $0x4f0] sm:$0xff]  ;;  %10408 = vmatpush1.bf16.msra.mxu1 %v10083_v51  ;;  %v10112_v51 = vld [vmem:[#allocation5 + $0xe8] sm:$0xff] }
 0x867   :  { %10543 = vmatpush1.bf16.msra.mxu0 %v10191_v33  ;;  %v10244_v33 = vld [vmem:[#allocation5 + $0x508] sm:$0xff] }
 0x868   :  { %10544 = vmatprep.subr.bf16.mxu0 %v10194_v0  ;;  %v11441_v0 = vpack.c.bf16 %v18469_v4, %v18469_v4  ;;  %v10248_v4 = vld [vmem:[#allocation5 + $0x528] sm:$0xff] }
 0x86b   :  { %10545 = vmatpush1.bf16.msra.mxu0 %v10193_v3  ;;  %v11444_v3 = vpack.c.bf16 %v18478_v58, %v18478_v58  ;;  %v10089_v58 = vld [vmem:[#allocation5 + $0x30] sm:$0xff] }
 0x86c   :  { %10546 = vmatprep.subr.bf16.mxu0 %v10196_v44  ;;  %v10086_v44 = vld [vmem:[#allocation5 + $0x18] sm:$0xff] }
 0x86d   :  { %10409 = vmatprep.subr.bf16.mxu1 %v10086_v44  ;;  %v10113_v44 = vld [vmem:[#allocation5 + $0xf0] sm:$0xff] }
 0x86f   :  { %10547 = vmatpush1.bf16.msra.mxu0 %v10195_v26  ;;  %v10085_v26 = vld [vmem:[#allocation5 + $0x10] sm:$0xff] }
 0x870   :  { %10548 = vmatprep.subr.bf16.mxu0 %v10198_v49  ;;  %v10243_v49 = vld [vmem:[#allocation5 + $0x500] sm:$0xff]  ;;  %10410 = vmatpush1.bf16.msra.mxu1 %v10085_v26 }
 0x871   :  { %v10271_v26 = vld [vmem:[#allocation5 + $0x5e0] sm:$0xff] }
 0x873   :  { %10549 = vmatpush1.bf16.msra.mxu0 %v10197_v39  ;;  %v10246_v39 = vld [vmem:[#allocation5 + $0x518] sm:$0xff] }
 0x874   :  { %10550 = vmatprep.subr.bf16.mxu0 %v10200_v52  ;;  %v10088_v52 = vld [vmem:[#allocation5 + $0x28] sm:$0xff] }
 0x875   :  { %10411 = vmatprep.subr.bf16.mxu1 %v10088_v52  ;;  %v19861_v52 = vmov 0.0  }
 0x877   :  { %10551 = vmatpush1.bf16.msra.mxu0 %v10199_v29  ;;  %v10087_v29 = vld [vmem:[#allocation5 + $0x20] sm:$0xff] }
 0x878   :  { %10552 = vmatprep.subr.bf16.mxu0 %v10202_v2  ;;  %v10245_v2 = vld [vmem:[#allocation5 + $0x510] sm:$0xff]  ;;  %10412 = vmatpush1.bf16.msra.mxu1 %v10087_v29  ;;  %v11433_v29 = vpack.c.bf16 %v18447_v5, %v18447_v5 }
 0x879   :  { %v10277_v5 = vld [vmem:[#allocation5 + $0x610] sm:$0xff] }
 0x87b   :  { %10553 = vmatpush1.bf16.msra.mxu0 %v10201_v43  ;;  %v10090_v43 = vld [vmem:[#allocation5 + $0x38] sm:$0xff] }
 0x87c   :  { %10554 = vmatprep.subr.bf16.mxu0 %v10204_v32  ;;  %v10247_v32 = vld [vmem:[#allocation5 + $0x520] sm:$0xff]  ;;  %10413 = vmatprep.subr.bf16.mxu1 %v10090_v43  ;;  %v11443_v43 = vpack.c.bf16 %v18475_v15, %v18475_v15  ;;  %v10281_v15 = vld [vmem:[#allocation5 + $0x630] sm:$0xff] }
 0x87d   :  { %10414 = vmatpush1.bf16.msra.mxu1 %v10089_v58  ;;  %v11446_v58 = vpack.c.bf16 %v18484_v31, %v18484_v31  ;;  %v10283_v31 = vld [vmem:[#allocation5 + $0x640] sm:$0xff] }
 0x87f   :  { %10555 = vmatpush1.bf16.msra.mxu0 %v10203_v24  ;;  %v10250_v24 = vld [vmem:[#allocation5 + $0x538] sm:$0xff] }
 0x880   :  { %10556 = vmatprep.subr.bf16.mxu0 %v10206_v53  ;;  %v10092_v53 = vld [vmem:[#allocation5 + $0x48] sm:$0xff] }
 0x881   :  { %10415 = vmatprep.subr.bf16.mxu1 %v10092_v53  ;;  %v10279_v53 = vld [vmem:[#allocation5 + $0x620] sm:$0xff] }
 0x883   :  { %10557 = vmatpush1.bf16.msra.mxu0 %v10205_v19  ;;  %v10091_v19 = vld [vmem:[#allocation5 + $0x40] sm:$0xff] }
 0x884   :  { %10558 = vmatprep.subr.bf16.mxu0 %v10208_v45  ;;  %v10249_v45 = vld [vmem:[#allocation5 + $0x530] sm:$0xff]  ;;  %10416 = vmatpush1.bf16.msra.mxu1 %v10091_v19  ;;  %v10282_v19 = vld [vmem:[#allocation5 + $0x638] sm:$0xff] }
 0x887   :  { %10559 = vmatpush1.bf16.msra.mxu0 %v10207_v59  ;;  %v10252_v59 = vld [vmem:[#allocation5 + $0x548] sm:$0xff] }
 0x888   :  { %10560 = vmatprep.subr.bf16.mxu0 %v10210_v47  ;;  %v10094_v47 = vld [vmem:[#allocation5 + $0x58] sm:$0xff] }
 0x889   :  { %10417 = vmatprep.subr.bf16.mxu1 %v10094_v47  ;;  %v10285_v47 = vld [vmem:[#allocation5 + $0x650] sm:$0xff] }
 0x88b   :  { %10561 = vmatpush1.bf16.msra.mxu0 %v10209_v38  ;;  %v10093_v38 = vld [vmem:[#allocation5 + $0x50] sm:$0xff] }
 0x88c   :  { %10571 = vmatprep.subr.bf16.mxu0 %v10212_v16  ;;  %v10251_v16 = vld [vmem:[#allocation5 + $0x540] sm:$0xff]  ;;  %10418 = vmatpush1.bf16.msra.mxu1 %v10093_v38  ;;  %v10288_v38 = vld [vmem:[#allocation5 + $0x668] sm:$0xff] }
 0x88e   :  { %10563 = vmatmul.mubr.bf16.vlgmr.msra.gmra.mrb[112].mxu0 %v11439_v14  ;;  %v10254_v14 = vld [vmem:[#allocation5 + $0x558] sm:$0xff] }
 0x88f   :  { %10572 = vmatpush1.bf16.msra.mxu0 %v10211_v56  ;;  %10603 = vmatprep.mubr.bf16.mxu0 %v11442_v36  ;;  %v10096_v36 = vld [vmem:[#allocation5 + $0x68] sm:$0xff]  ;;  %v10095_v56 = vld [vmem:[#allocation5 + $0x60] sm:$0xff] }
 0x890   :  { %10573 = vmatprep.subr.bf16.mxu0 %v10214_v18  ;;  %v10253_v18 = vld [vmem:[#allocation5 + $0x550] sm:$0xff]  ;;  %10419 = vmatprep.subr.bf16.mxu1 %v10096_v36 }
 0x891   :  { %10420 = vmatpush1.bf16.msra.mxu1 %v10095_v56  ;;  %v10289_v36 = vld [vmem:[#allocation5 + $0x670] sm:$0xff]  ;;  %v10292_v56 = vld [vmem:[#allocation5 + $0x688] sm:$0xff] }
 0x893   :  { %10574 = vmatpush1.bf16.msra.mxu0 %v10213_v50  ;;  %v10256_v50 = vld [vmem:[#allocation5 + $0x568] sm:$0xff] }
 0x894   :  { %10575 = vmatprep.subr.bf16.mxu0 %v10216_v30  ;;  %v10098_v30 = vld [vmem:[#allocation5 + $0x78] sm:$0xff] }
 0x895   :  { %10421 = vmatprep.subr.bf16.mxu1 %v10098_v30  ;;  %v10293_v30 = vld [vmem:[#allocation5 + $0x690] sm:$0xff] }
 0x897   :  { %10576 = vmatpush1.bf16.msra.mxu0 %v10215_v25  ;;  %v10097_v25 = vld [vmem:[#allocation5 + $0x70] sm:$0xff] }
 0x898   :  { %10577 = vmatprep.subr.bf16.mxu0 %v10218_v61  ;;  %v10255_v61 = vld [vmem:[#allocation5 + $0x560] sm:$0xff]  ;;  %10422 = vmatpush1.bf16.msra.mxu1 %v10097_v25  ;;  %v10296_v25 = vld [vmem:[#allocation5 + $0x6a8] sm:$0xff] }
 0x89b   :  { %10578 = vmatpush1.bf16.msra.mxu0 %v10217_v46  ;;  %v10258_v46 = vld [vmem:[#allocation5 + $0x578] sm:$0xff] }
 0x89c   :  { %10579 = vmatprep.subr.bf16.mxu0 %v10220_v13  ;;  %v10100_v13 = vld [vmem:[#allocation5 + $0x88] sm:$0xff] }
 0x89d   :  { %10423 = vmatprep.subr.bf16.mxu1 %v10100_v13  ;;  %v10297_v13 = vld [vmem:[#allocation5 + $0x6b0] sm:$0xff] }
 0x89f   :  { %10580 = vmatpush1.bf16.msra.mxu0 %v10219_v48  ;;  %v10099_v48 = vld [vmem:[#allocation5 + $0x80] sm:$0xff] }
 0x8a0   :  { %10581 = vmatprep.subr.bf16.mxu0 %v10222_v1  ;;  %v10257_v1 = vld [vmem:[#allocation5 + $0x570] sm:$0xff]  ;;  %10424 = vmatpush1.bf16.msra.mxu1 %v10099_v48  ;;  %v10300_v48 = vld [vmem:[#allocation5 + $0x6c8] sm:$0xff] }
 0x8a3   :  { %10582 = vmatpush1.bf16.msra.mxu0 %v10221_v40  ;;  %v10260_v40 = vld [vmem:[#allocation5 + $0x588] sm:$0xff] }
 0x8a4   :  { %10583 = vmatprep.subr.bf16.mxu0 %v10224_v54  ;;  %v10102_v54 = vld [vmem:[#allocation5 + $0x98] sm:$0xff] }
 0x8a5   :  { %10425 = vmatprep.subr.bf16.mxu1 %v10102_v54  ;;  %v10301_v54 = vld [vmem:[#allocation5 + $0x6d0] sm:$0xff] }
 0x8a7   :  { %10584 = vmatpush1.bf16.msra.mxu0 %v10223_v7  ;;  %v10101_v7 = vld [vmem:[#allocation5 + $0x90] sm:$0xff] }
 0x8a8   :  { %10585 = vmatprep.subr.bf16.mxu0 %v10226_v20  ;;  %v10259_v20 = vld [vmem:[#allocation5 + $0x580] sm:$0xff]  ;;  %10426 = vmatpush1.bf16.msra.mxu1 %v10101_v7  ;;  %v10304_v7 = vld [vmem:[#allocation5 + $0x6e8] sm:$0xff] }
 0x8ab   :  { %10586 = vmatpush1.bf16.msra.mxu0 %v10225_v22  ;;  %v10262_v22 = vld [vmem:[#allocation5 + $0x598] sm:$0xff] }
 0x8ac   :  { %10587 = vmatprep.subr.bf16.mxu0 %v10228_v62  ;;  %v10104_v62 = vld [vmem:[#allocation5 + $0xa8] sm:$0xff] }
 0x8ad   :  { %10427 = vmatprep.subr.bf16.mxu1 %v10104_v62  ;;  %v10305_v62 = vld [vmem:[#allocation5 + $0x6f0] sm:$0xff] }
 0x8af   :  { %10588 = vmatpush1.bf16.msra.mxu0 %v10227_v60  ;;  %v10103_v60 = vld [vmem:[#allocation5 + $0xa0] sm:$0xff] }
 0x8b0   :  { %10589 = vmatprep.subr.bf16.mxu0 %v10230_v21  ;;  %v10261_v21 = vld [vmem:[#allocation5 + $0x590] sm:$0xff]  ;;  %10428 = vmatpush1.bf16.msra.mxu1 %v10103_v60  ;;  %v10308_v60 = vld [vmem:[#allocation5 + $0x708] sm:$0xff] }
 0x8b3   :  { %10590 = vmatpush1.bf16.msra.mxu0 %v10229_v28  ;;  %v10264_v28 = vld [vmem:[#allocation5 + $0x5a8] sm:$0xff] }
 0x8b4   :  { %10591 = vmatprep.subr.bf16.mxu0 %v10232_v42  ;;  %v10106_v42 = vld [vmem:[#allocation5 + $0xb8] sm:$0xff] }
 0x8b5   :  { %10429 = vmatprep.subr.bf16.mxu1 %v10106_v42  ;;  %v10307_v42 = vld [vmem:[#allocation5 + $0x700] sm:$0xff] }
 0x8b7   :  { %10592 = vmatpush1.bf16.msra.mxu0 %v10231_v8  ;;  %v10105_v8 = vld [vmem:[#allocation5 + $0xb0] sm:$0xff] }
 0x8b8   :  { %10593 = vmatprep.subr.bf16.mxu0 %v10234_v34  ;;  %v10263_v34 = vld [vmem:[#allocation5 + $0x5a0] sm:$0xff]  ;;  %10430 = vmatpush1.bf16.msra.mxu1 %v10105_v8  ;;  %v10310_v8 = vld [vmem:[#allocation5 + $0x718] sm:$0xff] }
 0x8bb   :  { %10594 = vmatpush1.bf16.msra.mxu0 %v10233_v35  ;;  %v10266_v35 = vld [vmem:[#allocation5 + $0x5b8] sm:$0xff] }
 0x8bc   :  { %10595 = vmatprep.subr.bf16.mxu0 %v10236_v23  ;;  %v10108_v23 = vld [vmem:[#allocation5 + $0xc8] sm:$0xff] }
 0x8bd   :  { %10431 = vmatprep.subr.bf16.mxu1 %v10108_v23  ;;  %v10311_v23 = vld [vmem:[#allocation5 + $0x720] sm:$0xff] }
 0x8bf   :  { %10596 = vmatpush1.bf16.msra.mxu0 %v10235_v41  ;;  %v10107_v41 = vld [vmem:[#allocation5 + $0xc0] sm:$0xff] }
 0x8c0   :  { %10597 = vmatprep.subr.bf16.mxu0 %v10238_v57  ;;  %v10265_v57 = vld [vmem:[#allocation5 + $0x5b0] sm:$0xff]  ;;  %10432 = vmatpush1.bf16.msra.mxu1 %v10107_v41  ;;  %v10314_v41 = vld [vmem:[#allocation5 + $0x738] sm:$0xff] }
 0x8c3   :  { %10598 = vmatpush1.bf16.msra.mxu0 %v10237_v10  ;;  %v10268_v10 = vld [vmem:[#allocation5 + $0x5c8] sm:$0xff] }
 0x8c4   :  { %10599 = vmatprep.subr.bf16.mxu0 %v10240_v63  ;;  %v10110_v63 = vld [vmem:[#allocation5 + $0xd8] sm:$0xff] }
 0x8c5   :  { %10433 = vmatprep.subr.bf16.mxu1 %v10110_v63  ;;  %v10782_v63 = vld [vmem:[%s18599_s7] sm:$0x3] }
 0x8c7   :  { %10600 = vmatpush1.bf16.msra.mxu0 %v10239_v11  ;;  %v10109_v11 = vld [vmem:[#allocation5 + $0xd0] sm:$0xff] }
 0x8c8   :  { %10601 = vmatprep.subr.bf16.mxu0 %v10242_v12  ;;  %v10267_v12 = vld [vmem:[#allocation5 + $0x5c0] sm:$0xff]  ;;  %10434 = vmatpush1.bf16.msra.mxu1 %v10109_v11  ;;  %v10317_v11 = vld [vmem:[#allocation5 + $0x750] sm:$0xff] }
 0x8c9   :  { %10435 = vmatprep.subr.bf16.mxu1 %v10112_v51  ;;  %v10319_v51 = vld [vmem:[#allocation5 + $0x760] sm:$0xff] }
 0x8cb   :  { %10602 = vmatpush1.bf16.msra.mxu0 %v10241_v17  ;;  %v10111_v17 = vld [vmem:[#allocation5 + $0xe0] sm:$0xff] }
 0x8cc   :  { %10612 = vmatprep.subr.bf16.mxu0 %v10244_v33  ;;  %v10269_v33 = vld [vmem:[#allocation5 + $0x5d0] sm:$0xff]  ;;  %10436 = vmatpush1.bf16.msra.mxu1 %v10111_v17  ;;  %v10322_v17 = vld [vmem:[#allocation5 + $0x778] sm:$0xff] }
 0x8ce   :  { %10604 = vmatmul.mubr.bf16.vlgmr.msra.gmra.mrb[112].mxu0 %v11441_v0  ;;  %v10272_v0 = vld [vmem:[#allocation5 + $0x5e8] sm:$0xff] }
 0x8cf   :  { %10613 = vmatpush1.bf16.msra.mxu0 %v10243_v49  ;;  %10644 = vmatprep.mubr.bf16.mxu0 %v11444_v3  ;;  %v10114_v3 = vld [vmem:[#allocation5 + $0xf8] sm:$0xff] }
 0x8d0   :  { %10614 = vmatprep.subr.bf16.mxu0 %v10246_v39  ;;  %10437 = vmatprep.subr.bf16.mxu1 %v10114_v3  ;;  %v10274_v49 = vld [vmem:[#allocation5 + $0x5f8] sm:$0xff]  ;;  %v11434_v39 = vpack.c.bf16 %v18450_v55, %v18450_v55  ;;  %v10275_v55 = vld [vmem:[#allocation5 + $0x600] sm:$0xff] }
 0x8d1   :  { %10438 = vmatpush1.bf16.msra.mxu1 %v10113_v44  ;;  %v10323_v3 = vld [vmem:[#allocation5 + $0x780] sm:$0xff]  ;;  %v10326_v44 = vld [vmem:[#allocation5 + $0x798] sm:$0xff] }
 0x8d2   :  { %12241 = vmatprep.subr.bf16.mxu1 %v19861_v52  ;;  %10439 = vmatprep.mubr.bf16.mxu1 %v11434_v39  ;;  %v10327_v39 = vld [vmem:[#allocation5 + $0x7a0] sm:$0xff] }
 0x8d3   :  { %10615 = vmatpush1.bf16.msra.mxu0 %v10245_v2  ;;  %v10273_v2 = vld [vmem:[#allocation5 + $0x5f0] sm:$0xff] }
 0x8d4   :  { %10616 = vmatprep.subr.bf16.mxu0 %v10248_v4  ;;  %v10276_v4 = vld [vmem:[#allocation5 + $0x608] sm:$0xff]  ;;  %10440 = vmatmul.mubr.bf16.vlgmr.msra.gmra.mrb[16].mxu1 %v11433_v29  ;;  %v10330_v29 = vld [vmem:[#allocation5 + $0x7b8] sm:$0xff] }
 0x8d5   :  { %12243 = vmatprep.mubr.msk.bf16.mxu1 %vm13036_vm2, %v19861_v52  ;;  %v13004_v52 = vld [vmem:[%s18598_s6 + $0x48] sm:$0xff]  }
 0x8d7   :  { %10617 = vmatpush1.bf16.msra.mxu0 %v10247_v32  ;;  %v10278_v32 = vld [vmem:[#allocation5 + $0x618] sm:$0xff] }
 0x8d8   :  { %10618 = vmatprep.subr.bf16.mxu0 %v10250_v24  ;;  %v10280_v24 = vld [vmem:[#allocation5 + $0x628] sm:$0xff] }
 0x8db   :  { %10619 = vmatpush1.bf16.msra.mxu0 %v10249_v45  ;;  %v10284_v45 = vld [vmem:[#allocation5 + $0x648] sm:$0xff] }
 0x8dc   :  { %10620 = vmatprep.subr.bf16.mxu0 %v10252_v59  ;;  %v10286_v59 = vld [vmem:[#allocation5 + $0x658] sm:$0xff] }
 0x8df   :  { %10621 = vmatpush1.bf16.msra.mxu0 %v10251_v16  ;;  %v10287_v16 = vld [vmem:[#allocation5 + $0x660] sm:$0xff] }
 0x8e0   :  { %10622 = vmatprep.subr.bf16.mxu0 %v10254_v14  ;;  %v10290_v14 = vld [vmem:[#allocation5 + $0x678] sm:$0xff] }
 0x8e3   :  { %10623 = vmatpush1.bf16.msra.mxu0 %v10253_v18  ;;  %v10291_v18 = vld [vmem:[#allocation5 + $0x680] sm:$0xff] }
 0x8e4   :  { %10624 = vmatprep.subr.bf16.mxu0 %v10256_v50  ;;  %v10294_v50 = vld [vmem:[#allocation5 + $0x698] sm:$0xff] }
 0x8e7   :  { %10625 = vmatpush1.bf16.msra.mxu0 %v10255_v61  ;;  %v10295_v61 = vld [vmem:[#allocation5 + $0x6a0] sm:$0xff] }
 0x8e8   :  { %10626 = vmatprep.subr.bf16.mxu0 %v10258_v46  ;;  %v10298_v46 = vld [vmem:[#allocation5 + $0x6b8] sm:$0xff] }
 0x8eb   :  { %10627 = vmatpush1.bf16.msra.mxu0 %v10257_v1  ;;  %v10299_v1 = vld [vmem:[#allocation5 + $0x6c0] sm:$0xff] }
 0x8ec   :  { %10628 = vmatprep.subr.bf16.mxu0 %v10260_v40  ;;  %v10302_v40 = vld [vmem:[#allocation5 + $0x6d8] sm:$0xff] }
 0x8ef   :  { %10629 = vmatpush1.bf16.msra.mxu0 %v10259_v20  ;;  %v10303_v20 = vld [vmem:[#allocation5 + $0x6e0] sm:$0xff] }
 0x8f0   :  { %10630 = vmatprep.subr.bf16.mxu0 %v10262_v22  ;;  %v10306_v22 = vld [vmem:[#allocation5 + $0x6f8] sm:$0xff] }
 0x8f3   :  { %10631 = vmatpush1.bf16.msra.mxu0 %v10261_v21  ;;  %v11445_v21 = vpack.c.bf16 %v18481_v37, %v18481_v37  ;;  %v10313_v37 = vld [vmem:[#allocation5 + $0x730] sm:$0xff] }
 0x8f4   :  { %10632 = vmatprep.subr.bf16.mxu0 %v10264_v28  ;;  %v11448_v28 = vpack.c.bf16 %v18490_v27, %v18490_v27  ;;  %v10315_v27 = vld [vmem:[#allocation5 + $0x740] sm:$0xff] }
 0x8f7   :  { %10633 = vmatpush1.bf16.msra.mxu0 %v10263_v34  ;;  %v10309_v34 = vld [vmem:[#allocation5 + $0x710] sm:$0xff] }
 0x8f8   :  { %10634 = vmatprep.subr.bf16.mxu0 %v10266_v35  ;;  %v10312_v35 = vld [vmem:[#allocation5 + $0x728] sm:$0xff] }
 0x8fb   :  { %10635 = vmatpush1.bf16.msra.mxu0 %v10265_v57  ;;  %v10316_v57 = vld [vmem:[#allocation5 + $0x748] sm:$0xff] }
 0x8fc   :  { %10636 = vmatprep.subr.bf16.mxu0 %v10268_v10  ;;  %v10318_v10 = vld [vmem:[#allocation5 + $0x758] sm:$0xff] }
 0x8ff   :  { %10637 = vmatpush1.bf16.msra.mxu0 %v10267_v12  ;;  %v10789_v12 = vsel %vm10787_vm0, %v10782_v63, 0 }
 0x900   :  { %10638 = vmatprep.subr.bf16.mxu0 %v10270_v9  ;;  %v10320_v9 = vld [vmem:[#allocation5 + $0x768] sm:$0xff]  ;;  %12242 = vmatpush3.bf16.msra.mxu1 %v10789_v12 }
 0x903   :  { %10639 = vmatpush1.bf16.msra.mxu0 %v10269_v33  ;;  %v10321_v33 = vld [vmem:[#allocation5 + $0x770] sm:$0xff] }
 0x904   :  { %10640 = vmatprep.subr.bf16.mxu0 %v10272_v0  ;;  %v10324_v0 = vld [vmem:[#allocation5 + $0x788] sm:$0xff] }
 0x907   :  { %10641 = vmatpush1.bf16.msra.mxu0 %v10271_v26  ;;  %v10325_v26 = vld [vmem:[#allocation5 + $0x790] sm:$0xff] }
 0x908   :  { %10642 = vmatprep.subr.bf16.mxu0 %v10274_v49  ;;  %v10328_v49 = vld [vmem:[#allocation5 + $0x7a8] sm:$0xff] }
 0x90b   :  { %10643 = vmatpush1.bf16.msra.mxu0 %v10273_v2  ;;  %v10329_v2 = vld [vmem:[#allocation5 + $0x7b0] sm:$0xff] }
 0x90c   :  { %10653 = vmatprep.subr.bf16.mxu0 %v10276_v4  ;;  %v10332_v4 = vld [vmem:[#allocation5 + $0x7c8] sm:$0xff] }
 0x90e   :  { %10645 = vmatmul.mubr.bf16.vlgmr.msra.gmra.mrb[112].mxu0 %v11443_v43  ;;  %v10331_v43 = vld [vmem:[#allocation5 + $0x7c0] sm:$0xff] }
 0x90f   :  { %10654 = vmatpush1.bf16.msra.mxu0 %v10275_v55  ;;  %10685 = vmatprep.mubr.bf16.mxu0 %v11446_v58  ;;  %v10334_v58 = vld [vmem:[#allocation5 + $0x7d8] sm:$0xff]  ;;  %v10333_v55 = vld [vmem:[#allocation5 + $0x7d0] sm:$0xff] }
 0x910   :  { %10655 = vmatprep.subr.bf16.mxu0 %v10278_v32  ;;  %v10336_v32 = vld [vmem:[#allocation5 + $0x7e8] sm:$0xff] }
 0x913   :  { %10656 = vmatpush1.bf16.msra.mxu0 %v10277_v5  ;;  %v10335_v5 = vld [vmem:[#allocation5 + $0x7e0] sm:$0xff] }
 0x914   :  { %10657 = vmatprep.subr.bf16.mxu0 %v10280_v24  ;;  %v10338_v24 = vld [vmem:[#allocation5 + $0x7f8] sm:$0xff] }
 0x917   :  { %10658 = vmatpush1.bf16.msra.mxu0 %v10279_v53  ;;  %v10337_v53 = vld [vmem:[#allocation5 + $0x7f0] sm:$0xff] }
 0x918   :  { %10659 = vmatprep.subr.bf16.mxu0 %v10282_v19  ;;  %v11447_v19 = vpack.c.bf16 %v18487_v6, %v18487_v6  ;;  %v13003_v6 = vld [vmem:[%s18598_s6] sm:$0xff]  }
 0x91b   :  { %10660 = vmatpush1.bf16.msra.mxu0 %v10281_v15 }
 0x91c   :  { %10661 = vmatprep.subr.bf16.mxu0 %v10284_v45 }
 0x91f   :  { %10662 = vmatpush1.bf16.msra.mxu0 %v10283_v31 }
 0x920   :  { %10663 = vmatprep.subr.bf16.mxu0 %v10286_v59 }
 0x923   :  { %10664 = vmatpush1.bf16.msra.mxu0 %v10285_v47  ;;  %v10781_v47 = vld [vmem:[%s18593_s1] sm:$0xf] }
 0x924   :  { %10665 = vmatprep.subr.bf16.mxu0 %v10288_v38  ;;  %12244 = vmatmul.mubr.msk.bf16.vlgmr.msra.gmra.mrb[20].mxu1 %vm10783_vm3, %v10781_v47  ;;  %v13002_v38 = vld [vmem:[%s18598_s6 + $0x40] sm:$0xff]  }
 0x925   :  { %12219 = vmatprep.subr.bf16.mxu1 %v13002_v38  ;;  %v11383_v38 = vld [vmem:[#allocation7] ss:$0 sm:$0xff] }
 0x926   :  { %12220 = vmatpush3.bf16.msra.mxu1 %v13003_v6 }
 0x927   :  { %10666 = vmatpush1.bf16.msra.mxu0 %v10287_v16  ;;  %v13005_v16 = vld [vmem:[%s18598_s6 + $0x8] sm:$0xff]   ;;  %12221 = vmatprep.subr.bf16.mxu1 %v13004_v52 }
 0x928   :  { %10667 = vmatprep.subr.bf16.mxu0 %v10290_v14  ;;  %v13006_v14 = vld [vmem:[%s18598_s6 + $0x50] sm:$0xff]  }
 0x92a   :  { %12222 = vmatpush3.bf16.msra.mxu1 %v13005_v16 }
 0x92b   :  { %10668 = vmatpush1.bf16.msra.mxu0 %v10289_v36  ;;  %v13007_v36 = vld [vmem:[%s18598_s6 + $0x10] sm:$0xff]   ;;  %12223 = vmatprep.subr.bf16.mxu1 %v13006_v14 }
 0x92c   :  { %10669 = vmatprep.subr.bf16.mxu0 %v10292_v56  ;;  %v13008_v56 = vld [vmem:[%s18598_s6 + $0x58] sm:$0xff]  }
 0x92e   :  { %12224 = vmatpush3.bf16.msra.mxu1 %v13007_v36 }
 0x92f   :  { %10670 = vmatpush1.bf16.msra.mxu0 %v10291_v18  ;;  %v13009_v18 = vld [vmem:[%s18598_s6 + $0x18] sm:$0xff]   ;;  %12225 = vmatprep.subr.bf16.mxu1 %v13008_v56 }
 0x930   :  { %10671 = vmatprep.subr.bf16.mxu0 %v10294_v50  ;;  %v13010_v50 = vld [vmem:[%s18598_s6 + $0x60] sm:$0xff]  }
 0x932   :  { %12226 = vmatpush3.bf16.msra.mxu1 %v13009_v18 }
 0x933   :  { %10672 = vmatpush1.bf16.msra.mxu0 %v10293_v30  ;;  %v13011_v30 = vld [vmem:[%s18598_s6 + $0x20] sm:$0xff]   ;;  %12227 = vmatprep.subr.bf16.mxu1 %v13010_v50 }
 0x934   :  { %10673 = vmatprep.subr.bf16.mxu0 %v10296_v25  ;;  %v13012_v25 = vld [vmem:[%s18598_s6 + $0x68] sm:$0xff]  }
 0x936   :  { %12228 = vmatpush3.bf16.msra.mxu1 %v13011_v30 }
 0x937   :  { %10674 = vmatpush1.bf16.msra.mxu0 %v10295_v61  ;;  %v13013_v61 = vld [vmem:[%s18598_s6 + $0x28] sm:$0xff]   ;;  %12229 = vmatprep.subr.bf16.mxu1 %v13012_v25 }
 0x938   :  { %10675 = vmatprep.subr.bf16.mxu0 %v10298_v46  ;;  %v13014_v46 = vld [vmem:[%s18598_s6 + $0x70] sm:$0xff]  }
 0x93a   :  { %12230 = vmatpush3.bf16.msra.mxu1 %v13013_v61 }
 0x93b   :  { %10676 = vmatpush1.bf16.msra.mxu0 %v10297_v13  ;;  %v13015_v13 = vld [vmem:[%s18598_s6 + $0x30] sm:$0xff]   ;;  %12231 = vmatprep.subr.bf16.mxu1 %v13014_v46 }
 0x93c   :  { %10677 = vmatprep.subr.bf16.mxu0 %v10300_v48  ;;  %v13016_v48 = vld [vmem:[%s18598_s6 + $0x78] sm:$0xff]  }
 0x93e   :  { %12232 = vmatpush3.bf16.msra.mxu1 %v13015_v13 }
 0x93f   :  { %10678 = vmatpush1.bf16.msra.mxu0 %v10299_v1  ;;  %v13017_v1 = vld [vmem:[%s18598_s6 + $0x38] sm:$0xff]   ;;  %12233 = vmatprep.subr.bf16.mxu1 %v13016_v48 }
 0x940   :  { %10679 = vmatprep.subr.bf16.mxu0 %v10302_v40  ;;  %v10339_v40 = vld [vmem:[%s18597_s5] sm:$0x3] }
 0x942   :  { %12234 = vmatpush3.bf16.msra.mxu1 %v13017_v1 }
 0x943   :  { %10680 = vmatpush1.bf16.msra.mxu0 %v10301_v54  ;;  %v19862_v54 = vld [vmem:[#allocation76_spill] sm:$0xff] }
 0x944   :  { %10681 = vmatprep.subr.bf16.mxu0 %v10304_v7  ;;  %v10347_v7 = vsub.s32 1, %v19862_v54 }
 0x947   :  { %10682 = vmatpush1.bf16.msra.mxu0 %v10303_v20  ;;  %v19863_v20 = vld [vmem:[#allocation79_spill] sm:$0xff] }
 0x948   :  { %10683 = vmatprep.subr.bf16.mxu0 %v10306_v22  ;;  %v10344_v22 = vrot.slane %v10339_v40, %v19863_v20 }
 0x94b   :  { %10684 = vmatpush1.bf16.msra.mxu0 %v10305_v62  ;;  %v10348_v62 = vrot.slane %v10339_v40, %v10347_v7 }
 0x94c   :  { %10694 = vmatprep.subr.bf16.mxu0 %v10308_v60 }
 0x94e   :  { %10686 = vmatmul.mubr.bf16.vlgmr.msra.gmra.mrb[112].mxu0 %v11445_v21 }
 0x94f   :  { %10695 = vmatpush1.bf16.msra.mxu0 %v10307_v42  ;;  %10726 = vmatprep.mubr.bf16.mxu0 %v11448_v28 }
 0x950   :  { %10696 = vmatprep.subr.bf16.mxu0 %v10310_v8 }
 0x953   :  { %10697 = vmatpush1.bf16.msra.mxu0 %v10309_v34 }
 0x954   :  { %10698 = vmatprep.subr.bf16.mxu0 %v10312_v35 }
 0x957   :  { %10699 = vmatpush1.bf16.msra.mxu0 %v10311_v23 }
 0x958   :  { %10700 = vmatprep.subr.bf16.mxu0 %v10314_v41 }
 0x95b   :  { %10701 = vmatpush1.bf16.msra.mxu0 %v10313_v37 }
 0x95c   :  { %10702 = vmatprep.subr.bf16.mxu0 %v10316_v57 }
 0x95f   :  { %10703 = vmatpush1.bf16.msra.mxu0 %v10315_v27 }
 0x960   :  { %10704 = vmatprep.subr.bf16.mxu0 %v10318_v10 }
 0x963   :  { %10705 = vmatpush1.bf16.msra.mxu0 %v10317_v11 }
 0x964   :  { %10706 = vmatprep.subr.bf16.mxu0 %v10320_v9 }
 0x967   :  { %10707 = vmatpush1.bf16.msra.mxu0 %v10319_v51 }
 0x968   :  { %10708 = vmatprep.subr.bf16.mxu0 %v10322_v17 }
 0x96b   :  { %10709 = vmatpush1.bf16.msra.mxu0 %v10321_v33 }
 0x96c   :  { %10710 = vmatprep.subr.bf16.mxu0 %v10324_v0 }
 0x96f   :  { %10711 = vmatpush1.bf16.msra.mxu0 %v10323_v3 }
 0x970   :  { %10712 = vmatprep.subr.bf16.mxu0 %v10326_v44 }
 0x973   :  { %10713 = vmatpush1.bf16.msra.mxu0 %v10325_v26 }
 0x974   :  { %10714 = vmatprep.subr.bf16.mxu0 %v10328_v49 }
 0x977   :  { %10715 = vmatpush1.bf16.msra.mxu0 %v10327_v39 }
 0x978   :  { %10716 = vmatprep.subr.bf16.mxu0 %v10330_v29 }
 0x97b   :  { %10717 = vmatpush1.bf16.msra.mxu0 %v10329_v2 }
 0x97c   :  { %10718 = vmatprep.subr.bf16.mxu0 %v10332_v4 }
 0x97f   :  { %10719 = vmatpush1.bf16.msra.mxu0 %v10331_v43 }
 0x980   :  { %10720 = vmatprep.subr.bf16.mxu0 %v10334_v58 }
 0x983   :  { %10721 = vmatpush1.bf16.msra.mxu0 %v10333_v55  ;;  %v11381_v55 = vld [vmem:[%s18600_s8] ss:$0 sm:$0xff] }
 0x984   :  { %10722 = vmatprep.subr.bf16.mxu0 %v10336_v32 }
 0x987   :  { %10723 = vmatpush1.bf16.msra.mxu0 %v10335_v5 }
 0x988   :  { %10724 = vmatprep.subr.bf16.mxu0 %v10338_v24 }
 0x98b   :  { %10725 = vmatpush1.bf16.msra.mxu0 %v10337_v53 }
 0x98e   :  { %10727 = vmatmul.mubr.bf16.vlgmr.msra.gmra.mrb[112].mxu0 %v11447_v19 }
 0x9a7   :  { %v10441_v15 = vpop.f32.mrb[16].mxu1 }
 0x9a8   :  { %v10443_v45 = vpop.f32.mrb[17].mxu1  ;;  %v10442_v60 = vadd.f32 %v10441_v15, %v10344_v22 }
 0x9a9   :  { %v10445_v31 = vpop.f32.mrb[18].mxu1  ;;  %v10444_v21 = vadd.f32 %v10443_v45, %v10348_v62 }
 0x9aa   :  { %v10446_v59 = vpop.f32.mrb[19].mxu1  ;;  %v11382_v31 = vld [vmem:[%s18601_s9] ss:$0 sm:$0xff] }
 0x9f7   :  { %v10825_v44 = vpop.f32.mrb[20].mxu1 }
 0x9f8   :  { %v12245_v26 = vpop.f32.mrb[21].mxu1 }
 0x9f9   :  { %v10828_v49 = vpop.f32.mrb[22].mxu1 }
 0x9fa   :  { %v12246_v39 = vpop.f32.mrb[23].mxu1 }
 0xa61   :  { %v10728_v28 = vpop.f32.mrb[112].mxu0 }
 0xa62   :  { %v12264_v42 = vadd.f32 %v10728_v28, %v10442_v60  ;;  %v10730_v8 = vpop.f32.mrb[113].mxu0 }
 0xa63   :  { %v12266_v34 = vadd.f32 %v10730_v8, %v10444_v21  ;;  %v10732_v35 = vpop.f32.mrb[114].mxu0 }
 0xa64   :  { %v10735_v23 = vsub.f32 0.0, %v12264_v42  ;;  %v10733_v41 = vpop.f32.mrb[115].mxu0 }
 0xa65   :  { %v10736_v37 = vsub.f32 0.0, %v12266_v34 }
 0xa66   :  { %v10737_v57 = vmul.f32 1.442695, %v10735_v23 }
 0xa67   :  { %v10739_v27 = vmul.f32 1.442695, %v10736_v37 }
 0xa68   :  { %13018 = vpow2.f32 %v10737_v57 }
 0xa69   :  { %13020 = vpow2.f32 %v10739_v27 }
 0xa72   :  { %v13019_v10 = vpop.eup %13018 }
 0xa73   :  { %v13021_v63 = vpop.eup %13020  ;;  %v10741_v11 = vadd.f32 1.0, %v13019_v10 }
 0xa74   :  { %v10742_v12 = vadd.f32 1.0, %v13021_v63 }
 0xa75   :  { %13022 = vrcp.f32 %v10741_v11 }
 0xa76   :  { %13024 = vrcp.f32 %v10742_v12 }
 0xa7f   :  { %v13023_v9 = vpop.eup %13022 }
 0xa80   :  { %v13025_v51 = vpop.eup %13024  ;;  %v10745_v17 = vmul.f32 %v13023_v9, %v12264_v42 }
 0xa81   :  { %v10746_v33 = vmul.f32 %v13025_v51, %v12266_v34 }
 0xa82   :  { %v10747_v3 = vpack.c.bf16 %v10745_v17, %v10745_v17 }
 0xa83   :  { %v10748_v0 = vpack.c.bf16 %v10746_v33, %v10746_v33 }
 0xa85   :  { %10959 = vmatprep.mubr.bf16.mxu1 %v10748_v0 }
 0xa86   :  { %10960 = vmatmul.mubr.bf16.vlgmr.msra.gmra.mrb[24].mxu1 %v10747_v3 }
 0xb59   :  { %v12235_v29 = vpop.f32.mrb[24].mxu1 }
 0xb5a   :  { %v12236_v2 = vpop.f32.mrb[25].mxu1 }
 0xb5b   :  { %v12237_v4 = vadd.f32 %v12236_v2, %v12235_v29  ;;  %v12238_v43 = vpop.f32.mrb[26].mxu1 }
 0xb5c   :  { %v12239_v58 = vpop.f32.mrb[27].mxu1 }
 0xb5d   :  { %v10962_v32 = vadd.f32 %v12237_v4, %v10825_v44 }
 0xb5f   :  { %v10974_v5 = vadd.f32 %v11381_v55, %v10962_v32 }
 0xb61   :  { %v10975_v24 = vsub.f32 0.0, %v10974_v5 }
 0xb63   :  { %v10976_v53 = vmul.f32 1.442695, %v10975_v24 }
 0xb65   :  { %13026 = vpow2.f32 %v10976_v53 }
 0xb6f   :  { %v13027_v19 = vpop.eup %13026 }
 0xb70   :  { %v10978_v15 = vadd.f32 1.0, %v13027_v19 }
 0xb72   :  { %13028 = vrcp.f32 %v10978_v15 }
 0xb7c   :  { %v13029_v45 = vpop.eup %13028 }
 0xb7d   :  { %v10980_v59 = vmul.f32 %v13029_v45, %v10974_v5 }
 0xb7f   :  { %v10988_v47 = vmul.f32 %v11382_v31, %v10980_v59 }
 0xb81   :  { %10989 = vadd.xlane.f32.xlu0 %v10988_v47 }
 0xc0e   :  { %v10990_v6 = vpop.xlane.xlu0 %10989 }
 0xc0f   :  { %v10998_v52 = vadd.f32 %v11383_v38, %v10990_v6 }
 0xc11   :  { %11000 = vst.msk [vmem:[%s18603_s11] sm:$0xff] %vm10999_vm4, %v10998_v52 }
 0xc12   :  { %11005 = vsyncmov [#allocation6] }
 0xc15   :  { %s11006_s3 = vpop.sfrf %11005 }
 0xc16   :  { %p11384_p0 = scmp.ne.s32.totalorder %s11006_s3, 0 }
 0xc18   :  { %11010 = shalt.err (%p11384_p0)  }
 0xc19   :  { %11012 = vsyncmov [#allocation6 + $0x1] }
 0xc1c   :  { %s11013_s15 = vpop.sfrf %11012 }
 0xc1d   :  { %p11385_p1 = scmp.ne.s32.totalorder %s11013_s15, 0 }
 0xc1f   :  { %11017 = shalt.err (%p11385_p1)  }

</bundles_post_ra>
